<compile_context>
chip_gen: v7x
topology: tpu7x:2x2x1
jax: 0.10.0
libtpu: 0.0.40
codegen_flags: <defaults>
</compile_context>

<pallas_src>
import functools

import jax
import jax.numpy as jnp
from jax.experimental import pallas as pl
from jax.experimental.pallas import tpu as pltpu


_HIDDEN = (2048, 1024, 512, 256, 128)
_LANE = 128      # TPU lane width (last dim)
_SUBLANE = 8     # f32 sublane count (second-to-last dim)


def _round_up(n, m):
    return ((n + m - 1) // m) * m


# ----------------------------- fused kernel --------------------------------


def _encoder_kernel(a_ref, x_ref, bias_ref, w1, w2, w3, w4, w5, w6, o_ref):
    """All six Linear(+PReLU/Sigmoid) layers fused in a single kernel.

    a_ref    : SMEM (5,) f32          -- per-layer PReLU slopes
    x_ref    : VMEM (M, K0) f32       -- input activations (pre-padded)
    bias_ref : VMEM (1, sum N_i) f32  -- all six biases packed lane-wise
    w*       : VMEM (Kin, Kout) bf16  -- weights in (in, out) layout
    o_ref    : VMEM (M, N_pad) f32    -- lane-dense padded output
    """
    ws = (w1, w2, w3, w4, w5, w6)

    def linear(h, w_ref, b_off, n):
        # bf16 x bf16 -> f32 accumulate: native MXU path on v5e/v6e/v7x.
        z = jnp.dot(h.astype(jnp.bfloat16), w_ref[...],
                    preferred_element_type=jnp.float32)
        # static lane-slice of the packed bias slab; (1, n) broadcasts over rows
        return z + bias_ref[:, b_off:b_off + n]

    h = x_ref[...]
    off = 0
    for i in range(5):
        n = ws[i].shape[1]
        z = linear(h, ws[i], off, n)
        off += n
        a = a_ref[i]                              # PReLU slope (scalar, SMEM)
        h = jnp.where(z > 0.0, z, a * z)

    n6 = w6.shape[1]
    o_ref[...] = jax.nn.sigmoid(linear(h, w6, off, n6)).astype(o_ref.dtype)


# ----------------------------- parameter prep -------------------------------


def init_encoder_params(key, input_size, output_size):
    """PyTorch-default Linear init + PReLU(0.25); logical (unpadded) f32 params."""
    dims = (input_size,) + _HIDDEN + (output_size,)
    weights, biases = [], []
    for i in range(len(dims) - 1):
        fan_in, fan_out = dims[i], dims[i + 1]
        key, kw, kb = jax.random.split(key, 3)
        bound = 1.0 / jnp.sqrt(fan_in)
        # stored transposed vs. PyTorch: (in_features, out_features)
        w = jax.random.uniform(kw, (fan_in, fan_out), jnp.float32, -bound, bound)
        b = jax.random.uniform(kb, (fan_out,), jnp.float32, -bound, bound)
        weights.append(w)
        biases.append(b)
    prelu = jnp.full((len(dims) - 2,), 0.25, jnp.float32)   # nn.PReLU() default
    return {"weights": weights, "biases": biases, "prelu": prelu}


def prepare_encoder_params(params):
    """One-time pad + pack (outside the per-call path).

    * W1 input dim padded to a multiple of 128 lanes.
    * W6/b6 output dim padded to a multiple of 128 lanes (lane-dense store).
    * Weights cast to bf16 (resident MXU dtype).
    * All six biases concatenated into one (1, sum N_i) f32 slab -> single DMA.
    """
    weights, biases = params["weights"], params["biases"]
    n_layers = len(weights)
    k_in = weights[0].shape[0]
    k_pad = _round_up(k_in, _LANE)
    n_out = weights[-1].shape[1]
    n_pad = _round_up(n_out, _LANE)

    padded_w, padded_b = [], []
    for i, (w, b) in enumerate(zip(weights, biases)):
        kin, nout = w.shape
        kp = k_pad if i == 0 else kin
        npd = n_pad if i == n_layers - 1 else nout
        if (kp, npd) != (kin, nout):
            w = jnp.pad(w, ((0, kp - kin), (0, npd - nout)))
            b = jnp.pad(b, (0, npd - nout))
        padded_w.append(w.astype(jnp.bfloat16))
        padded_b.append(b.astype(jnp.float32))
    bias_slab = jnp.concatenate(padded_b)[None, :]          # (1, sum N_i)

    return {
        "weights": tuple(padded_w),
        "bias_slab": bias_slab,
        "prelu": params["prelu"].astype(jnp.float32),
    }


# ----------------------------- wrapper ---------------------------------------


@functools.partial(jax.jit, static_argnames=("output_size",))
def encoder_forward(prepared, x, *, output_size):
    """Full Encoder forward as one fused Pallas kernel call."""
    weights = prepared["weights"]        # 6 x bf16, already padded
    bias_slab = prepared["bias_slab"]    # (1, sum N_i) f32
    slopes = prepared["prelu"]           # (5,) f32

    M, K_in = x.shape
    Mp = _round_up(M, _SUBLANE)
    K_pad = weights[0].shape[0]
    N_pad = weights[-1].shape[1]

    # Only the runtime input may still need padding (no-op when shapes align).
    if (Mp, K_pad) != (M, K_in):
        x = jnp.pad(x, ((0, Mp - M), (0, K_pad - K_in)))

    def full2d(shape):
        # whole-array, VMEM-resident block; grid=(1,) => single-buffer is enough
        return pl.BlockSpec(shape, lambda i: (0, 0),
                            pipeline_mode=pl.Buffered(1))

    in_specs = [pl.BlockSpec(memory_space=pltpu.MemorySpace.SMEM),   # slopes
                full2d((Mp, K_pad)),                                 # x
                full2d(bias_slab.shape)]                             # biases
    in_specs += [full2d(w.shape) for w in weights]                   # 6 weights

    out = pl.pallas_call(
        _encoder_kernel,
        out_shape=jax.ShapeDtypeStruct((Mp, N_pad), jnp.float32),
        grid=(1,),
        in_specs=in_specs,
        out_specs=full2d((Mp, N_pad)),
        compiler_params=pltpu.CompilerParams(
            dimension_semantics=("arbitrary",),
            # ~7 MB actually needed (single-buffered bf16 weights); 24 MB gives
            # ample margin on every chip (v5e/v6e 128 MiB, v7x 64 MiB physical).
            vmem_limit_bytes=24 * 1024 * 1024,
        ),
    )(slopes, x, bias_slab, *weights)

    return out[:M, :output_size]


# ----------------------------- reference -------------------------------------


def encoder_reference(params, x):
    """Pure-JAX reference (bf16 weights / f32 accumulation, same as kernel)."""
    h = x
    n = len(params["weights"])
    for i, (w, b) in enumerate(zip(params["weights"], params["biases"])):
        z = jnp.dot(h.astype(jnp.bfloat16), w.astype(jnp.bfloat16),
                    preferred_element_type=jnp.float32) + b
        if i < n - 1:
            a = params["prelu"][i]
            h = jnp.where(z > 0.0, z, a * z)
        else:
            h = jax.nn.sigmoid(z)
    return h


# ----------------------------- main ------------------------------------------


if __name__ == "__main__":
    input_size = 256
    output_size = 64
    batch = 8

    key = jax.random.PRNGKey(0)
    kx, kp = jax.random.split(key)
    x = jax.random.normal(kx, (batch, input_size), jnp.float32)

    params = init_encoder_params(kp, input_size, output_size)
    prepared = prepare_encoder_params(params)        # one-time pad + pack

    y = encoder_forward(prepared, x, output_size=output_size)
    jax.block_until_ready(y)

    y_ref = encoder_reference(params, x)
    assert y.shape == (batch, output_size), y.shape
    err = float(jnp.max(jnp.abs(y - y_ref)))
    assert err < 1e-2, f"max abs err {err}"

    print("KERNEL_OK")
</pallas_src>

<mosaic_0001>
module attributes {stable_mosaic.version = 11 : i64} {
  func.func @_encoder_kernel(%arg0: i32, %arg1: memref<5xf32, #tpu.memory_space<smem>>, %arg2: memref<8x256xf32, #tpu.memory_space<vmem>>, %arg3: memref<1x4096xf32, #tpu.memory_space<vmem>>, %arg4: memref<256x2048xbf16, #tpu.memory_space<vmem>>, %arg5: memref<2048x1024xbf16, #tpu.memory_space<vmem>>, %arg6: memref<1024x512xbf16, #tpu.memory_space<vmem>>, %arg7: memref<512x256xbf16, #tpu.memory_space<vmem>>, %arg8: memref<256x128xbf16, #tpu.memory_space<vmem>>, %arg9: memref<128x128xbf16, #tpu.memory_space<vmem>>, %arg10: memref<8x128xf32, #tpu.memory_space<vmem>>) attributes {dimension_semantics = [#tpu.dimension_semantics<arbitrary>], iteration_bounds = array<i64: 1>, scalar_prefetch = 0 : i64, scratch_operands = 0 : i64, tpu.core_type = #tpu.core_type<tc>, window_params = [{transform_indices = @transform_0, window_bounds = array<i64: 5>}, {pipeline_mode = #tpu.pipeline_mode<synchronous>, transform_indices = @transform_1, window_bounds = array<i64: 8, 256>}, {pipeline_mode = #tpu.pipeline_mode<synchronous>, transform_indices = @transform_2, window_bounds = array<i64: 1, 4096>}, {pipeline_mode = #tpu.pipeline_mode<synchronous>, transform_indices = @transform_3, window_bounds = array<i64: 256, 2048>}, {pipeline_mode = #tpu.pipeline_mode<synchronous>, transform_indices = @transform_4, window_bounds = array<i64: 2048, 1024>}, {pipeline_mode = #tpu.pipeline_mode<synchronous>, transform_indices = @transform_5, window_bounds = array<i64: 1024, 512>}, {pipeline_mode = #tpu.pipeline_mode<synchronous>, transform_indices = @transform_6, window_bounds = array<i64: 512, 256>}, {pipeline_mode = #tpu.pipeline_mode<synchronous>, transform_indices = @transform_7, window_bounds = array<i64: 256, 128>}, {pipeline_mode = #tpu.pipeline_mode<synchronous>, transform_indices = @transform_8, window_bounds = array<i64: 128, 128>}, {pipeline_mode = #tpu.pipeline_mode<synchronous>, transform_indices = @transform_9, window_bounds = array<i64: 8, 128>}]} {
    %c0 = arith.constant 0 : index
    %c0_0 = arith.constant 0 : index
    %0 = vector.load %arg2[%c0, %c0_0] : memref<8x256xf32, #tpu.memory_space<vmem>>, vector<8x256xf32>
    %1 = arith.truncf %0 : vector<8x256xf32> to vector<8x256xbf16>
    %c0_1 = arith.constant 0 : index
    %c0_2 = arith.constant 0 : index
    %2 = vector.load %arg4[%c0_1, %c0_2] : memref<256x2048xbf16, #tpu.memory_space<vmem>>, vector<256x2048xbf16>
    %cst = arith.constant dense<0.000000e+00> : vector<8x2048xf32>
    %3 = tpu.matmul %1, %2, %cst {dimension_numbers = #tpu.dot_dimension_numbers<[1], [0], [0], [1], [0, 0, 1, 1], [], []>} : vector<8x256xbf16>, vector<256x2048xbf16>, vector<8x2048xf32> -> vector<8x2048xf32>
    %c0_3 = arith.constant 0 : index
    %c0_4 = arith.constant 0 : index
    %4 = vector.load %arg3[%c0_3, %c0_4] : memref<1x4096xf32, #tpu.memory_space<vmem>>, vector<1x2048xf32>
    %5 = vector.broadcast %4 : vector<1x2048xf32> to vector<8x2048xf32>
    %6 = arith.addf %3, %5 : vector<8x2048xf32>
    %c0_5 = arith.constant 0 : index
    %7 = memref.load %arg1[%c0_5] : memref<5xf32, #tpu.memory_space<smem>>
    %cst_6 = arith.constant 0.000000e+00 : f32
    %8 = vector.broadcast %cst_6 : f32 to vector<8x2048xf32>
    %9 = arith.cmpf ogt, %6, %8 : vector<8x2048xf32>
    %10 = vector.broadcast %7 : f32 to vector<8x2048xf32>
    %11 = arith.mulf %10, %6 : vector<8x2048xf32>
    %12 = arith.select %9, %6, %11 : vector<8x2048xi1>, vector<8x2048xf32>
    %13 = arith.truncf %12 : vector<8x2048xf32> to vector<8x2048xbf16>
    %c0_7 = arith.constant 0 : index
    %c0_8 = arith.constant 0 : index
    %14 = vector.load %arg5[%c0_7, %c0_8] : memref<2048x1024xbf16, #tpu.memory_space<vmem>>, vector<2048x1024xbf16>
    %cst_9 = arith.constant dense<0.000000e+00> : vector<8x1024xf32>
    %15 = tpu.matmul %13, %14, %cst_9 {dimension_numbers = #tpu.dot_dimension_numbers<[1], [0], [0], [1], [0, 0, 1, 1], [], []>} : vector<8x2048xbf16>, vector<2048x1024xbf16>, vector<8x1024xf32> -> vector<8x1024xf32>
    %c0_10 = arith.constant 0 : index
    %c2048 = arith.constant 2048 : index
    %16 = vector.load %arg3[%c0_10, %c2048] : memref<1x4096xf32, #tpu.memory_space<vmem>>, vector<1x1024xf32>
    %17 = vector.broadcast %16 : vector<1x1024xf32> to vector<8x1024xf32>
    %18 = arith.addf %15, %17 : vector<8x1024xf32>
    %c1 = arith.constant 1 : index
    %19 = memref.load %arg1[%c1] : memref<5xf32, #tpu.memory_space<smem>>
    %cst_11 = arith.constant 0.000000e+00 : f32
    %20 = vector.broadcast %cst_11 : f32 to vector<8x1024xf32>
    %21 = arith.cmpf ogt, %18, %20 : vector<8x1024xf32>
    %22 = vector.broadcast %19 : f32 to vector<8x1024xf32>
    %23 = arith.mulf %22, %18 : vector<8x1024xf32>
    %24 = arith.select %21, %18, %23 : vector<8x1024xi1>, vector<8x1024xf32>
    %25 = arith.truncf %24 : vector<8x1024xf32> to vector<8x1024xbf16>
    %c0_12 = arith.constant 0 : index
    %c0_13 = arith.constant 0 : index
    %26 = vector.load %arg6[%c0_12, %c0_13] : memref<1024x512xbf16, #tpu.memory_space<vmem>>, vector<1024x512xbf16>
    %cst_14 = arith.constant dense<0.000000e+00> : vector<8x512xf32>
    %27 = tpu.matmul %25, %26, %cst_14 {dimension_numbers = #tpu.dot_dimension_numbers<[1], [0], [0], [1], [0, 0, 1, 1], [], []>} : vector<8x1024xbf16>, vector<1024x512xbf16>, vector<8x512xf32> -> vector<8x512xf32>
    %c0_15 = arith.constant 0 : index
    %c3072 = arith.constant 3072 : index
    %28 = vector.load %arg3[%c0_15, %c3072] : memref<1x4096xf32, #tpu.memory_space<vmem>>, vector<1x512xf32>
    %29 = vector.broadcast %28 : vector<1x512xf32> to vector<8x512xf32>
    %30 = arith.addf %27, %29 : vector<8x512xf32>
    %c2 = arith.constant 2 : index
    %31 = memref.load %arg1[%c2] : memref<5xf32, #tpu.memory_space<smem>>
    %cst_16 = arith.constant 0.000000e+00 : f32
    %32 = vector.broadcast %cst_16 : f32 to vector<8x512xf32>
    %33 = arith.cmpf ogt, %30, %32 : vector<8x512xf32>
    %34 = vector.broadcast %31 : f32 to vector<8x512xf32>
    %35 = arith.mulf %34, %30 : vector<8x512xf32>
    %36 = arith.select %33, %30, %35 : vector<8x512xi1>, vector<8x512xf32>
    %37 = arith.truncf %36 : vector<8x512xf32> to vector<8x512xbf16>
    %c0_17 = arith.constant 0 : index
    %c0_18 = arith.constant 0 : index
    %38 = vector.load %arg7[%c0_17, %c0_18] : memref<512x256xbf16, #tpu.memory_space<vmem>>, vector<512x256xbf16>
    %cst_19 = arith.constant dense<0.000000e+00> : vector<8x256xf32>
    %39 = tpu.matmul %37, %38, %cst_19 {dimension_numbers = #tpu.dot_dimension_numbers<[1], [0], [0], [1], [0, 0, 1, 1], [], []>} : vector<8x512xbf16>, vector<512x256xbf16>, vector<8x256xf32> -> vector<8x256xf32>
    %c0_20 = arith.constant 0 : index
    %c3584 = arith.constant 3584 : index
    %40 = vector.load %arg3[%c0_20, %c3584] : memref<1x4096xf32, #tpu.memory_space<vmem>>, vector<1x256xf32>
    %41 = vector.broadcast %40 : vector<1x256xf32> to vector<8x256xf32>
    %42 = arith.addf %39, %41 : vector<8x256xf32>
    %c3 = arith.constant 3 : index
    %43 = memref.load %arg1[%c3] : memref<5xf32, #tpu.memory_space<smem>>
    %cst_21 = arith.constant 0.000000e+00 : f32
    %44 = vector.broadcast %cst_21 : f32 to vector<8x256xf32>
    %45 = arith.cmpf ogt, %42, %44 : vector<8x256xf32>
    %46 = vector.broadcast %43 : f32 to vector<8x256xf32>
    %47 = arith.mulf %46, %42 : vector<8x256xf32>
    %48 = arith.select %45, %42, %47 : vector<8x256xi1>, vector<8x256xf32>
    %49 = arith.truncf %48 : vector<8x256xf32> to vector<8x256xbf16>
    %c0_22 = arith.constant 0 : index
    %c0_23 = arith.constant 0 : index
    %50 = vector.load %arg8[%c0_22, %c0_23] : memref<256x128xbf16, #tpu.memory_space<vmem>>, vector<256x128xbf16>
    %cst_24 = arith.constant dense<0.000000e+00> : vector<8x128xf32>
    %51 = tpu.matmul %49, %50, %cst_24 {dimension_numbers = #tpu.dot_dimension_numbers<[1], [0], [0], [1], [0, 0, 1, 1], [], []>} : vector<8x256xbf16>, vector<256x128xbf16>, vector<8x128xf32> -> vector<8x128xf32>
    %c0_25 = arith.constant 0 : index
    %c3840 = arith.constant 3840 : index
    %52 = vector.load %arg3[%c0_25, %c3840] : memref<1x4096xf32, #tpu.memory_space<vmem>>, vector<1x128xf32>
    %53 = vector.broadcast %52 : vector<1x128xf32> to vector<8x128xf32>
    %54 = arith.addf %51, %53 : vector<8x128xf32>
    %c4 = arith.constant 4 : index
    %55 = memref.load %arg1[%c4] : memref<5xf32, #tpu.memory_space<smem>>
    %cst_26 = arith.constant 0.000000e+00 : f32
    %56 = vector.broadcast %cst_26 : f32 to vector<8x128xf32>
    %57 = arith.cmpf ogt, %54, %56 : vector<8x128xf32>
    %58 = vector.broadcast %55 : f32 to vector<8x128xf32>
    %59 = arith.mulf %58, %54 : vector<8x128xf32>
    %60 = arith.select %57, %54, %59 : vector<8x128xi1>, vector<8x128xf32>
    %61 = arith.truncf %60 : vector<8x128xf32> to vector<8x128xbf16>
    %c0_27 = arith.constant 0 : index
    %c0_28 = arith.constant 0 : index
    %62 = vector.load %arg9[%c0_27, %c0_28] : memref<128x128xbf16, #tpu.memory_space<vmem>>, vector<128x128xbf16>
    %cst_29 = arith.constant dense<0.000000e+00> : vector<8x128xf32>
    %63 = tpu.matmul %61, %62, %cst_29 {dimension_numbers = #tpu.dot_dimension_numbers<[1], [0], [0], [1], [0, 0, 1, 1], [], []>} : vector<8x128xbf16>, vector<128x128xbf16>, vector<8x128xf32> -> vector<8x128xf32>
    %c0_30 = arith.constant 0 : index
    %c3968 = arith.constant 3968 : index
    %64 = vector.load %arg3[%c0_30, %c3968] : memref<1x4096xf32, #tpu.memory_space<vmem>>, vector<1x128xf32>
    %65 = vector.broadcast %64 : vector<1x128xf32> to vector<8x128xf32>
    %66 = arith.addf %63, %65 : vector<8x128xf32>
    %67 = arith.negf %66 : vector<8x128xf32>
    %68 = math.exp %67 : vector<8x128xf32>
    %cst_31 = arith.constant 1.000000e+00 : f32
    %69 = vector.broadcast %cst_31 : f32 to vector<8x128xf32>
    %70 = arith.addf %69, %68 : vector<8x128xf32>
    %71 = arith.divf %69, %70 : vector<8x128xf32>
    %c0_32 = arith.constant 0 : index
    %c0_33 = arith.constant 0 : index
    %72 = vector.load %arg10[%c0_32, %c0_33] : memref<8x128xf32, #tpu.memory_space<vmem>>, vector<8x128xf32>
    tpu.vector_store %arg10[%c0_32, %c0_33], %71 {strides = array<i32>} : memref<8x128xf32, #tpu.memory_space<vmem>>, vector<8x128xf32>,
    return
  }
  func.func @transform_0(%arg0: i32) -> i32 {
    %c0_i32 = arith.constant 0 : i32
    %c0_i32_0 = arith.constant 0 : i32
    return %c0_i32 : i32
  }
  func.func @transform_1(%arg0: i32) -> (i32, i32) {
    %c0_i32 = arith.constant 0 : i32
    %c0_i32_0 = arith.constant 0 : i32
    %c0_i32_1 = arith.constant 0 : i32
    return %c0_i32, %c0_i32_0 : i32, i32
  }
  func.func @transform_2(%arg0: i32) -> (i32, i32) {
    %c0_i32 = arith.constant 0 : i32
    %c0_i32_0 = arith.constant 0 : i32
    %c0_i32_1 = arith.constant 0 : i32
    return %c0_i32, %c0_i32_0 : i32, i32
  }
  func.func @transform_3(%arg0: i32) -> (i32, i32) {
    %c0_i32 = arith.constant 0 : i32
    %c0_i32_0 = arith.constant 0 : i32
    %c0_i32_1 = arith.constant 0 : i32
    return %c0_i32, %c0_i32_0 : i32, i32
  }
  func.func @transform_4(%arg0: i32) -> (i32, i32) {
    %c0_i32 = arith.constant 0 : i32
    %c0_i32_0 = arith.constant 0 : i32
    %c0_i32_1 = arith.constant 0 : i32
    return %c0_i32, %c0_i32_0 : i32, i32
  }
  func.func @transform_5(%arg0: i32) -> (i32, i32) {
    %c0_i32 = arith.constant 0 : i32
    %c0_i32_0 = arith.constant 0 : i32
    %c0_i32_1 = arith.constant 0 : i32
    return %c0_i32, %c0_i32_0 : i32, i32
  }
  func.func @transform_6(%arg0: i32) -> (i32, i32) {
    %c0_i32 = arith.constant 0 : i32
    %c0_i32_0 = arith.constant 0 : i32
    %c0_i32_1 = arith.constant 0 : i32
    return %c0_i32, %c0_i32_0 : i32, i32
  }
  func.func @transform_7(%arg0: i32) -> (i32, i32) {
    %c0_i32 = arith.constant 0 : i32
    %c0_i32_0 = arith.constant 0 : i32
    %c0_i32_1 = arith.constant 0 : i32
    return %c0_i32, %c0_i32_0 : i32, i32
  }
  func.func @transform_8(%arg0: i32) -> (i32, i32) {
    %c0_i32 = arith.constant 0 : i32
    %c0_i32_0 = arith.constant 0 : i32
    %c0_i32_1 = arith.constant 0 : i32
    return %c0_i32, %c0_i32_0 : i32, i32
  }
  func.func @transform_9(%arg0: i32) -> (i32, i32) {
    %c0_i32 = arith.constant 0 : i32
    %c0_i32_0 = arith.constant 0 : i32
    %c0_i32_1 = arith.constant 0 : i32
    return %c0_i32, %c0_i32_0 : i32, i32
  }
}

</mosaic_0001>

<bundles_post_ra>
// kernel: encoder_forward.1
= control target key start
LH: loop header
LB: loop body
LE: loop exit
PB: predicated region body
PF: predicated region fallthrough
CT: control target
= control target key end

     0   :  { %14 = vsyncpa [#allocation5], 0  ;;  %s15508_s0 = inlined_call_operand.hbm [shape: f32[5], index: 0, kind: input, shape index: {}]   ;;  %s15509_s1 = inlined_call_operand.hbm [shape: f32[8,256], index: 1, kind: input, shape index: {}]   ;;  %s15510_s2 = inlined_call_operand.hbm [shape: f32[1,4096], index: 2, kind: input, shape index: {}]   ;;  %s15511_s3 = inlined_call_operand.hbm [shape: bf16[256,2048], index: 3, kind: input, shape index: {}]   ;;  %s15512_s4 = inlined_call_operand.hbm [shape: bf16[2048,1024], index: 4, kind: input, shape index: {}]   ;;  %s15513_s5 = inlined_call_operand.hbm [shape: bf16[1024,512], index: 5, kind: input, shape index: {}]   ;;  %s15514_s6 = inlined_call_operand.hbm [shape: bf16[512,256], index: 6, kind: input, shape index: {}]   ;;  %s15515_s7 = inlined_call_operand.hbm [shape: bf16[256,128], index: 7, kind: input, shape index: {}]   ;;  %s15516_s8 = inlined_call_operand.hbm [shape: bf16[128,128], index: 8, kind: input, shape index: {}]   ;;  %s15517_s9 = inlined_call_operand.hbm [shape: f32[8,128], index: 9, kind: output, shape index: {}]  }
   0x1   :  { %15 = vsyncpa [#allocation3], 0 }
   0x2   :  { %16 = vsyncpa [#allocation8], 0 }
   0x3   :  { %17 = vsyncpa [#allocation11], 0 }
   0x4   :  { %18 = vsyncpa [#allocation14], 0 }
   0x5   :  { %19 = vsyncpa [#allocation17], 0 }
   0x6   :  { %20 = vsyncpa [#allocation4], 0  ;;  %s15001_s30 = smov [#allocation7]   ;;  %s15002_s11 = smov [#allocation10]  }
   0x7   :  { %s45_s10 = sshll.u32 %s15001_s30, 4  ;;  %s66_s12 = sshll.u32 %s15002_s11, 4  ;;  %s46_s10 = int_to_ptr.vmem [resolvable:$true] %s45_s10  ;;  %s15072_s12 = int_to_ptr.vmem [resolvable:$true] %s66_s12 }
   0x8   :  { %s14779_s15 = scalar_lea.hbm %s15510_s2, 512 }
   0x9   :  { %p14780_p0 = scmp.ne.s32.totalorder %s15510_s2, %s14779_s15  ;;  %p14783_p1 = scmp.lt.u32.totalorder %s14779_s15, %s15510_s2 }
   0xb   :  { %p14785_p2 = pnand %p14783_p1, %p14780_p0 }
   0xd   :  { %14788 = shalt.err (!%p14785_p2)
}
   0xe   :  { %s14789_s20 = scalar_lea.vmem %s46_s10, 512  ;;  %p14794_p4 = scmp.lt.s32.totalorder %s46_s10, %s46_s10 }
   0xf   :  { %p14790_p3 = scmp.ne.s32.totalorder %s46_s10, %s14789_s20  ;;  %p14795_p5 = scmp.lt.s32.totalorder %s14789_s20, %s14789_s20 }
  0x11   :  { %p14796_p6 = por %p14795_p5, %p14794_p4 }
  0x13   :  { %p14797_p7 = pnand %p14796_p6, %p14790_p3 }
  0x15   :  { %14800 = shalt.err (!%p14797_p7)
}
  0x16   :  { %48 = dma.hbm_to_vmem [thread:$0]  %s15510_s2, 512, %s46_s10, [#allocation8]  }
  0x17   :  { %s14801_s25 = scalar_lea.hbm %s15512_s4, 131072 }
  0x18   :  { %p14802_p8 = scmp.ne.s32.totalorder %s15512_s4, %s14801_s25  ;;  %p14805_p9 = scmp.lt.u32.totalorder %s14801_s25, %s15512_s4 }
  0x1a   :  { %p14807_p10 = pnand %p14805_p9, %p14802_p8 }
  0x1c   :  { %14810 = shalt.err (!%p14807_p10)
}
  0x1d   :  { %s14811_s30 = scalar_lea.vmem %s15072_s12, 131072  ;;  %p14816_p12 = scmp.lt.s32.totalorder %s15072_s12, %s15072_s12 }
  0x1e   :  { %p14812_p11 = scmp.ne.s32.totalorder %s15072_s12, %s14811_s30  ;;  %p14817_p13 = scmp.lt.s32.totalorder %s14811_s30, %s14811_s30 }
  0x20   :  { %p14818_p0 = por %p14817_p13, %p14816_p12 }
  0x22   :  { %p14819_p1 = pnand %p14818_p0, %p14812_p11 }
  0x24   :  { %14822 = shalt.err (!%p14819_p1)
}
  0x25   :  { %s15003_s2 = smov 512   ;;  %s15004_s10 = smov 32  }
  0x26   :  { %72 = dma.hbm_to_vmem [thread:$0]  %s15512_s4, 131072, %s15072_s12, [#allocation11], %s15003_s2, %s15003_s2, %s15004_s10  }
  0x27   :  { %s15005_s14 = smov [#allocation13]   ;;  %s14823_s18 = scalar_lea.hbm %s15514_s6, 8192 }
  0x28   :  { %s90_s15 = sshll.u32 %s15005_s14, 4  ;;  %p14824_p2 = scmp.ne.s32.totalorder %s15514_s6, %s14823_s18  ;;  %s91_s15 = int_to_ptr.vmem [resolvable:$true] %s90_s15 }
  0x29   :  { %p14827_p3 = scmp.lt.u32.totalorder %s14823_s18, %s15514_s6 }
  0x2b   :  { %p14829_p4 = pnand %p14827_p3, %p14824_p2 }
  0x2d   :  { %14832 = shalt.err (!%p14829_p4)
}
  0x2e   :  { %s14833_s23 = scalar_lea.vmem %s91_s15, 8192  ;;  %p14838_p6 = scmp.lt.s32.totalorder %s91_s15, %s91_s15 }
  0x2f   :  { %p14834_p5 = scmp.ne.s32.totalorder %s91_s15, %s14833_s23  ;;  %p14839_p7 = scmp.lt.s32.totalorder %s14833_s23, %s14833_s23 }
  0x31   :  { %p14840_p8 = por %p14839_p7, %p14838_p6 }
  0x33   :  { %p14841_p9 = pnand %p14840_p8, %p14834_p5 }
  0x35   :  { %14844 = shalt.err (!%p14841_p9)
}
  0x36   :  { %s15006_s4 = smov 128   ;;  %s15007_s12 = smov 8  }
  0x37   :  { %96 = dma.hbm_to_vmem [thread:$0]  %s15514_s6, 8192, %s91_s15, [#allocation14], %s15006_s4, %s15006_s4, %s15007_s12  }
  0x38   :  { %s14845_s28 = scalar_lea.hbm %s15508_s0, 16 }
  0x39   :  { %p14846_p10 = scmp.ne.s32.totalorder %s15508_s0, %s14845_s28  ;;  %p14849_p11 = scmp.lt.u32.totalorder %s14845_s28, %s15508_s0 }
  0x3b   :  { %p14851_p12 = pnand %p14849_p11, %p14846_p10 }
  0x3d   :  { %14854 = shalt.err (!%p14851_p12)
}
  0x3e   :  { %s15008_s11 = smov [#allocation2]   ;;  %s15009_s6 = smov [#allocation6]  }
  0x3f   :  { %28 = dma.hbm_to_smem %s15508_s0, 16, %s15008_s11, [#allocation5]  }
  0x40   :  { %s35_s15 = sshll.u32 %s15009_s6, 4  ;;  %s15010_s16 = smov [#allocation9]   ;;  %s36_s15 = int_to_ptr.vmem [resolvable:$true] %s35_s15 }
  0x41   :  { %s54_s17 = sshll.u32 %s15010_s16, 4  ;;  %s14855_s20 = scalar_lea.hbm %s15509_s1, 256  ;;  %s15127_s17 = int_to_ptr.vmem [resolvable:$true] %s54_s17 }
  0x42   :  { %p14856_p13 = scmp.ne.s32.totalorder %s15509_s1, %s14855_s20  ;;  %p14859_p0 = scmp.lt.u32.totalorder %s14855_s20, %s15509_s1 }
  0x44   :  { %p14861_p1 = pnand %p14859_p0, %p14856_p13 }
  0x46   :  { %14864 = shalt.err (!%p14861_p1)
}
  0x47   :  { %s14865_s0 = scalar_lea.vmem %s36_s15, 256  ;;  %p14870_p3 = scmp.lt.s32.totalorder %s36_s15, %s36_s15 }
  0x48   :  { %p14866_p2 = scmp.ne.s32.totalorder %s36_s15, %s14865_s0  ;;  %p14871_p4 = scmp.lt.s32.totalorder %s14865_s0, %s14865_s0 }
  0x4a   :  { %p14872_p5 = por %p14871_p4, %p14870_p3 }
  0x4c   :  { %p14873_p6 = pnand %p14872_p5, %p14866_p2 }
  0x4e   :  { %14876 = shalt.err (!%p14873_p6)
}
  0x4f   :  { %38 = dma.hbm_to_vmem [thread:$0]  %s15509_s1, 256, %s36_s15, [#allocation3]  }
  0x50   :  { %s14877_s27 = scalar_lea.hbm %s15511_s3, 32768 }
  0x51   :  { %p14878_p7 = scmp.ne.s32.totalorder %s15511_s3, %s14877_s27  ;;  %p14881_p8 = scmp.lt.u32.totalorder %s14877_s27, %s15511_s3 }
  0x53   :  { %p14883_p9 = pnand %p14881_p8, %p14878_p7 }
  0x55   :  { %14886 = shalt.err (!%p14883_p9)
}
  0x56   :  { %s14887_s10 = scalar_lea.vmem %s15127_s17, 32768  ;;  %p14892_p11 = scmp.lt.s32.totalorder %s15127_s17, %s15127_s17 }
  0x57   :  { %p14888_p10 = scmp.ne.s32.totalorder %s15127_s17, %s14887_s10  ;;  %p14893_p12 = scmp.lt.s32.totalorder %s14887_s10, %s14887_s10 }
  0x59   :  { %p14894_p13 = por %p14893_p12, %p14892_p11 }
  0x5b   :  { %p14895_p0 = pnand %p14894_p13, %p14888_p10 }
  0x5d   :  { %14898 = shalt.err (!%p14895_p0)
}
  0x5e   :  { %s15011_s1 = smov 1024   ;;  %s15012_s11 = smov 64  }
  0x5f   :  { %60 = dma.hbm_to_vmem [thread:$0]  %s15511_s3, 32768, %s15127_s17, [#allocation8], %s15011_s1, %s15011_s1, %s15012_s11  }
  0x60   :  { %s15013_s6 = smov [#allocation12]   ;;  %s14899_s19 = scalar_lea.hbm %s15513_s5, 32768 }
  0x61   :  { %s78_s15 = sshll.u32 %s15013_s6, 4  ;;  %p14900_p1 = scmp.ne.s32.totalorder %s15513_s5, %s14899_s19  ;;  %s79_s15 = int_to_ptr.vmem [resolvable:$true] %s78_s15 }
  0x62   :  { %p14903_p2 = scmp.lt.u32.totalorder %s14899_s19, %s15513_s5 }
  0x64   :  { %p14905_p3 = pnand %p14903_p2, %p14900_p1 }
  0x66   :  { %14908 = shalt.err (!%p14905_p3)
}
  0x67   :  { %s14909_s4 = scalar_lea.vmem %s79_s15, 32768  ;;  %p14914_p5 = scmp.lt.s32.totalorder %s79_s15, %s79_s15 }
  0x68   :  { %p14910_p4 = scmp.ne.s32.totalorder %s79_s15, %s14909_s4  ;;  %p14915_p6 = scmp.lt.s32.totalorder %s14909_s4, %s14909_s4 }
  0x6a   :  { %p14916_p7 = por %p14915_p6, %p14914_p5 }
  0x6c   :  { %p14917_p8 = pnand %p14916_p7, %p14910_p4 }
  0x6e   :  { %14920 = shalt.err (!%p14917_p8)
}
  0x6f   :  { %s15014_s3 = smov 256   ;;  %s15015_s17 = smov 16  }
  0x70   :  { %84 = dma.hbm_to_vmem [thread:$0]  %s15513_s5, 32768, %s79_s15, [#allocation11], %s15014_s3, %s15014_s3, %s15015_s17  }
  0x71   :  { %s15016_s24 = smov [#allocation15]   ;;  %s14921_s28 = scalar_lea.hbm %s15515_s7, 2048 }
  0x72   :  { %s102_s25 = sshll.u32 %s15016_s24, 4  ;;  %p14922_p9 = scmp.ne.s32.totalorder %s15515_s7, %s14921_s28  ;;  %s103_s25 = int_to_ptr.vmem [resolvable:$true] %s102_s25 }
  0x73   :  { %p14925_p10 = scmp.lt.u32.totalorder %s14921_s28, %s15515_s7 }
  0x75   :  { %p14927_p11 = pnand %p14925_p10, %p14922_p9 }
  0x77   :  { %14930 = shalt.err (!%p14927_p11)
}
  0x78   :  { %s14931_s1 = scalar_lea.vmem %s103_s25, 2048  ;;  %p14936_p13 = scmp.lt.s32.totalorder %s103_s25, %s103_s25 }
  0x79   :  { %p14932_p12 = scmp.ne.s32.totalorder %s103_s25, %s14931_s1  ;;  %p14937_p0 = scmp.lt.s32.totalorder %s14931_s1, %s14931_s1 }
  0x7b   :  { %p14938_p1 = por %p14937_p0, %p14936_p13 }
  0x7d   :  { %p14939_p2 = pnand %p14938_p1, %p14932_p12 }
  0x7f   :  { %14942 = shalt.err (!%p14939_p2)
}
  0x80   :  { %s15017_s5 = smov 4   ;;  %s15018_s6 = smov [#allocation16]  }
  0x81   :  { %108 = dma.hbm_to_vmem [thread:$0]  %s15515_s7, 2048, %s103_s25, [#allocation14], %s15012_s11, %s15012_s11, %s15017_s5  }
  0x82   :  { %s114_s15 = sshll.u32 %s15018_s6, 4  ;;  %s14943_s19 = scalar_lea.hbm %s15516_s8, 1024  ;;  %s115_s15 = int_to_ptr.vmem [resolvable:$true] %s114_s15 }
  0x83   :  { %p14944_p3 = scmp.ne.s32.totalorder %s15516_s8, %s14943_s19  ;;  %p14947_p4 = scmp.lt.u32.totalorder %s14943_s19, %s15516_s8 }
  0x85   :  { %p14949_p5 = pnand %p14947_p4, %p14944_p3 }
  0x87   :  { %14952 = shalt.err (!%p14949_p5)
}
  0x88   :  { %s14953_s4 = scalar_lea.vmem %s115_s15, 1024  ;;  %p14958_p7 = scmp.lt.s32.totalorder %s115_s15, %s115_s15 }
  0x89   :  { %p14954_p6 = scmp.ne.s32.totalorder %s115_s15, %s14953_s4  ;;  %p14959_p8 = scmp.lt.s32.totalorder %s14953_s4, %s14953_s4 }
  0x8b   :  { %p14960_p9 = por %p14959_p8, %p14958_p7 }
  0x8d   :  { %p14961_p10 = pnand %p14960_p9, %p14954_p6 }
  0x8f   :  { %14964 = shalt.err (!%p14961_p10)
}
  0x90   :  { %120 = dma.hbm_to_vmem [thread:$0]  %s15516_s8, 1024, %s115_s15, [#allocation17], %s15012_s11, %s15012_s11, %s15017_s5  }
  0x91   :  { %14987 = dma.done.wait [#allocation5], 16  }
  0x92   :  { %14988 = vsyncadd [#allocation5], 4294967280 }
  0x93   :  { %14989 = dma.done.wait [#allocation3], 256  }
  0x94   :  { %14990 = vsyncadd [#allocation3], 4294967040 }
  0x95   :  { %14991 = dma.done.wait [#allocation8], 33280  }
  0x96   :  { %14992 = vsyncadd [#allocation8], 4294934016 }
  0x97   :  { %14993 = dma.done.wait [#allocation11], 163840  }
  0x98   :  { %14994 = vsyncadd [#allocation11], 4294803456 }
  0x99   :  { %14995 = dma.done.wait [#allocation14], 10240  }
  0x9a   :  { %14996 = vsyncadd [#allocation14], 4294957056 }
  0x9b   :  { %14997 = dma.done.wait [#allocation17], 1024  }
  0x9c   :  { %14998 = vsyncadd [#allocation17], 4294966272 }
  0x9d   :  { %148 = sfence }
  0x9e   :  { %v154_v0 = vld [vmem:[#allocation9] sm:$0xff]  ;;  %v155_v2 = vld [vmem:[#allocation9 + $0x8] sm:$0xff]  ;;  %v151_v53 = vld [vmem:[#allocation6 + $0x8] sm:$0xff]  ;;  %s2102_s8 = sld [smem:[#allocation2]]  ;;  %s13691_s11 = sld [smem:[#allocation2 + $0x1]] }
  0x9f   :  { %v162_v1 = vld [vmem:[#allocation9 + $0x40] sm:$0xff]  ;;  %v163_v4 = vld [vmem:[#allocation9 + $0x48] sm:$0xff]  ;;  %v15199_v57 = vpack.c.bf16 %v151_v53, %v151_v53  ;;  %s13948_s17 = sld [smem:[#allocation2 + $0x2]]  ;;  %s14013_s0 = sld [smem:[#allocation2 + $0x3]] }
  0xa0   :  { %v12412_v3 = vcombine.high %v154_v0, %v162_v1  ;;  %v12411_v5 = vcombine.low %v154_v0, %v162_v1  ;;  %v170_v6 = vld [vmem:[#allocation9 + $0x80] sm:$0xff]  ;;  %v12414_v8 = vcombine.high %v155_v2, %v163_v4  ;;  %v12413_v9 = vcombine.low %v155_v2, %v163_v4  ;;  %v171_v11 = vld [vmem:[#allocation9 + $0x88] sm:$0xff]  ;;  %s14031_s12 = sld [smem:[#allocation2 + $0x4]]  ;;  %s15021_s24 = smov [#allocation18]  }
  0xa1   :  { %v178_v7 = vld [vmem:[#allocation9 + $0xc0] sm:$0xff]  ;;  %v179_v12 = vld [vmem:[#allocation9 + $0xc8] sm:$0xff]  ;;  %1806 = vmatprep.mubr.bf16.mxu0 %v15199_v57  ;;  %1847 = vmatprep.mubr.bf16.mxu1 %v15199_v57  ;;  %s12397_s25 = sshll.u32 %s15021_s24, 4  ;;  %s12398_s25 = int_to_ptr.vmem [resolvable:$true] %s12397_s25 }
  0xa2   :  { %v12428_v10 = vcombine.high %v170_v6, %v178_v7  ;;  %v186_v13 = vld [vmem:[#allocation9 + $0x100] sm:$0xff]  ;;  %1774 = vmatprep.subr.bf16.mxu0 %v12412_v3  ;;  %v12430_v14 = vcombine.high %v171_v11, %v179_v12  ;;  %v187_v16 = vld [vmem:[#allocation9 + $0x108] sm:$0xff]  ;;  %1815 = vmatprep.subr.bf16.mxu1 %v12414_v8  ;;  %v12427_v18 = vcombine.low %v170_v6, %v178_v7  ;;  %s14965_s26 = scalar_lea.vmem %s12398_s25, 128  ;;  %p14970_p12 = scmp.lt.s32.totalorder %s12398_s25, %s12398_s25 }
  0xa3   :  { %v194_v15 = vld [vmem:[#allocation9 + $0x140] sm:$0xff]  ;;  %v195_v17 = vld [vmem:[#allocation9 + $0x148] sm:$0xff]  ;;  %1775 = vmatpush1.bf16.msra.mxu0 %v12411_v5  ;;  %1816 = vmatpush1.bf16.msra.mxu1 %v12413_v9  ;;  %v12429_v19 = vcombine.low %v171_v11, %v179_v12  ;;  %p14966_p11 = scmp.ne.s32.totalorder %s12398_s25, %s14965_s26  ;;  %p14971_p13 = scmp.lt.s32.totalorder %s14965_s26, %s14965_s26 }
  0xa4   :  { %1776 = vmatprep.subr.bf16.mxu0 %v12428_v10  ;;  %v12444_v20 = vcombine.high %v186_v13, %v194_v15  ;;  %1817 = vmatprep.subr.bf16.mxu1 %v12430_v14  ;;  %v12446_v21 = vcombine.high %v187_v16, %v195_v17  ;;  %v202_v22 = vld [vmem:[#allocation9 + $0x180] sm:$0xff]  ;;  %v203_v24 = vld [vmem:[#allocation9 + $0x188] sm:$0xff]  ;;  %v12443_v26 = vcombine.low %v186_v13, %v194_v15 }
  0xa5   :  { %v210_v23 = vld [vmem:[#allocation9 + $0x1c0] sm:$0xff]  ;;  %v211_v25 = vld [vmem:[#allocation9 + $0x1c8] sm:$0xff]  ;;  %v12445_v27 = vcombine.low %v187_v16, %v195_v17  ;;  %p14972_p0 = por %p14971_p13, %p14970_p12 }
  0xa6   :  { %v12460_v28 = vcombine.high %v202_v22, %v210_v23  ;;  %v12462_v29 = vcombine.high %v203_v24, %v211_v25  ;;  %v218_v30 = vld [vmem:[#allocation9 + $0x200] sm:$0xff]  ;;  %v219_v32 = vld [vmem:[#allocation9 + $0x208] sm:$0xff]  ;;  %v12459_v34 = vcombine.low %v202_v22, %v210_v23  ;;  %v12461_v35 = vcombine.low %v203_v24, %v211_v25 }
  0xa7   :  { %1777 = vmatpush1.bf16.msra.mxu0 %v12427_v18  ;;  %1818 = vmatpush1.bf16.msra.mxu1 %v12429_v19  ;;  %v226_v31 = vld [vmem:[#allocation9 + $0x240] sm:$0xff]  ;;  %v227_v33 = vld [vmem:[#allocation9 + $0x248] sm:$0xff]  ;;  %p14973_p1 = pnand %p14972_p0, %p14966_p11 }
  0xa8   :  { %1778 = vmatprep.subr.bf16.mxu0 %v12444_v20  ;;  %1819 = vmatprep.subr.bf16.mxu1 %v12446_v21  ;;  %v12476_v36 = vcombine.high %v218_v30, %v226_v31  ;;  %v12478_v37 = vcombine.high %v219_v32, %v227_v33  ;;  %v234_v38 = vld [vmem:[#allocation9 + $0x280] sm:$0xff]  ;;  %v235_v40 = vld [vmem:[#allocation9 + $0x288] sm:$0xff]  ;;  %v12475_v42 = vcombine.low %v218_v30, %v226_v31 }
  0xa9   :  { %v242_v39 = vld [vmem:[#allocation9 + $0x2c0] sm:$0xff]  ;;  %v243_v41 = vld [vmem:[#allocation9 + $0x2c8] sm:$0xff]  ;;  %v12477_v43 = vcombine.low %v219_v32, %v227_v33 }
  0xaa   :  { %v12492_v44 = vcombine.high %v234_v38, %v242_v39  ;;  %v12494_v45 = vcombine.high %v235_v40, %v243_v41  ;;  %v250_v46 = vld [vmem:[#allocation9 + $0x300] sm:$0xff]  ;;  %v251_v48 = vld [vmem:[#allocation9 + $0x308] sm:$0xff]  ;;  %v12491_v50 = vcombine.low %v234_v38, %v242_v39  ;;  %v12493_v51 = vcombine.low %v235_v40, %v243_v41 }
  0xab   :  { %1779 = vmatpush1.bf16.msra.mxu0 %v12443_v26  ;;  %1820 = vmatpush1.bf16.msra.mxu1 %v12445_v27  ;;  %v258_v47 = vld [vmem:[#allocation9 + $0x340] sm:$0xff]  ;;  %v259_v49 = vld [vmem:[#allocation9 + $0x348] sm:$0xff] }
  0xac   :  { %1780 = vmatprep.subr.bf16.mxu0 %v12460_v28  ;;  %1821 = vmatprep.subr.bf16.mxu1 %v12462_v29  ;;  %v12508_v52 = vcombine.high %v250_v46, %v258_v47  ;;  %v12510_v54 = vcombine.high %v251_v48, %v259_v49  ;;  %v266_v55 = vld [vmem:[#allocation9 + $0x380] sm:$0xff]  ;;  %v267_v58 = vld [vmem:[#allocation9 + $0x388] sm:$0xff]  ;;  %v12507_v60 = vcombine.low %v250_v46, %v258_v47 }
  0xad   :  { %v274_v56 = vld [vmem:[#allocation9 + $0x3c0] sm:$0xff]  ;;  %v275_v59 = vld [vmem:[#allocation9 + $0x3c8] sm:$0xff]  ;;  %v12509_v61 = vcombine.low %v251_v48, %v259_v49 }
  0xae   :  { %v12524_v62 = vcombine.high %v266_v55, %v274_v56  ;;  %v12526_v63 = vcombine.high %v267_v58, %v275_v59  ;;  %v282_v0 = vld [vmem:[#allocation9 + $0x400] sm:$0xff]  ;;  %v283_v2 = vld [vmem:[#allocation9 + $0x408] sm:$0xff]  ;;  %v12523_v4 = vcombine.low %v266_v55, %v274_v56  ;;  %v12525_v5 = vcombine.low %v267_v58, %v275_v59 }
  0xaf   :  { %1781 = vmatpush1.bf16.msra.mxu0 %v12459_v34  ;;  %1822 = vmatpush1.bf16.msra.mxu1 %v12461_v35  ;;  %v290_v1 = vld [vmem:[#allocation9 + $0x440] sm:$0xff]  ;;  %v291_v3 = vld [vmem:[#allocation9 + $0x448] sm:$0xff] }
  0xb0   :  { %1782 = vmatprep.subr.bf16.mxu0 %v12476_v36  ;;  %1823 = vmatprep.subr.bf16.mxu1 %v12478_v37  ;;  %v12540_v6 = vcombine.high %v282_v0, %v290_v1  ;;  %v12542_v7 = vcombine.high %v283_v2, %v291_v3  ;;  %v298_v8 = vld [vmem:[#allocation9 + $0x480] sm:$0xff]  ;;  %v299_v10 = vld [vmem:[#allocation9 + $0x488] sm:$0xff]  ;;  %v12539_v12 = vcombine.low %v282_v0, %v290_v1  ;;  %v156_v1 = vld [vmem:[#allocation9 + $0x10] sm:$0xff] }
  0xb1   :  { %v306_v9 = vld [vmem:[#allocation9 + $0x4c0] sm:$0xff]  ;;  %v307_v11 = vld [vmem:[#allocation9 + $0x4c8] sm:$0xff]  ;;  %v12541_v13 = vcombine.low %v283_v2, %v291_v3  ;;  %v164_v2 = vld [vmem:[#allocation9 + $0x50] sm:$0xff] }
  0xb2   :  { %v12556_v14 = vcombine.high %v298_v8, %v306_v9  ;;  %v12558_v15 = vcombine.high %v299_v10, %v307_v11  ;;  %v314_v16 = vld [vmem:[#allocation9 + $0x500] sm:$0xff]  ;;  %v315_v18 = vld [vmem:[#allocation9 + $0x508] sm:$0xff]  ;;  %v12555_v20 = vcombine.low %v298_v8, %v306_v9  ;;  %v12557_v21 = vcombine.low %v299_v10, %v307_v11  ;;  %v157_v3 = vld [vmem:[#allocation9 + $0x18] sm:$0xff] }
  0xb3   :  { %1783 = vmatpush1.bf16.msra.mxu0 %v12475_v42  ;;  %1824 = vmatpush1.bf16.msra.mxu1 %v12477_v43  ;;  %v322_v17 = vld [vmem:[#allocation9 + $0x540] sm:$0xff]  ;;  %v323_v19 = vld [vmem:[#allocation9 + $0x548] sm:$0xff]  ;;  %v12416_v8 = vcombine.high %v156_v1, %v164_v2  ;;  %v172_v10 = vld [vmem:[#allocation9 + $0x90] sm:$0xff] }
  0xb4   :  { %1784 = vmatprep.subr.bf16.mxu0 %v12492_v44  ;;  %1825 = vmatprep.subr.bf16.mxu1 %v12494_v45  ;;  %v12572_v22 = vcombine.high %v314_v16, %v322_v17  ;;  %v12574_v23 = vcombine.high %v315_v18, %v323_v19  ;;  %v330_v24 = vld [vmem:[#allocation9 + $0x580] sm:$0xff]  ;;  %v331_v26 = vld [vmem:[#allocation9 + $0x588] sm:$0xff]  ;;  %v12571_v28 = vcombine.low %v314_v16, %v322_v17  ;;  %v180_v11 = vld [vmem:[#allocation9 + $0xd0] sm:$0xff] }
  0xb5   :  { %v338_v25 = vld [vmem:[#allocation9 + $0x5c0] sm:$0xff]  ;;  %v339_v27 = vld [vmem:[#allocation9 + $0x5c8] sm:$0xff]  ;;  %v12573_v29 = vcombine.low %v315_v18, %v323_v19  ;;  %v12432_v17 = vcombine.high %v172_v10, %v180_v11  ;;  %v188_v18 = vld [vmem:[#allocation9 + $0x110] sm:$0xff] }
  0xb6   :  { %v12588_v30 = vcombine.high %v330_v24, %v338_v25  ;;  %v12590_v31 = vcombine.high %v331_v26, %v339_v27  ;;  %v346_v32 = vld [vmem:[#allocation9 + $0x600] sm:$0xff]  ;;  %v347_v34 = vld [vmem:[#allocation9 + $0x608] sm:$0xff]  ;;  %v12587_v36 = vcombine.low %v330_v24, %v338_v25  ;;  %v12589_v37 = vcombine.low %v331_v26, %v339_v27  ;;  %v196_v19 = vld [vmem:[#allocation9 + $0x150] sm:$0xff] }
  0xb7   :  { %1785 = vmatpush1.bf16.msra.mxu0 %v12491_v50  ;;  %1826 = vmatpush1.bf16.msra.mxu1 %v12493_v51  ;;  %v354_v33 = vld [vmem:[#allocation9 + $0x640] sm:$0xff]  ;;  %v355_v35 = vld [vmem:[#allocation9 + $0x648] sm:$0xff]  ;;  %v12448_v25 = vcombine.high %v188_v18, %v196_v19  ;;  %v204_v26 = vld [vmem:[#allocation9 + $0x190] sm:$0xff] }
  0xb8   :  { %1786 = vmatprep.subr.bf16.mxu0 %v12508_v52  ;;  %1827 = vmatprep.subr.bf16.mxu1 %v12510_v54  ;;  %v12604_v38 = vcombine.high %v346_v32, %v354_v33  ;;  %v12606_v39 = vcombine.high %v347_v34, %v355_v35  ;;  %v362_v40 = vld [vmem:[#allocation9 + $0x680] sm:$0xff]  ;;  %v363_v42 = vld [vmem:[#allocation9 + $0x688] sm:$0xff]  ;;  %v12603_v44 = vcombine.low %v346_v32, %v354_v33  ;;  %v212_v27 = vld [vmem:[#allocation9 + $0x1d0] sm:$0xff] }
  0xb9   :  { %v370_v41 = vld [vmem:[#allocation9 + $0x6c0] sm:$0xff]  ;;  %v371_v43 = vld [vmem:[#allocation9 + $0x6c8] sm:$0xff]  ;;  %v12605_v45 = vcombine.low %v347_v34, %v355_v35  ;;  %v12464_v33 = vcombine.high %v204_v26, %v212_v27  ;;  %v220_v34 = vld [vmem:[#allocation9 + $0x210] sm:$0xff] }
  0xba   :  { %v12620_v46 = vcombine.high %v362_v40, %v370_v41  ;;  %v12622_v47 = vcombine.high %v363_v42, %v371_v43  ;;  %v378_v48 = vld [vmem:[#allocation9 + $0x700] sm:$0xff]  ;;  %v379_v50 = vld [vmem:[#allocation9 + $0x708] sm:$0xff]  ;;  %v12619_v52 = vcombine.low %v362_v40, %v370_v41  ;;  %v12621_v53 = vcombine.low %v363_v42, %v371_v43  ;;  %v228_v35 = vld [vmem:[#allocation9 + $0x250] sm:$0xff] }
  0xbb   :  { %1787 = vmatpush1.bf16.msra.mxu0 %v12507_v60  ;;  %1828 = vmatpush1.bf16.msra.mxu1 %v12509_v61  ;;  %v386_v49 = vld [vmem:[#allocation9 + $0x740] sm:$0xff]  ;;  %v387_v51 = vld [vmem:[#allocation9 + $0x748] sm:$0xff]  ;;  %v12480_v41 = vcombine.high %v220_v34, %v228_v35  ;;  %v236_v42 = vld [vmem:[#allocation9 + $0x290] sm:$0xff] }
  0xbc   :  { %1788 = vmatprep.subr.bf16.mxu0 %v12524_v62  ;;  %1829 = vmatprep.subr.bf16.mxu1 %v12526_v63  ;;  %v12636_v54 = vcombine.high %v378_v48, %v386_v49  ;;  %v12638_v55 = vcombine.high %v379_v50, %v387_v51  ;;  %v394_v56 = vld [vmem:[#allocation9 + $0x780] sm:$0xff]  ;;  %v395_v59 = vld [vmem:[#allocation9 + $0x788] sm:$0xff]  ;;  %v12635_v61 = vcombine.low %v378_v48, %v386_v49  ;;  %v244_v43 = vld [vmem:[#allocation9 + $0x2d0] sm:$0xff] }
  0xbd   :  { %v402_v58 = vld [vmem:[#allocation9 + $0x7c0] sm:$0xff]  ;;  %v403_v60 = vld [vmem:[#allocation9 + $0x7c8] sm:$0xff]  ;;  %v12637_v62 = vcombine.low %v379_v50, %v387_v51  ;;  %v12496_v49 = vcombine.high %v236_v42, %v244_v43  ;;  %v252_v50 = vld [vmem:[#allocation9 + $0x310] sm:$0xff] }
  0xbe   :  { %v12652_v63 = vcombine.high %v394_v56, %v402_v58  ;;  %v12654_v0 = vcombine.high %v395_v59, %v403_v60  ;;  %v260_v51 = vld [vmem:[#allocation9 + $0x350] sm:$0xff] }
  0xbf   :  { %1789 = vmatpush1.bf16.msra.mxu0 %v12523_v4  ;;  %1830 = vmatpush1.bf16.msra.mxu1 %v12525_v5  ;;  %v165_v4 = vld [vmem:[#allocation9 + $0x58] sm:$0xff]  ;;  %v12651_v5 = vcombine.low %v394_v56, %v402_v58  ;;  %v12512_v58 = vcombine.high %v252_v50, %v260_v51 }
  0xc0   :  { %1790 = vmatprep.subr.bf16.mxu0 %v12540_v6  ;;  %1831 = vmatprep.subr.bf16.mxu1 %v12542_v7  ;;  %v150_v6 = vld [vmem:[#allocation6] sm:$0xff]  ;;  %v12653_v7 = vcombine.low %v395_v59, %v403_v60  ;;  %v12418_v9 = vcombine.high %v157_v3, %v165_v4  ;;  %v12417_v16 = vcombine.low %v157_v3, %v165_v4 }
  0xc1   :  { %v268_v59 = vld [vmem:[#allocation9 + $0x390] sm:$0xff] }
  0xc2   :  { %v276_v60 = vld [vmem:[#allocation9 + $0x3d0] sm:$0xff] }
  0xc3   :  { %1791 = vmatpush1.bf16.msra.mxu0 %v12539_v12  ;;  %1832 = vmatpush1.bf16.msra.mxu1 %v12541_v13  ;;  %v15203_v12 = vpack.c.bf16 %v150_v6, %v150_v6  ;;  %v173_v13 = vld [vmem:[#allocation9 + $0x98] sm:$0xff]  ;;  %v284_v3 = vld [vmem:[#allocation9 + $0x410] sm:$0xff] }
  0xc4   :  { %1792 = vmatprep.subr.bf16.mxu0 %v12556_v14  ;;  %1833 = vmatprep.subr.bf16.mxu1 %v12558_v15  ;;  %v181_v14 = vld [vmem:[#allocation9 + $0xd8] sm:$0xff]  ;;  %v12415_v15 = vcombine.low %v156_v1, %v164_v2  ;;  %v12528_v2 = vcombine.high %v268_v59, %v276_v60  ;;  %v292_v4 = vld [vmem:[#allocation9 + $0x450] sm:$0xff] }
  0xc5   :  { %v12433_v24 = vcombine.low %v173_v13, %v181_v14 }
  0xc7   :  { %1793 = vmatpush1.bf16.msra.mxu0 %v12555_v20  ;;  %1834 = vmatpush1.bf16.msra.mxu1 %v12557_v21  ;;  %v189_v20 = vld [vmem:[#allocation9 + $0x118] sm:$0xff]  ;;  %v12434_v21 = vcombine.high %v173_v13, %v181_v14  ;;  %v308_v13 = vld [vmem:[#allocation9 + $0x4d0] sm:$0xff] }
  0xc8   :  { %1794 = vmatprep.subr.bf16.mxu0 %v12572_v22  ;;  %1835 = vmatprep.subr.bf16.mxu1 %v12574_v23  ;;  %v197_v22 = vld [vmem:[#allocation9 + $0x158] sm:$0xff]  ;;  %v12431_v23 = vcombine.low %v172_v10, %v180_v11  ;;  %v12544_v10 = vcombine.high %v284_v3, %v292_v4  ;;  %v300_v11 = vld [vmem:[#allocation9 + $0x490] sm:$0xff] }
  0xc9   :  { %v12449_v32 = vcombine.low %v189_v20, %v197_v22  ;;  %v301_v14 = vld [vmem:[#allocation9 + $0x498] sm:$0xff] }
  0xcb   :  { %1795 = vmatpush1.bf16.msra.mxu0 %v12571_v28  ;;  %1836 = vmatpush1.bf16.msra.mxu1 %v12573_v29  ;;  %v205_v28 = vld [vmem:[#allocation9 + $0x198] sm:$0xff]  ;;  %v12450_v29 = vcombine.high %v189_v20, %v197_v22  ;;  %v316_v20 = vld [vmem:[#allocation9 + $0x510] sm:$0xff] }
  0xcc   :  { %1796 = vmatprep.subr.bf16.mxu0 %v12588_v30  ;;  %1837 = vmatprep.subr.bf16.mxu1 %v12590_v31  ;;  %v213_v30 = vld [vmem:[#allocation9 + $0x1d8] sm:$0xff]  ;;  %v12447_v31 = vcombine.low %v188_v18, %v196_v19  ;;  %v12560_v19 = vcombine.high %v300_v11, %v308_v13 }
  0xcd   :  { %v12465_v40 = vcombine.low %v205_v28, %v213_v30  ;;  %v317_v22 = vld [vmem:[#allocation9 + $0x518] sm:$0xff] }
  0xcf   :  { %1797 = vmatpush1.bf16.msra.mxu0 %v12587_v36  ;;  %1838 = vmatpush1.bf16.msra.mxu1 %v12589_v37  ;;  %v221_v36 = vld [vmem:[#allocation9 + $0x218] sm:$0xff]  ;;  %v12466_v37 = vcombine.high %v205_v28, %v213_v30  ;;  %v332_v28 = vld [vmem:[#allocation9 + $0x590] sm:$0xff] }
  0xd0   :  { %1798 = vmatprep.subr.bf16.mxu0 %v12604_v38  ;;  %1839 = vmatprep.subr.bf16.mxu1 %v12606_v39  ;;  %v229_v38 = vld [vmem:[#allocation9 + $0x258] sm:$0xff]  ;;  %v12463_v39 = vcombine.low %v204_v26, %v212_v27 }
  0xd1   :  { %v12481_v48 = vcombine.low %v221_v36, %v229_v38  ;;  %v333_v30 = vld [vmem:[#allocation9 + $0x598] sm:$0xff] }
  0xd3   :  { %1799 = vmatpush1.bf16.msra.mxu0 %v12603_v44  ;;  %1840 = vmatpush1.bf16.msra.mxu1 %v12605_v45  ;;  %v237_v44 = vld [vmem:[#allocation9 + $0x298] sm:$0xff]  ;;  %v12482_v45 = vcombine.high %v221_v36, %v229_v38  ;;  %v348_v36 = vld [vmem:[#allocation9 + $0x610] sm:$0xff] }
  0xd4   :  { %1800 = vmatprep.subr.bf16.mxu0 %v12620_v46  ;;  %1841 = vmatprep.subr.bf16.mxu1 %v12622_v47  ;;  %v245_v46 = vld [vmem:[#allocation9 + $0x2d8] sm:$0xff]  ;;  %v12479_v47 = vcombine.low %v220_v34, %v228_v35 }
  0xd5   :  { %v12497_v56 = vcombine.low %v237_v44, %v245_v46  ;;  %v349_v38 = vld [vmem:[#allocation9 + $0x618] sm:$0xff] }
  0xd7   :  { %1801 = vmatpush1.bf16.msra.mxu0 %v12619_v52  ;;  %1842 = vmatpush1.bf16.msra.mxu1 %v12621_v53  ;;  %v253_v52 = vld [vmem:[#allocation9 + $0x318] sm:$0xff]  ;;  %v12498_v53 = vcombine.high %v237_v44, %v245_v46  ;;  %v364_v44 = vld [vmem:[#allocation9 + $0x690] sm:$0xff] }
  0xd8   :  { %1802 = vmatprep.subr.bf16.mxu0 %v12636_v54  ;;  %1843 = vmatprep.subr.bf16.mxu1 %v12638_v55  ;;  %v261_v54 = vld [vmem:[#allocation9 + $0x358] sm:$0xff]  ;;  %v12495_v55 = vcombine.low %v236_v42, %v244_v43 }
  0xd9   :  { %v12513_v1 = vcombine.low %v253_v52, %v261_v54  ;;  %v365_v46 = vld [vmem:[#allocation9 + $0x698] sm:$0xff] }
  0xdb   :  { %1803 = vmatpush1.bf16.msra.mxu0 %v12635_v61  ;;  %1844 = vmatpush1.bf16.msra.mxu1 %v12637_v62  ;;  %v269_v61 = vld [vmem:[#allocation9 + $0x398] sm:$0xff]  ;;  %v12514_v62 = vcombine.high %v253_v52, %v261_v54  ;;  %v380_v52 = vld [vmem:[#allocation9 + $0x710] sm:$0xff] }
  0xdc   :  { %1804 = vmatprep.subr.bf16.mxu0 %v12652_v63  ;;  %1845 = vmatprep.subr.bf16.mxu1 %v12654_v0  ;;  %v277_v63 = vld [vmem:[#allocation9 + $0x3d8] sm:$0xff]  ;;  %v12511_v0 = vcombine.low %v252_v50, %v260_v51 }
  0xdd   :  { %v12530_v6 = vcombine.high %v269_v61, %v277_v63  ;;  %v381_v54 = vld [vmem:[#allocation9 + $0x718] sm:$0xff] }
  0xdf   :  { %1805 = vmatpush1.bf16.msra.mxu0 %v12651_v5  ;;  %1846 = vmatpush1.bf16.msra.mxu1 %v12653_v7  ;;  %v285_v5 = vld [vmem:[#allocation9 + $0x418] sm:$0xff] }
  0xe0   :  { %1856 = vmatprep.subr.bf16.mxu0 %v12416_v8  ;;  %1897 = vmatprep.subr.bf16.mxu1 %v12418_v9  ;;  %v293_v7 = vld [vmem:[#allocation9 + $0x458] sm:$0xff]  ;;  %v12527_v8 = vcombine.low %v268_v59, %v276_v60  ;;  %v12529_v9 = vcombine.low %v269_v61, %v277_v63  ;;  %v396_v61 = vld [vmem:[#allocation9 + $0x790] sm:$0xff] }
  0xe1   :  { %v12545_v18 = vcombine.low %v285_v5, %v293_v7  ;;  %v397_v63 = vld [vmem:[#allocation9 + $0x798] sm:$0xff] }
  0xe2   :  { %1807 = vmatmul.mubr.bf16.vlgmr.msra.gmra.mrb[0].mxu0 %v15203_v12  ;;  %1848 = vmatmul.mubr.bf16.vlgmr.msra.gmra.mrb[0].mxu1 %v15203_v12 }
  0xe3   :  { %1857 = vmatpush1.bf16.msra.mxu0 %v12415_v15  ;;  %1898 = vmatpush1.bf16.msra.mxu1 %v12417_v16  ;;  %v12546_v15 = vcombine.high %v285_v5, %v293_v7  ;;  %v309_v16 = vld [vmem:[#allocation9 + $0x4d8] sm:$0xff]  ;;  %v158_v5 = vld [vmem:[#allocation9 + $0x20] sm:$0xff]  ;;  %v159_v7 = vld [vmem:[#allocation9 + $0x28] sm:$0xff] }
  0xe4   :  { %1858 = vmatprep.subr.bf16.mxu0 %v12432_v17  ;;  %1899 = vmatprep.subr.bf16.mxu1 %v12434_v21  ;;  %v12543_v17 = vcombine.low %v284_v3, %v292_v4  ;;  %v324_v21 = vld [vmem:[#allocation9 + $0x550] sm:$0xff]  ;;  %v12561_v26 = vcombine.low %v301_v14, %v309_v16 }
  0xe5   :  { %1888 = vmatprep.mubr.bf16.mxu0 %v15199_v57  ;;  %1929 = vmatprep.mubr.bf16.mxu1 %v15199_v57  ;;  %v12576_v27 = vcombine.high %v316_v20, %v324_v21 }
  0xe7   :  { %1859 = vmatpush1.bf16.msra.mxu0 %v12431_v23  ;;  %1900 = vmatpush1.bf16.msra.mxu1 %v12433_v24  ;;  %v12562_v23 = vcombine.high %v301_v14, %v309_v16  ;;  %v325_v24 = vld [vmem:[#allocation9 + $0x558] sm:$0xff]  ;;  %v174_v14 = vld [vmem:[#allocation9 + $0xa0] sm:$0xff]  ;;  %v175_v16 = vld [vmem:[#allocation9 + $0xa8] sm:$0xff] }
  0xe8   :  { %1860 = vmatprep.subr.bf16.mxu0 %v12448_v25  ;;  %1901 = vmatprep.subr.bf16.mxu1 %v12450_v29  ;;  %v12559_v25 = vcombine.low %v300_v11, %v308_v13  ;;  %v340_v29 = vld [vmem:[#allocation9 + $0x5d0] sm:$0xff]  ;;  %v12577_v34 = vcombine.low %v317_v22, %v325_v24 }
  0xe9   :  { %v12592_v35 = vcombine.high %v332_v28, %v340_v29 }
  0xeb   :  { %1861 = vmatpush1.bf16.msra.mxu0 %v12447_v31  ;;  %1902 = vmatpush1.bf16.msra.mxu1 %v12449_v32  ;;  %v12578_v31 = vcombine.high %v317_v22, %v325_v24  ;;  %v341_v32 = vld [vmem:[#allocation9 + $0x5d8] sm:$0xff]  ;;  %v190_v22 = vld [vmem:[#allocation9 + $0x120] sm:$0xff]  ;;  %v191_v24 = vld [vmem:[#allocation9 + $0x128] sm:$0xff] }
  0xec   :  { %1862 = vmatprep.subr.bf16.mxu0 %v12464_v33  ;;  %1903 = vmatprep.subr.bf16.mxu1 %v12466_v37  ;;  %v12575_v33 = vcombine.low %v316_v20, %v324_v21  ;;  %v356_v37 = vld [vmem:[#allocation9 + $0x650] sm:$0xff]  ;;  %v12593_v42 = vcombine.low %v333_v30, %v341_v32 }
  0xed   :  { %v12608_v43 = vcombine.high %v348_v36, %v356_v37 }
  0xef   :  { %1863 = vmatpush1.bf16.msra.mxu0 %v12463_v39  ;;  %1904 = vmatpush1.bf16.msra.mxu1 %v12465_v40  ;;  %v12594_v39 = vcombine.high %v333_v30, %v341_v32  ;;  %v357_v40 = vld [vmem:[#allocation9 + $0x658] sm:$0xff]  ;;  %v206_v30 = vld [vmem:[#allocation9 + $0x1a0] sm:$0xff]  ;;  %v207_v32 = vld [vmem:[#allocation9 + $0x1a8] sm:$0xff] }
  0xf0   :  { %1864 = vmatprep.subr.bf16.mxu0 %v12480_v41  ;;  %1905 = vmatprep.subr.bf16.mxu1 %v12482_v45  ;;  %v12591_v41 = vcombine.low %v332_v28, %v340_v29  ;;  %v372_v45 = vld [vmem:[#allocation9 + $0x6d0] sm:$0xff]  ;;  %v12609_v50 = vcombine.low %v349_v38, %v357_v40 }
  0xf1   :  { %v12624_v51 = vcombine.high %v364_v44, %v372_v45 }
  0xf3   :  { %1865 = vmatpush1.bf16.msra.mxu0 %v12479_v47  ;;  %1906 = vmatpush1.bf16.msra.mxu1 %v12481_v48  ;;  %v12610_v47 = vcombine.high %v349_v38, %v357_v40  ;;  %v373_v48 = vld [vmem:[#allocation9 + $0x6d8] sm:$0xff]  ;;  %v222_v38 = vld [vmem:[#allocation9 + $0x220] sm:$0xff]  ;;  %v223_v40 = vld [vmem:[#allocation9 + $0x228] sm:$0xff] }
  0xf4   :  { %1866 = vmatprep.subr.bf16.mxu0 %v12496_v49  ;;  %1907 = vmatprep.subr.bf16.mxu1 %v12498_v53  ;;  %v12607_v49 = vcombine.low %v348_v36, %v356_v37  ;;  %v388_v53 = vld [vmem:[#allocation9 + $0x750] sm:$0xff]  ;;  %v12625_v59 = vcombine.low %v365_v46, %v373_v48 }
  0xf5   :  { %v12640_v60 = vcombine.high %v380_v52, %v388_v53 }
  0xf7   :  { %1867 = vmatpush1.bf16.msra.mxu0 %v12495_v55  ;;  %1908 = vmatpush1.bf16.msra.mxu1 %v12497_v56  ;;  %v12626_v55 = vcombine.high %v365_v46, %v373_v48  ;;  %v389_v56 = vld [vmem:[#allocation9 + $0x758] sm:$0xff]  ;;  %v238_v46 = vld [vmem:[#allocation9 + $0x2a0] sm:$0xff]  ;;  %v239_v48 = vld [vmem:[#allocation9 + $0x2a8] sm:$0xff] }
  0xf8   :  { %1868 = vmatprep.subr.bf16.mxu0 %v12512_v58  ;;  %1909 = vmatprep.subr.bf16.mxu1 %v12514_v62  ;;  %v12623_v58 = vcombine.low %v364_v44, %v372_v45  ;;  %v404_v62 = vld [vmem:[#allocation9 + $0x7d0] sm:$0xff]  ;;  %v12641_v3 = vcombine.low %v381_v54, %v389_v56 }
  0xf9   :  { %v12656_v4 = vcombine.high %v396_v61, %v404_v62 }
  0xfb   :  { %1869 = vmatpush1.bf16.msra.mxu0 %v12511_v0  ;;  %1910 = vmatpush1.bf16.msra.mxu1 %v12513_v1  ;;  %v12642_v0 = vcombine.high %v381_v54, %v389_v56  ;;  %v405_v1 = vld [vmem:[#allocation9 + $0x7d8] sm:$0xff]  ;;  %v254_v54 = vld [vmem:[#allocation9 + $0x320] sm:$0xff]  ;;  %v255_v56 = vld [vmem:[#allocation9 + $0x328] sm:$0xff] }
  0xfc   :  { %1870 = vmatprep.subr.bf16.mxu0 %v12528_v2  ;;  %1911 = vmatprep.subr.bf16.mxu1 %v12530_v6  ;;  %v12639_v2 = vcombine.low %v380_v52, %v388_v53  ;;  %v166_v6 = vld [vmem:[#allocation9 + $0x60] sm:$0xff]  ;;  %v12657_v11 = vcombine.low %v397_v63, %v405_v1 }
  0xfd   :  { %v12420_v13 = vcombine.high %v158_v5, %v166_v6 }
  0xff   :  { %1871 = vmatpush1.bf16.msra.mxu0 %v12527_v8  ;;  %1912 = vmatpush1.bf16.msra.mxu1 %v12529_v9  ;;  %v12658_v8 = vcombine.high %v397_v63, %v405_v1  ;;  %v167_v9 = vld [vmem:[#allocation9 + $0x68] sm:$0xff]  ;;  %v270_v63 = vld [vmem:[#allocation9 + $0x3a0] sm:$0xff] }
 0x100   :  { %1872 = vmatprep.subr.bf16.mxu0 %v12544_v10  ;;  %1913 = vmatprep.subr.bf16.mxu1 %v12546_v15  ;;  %v12655_v10 = vcombine.low %v396_v61, %v404_v62  ;;  %v182_v15 = vld [vmem:[#allocation9 + $0xe0] sm:$0xff]  ;;  %v12421_v20 = vcombine.low %v159_v7, %v167_v9 }
 0x101   :  { %v12436_v21 = vcombine.high %v174_v14, %v182_v15 }
 0x103   :  { %1873 = vmatpush1.bf16.msra.mxu0 %v12543_v17  ;;  %1914 = vmatpush1.bf16.msra.mxu1 %v12545_v18  ;;  %v12422_v17 = vcombine.high %v159_v7, %v167_v9  ;;  %v183_v18 = vld [vmem:[#allocation9 + $0xe8] sm:$0xff]  ;;  %v286_v7 = vld [vmem:[#allocation9 + $0x420] sm:$0xff] }
 0x104   :  { %1874 = vmatprep.subr.bf16.mxu0 %v12560_v19  ;;  %1915 = vmatprep.subr.bf16.mxu1 %v12562_v23  ;;  %v12419_v19 = vcombine.low %v158_v5, %v166_v6  ;;  %v198_v23 = vld [vmem:[#allocation9 + $0x160] sm:$0xff]  ;;  %v12437_v28 = vcombine.low %v175_v16, %v183_v18  ;;  %v287_v9 = vld [vmem:[#allocation9 + $0x428] sm:$0xff] }
 0x105   :  { %v12452_v29 = vcombine.high %v190_v22, %v198_v23 }
 0x107   :  { %1875 = vmatpush1.bf16.msra.mxu0 %v12559_v25  ;;  %1916 = vmatpush1.bf16.msra.mxu1 %v12561_v26  ;;  %v12438_v25 = vcombine.high %v175_v16, %v183_v18  ;;  %v199_v26 = vld [vmem:[#allocation9 + $0x168] sm:$0xff]  ;;  %v302_v16 = vld [vmem:[#allocation9 + $0x4a0] sm:$0xff] }
 0x108   :  { %1876 = vmatprep.subr.bf16.mxu0 %v12576_v27  ;;  %1917 = vmatprep.subr.bf16.mxu1 %v12578_v31  ;;  %v12435_v27 = vcombine.low %v174_v14, %v182_v15  ;;  %v214_v31 = vld [vmem:[#allocation9 + $0x1e0] sm:$0xff]  ;;  %v12453_v36 = vcombine.low %v191_v24, %v199_v26  ;;  %v303_v18 = vld [vmem:[#allocation9 + $0x4a8] sm:$0xff] }
 0x109   :  { %v12468_v37 = vcombine.high %v206_v30, %v214_v31 }
 0x10b   :  { %1877 = vmatpush1.bf16.msra.mxu0 %v12575_v33  ;;  %1918 = vmatpush1.bf16.msra.mxu1 %v12577_v34  ;;  %v12454_v33 = vcombine.high %v191_v24, %v199_v26  ;;  %v215_v34 = vld [vmem:[#allocation9 + $0x1e8] sm:$0xff]  ;;  %v318_v24 = vld [vmem:[#allocation9 + $0x520] sm:$0xff] }
 0x10c   :  { %1878 = vmatprep.subr.bf16.mxu0 %v12592_v35  ;;  %1919 = vmatprep.subr.bf16.mxu1 %v12594_v39  ;;  %v12451_v35 = vcombine.low %v190_v22, %v198_v23  ;;  %v230_v39 = vld [vmem:[#allocation9 + $0x260] sm:$0xff]  ;;  %v12469_v44 = vcombine.low %v207_v32, %v215_v34  ;;  %v319_v26 = vld [vmem:[#allocation9 + $0x528] sm:$0xff] }
 0x10d   :  { %v12484_v45 = vcombine.high %v222_v38, %v230_v39 }
 0x10f   :  { %1879 = vmatpush1.bf16.msra.mxu0 %v12591_v41  ;;  %1920 = vmatpush1.bf16.msra.mxu1 %v12593_v42  ;;  %v12470_v41 = vcombine.high %v207_v32, %v215_v34  ;;  %v231_v42 = vld [vmem:[#allocation9 + $0x268] sm:$0xff]  ;;  %v334_v32 = vld [vmem:[#allocation9 + $0x5a0] sm:$0xff] }
 0x110   :  { %1880 = vmatprep.subr.bf16.mxu0 %v12608_v43  ;;  %1921 = vmatprep.subr.bf16.mxu1 %v12610_v47  ;;  %v12467_v43 = vcombine.low %v206_v30, %v214_v31  ;;  %v246_v47 = vld [vmem:[#allocation9 + $0x2e0] sm:$0xff]  ;;  %v12485_v52 = vcombine.low %v223_v40, %v231_v42  ;;  %v335_v34 = vld [vmem:[#allocation9 + $0x5a8] sm:$0xff] }
 0x111   :  { %v12500_v53 = vcombine.high %v238_v46, %v246_v47 }
 0x113   :  { %1881 = vmatpush1.bf16.msra.mxu0 %v12607_v49  ;;  %1922 = vmatpush1.bf16.msra.mxu1 %v12609_v50  ;;  %v12486_v49 = vcombine.high %v223_v40, %v231_v42  ;;  %v247_v50 = vld [vmem:[#allocation9 + $0x2e8] sm:$0xff]  ;;  %v350_v40 = vld [vmem:[#allocation9 + $0x620] sm:$0xff] }
 0x114   :  { %1882 = vmatprep.subr.bf16.mxu0 %v12624_v51  ;;  %1923 = vmatprep.subr.bf16.mxu1 %v12626_v55  ;;  %v12483_v51 = vcombine.low %v222_v38, %v230_v39  ;;  %v262_v55 = vld [vmem:[#allocation9 + $0x360] sm:$0xff]  ;;  %v12501_v61 = vcombine.low %v239_v48, %v247_v50  ;;  %v351_v42 = vld [vmem:[#allocation9 + $0x628] sm:$0xff] }
 0x115   :  { %v12516_v62 = vcombine.high %v254_v54, %v262_v55 }
 0x117   :  { %1883 = vmatpush1.bf16.msra.mxu0 %v12623_v58  ;;  %1924 = vmatpush1.bf16.msra.mxu1 %v12625_v59  ;;  %v12502_v58 = vcombine.high %v239_v48, %v247_v50  ;;  %v263_v59 = vld [vmem:[#allocation9 + $0x368] sm:$0xff]  ;;  %v366_v48 = vld [vmem:[#allocation9 + $0x6a0] sm:$0xff] }
 0x118   :  { %1884 = vmatprep.subr.bf16.mxu0 %v12640_v60  ;;  %1925 = vmatprep.subr.bf16.mxu1 %v12642_v0  ;;  %v12499_v60 = vcombine.low %v238_v46, %v246_v47  ;;  %v278_v0 = vld [vmem:[#allocation9 + $0x3e0] sm:$0xff]  ;;  %v12518_v1 = vcombine.high %v255_v56, %v263_v59  ;;  %v12517_v5 = vcombine.low %v255_v56, %v263_v59  ;;  %v367_v50 = vld [vmem:[#allocation9 + $0x6a8] sm:$0xff] }
 0x119   :  { %v12532_v6 = vcombine.high %v270_v63, %v278_v0  ;;  %v382_v56 = vld [vmem:[#allocation9 + $0x720] sm:$0xff]  ;;  %v383_v59 = vld [vmem:[#allocation9 + $0x728] sm:$0xff] }
 0x11b   :  { %1885 = vmatpush1.bf16.msra.mxu0 %v12639_v2  ;;  %1926 = vmatpush1.bf16.msra.mxu1 %v12641_v3  ;;  %v271_v2 = vld [vmem:[#allocation9 + $0x3a8] sm:$0xff] }
 0x11c   :  { %1886 = vmatprep.subr.bf16.mxu0 %v12656_v4  ;;  %1927 = vmatprep.subr.bf16.mxu1 %v12658_v8  ;;  %v279_v3 = vld [vmem:[#allocation9 + $0x3e8] sm:$0xff]  ;;  %v12515_v4 = vcombine.low %v254_v54, %v262_v55  ;;  %v294_v8 = vld [vmem:[#allocation9 + $0x460] sm:$0xff] }
 0x11d   :  { %v12533_v14 = vcombine.low %v271_v2, %v279_v3  ;;  %v12548_v15 = vcombine.high %v286_v7, %v294_v8 }
 0x11f   :  { %1887 = vmatpush1.bf16.msra.mxu0 %v12655_v10  ;;  %1928 = vmatpush1.bf16.msra.mxu1 %v12657_v11  ;;  %v12534_v10 = vcombine.high %v271_v2, %v279_v3  ;;  %v295_v11 = vld [vmem:[#allocation9 + $0x468] sm:$0xff]  ;;  %v406_v2 = vld [vmem:[#allocation9 + $0x7e0] sm:$0xff] }
 0x120   :  { %1938 = vmatprep.subr.bf16.mxu0 %v12420_v13  ;;  %1979 = vmatprep.subr.bf16.mxu1 %v12422_v17  ;;  %v12531_v13 = vcombine.low %v270_v63, %v278_v0  ;;  %v310_v17 = vld [vmem:[#allocation9 + $0x4e0] sm:$0xff]  ;;  %v12549_v22 = vcombine.low %v287_v9, %v295_v11  ;;  %v399_v3 = vld [vmem:[#allocation9 + $0x7a8] sm:$0xff] }
 0x121   :  { %v12564_v23 = vcombine.high %v302_v16, %v310_v17 }
 0x122   :  { %1889 = vmatmul.mubr.bf16.vlgmr.msra.gmra.mrb[4].mxu0 %v15203_v12  ;;  %1930 = vmatmul.mubr.bf16.vlgmr.msra.gmra.mrb[4].mxu1 %v15203_v12 }
 0x123   :  { %1939 = vmatpush1.bf16.msra.mxu0 %v12419_v19  ;;  %1980 = vmatpush1.bf16.msra.mxu1 %v12421_v20  ;;  %v12550_v19 = vcombine.high %v287_v9, %v295_v11  ;;  %v311_v20 = vld [vmem:[#allocation9 + $0x4e8] sm:$0xff]  ;;  %v160_v9 = vld [vmem:[#allocation9 + $0x30] sm:$0xff]  ;;  %v161_v11 = vld [vmem:[#allocation9 + $0x38] sm:$0xff] }
 0x124   :  { %1940 = vmatprep.subr.bf16.mxu0 %v12436_v21  ;;  %1981 = vmatprep.subr.bf16.mxu1 %v12438_v25  ;;  %v12547_v21 = vcombine.low %v286_v7, %v294_v8  ;;  %v326_v25 = vld [vmem:[#allocation9 + $0x560] sm:$0xff]  ;;  %v12565_v30 = vcombine.low %v303_v18, %v311_v20 }
 0x125   :  { %1970 = vmatprep.mubr.bf16.mxu0 %v15199_v57  ;;  %2011 = vmatprep.mubr.bf16.mxu1 %v15199_v57  ;;  %v12580_v31 = vcombine.high %v318_v24, %v326_v25 }
 0x127   :  { %1941 = vmatpush1.bf16.msra.mxu0 %v12435_v27  ;;  %1982 = vmatpush1.bf16.msra.mxu1 %v12437_v28  ;;  %v12566_v27 = vcombine.high %v303_v18, %v311_v20  ;;  %v327_v28 = vld [vmem:[#allocation9 + $0x568] sm:$0xff]  ;;  %v176_v18 = vld [vmem:[#allocation9 + $0xb0] sm:$0xff]  ;;  %v177_v20 = vld [vmem:[#allocation9 + $0xb8] sm:$0xff] }
 0x128   :  { %1942 = vmatprep.subr.bf16.mxu0 %v12452_v29  ;;  %1983 = vmatprep.subr.bf16.mxu1 %v12454_v33  ;;  %v12563_v29 = vcombine.low %v302_v16, %v310_v17  ;;  %v342_v33 = vld [vmem:[#allocation9 + $0x5e0] sm:$0xff]  ;;  %v12581_v38 = vcombine.low %v319_v26, %v327_v28 }
 0x129   :  { %v12596_v39 = vcombine.high %v334_v32, %v342_v33 }
 0x12b   :  { %1943 = vmatpush1.bf16.msra.mxu0 %v12451_v35  ;;  %1984 = vmatpush1.bf16.msra.mxu1 %v12453_v36  ;;  %v12582_v35 = vcombine.high %v319_v26, %v327_v28  ;;  %v343_v36 = vld [vmem:[#allocation9 + $0x5e8] sm:$0xff]  ;;  %v192_v26 = vld [vmem:[#allocation9 + $0x130] sm:$0xff]  ;;  %v193_v28 = vld [vmem:[#allocation9 + $0x138] sm:$0xff] }
 0x12c   :  { %1944 = vmatprep.subr.bf16.mxu0 %v12468_v37  ;;  %1985 = vmatprep.subr.bf16.mxu1 %v12470_v41  ;;  %v12579_v37 = vcombine.low %v318_v24, %v326_v25  ;;  %v358_v41 = vld [vmem:[#allocation9 + $0x660] sm:$0xff]  ;;  %v12597_v46 = vcombine.low %v335_v34, %v343_v36 }
 0x12d   :  { %v12612_v47 = vcombine.high %v350_v40, %v358_v41 }
 0x12f   :  { %1945 = vmatpush1.bf16.msra.mxu0 %v12467_v43  ;;  %1986 = vmatpush1.bf16.msra.mxu1 %v12469_v44  ;;  %v12598_v43 = vcombine.high %v335_v34, %v343_v36  ;;  %v359_v44 = vld [vmem:[#allocation9 + $0x668] sm:$0xff]  ;;  %v208_v34 = vld [vmem:[#allocation9 + $0x1b0] sm:$0xff]  ;;  %v209_v36 = vld [vmem:[#allocation9 + $0x1b8] sm:$0xff] }
 0x130   :  { %1946 = vmatprep.subr.bf16.mxu0 %v12484_v45  ;;  %1987 = vmatprep.subr.bf16.mxu1 %v12486_v49  ;;  %v12595_v45 = vcombine.low %v334_v32, %v342_v33  ;;  %v374_v49 = vld [vmem:[#allocation9 + $0x6e0] sm:$0xff]  ;;  %v12613_v54 = vcombine.low %v351_v42, %v359_v44 }
 0x131   :  { %v12628_v55 = vcombine.high %v366_v48, %v374_v49 }
 0x133   :  { %1947 = vmatpush1.bf16.msra.mxu0 %v12483_v51  ;;  %1988 = vmatpush1.bf16.msra.mxu1 %v12485_v52  ;;  %v12614_v51 = vcombine.high %v351_v42, %v359_v44  ;;  %v375_v52 = vld [vmem:[#allocation9 + $0x6e8] sm:$0xff]  ;;  %v224_v42 = vld [vmem:[#allocation9 + $0x230] sm:$0xff]  ;;  %v225_v44 = vld [vmem:[#allocation9 + $0x238] sm:$0xff] }
 0x134   :  { %1948 = vmatprep.subr.bf16.mxu0 %v12500_v53  ;;  %1989 = vmatprep.subr.bf16.mxu1 %v12502_v58  ;;  %v12611_v53 = vcombine.low %v350_v40, %v358_v41  ;;  %v390_v58 = vld [vmem:[#allocation9 + $0x760] sm:$0xff]  ;;  %v12629_v63 = vcombine.low %v367_v50, %v375_v52 }
 0x135   :  { %v12644_v0 = vcombine.high %v382_v56, %v390_v58 }
 0x137   :  { %1949 = vmatpush1.bf16.msra.mxu0 %v12499_v60  ;;  %1990 = vmatpush1.bf16.msra.mxu1 %v12501_v61  ;;  %v12630_v60 = vcombine.high %v367_v50, %v375_v52  ;;  %v391_v61 = vld [vmem:[#allocation9 + $0x768] sm:$0xff]  ;;  %v240_v50 = vld [vmem:[#allocation9 + $0x2b0] sm:$0xff] }
 0x138   :  { %1950 = vmatprep.subr.bf16.mxu0 %v12516_v62  ;;  %1991 = vmatprep.subr.bf16.mxu1 %v12518_v1  ;;  %v12627_v62 = vcombine.low %v366_v48, %v374_v49  ;;  %v398_v1 = vld [vmem:[#allocation9 + $0x7a0] sm:$0xff]  ;;  %v12645_v7 = vcombine.low %v383_v59, %v391_v61 }
 0x139   :  { %v12660_v8 = vcombine.high %v398_v1, %v406_v2 }
 0x13b   :  { %1951 = vmatpush1.bf16.msra.mxu0 %v12515_v4  ;;  %1992 = vmatpush1.bf16.msra.mxu1 %v12517_v5  ;;  %v12646_v4 = vcombine.high %v383_v59, %v391_v61  ;;  %v407_v5 = vld [vmem:[#allocation9 + $0x7e8] sm:$0xff]  ;;  %v264_v59 = vld [vmem:[#allocation9 + $0x370] sm:$0xff] }
 0x13c   :  { %1952 = vmatprep.subr.bf16.mxu0 %v12532_v6  ;;  %1993 = vmatprep.subr.bf16.mxu1 %v12534_v10  ;;  %v12643_v6 = vcombine.low %v382_v56, %v390_v58  ;;  %v168_v10 = vld [vmem:[#allocation9 + $0x70] sm:$0xff]  ;;  %v12661_v16 = vcombine.low %v399_v3, %v407_v5 }
 0x13d   :  { %v12424_v17 = vcombine.high %v160_v9, %v168_v10  ;;  %v256_v58 = vld [vmem:[#allocation9 + $0x330] sm:$0xff] }
 0x13f   :  { %1953 = vmatpush1.bf16.msra.mxu0 %v12531_v13  ;;  %1994 = vmatpush1.bf16.msra.mxu1 %v12533_v14  ;;  %v12662_v13 = vcombine.high %v399_v3, %v407_v5  ;;  %v169_v14 = vld [vmem:[#allocation9 + $0x78] sm:$0xff]  ;;  %v280_v3 = vld [vmem:[#allocation9 + $0x3f0] sm:$0xff] }
 0x140   :  { %1954 = vmatprep.subr.bf16.mxu0 %v12548_v15  ;;  %1995 = vmatprep.subr.bf16.mxu1 %v12550_v19  ;;  %v12659_v15 = vcombine.low %v398_v1, %v406_v2  ;;  %v184_v19 = vld [vmem:[#allocation9 + $0xf0] sm:$0xff]  ;;  %v12425_v24 = vcombine.low %v161_v11, %v169_v14  ;;  %v12520_v1 = vcombine.high %v256_v58, %v264_v59 }
 0x141   :  { %v12440_v25 = vcombine.high %v176_v18, %v184_v19  ;;  %v272_v2 = vld [vmem:[#allocation9 + $0x3b0] sm:$0xff] }
 0x143   :  { %1955 = vmatpush1.bf16.msra.mxu0 %v12547_v21  ;;  %1996 = vmatpush1.bf16.msra.mxu1 %v12549_v22  ;;  %v12426_v21 = vcombine.high %v161_v11, %v169_v14  ;;  %v185_v22 = vld [vmem:[#allocation9 + $0xf8] sm:$0xff]  ;;  %v296_v11 = vld [vmem:[#allocation9 + $0x470] sm:$0xff] }
 0x144   :  { %1956 = vmatprep.subr.bf16.mxu0 %v12564_v23  ;;  %1997 = vmatprep.subr.bf16.mxu1 %v12566_v27  ;;  %v12423_v23 = vcombine.low %v160_v9, %v168_v10  ;;  %v200_v27 = vld [vmem:[#allocation9 + $0x170] sm:$0xff]  ;;  %v12441_v32 = vcombine.low %v177_v20, %v185_v22  ;;  %v12536_v9 = vcombine.high %v272_v2, %v280_v3 }
 0x145   :  { %v12456_v33 = vcombine.high %v192_v26, %v200_v27  ;;  %v288_v10 = vld [vmem:[#allocation9 + $0x430] sm:$0xff] }
 0x147   :  { %1957 = vmatpush1.bf16.msra.mxu0 %v12563_v29  ;;  %1998 = vmatpush1.bf16.msra.mxu1 %v12565_v30  ;;  %v12442_v29 = vcombine.high %v177_v20, %v185_v22  ;;  %v201_v30 = vld [vmem:[#allocation9 + $0x178] sm:$0xff]  ;;  %v312_v20 = vld [vmem:[#allocation9 + $0x4f0] sm:$0xff] }
 0x148   :  { %1958 = vmatprep.subr.bf16.mxu0 %v12580_v31  ;;  %1999 = vmatprep.subr.bf16.mxu1 %v12582_v35  ;;  %v12439_v31 = vcombine.low %v176_v18, %v184_v19  ;;  %v216_v35 = vld [vmem:[#allocation9 + $0x1f0] sm:$0xff]  ;;  %v12457_v40 = vcombine.low %v193_v28, %v201_v30  ;;  %v12552_v18 = vcombine.high %v288_v10, %v296_v11 }
 0x149   :  { %v12472_v41 = vcombine.high %v208_v34, %v216_v35  ;;  %v304_v19 = vld [vmem:[#allocation9 + $0x4b0] sm:$0xff] }
 0x14b   :  { %1959 = vmatpush1.bf16.msra.mxu0 %v12579_v37  ;;  %2000 = vmatpush1.bf16.msra.mxu1 %v12581_v38  ;;  %v12458_v37 = vcombine.high %v193_v28, %v201_v30  ;;  %v217_v38 = vld [vmem:[#allocation9 + $0x1f8] sm:$0xff]  ;;  %v328_v28 = vld [vmem:[#allocation9 + $0x570] sm:$0xff] }
 0x14c   :  { %1960 = vmatprep.subr.bf16.mxu0 %v12596_v39  ;;  %2001 = vmatprep.subr.bf16.mxu1 %v12598_v43  ;;  %v12455_v39 = vcombine.low %v192_v26, %v200_v27  ;;  %v232_v43 = vld [vmem:[#allocation9 + $0x270] sm:$0xff]  ;;  %v12473_v48 = vcombine.low %v209_v36, %v217_v38  ;;  %v12568_v26 = vcombine.high %v304_v19, %v312_v20 }
 0x14d   :  { %v12488_v49 = vcombine.high %v224_v42, %v232_v43  ;;  %v320_v27 = vld [vmem:[#allocation9 + $0x530] sm:$0xff] }
 0x14f   :  { %1961 = vmatpush1.bf16.msra.mxu0 %v12595_v45  ;;  %2002 = vmatpush1.bf16.msra.mxu1 %v12597_v46  ;;  %v12474_v45 = vcombine.high %v209_v36, %v217_v38  ;;  %v233_v46 = vld [vmem:[#allocation9 + $0x278] sm:$0xff]  ;;  %v344_v36 = vld [vmem:[#allocation9 + $0x5f0] sm:$0xff] }
 0x150   :  { %1962 = vmatprep.subr.bf16.mxu0 %v12612_v47  ;;  %2003 = vmatprep.subr.bf16.mxu1 %v12614_v51  ;;  %v12471_v47 = vcombine.low %v208_v34, %v216_v35  ;;  %v241_v51 = vld [vmem:[#allocation9 + $0x2b8] sm:$0xff]  ;;  %v12490_v52 = vcombine.high %v225_v44, %v233_v46  ;;  %v12584_v34 = vcombine.high %v320_v27, %v328_v28  ;;  %v336_v35 = vld [vmem:[#allocation9 + $0x5b0] sm:$0xff] }
 0x153   :  { %1963 = vmatpush1.bf16.msra.mxu0 %v12611_v53  ;;  %2004 = vmatpush1.bf16.msra.mxu1 %v12613_v54  ;;  %v249_v53 = vld [vmem:[#allocation9 + $0x2f8] sm:$0xff]  ;;  %v12487_v54 = vcombine.low %v224_v42, %v232_v43  ;;  %v12600_v42 = vcombine.high %v336_v35, %v344_v36  ;;  %v352_v43 = vld [vmem:[#allocation9 + $0x630] sm:$0xff] }
 0x154   :  { %1964 = vmatprep.subr.bf16.mxu0 %v12628_v55  ;;  %2005 = vmatprep.subr.bf16.mxu1 %v12630_v60  ;;  %v12489_v55 = vcombine.low %v225_v44, %v233_v46  ;;  %v257_v60 = vld [vmem:[#allocation9 + $0x338] sm:$0xff]  ;;  %v12506_v61 = vcombine.high %v241_v51, %v249_v53  ;;  %v360_v44 = vld [vmem:[#allocation9 + $0x670] sm:$0xff] }
 0x157   :  { %1965 = vmatpush1.bf16.msra.mxu0 %v12627_v62  ;;  %2006 = vmatpush1.bf16.msra.mxu1 %v12629_v63  ;;  %v265_v62 = vld [vmem:[#allocation9 + $0x378] sm:$0xff] }
 0x158   :  { %1966 = vmatprep.subr.bf16.mxu0 %v12644_v0  ;;  %2007 = vmatprep.subr.bf16.mxu1 %v12646_v4  ;;  %v12505_v0 = vcombine.low %v241_v51, %v249_v53  ;;  %v273_v4 = vld [vmem:[#allocation9 + $0x3b8] sm:$0xff]  ;;  %v12522_v5 = vcombine.high %v257_v60, %v265_v62  ;;  %v376_v51 = vld [vmem:[#allocation9 + $0x6f0] sm:$0xff] }
 0x15b   :  { %1967 = vmatpush1.bf16.msra.mxu0 %v12643_v6  ;;  %2008 = vmatpush1.bf16.msra.mxu1 %v12645_v7  ;;  %v281_v6 = vld [vmem:[#allocation9 + $0x3f8] sm:$0xff]  ;;  %v12519_v7 = vcombine.low %v256_v58, %v264_v59  ;;  %v384_v59 = vld [vmem:[#allocation9 + $0x730] sm:$0xff] }
 0x15c   :  { %1968 = vmatprep.subr.bf16.mxu0 %v12660_v8  ;;  %2009 = vmatprep.subr.bf16.mxu1 %v12662_v13  ;;  %v12521_v8 = vcombine.low %v257_v60, %v265_v62  ;;  %v289_v13 = vld [vmem:[#allocation9 + $0x438] sm:$0xff]  ;;  %v12538_v14 = vcombine.high %v273_v4, %v281_v6  ;;  %v392_v60 = vld [vmem:[#allocation9 + $0x770] sm:$0xff] }
 0x15f   :  { %1969 = vmatpush1.bf16.msra.mxu0 %v12659_v15  ;;  %2010 = vmatpush1.bf16.msra.mxu1 %v12661_v16  ;;  %v297_v15 = vld [vmem:[#allocation9 + $0x478] sm:$0xff]  ;;  %v12535_v16 = vcombine.low %v272_v2, %v280_v3  ;;  %v12648_v2 = vcombine.high %v384_v59, %v392_v60  ;;  %v400_v3 = vld [vmem:[#allocation9 + $0x7b0] sm:$0xff] }
 0x160   :  { %2020 = vmatprep.subr.bf16.mxu0 %v12424_v17  ;;  %2061 = vmatprep.subr.bf16.mxu1 %v12426_v21  ;;  %v12537_v17 = vcombine.low %v273_v4, %v281_v6  ;;  %v305_v21 = vld [vmem:[#allocation9 + $0x4b8] sm:$0xff]  ;;  %v12554_v22 = vcombine.high %v289_v13, %v297_v15  ;;  %v408_v4 = vld [vmem:[#allocation9 + $0x7f0] sm:$0xff] }
 0x162   :  { %1971 = vmatmul.mubr.bf16.vlgmr.msra.gmra.mrb[8].mxu0 %v15203_v12  ;;  %2012 = vmatmul.mubr.bf16.vlgmr.msra.gmra.mrb[8].mxu1 %v15203_v12 }
 0x163   :  { %2021 = vmatpush1.bf16.msra.mxu0 %v12423_v23  ;;  %2062 = vmatpush1.bf16.msra.mxu1 %v12425_v24  ;;  %v313_v23 = vld [vmem:[#allocation9 + $0x4f8] sm:$0xff]  ;;  %v12551_v24 = vcombine.low %v288_v10, %v296_v11  ;;  %v12664_v10 = vcombine.high %v400_v3, %v408_v4 }
 0x164   :  { %2022 = vmatprep.subr.bf16.mxu0 %v12440_v25  ;;  %2063 = vmatprep.subr.bf16.mxu1 %v12442_v29  ;;  %v12553_v25 = vcombine.low %v289_v13, %v297_v15  ;;  %v321_v29 = vld [vmem:[#allocation9 + $0x538] sm:$0xff]  ;;  %v12570_v30 = vcombine.high %v305_v21, %v313_v23  ;;  %v2168_v13 = vld [vmem:[#allocation10] sm:$0xff]  ;;  %v2169_v15 = vld [vmem:[#allocation10 + $0x8] sm:$0xff] }
 0x165   :  { %2052 = vmatprep.mubr.bf16.mxu0 %v15199_v57  ;;  %2093 = vmatprep.mubr.bf16.mxu1 %v15199_v57  ;;  %v248_v57 = vld [vmem:[#allocation9 + $0x2f0] sm:$0xff] }
 0x166   :  { %v12504_v56 = vcombine.high %v240_v50, %v248_v57  ;;  %v12503_v63 = vcombine.low %v240_v50, %v248_v57  ;;  %v12616_v50 = vcombine.high %v352_v43, %v360_v44  ;;  %v368_v57 = vld [vmem:[#allocation9 + $0x6b0] sm:$0xff] }
 0x167   :  { %2023 = vmatpush1.bf16.msra.mxu0 %v12439_v31  ;;  %2064 = vmatpush1.bf16.msra.mxu1 %v12441_v32  ;;  %v329_v31 = vld [vmem:[#allocation9 + $0x578] sm:$0xff]  ;;  %v12567_v32 = vcombine.low %v304_v19, %v312_v20  ;;  %v12632_v58 = vcombine.high %v368_v57, %v376_v51 }
 0x168   :  { %2024 = vmatprep.subr.bf16.mxu0 %v12456_v33  ;;  %2065 = vmatprep.subr.bf16.mxu1 %v12458_v37  ;;  %v12569_v33 = vcombine.low %v305_v21, %v313_v23  ;;  %v337_v37 = vld [vmem:[#allocation9 + $0x5b8] sm:$0xff]  ;;  %v12586_v38 = vcombine.high %v321_v29, %v329_v31  ;;  %v2176_v21 = vld [vmem:[#allocation10 + $0x40] sm:$0xff]  ;;  %v2177_v23 = vld [vmem:[#allocation10 + $0x48] sm:$0xff] }
 0x16b   :  { %2025 = vmatpush1.bf16.msra.mxu0 %v12455_v39  ;;  %2066 = vmatpush1.bf16.msra.mxu1 %v12457_v40  ;;  %v345_v39 = vld [vmem:[#allocation9 + $0x5f8] sm:$0xff]  ;;  %v12583_v40 = vcombine.low %v320_v27, %v328_v28 }
 0x16c   :  { %2026 = vmatprep.subr.bf16.mxu0 %v12472_v41  ;;  %2067 = vmatprep.subr.bf16.mxu1 %v12474_v45  ;;  %v12585_v41 = vcombine.low %v321_v29, %v329_v31  ;;  %v353_v45 = vld [vmem:[#allocation9 + $0x638] sm:$0xff]  ;;  %v12602_v46 = vcombine.high %v337_v37, %v345_v39  ;;  %v2184_v29 = vld [vmem:[#allocation10 + $0x80] sm:$0xff]  ;;  %v2185_v31 = vld [vmem:[#allocation10 + $0x88] sm:$0xff] }
 0x16f   :  { %2027 = vmatpush1.bf16.msra.mxu0 %v12471_v47  ;;  %2068 = vmatpush1.bf16.msra.mxu1 %v12473_v48  ;;  %v361_v47 = vld [vmem:[#allocation9 + $0x678] sm:$0xff]  ;;  %v12599_v48 = vcombine.low %v336_v35, %v344_v36 }
 0x170   :  { %2028 = vmatprep.subr.bf16.mxu0 %v12488_v49  ;;  %2069 = vmatprep.subr.bf16.mxu1 %v12490_v52  ;;  %v12601_v49 = vcombine.low %v337_v37, %v345_v39  ;;  %v369_v52 = vld [vmem:[#allocation9 + $0x6b8] sm:$0xff]  ;;  %v12618_v53 = vcombine.high %v353_v45, %v361_v47  ;;  %v2192_v37 = vld [vmem:[#allocation10 + $0xc0] sm:$0xff]  ;;  %v2193_v39 = vld [vmem:[#allocation10 + $0xc8] sm:$0xff] }
 0x173   :  { %2029 = vmatpush1.bf16.msra.mxu0 %v12487_v54  ;;  %2070 = vmatpush1.bf16.msra.mxu1 %v12489_v55  ;;  %v377_v54 = vld [vmem:[#allocation9 + $0x6f8] sm:$0xff]  ;;  %v12615_v55 = vcombine.low %v352_v43, %v360_v44 }
 0x174   :  { %2030 = vmatprep.subr.bf16.mxu0 %v12504_v56  ;;  %2071 = vmatprep.subr.bf16.mxu1 %v12506_v61  ;;  %v12617_v56 = vcombine.low %v353_v45, %v361_v47  ;;  %v385_v61 = vld [vmem:[#allocation9 + $0x738] sm:$0xff]  ;;  %v12634_v62 = vcombine.high %v369_v52, %v377_v54  ;;  %v2200_v45 = vld [vmem:[#allocation10 + $0x100] sm:$0xff]  ;;  %v2201_v47 = vld [vmem:[#allocation10 + $0x108] sm:$0xff] }
 0x177   :  { %2031 = vmatpush1.bf16.msra.mxu0 %v12503_v63  ;;  %2072 = vmatpush1.bf16.msra.mxu1 %v12505_v0  ;;  %v393_v63 = vld [vmem:[#allocation9 + $0x778] sm:$0xff]  ;;  %v12631_v0 = vcombine.low %v368_v57, %v376_v51 }
 0x178   :  { %2032 = vmatprep.subr.bf16.mxu0 %v12520_v1  ;;  %2073 = vmatprep.subr.bf16.mxu1 %v12522_v5  ;;  %v12633_v1 = vcombine.low %v369_v52, %v377_v54  ;;  %v401_v5 = vld [vmem:[#allocation9 + $0x7b8] sm:$0xff]  ;;  %v12650_v6 = vcombine.high %v385_v61, %v393_v63  ;;  %v2212_v54 = vld [vmem:[#allocation10 + $0x160] sm:$0xff] }
 0x17b   :  { %2033 = vmatpush1.bf16.msra.mxu0 %v12519_v7  ;;  %2074 = vmatpush1.bf16.msra.mxu1 %v12521_v8  ;;  %v409_v7 = vld [vmem:[#allocation9 + $0x7f8] sm:$0xff]  ;;  %v12647_v8 = vcombine.low %v384_v59, %v392_v60 }
 0x17c   :  { %2034 = vmatprep.subr.bf16.mxu0 %v12536_v9  ;;  %2075 = vmatprep.subr.bf16.mxu1 %v12538_v14  ;;  %v12649_v9 = vcombine.low %v385_v61, %v393_v63  ;;  %v12666_v11 = vcombine.high %v401_v5, %v409_v7  ;;  %v2172_v14 = vld [vmem:[#allocation10 + $0x20] sm:$0xff] }
 0x17d   :  { %v12668_v19 = vcombine.high %v2168_v13, %v2172_v14  ;;  %v15224_v61 = vld [vmem:[#allocation7] sm:$0xff] }
 0x17f   :  { %2035 = vmatpush1.bf16.msra.mxu0 %v12535_v16  ;;  %2076 = vmatpush1.bf16.msra.mxu1 %v12537_v17  ;;  %v2173_v16 = vld [vmem:[#allocation10 + $0x28] sm:$0xff]  ;;  %v12663_v17 = vcombine.low %v400_v3, %v408_v4 }
 0x180   :  { %2036 = vmatprep.subr.bf16.mxu0 %v12552_v18  ;;  %2077 = vmatprep.subr.bf16.mxu1 %v12554_v22  ;;  %v12665_v18 = vcombine.low %v401_v5, %v409_v7  ;;  %v12670_v20 = vcombine.high %v2169_v15, %v2173_v16  ;;  %v2180_v22 = vld [vmem:[#allocation10 + $0x60] sm:$0xff]  ;;  %v2221_v3 = vld [vmem:[#allocation10 + $0x1a8] sm:$0xff] }
 0x181   :  { %v12676_v27 = vcombine.high %v2176_v21, %v2180_v22 }
 0x183   :  { %2037 = vmatpush1.bf16.msra.mxu0 %v12551_v24  ;;  %2078 = vmatpush1.bf16.msra.mxu1 %v12553_v25  ;;  %v2181_v24 = vld [vmem:[#allocation10 + $0x68] sm:$0xff]  ;;  %v12667_v25 = vcombine.low %v2168_v13, %v2172_v14  ;;  %v15230_v13 = vstv %s2102_s8 }
 0x184   :  { %2038 = vmatprep.subr.bf16.mxu0 %v12568_v26  ;;  %2079 = vmatprep.subr.bf16.mxu1 %v12570_v30  ;;  %v12669_v26 = vcombine.low %v2169_v15, %v2173_v16  ;;  %v12678_v28 = vcombine.high %v2177_v23, %v2181_v24  ;;  %v2188_v30 = vld [vmem:[#allocation10 + $0xa0] sm:$0xff]  ;;  %v2225_v15 = vld [vmem:[#allocation10 + $0x1c8] sm:$0xff] }
 0x185   :  { %v12684_v35 = vcombine.high %v2184_v29, %v2188_v30  ;;  %v2229_v16 = vld [vmem:[#allocation10 + $0x1e8] sm:$0xff] }
 0x187   :  { %2039 = vmatpush1.bf16.msra.mxu0 %v12567_v32  ;;  %2080 = vmatpush1.bf16.msra.mxu1 %v12569_v33  ;;  %v2189_v32 = vld [vmem:[#allocation10 + $0xa8] sm:$0xff]  ;;  %v12675_v33 = vcombine.low %v2176_v21, %v2180_v22 }
 0x188   :  { %2040 = vmatprep.subr.bf16.mxu0 %v12584_v34  ;;  %2081 = vmatprep.subr.bf16.mxu1 %v12586_v38  ;;  %v12677_v34 = vcombine.low %v2177_v23, %v2181_v24  ;;  %v12686_v36 = vcombine.high %v2185_v31, %v2189_v32  ;;  %v2196_v38 = vld [vmem:[#allocation10 + $0xe0] sm:$0xff]  ;;  %v12685_v43 = vcombine.low %v2185_v31, %v2189_v32  ;;  %v2233_v31 = vld [vmem:[#allocation10 + $0x208] sm:$0xff] }
 0x189   :  { %v12692_v44 = vcombine.high %v2192_v37, %v2196_v38  ;;  %v2237_v32 = vld [vmem:[#allocation10 + $0x228] sm:$0xff] }
 0x18b   :  { %2041 = vmatpush1.bf16.msra.mxu0 %v12583_v40  ;;  %2082 = vmatpush1.bf16.msra.mxu1 %v12585_v41  ;;  %v2197_v40 = vld [vmem:[#allocation10 + $0xe8] sm:$0xff]  ;;  %v12683_v41 = vcombine.low %v2184_v29, %v2188_v30  ;;  %v2236_v29 = vld [vmem:[#allocation10 + $0x220] sm:$0xff] }
 0x18c   :  { %2042 = vmatprep.subr.bf16.mxu0 %v12600_v42  ;;  %2083 = vmatprep.subr.bf16.mxu1 %v12602_v46  ;;  %v414_v42 = vlaneseq  ;;  %v2204_v46 = vld [vmem:[#allocation10 + $0x120] sm:$0xff]  ;;  %v12693_v57 = vcombine.low %v2193_v39, %v2197_v40 }
 0x18d   :  { %v12700_v51 = vcombine.high %v2200_v45, %v2204_v46 }
 0x18f   :  { %2043 = vmatpush1.bf16.msra.mxu0 %v12599_v48  ;;  %2084 = vmatpush1.bf16.msra.mxu1 %v12601_v49  ;;  %v2205_v48 = vld [vmem:[#allocation10 + $0x128] sm:$0xff]  ;;  %v12691_v49 = vcombine.low %v2192_v37, %v2196_v38  ;;  %v12734_v38 = vcombine.high %v2233_v31, %v2237_v32 }
 0x190   :  { %2044 = vmatprep.subr.bf16.mxu0 %v12616_v50  ;;  %2085 = vmatprep.subr.bf16.mxu1 %v12618_v53  ;;  %v15219_v50 = vshrl.u32 %v414_v42, 7  ;;  %v12702_v52 = vcombine.high %v2201_v47, %v2205_v48  ;;  %v2208_v53 = vld [vmem:[#allocation10 + $0x140] sm:$0xff]  ;;  %v12701_v60 = vcombine.low %v2201_v47, %v2205_v48  ;;  %v2245_v42 = vld [vmem:[#allocation10 + $0x268] sm:$0xff] }
 0x191   :  { %v12707_v5 = vcombine.low %v2208_v53, %v2212_v54  ;;  %v2252_v47 = vld [vmem:[#allocation10 + $0x2a0] sm:$0xff]  ;;  %v2249_v48 = vld [vmem:[#allocation10 + $0x288] sm:$0xff] }
 0x192   :  { %v15222_v59 = vsub.s32 1, %v15219_v50 }
 0x193   :  { %2045 = vmatpush1.bf16.msra.mxu0 %v12615_v55  ;;  %2086 = vmatpush1.bf16.msra.mxu1 %v12617_v56  ;;  %v2209_v55 = vld [vmem:[#allocation10 + $0x148] sm:$0xff] }
 0x194   :  { %2046 = vmatprep.subr.bf16.mxu0 %v12632_v58  ;;  %2087 = vmatprep.subr.bf16.mxu1 %v12634_v62  ;;  %v2213_v56 = vld [vmem:[#allocation10 + $0x168] sm:$0xff]  ;;  %v12699_v58 = vcombine.low %v2200_v45, %v2204_v46  ;;  %v12708_v62 = vcombine.high %v2208_v53, %v2212_v54  ;;  %v421_v4 = vrot.slane %v15224_v61, %v15222_v59  ;;  %v2248_v46 = vld [vmem:[#allocation10 + $0x280] sm:$0xff] }
 0x195   :  { %v12710_v63 = vcombine.high %v2209_v55, %v2213_v56  ;;  %v2256_v54 = vld [vmem:[#allocation10 + $0x2c0] sm:$0xff] }
 0x197   :  { %2047 = vmatpush1.bf16.msra.mxu0 %v12631_v0  ;;  %2088 = vmatpush1.bf16.msra.mxu1 %v12633_v1  ;;  %v2216_v0 = vld [vmem:[#allocation10 + $0x180] sm:$0xff] }
 0x198   :  { %2048 = vmatprep.subr.bf16.mxu0 %v12648_v2  ;;  %2089 = vmatprep.subr.bf16.mxu1 %v12650_v6  ;;  %v2220_v1 = vld [vmem:[#allocation10 + $0x1a0] sm:$0xff]  ;;  %v2217_v2 = vld [vmem:[#allocation10 + $0x188] sm:$0xff]  ;;  %v12709_v6 = vcombine.low %v2209_v55, %v2213_v56 }
 0x199   :  { %v12716_v7 = vcombine.high %v2216_v0, %v2220_v1  ;;  %v12717_v23 = vcombine.low %v2217_v2, %v2221_v3  ;;  %v2260_v55 = vld [vmem:[#allocation10 + $0x2e0] sm:$0xff]  ;;  %v2257_v56 = vld [vmem:[#allocation10 + $0x2c8] sm:$0xff] }
 0x19b   :  { %2049 = vmatpush1.bf16.msra.mxu0 %v12647_v8  ;;  %2090 = vmatpush1.bf16.msra.mxu1 %v12649_v9  ;;  %v12718_v9 = vcombine.high %v2217_v2, %v2221_v3  ;;  %v2268_v2 = vld [vmem:[#allocation10 + $0x320] sm:$0xff]  ;;  %v2265_v3 = vld [vmem:[#allocation10 + $0x308] sm:$0xff] }
 0x19c   :  { %2050 = vmatprep.subr.bf16.mxu0 %v12664_v10  ;;  %2091 = vmatprep.subr.bf16.mxu1 %v12666_v11  ;;  %v2224_v10 = vld [vmem:[#allocation10 + $0x1c0] sm:$0xff] }
 0x19d   :  { %v2228_v11 = vld [vmem:[#allocation10 + $0x1e0] sm:$0xff] }
 0x19e   :  { %v12724_v24 = vcombine.high %v2224_v10, %v2228_v11 }
 0x19f   :  { %2051 = vmatpush1.bf16.msra.mxu0 %v12663_v17  ;;  %2092 = vmatpush1.bf16.msra.mxu1 %v12665_v18 }
 0x1a0   :  { %8354 = vmatprep.subr.bf16.mxu0 %v12668_v19  ;;  %8682 = vmatprep.subr.bf16.mxu1 %v12670_v20  ;;  %v12715_v20 = vcombine.low %v2216_v0, %v2220_v1  ;;  %v2264_v1 = vld [vmem:[#allocation10 + $0x300] sm:$0xff] }
 0x1a2   :  { %2053 = vmatmul.mubr.bf16.vlgmr.msra.gmra.mrb[12].mxu0 %v15203_v12  ;;  %2094 = vmatmul.mubr.bf16.vlgmr.msra.gmra.mrb[12].mxu1 %v15203_v12  ;;  %v12694_v12 = vcombine.high %v2193_v39, %v2197_v40  ;;  %v2240_v39 = vld [vmem:[#allocation10 + $0x240] sm:$0xff] }
 0x1a3   :  { %8355 = vmatpush1.bf16.msra.mxu0 %v12667_v25  ;;  %8683 = vmatpush1.bf16.msra.mxu1 %v12669_v26  ;;  %v2244_v40 = vld [vmem:[#allocation10 + $0x260] sm:$0xff] }
 0x1a4   :  { %8356 = vmatprep.subr.bf16.mxu0 %v12676_v27  ;;  %8684 = vmatprep.subr.bf16.mxu1 %v12678_v28  ;;  %v12726_v27 = vcombine.high %v2225_v15, %v2229_v16  ;;  %v2232_v28 = vld [vmem:[#allocation10 + $0x200] sm:$0xff] }
 0x1a5   :  { %v12732_v37 = vcombine.high %v2232_v28, %v2236_v29 }
 0x1a7   :  { %8357 = vmatpush1.bf16.msra.mxu0 %v12675_v33  ;;  %8685 = vmatpush1.bf16.msra.mxu1 %v12677_v34  ;;  %v12723_v34 = vcombine.low %v2224_v10, %v2228_v11  ;;  %v2272_v11 = vld [vmem:[#allocation10 + $0x340] sm:$0xff] }
 0x1a8   :  { %8358 = vmatprep.subr.bf16.mxu0 %v12684_v35  ;;  %8686 = vmatprep.subr.bf16.mxu1 %v12686_v36  ;;  %v12725_v36 = vcombine.low %v2225_v15, %v2229_v16  ;;  %v2273_v15 = vld [vmem:[#allocation10 + $0x348] sm:$0xff] }
 0x1a9   :  { %v2277_v16 = vld [vmem:[#allocation10 + $0x368] sm:$0xff] }
 0x1ab   :  { %8359 = vmatpush1.bf16.msra.mxu0 %v12683_v41  ;;  %8687 = vmatpush1.bf16.msra.mxu1 %v12685_v43  ;;  %v2241_v41 = vld [vmem:[#allocation10 + $0x248] sm:$0xff]  ;;  %v12731_v43 = vcombine.low %v2232_v28, %v2236_v29 }
 0x1ac   :  { %8360 = vmatprep.subr.bf16.mxu0 %v12692_v44  ;;  %8688 = vmatprep.subr.bf16.mxu1 %v12694_v12  ;;  %v12733_v44 = vcombine.low %v2233_v31, %v2237_v32  ;;  %v12740_v12 = vcombine.high %v2240_v39, %v2244_v40  ;;  %v12742_v45 = vcombine.high %v2241_v41, %v2245_v42  ;;  %v2285_v28 = vld [vmem:[#allocation10 + $0x3a8] sm:$0xff] }
 0x1ad   :  { %v12773_v31 = vcombine.low %v2273_v15, %v2277_v16 }
 0x1af   :  { %8361 = vmatpush1.bf16.msra.mxu0 %v12691_v49  ;;  %8689 = vmatpush1.bf16.msra.mxu1 %v12693_v57  ;;  %v2253_v49 = vld [vmem:[#allocation10 + $0x2a8] sm:$0xff]  ;;  %v12739_v57 = vcombine.low %v2240_v39, %v2244_v40 }
 0x1b0   :  { %8362 = vmatprep.subr.bf16.mxu0 %v12700_v51  ;;  %8690 = vmatprep.subr.bf16.mxu1 %v12702_v52  ;;  %v12741_v51 = vcombine.low %v2241_v41, %v2245_v42  ;;  %v12748_v52 = vcombine.high %v2248_v46, %v2252_v47  ;;  %v12750_v53 = vcombine.high %v2249_v48, %v2253_v49  ;;  %v2293_v39 = vld [vmem:[#allocation10 + $0x3e8] sm:$0xff] }
 0x1b3   :  { %8363 = vmatpush1.bf16.msra.mxu0 %v12699_v58  ;;  %8691 = vmatpush1.bf16.msra.mxu1 %v12701_v60  ;;  %v2261_v58 = vld [vmem:[#allocation10 + $0x2e8] sm:$0xff]  ;;  %v12747_v60 = vcombine.low %v2248_v46, %v2252_v47 }
 0x1b4   :  { %8364 = vmatprep.subr.bf16.mxu0 %v12708_v62  ;;  %8692 = vmatprep.subr.bf16.mxu1 %v12710_v63  ;;  %v12749_v62 = vcombine.low %v2249_v48, %v2253_v49  ;;  %v12756_v63 = vcombine.high %v2256_v54, %v2260_v55  ;;  %v12758_v0 = vcombine.high %v2257_v56, %v2261_v58  ;;  %v2297_v46 = vld [vmem:[#allocation10 + $0x408] sm:$0xff] }
 0x1b5   :  { %v15228_v8 = vpop.f32.mrb[0].mxu0  ;;  %v15232_v17 = vpop.f32.mrb[0].mxu1  ;;  %v2301_v47 = vld [vmem:[#allocation10 + $0x428] sm:$0xff] }
 0x1b6   :  { %v1810_v14 = vpop.f32.mrb[1].mxu0  ;;  %v15234_v21 = vpop.f32.mrb[1].mxu1 }
 0x1b7   :  { %v1811_v18 = vadd.f32 %v1810_v14, %v421_v4  ;;  %v1812_v19 = vpop.f32.mrb[2].mxu0  ;;  %8365 = vmatpush1.bf16.msra.mxu0 %v12707_v5  ;;  %8693 = vmatpush1.bf16.msra.mxu1 %v12709_v6  ;;  %v1853_v25 = vpop.f32.mrb[2].mxu1  ;;  %v2269_v4 = vld [vmem:[#allocation10 + $0x328] sm:$0xff]  ;;  %v12755_v5 = vcombine.low %v2256_v54, %v2260_v55  ;;  %v12757_v6 = vcombine.low %v2257_v56, %v2261_v58  ;;  %v2276_v14 = vld [vmem:[#allocation10 + $0x360] sm:$0xff] }
 0x1b8   :  { %v1813_v22 = vpop.f32.mrb[3].mxu0  ;;  %8366 = vmatprep.subr.bf16.mxu0 %v12716_v7  ;;  %8694 = vmatprep.subr.bf16.mxu1 %v12718_v9  ;;  %v1854_v30 = vpop.f32.mrb[3].mxu1  ;;  %v12764_v7 = vcombine.high %v2264_v1, %v2268_v2  ;;  %v15242_v9 = vsub.s32 0, %v15219_v50  ;;  %v12766_v10 = vcombine.high %v2265_v3, %v2269_v4  ;;  %v12763_v19 = vcombine.low %v2264_v1, %v2268_v2  ;;  %v2280_v25 = vld [vmem:[#allocation10 + $0x380] sm:$0xff]  ;;  %v2305_v55 = vld [vmem:[#allocation10 + $0x448] sm:$0xff] }
 0x1b9   :  { %vm2104_vm0 = vcmp.gt.f32.partialorder %v1811_v18, 0.0  ;;  %v2121_v26 = vmul.f32 %v15230_v13, %v1811_v18  ;;  %v12772_v22 = vcombine.high %v2272_v11, %v2276_v14  ;;  %v12771_v30 = vcombine.low %v2272_v11, %v2276_v14  ;;  %v2308_v54 = vld [vmem:[#allocation10 + $0x460] sm:$0xff]  ;;  %v2309_v56 = vld [vmem:[#allocation10 + $0x468] sm:$0xff] }
 0x1ba   :  { %v12806_v1 = vcombine.high %v2305_v55, %v2309_v56  ;;  %v2312_v2 = vld [vmem:[#allocation10 + $0x480] sm:$0xff] }
 0x1bb   :  { %v2137_v33 = vsel %vm2104_vm0, %v1811_v18, %v2121_v26  ;;  %8367 = vmatpush1.bf16.msra.mxu0 %v12715_v20  ;;  %8695 = vmatpush1.bf16.msra.mxu1 %v12717_v23  ;;  %v15245_v18 = vsub.s32 3, %v15219_v50  ;;  %v12765_v20 = vcombine.low %v2265_v3, %v2269_v4  ;;  %v417_v23 = vrot.slane %v15224_v61, %v15242_v9  ;;  %v2284_v26 = vld [vmem:[#allocation10 + $0x3a0] sm:$0xff] }
 0x1bc   :  { %v15237_v35 = vpack.c.bf16 %v2137_v33, %v2137_v33  ;;  %8368 = vmatprep.subr.bf16.mxu0 %v12724_v24  ;;  %8696 = vmatprep.subr.bf16.mxu1 %v12726_v27  ;;  %v12774_v24 = vcombine.high %v2273_v15, %v2277_v16  ;;  %v2281_v27 = vld [vmem:[#allocation10 + $0x388] sm:$0xff]  ;;  %v12780_v32 = vcombine.high %v2280_v25, %v2284_v26  ;;  %v2316_v3 = vld [vmem:[#allocation10 + $0x4a0] sm:$0xff] }
 0x1bd   :  { %v429_v29 = vrot.slane %v15224_v61, %v15245_v18  ;;  %v1809_v33 = vadd.f32 %v15228_v8, %v417_v23  ;;  %v12779_v41 = vcombine.low %v2280_v25, %v2284_v26  ;;  %v12781_v42 = vcombine.low %v2281_v27, %v2285_v28  ;;  %v2300_v8 = vld [vmem:[#allocation10 + $0x420] sm:$0xff] }
 0x1be   :  { %8386 = vmatprep.mubr.bf16.mxu0 %v15237_v35  ;;  %8714 = vmatprep.mubr.bf16.mxu1 %v15237_v35  ;;  %v12812_v11 = vcombine.high %v2312_v2, %v2316_v3  ;;  %v2320_v15 = vld [vmem:[#allocation10 + $0x4c0] sm:$0xff] }
 0x1bf   :  { %8369 = vmatpush1.bf16.msra.mxu0 %v12723_v34  ;;  %8697 = vmatpush1.bf16.msra.mxu1 %v12725_v36  ;;  %v12782_v34 = vcombine.high %v2281_v27, %v2285_v28  ;;  %v2288_v36 = vld [vmem:[#allocation10 + $0x3c0] sm:$0xff]  ;;  %v1852_v40 = vadd.f32 %v15234_v21, %v429_v29  ;;  %vm2103_vm1 = vcmp.gt.f32.partialorder %v1809_v33, 0.0  ;;  %v2329_v28 = vld [vmem:[#allocation10 + $0x508] sm:$0xff] }
 0x1c0   :  { %8370 = vmatprep.subr.bf16.mxu0 %v12732_v37  ;;  %8698 = vmatprep.subr.bf16.mxu1 %v12734_v38  ;;  %v2292_v37 = vld [vmem:[#allocation10 + $0x3e0] sm:$0xff]  ;;  %v2289_v38 = vld [vmem:[#allocation10 + $0x3c8] sm:$0xff] }
 0x1c1   :  { %v2123_v48 = vmul.f32 %v15230_v13, %v1852_v40  ;;  %v12787_v49 = vcombine.low %v2288_v36, %v2292_v37  ;;  %vm2106_vm2 = vcmp.gt.f32.partialorder %v1852_v40, 0.0  ;;  %v12789_v21 = vcombine.low %v2289_v38, %v2293_v39  ;;  %v2324_v16 = vld [vmem:[#allocation10 + $0x4e0] sm:$0xff]  ;;  %v2333_v29 = vld [vmem:[#allocation10 + $0x528] sm:$0xff] }
 0x1c2   :  { %v2328_v26 = vld [vmem:[#allocation10 + $0x500] sm:$0xff] }
 0x1c3   :  { %8371 = vmatpush1.bf16.msra.mxu0 %v12731_v43  ;;  %8699 = vmatpush1.bf16.msra.mxu1 %v12733_v44  ;;  %v12788_v43 = vcombine.high %v2288_v36, %v2292_v37  ;;  %v2120_v44 = vmul.f32 %v15230_v13, %v1809_v33  ;;  %v2139_v58 = vsel %vm2106_vm2, %v1852_v40, %v2123_v48  ;;  %v2332_v27 = vld [vmem:[#allocation10 + $0x520] sm:$0xff]  ;;  %v2337_v37 = vld [vmem:[#allocation10 + $0x548] sm:$0xff] }
 0x1c4   :  { %8372 = vmatprep.subr.bf16.mxu0 %v12740_v12  ;;  %8700 = vmatprep.subr.bf16.mxu1 %v12742_v45  ;;  %v12790_v12 = vcombine.high %v2289_v38, %v2293_v39  ;;  %v2296_v45 = vld [vmem:[#allocation10 + $0x400] sm:$0xff]  ;;  %v15257_v4 = vpack.c.bf16 %v2139_v58, %v2139_v58  ;;  %v2341_v38 = vld [vmem:[#allocation10 + $0x568] sm:$0xff]  ;;  %v12827_v39 = vcombine.low %v2328_v26, %v2332_v27 }
 0x1c5   :  { %v2340_v36 = vld [vmem:[#allocation10 + $0x560] sm:$0xff]  ;;  %v12829_v40 = vcombine.low %v2329_v28, %v2333_v29 }
 0x1c7   :  { %8373 = vmatpush1.bf16.msra.mxu0 %v12739_v57  ;;  %8701 = vmatpush1.bf16.msra.mxu1 %v12741_v51  ;;  %v12796_v57 = vcombine.high %v2296_v45, %v2300_v8  ;;  %v2136_v51 = vsel %vm2103_vm1, %v1809_v33, %v2120_v44  ;;  %v12830_v33 = vcombine.high %v2329_v28, %v2333_v29  ;;  %v2348_v44 = vld [vmem:[#allocation10 + $0x5a0] sm:$0xff] }
 0x1c8   :  { %8374 = vmatprep.subr.bf16.mxu0 %v12748_v52  ;;  %8702 = vmatprep.subr.bf16.mxu1 %v12750_v53  ;;  %v12798_v52 = vcombine.high %v2297_v46, %v2301_v47  ;;  %v2304_v53 = vld [vmem:[#allocation10 + $0x440] sm:$0xff] }
 0x1c9   :  { %v2376_v28 = vld [vmem:[#allocation10 + $0x680] sm:$0xff] }
 0x1ca   :  { %v2380_v29 = vld [vmem:[#allocation10 + $0x6a0] sm:$0xff] }
 0x1cb   :  { %8375 = vmatpush1.bf16.msra.mxu0 %v12747_v60  ;;  %8703 = vmatpush1.bf16.msra.mxu1 %v12749_v62  ;;  %v12795_v60 = vcombine.low %v2296_v45, %v2300_v8  ;;  %v15255_v62 = vpack.c.bf16 %v2136_v51, %v2136_v51  ;;  %v2349_v45 = vld [vmem:[#allocation10 + $0x5a8] sm:$0xff] }
 0x1cc   :  { %8376 = vmatprep.subr.bf16.mxu0 %v12756_v63  ;;  %8704 = vmatprep.subr.bf16.mxu1 %v12758_v0  ;;  %v12797_v63 = vcombine.low %v2297_v46, %v2301_v47  ;;  %v12804_v0 = vcombine.high %v2304_v53, %v2308_v54  ;;  %v12837_v46 = vcombine.low %v2337_v37, %v2341_v38 }
 0x1cf   :  { %8377 = vmatpush1.bf16.msra.mxu0 %v12755_v5  ;;  %8705 = vmatpush1.bf16.msra.mxu1 %v12757_v6  ;;  %v2313_v5 = vld [vmem:[#allocation10 + $0x488] sm:$0xff] }
 0x1d0   :  { %8378 = vmatprep.subr.bf16.mxu0 %v12764_v7  ;;  %8706 = vmatprep.subr.bf16.mxu1 %v12766_v10  ;;  %v2317_v6 = vld [vmem:[#allocation10 + $0x4a8] sm:$0xff]  ;;  %v12803_v7 = vcombine.low %v2304_v53, %v2308_v54  ;;  %v12805_v10 = vcombine.low %v2305_v55, %v2309_v56 }
 0x1d1   :  { %v12814_v14 = vcombine.high %v2313_v5, %v2317_v6  ;;  %v12813_v23 = vcombine.low %v2313_v5, %v2317_v6  ;;  %v2357_v53 = vld [vmem:[#allocation10 + $0x5e8] sm:$0xff]  ;;  %v2364_v5 = vld [vmem:[#allocation10 + $0x620] sm:$0xff] }
 0x1d3   :  { %8379 = vmatpush1.bf16.msra.mxu0 %v12763_v19  ;;  %8707 = vmatpush1.bf16.msra.mxu1 %v12765_v20  ;;  %v2321_v19 = vld [vmem:[#allocation10 + $0x4c8] sm:$0xff] }
 0x1d4   :  { %8380 = vmatprep.subr.bf16.mxu0 %v12772_v22  ;;  %8708 = vmatprep.subr.bf16.mxu1 %v12774_v24  ;;  %v2325_v20 = vld [vmem:[#allocation10 + $0x4e8] sm:$0xff]  ;;  %v12811_v22 = vcombine.low %v2312_v2, %v2316_v3  ;;  %v12820_v24 = vcombine.high %v2320_v15, %v2324_v16  ;;  %v2360_v3 = vld [vmem:[#allocation10 + $0x600] sm:$0xff] }
 0x1d5   :  { %v12822_v25 = vcombine.high %v2321_v19, %v2325_v20 }
 0x1d7   :  { %8381 = vmatpush1.bf16.msra.mxu0 %v12771_v30  ;;  %8709 = vmatpush1.bf16.msra.mxu1 %v12773_v31  ;;  %v12819_v30 = vcombine.low %v2320_v15, %v2324_v16  ;;  %v12821_v31 = vcombine.low %v2321_v19, %v2325_v20  ;;  %v12860_v15 = vcombine.high %v2360_v3, %v2364_v5  ;;  %v2368_v19 = vld [vmem:[#allocation10 + $0x640] sm:$0xff] }
 0x1d8   :  { %8382 = vmatprep.subr.bf16.mxu0 %v12780_v32  ;;  %8710 = vmatprep.subr.bf16.mxu1 %v12782_v34  ;;  %v12828_v32 = vcombine.high %v2328_v26, %v2332_v27  ;;  %v2336_v34 = vld [vmem:[#allocation10 + $0x540] sm:$0xff] }
 0x1d9   :  { %v12835_v8 = vcombine.low %v2336_v34, %v2340_v36  ;;  %v2372_v20 = vld [vmem:[#allocation10 + $0x660] sm:$0xff] }
 0x1da   :  { %v12868_v26 = vcombine.high %v2368_v19, %v2372_v20 }
 0x1db   :  { %8383 = vmatpush1.bf16.msra.mxu0 %v12779_v41  ;;  %8711 = vmatpush1.bf16.msra.mxu1 %v12781_v42  ;;  %v12836_v41 = vcombine.high %v2336_v34, %v2340_v36  ;;  %v12838_v42 = vcombine.high %v2337_v37, %v2341_v38  ;;  %v12876_v34 = vcombine.high %v2376_v28, %v2380_v29  ;;  %v2384_v37 = vld [vmem:[#allocation10 + $0x6c0] sm:$0xff] }
 0x1dc   :  { %8384 = vmatprep.subr.bf16.mxu0 %v12788_v43  ;;  %8712 = vmatprep.subr.bf16.mxu1 %v12790_v12  ;;  %v2344_v43 = vld [vmem:[#allocation10 + $0x580] sm:$0xff]  ;;  %v2345_v12 = vld [vmem:[#allocation10 + $0x588] sm:$0xff] }
 0x1dd   :  { %v12844_v47 = vcombine.high %v2344_v43, %v2348_v44  ;;  %v12843_v56 = vcombine.low %v2344_v43, %v2348_v44  ;;  %v2388_v38 = vld [vmem:[#allocation10 + $0x6e0] sm:$0xff] }
 0x1de   :  { %v12884_v43 = vcombine.high %v2384_v37, %v2388_v38 }
 0x1df   :  { %8385 = vmatpush1.bf16.msra.mxu0 %v12787_v49  ;;  %8713 = vmatpush1.bf16.msra.mxu1 %v12789_v21  ;;  %v12846_v49 = vcombine.high %v2345_v12, %v2349_v45  ;;  %v2352_v21 = vld [vmem:[#allocation10 + $0x5c0] sm:$0xff] }
 0x1e0   :  { %8395 = vmatprep.subr.bf16.mxu0 %v12796_v57  ;;  %8723 = vmatprep.subr.bf16.mxu1 %v12798_v52  ;;  %v2356_v57 = vld [vmem:[#allocation10 + $0x5e0] sm:$0xff]  ;;  %v2353_v52 = vld [vmem:[#allocation10 + $0x5c8] sm:$0xff] }
 0x1e1   :  { %v12854_v2 = vcombine.high %v2353_v52, %v2357_v53 }
 0x1e2   :  { %8387 = vmatmul.mubr.bf16.vlgmr.msra.gmra.mrb[16].mxu0 %v15255_v62  ;;  %8715 = vmatmul.mubr.bf16.vlgmr.msra.gmra.mrb[16].mxu1 %v15255_v62 }
 0x1e3   :  { %8396 = vmatpush1.bf16.msra.mxu0 %v12795_v60  ;;  %8724 = vmatpush1.bf16.msra.mxu1 %v12797_v63  ;;  %v12845_v63 = vcombine.low %v2345_v12, %v2349_v45  ;;  %v2392_v12 = vld [vmem:[#allocation10 + $0x700] sm:$0xff] }
 0x1e4   :  { %8397 = vmatprep.subr.bf16.mxu0 %v12804_v0  ;;  %8725 = vmatprep.subr.bf16.mxu1 %v12806_v1  ;;  %v12852_v0 = vcombine.high %v2352_v21, %v2356_v57  ;;  %v2396_v45 = vld [vmem:[#allocation10 + $0x720] sm:$0xff] }
 0x1e5   :  { %8427 = vmatprep.mubr.bf16.mxu0 %v15257_v4  ;;  %8755 = vmatprep.mubr.bf16.mxu1 %v15257_v4 }
 0x1e7   :  { %8398 = vmatpush1.bf16.msra.mxu0 %v12803_v7  ;;  %8726 = vmatpush1.bf16.msra.mxu1 %v12805_v10  ;;  %v2361_v7 = vld [vmem:[#allocation10 + $0x608] sm:$0xff] }
 0x1e8   :  { %8399 = vmatprep.subr.bf16.mxu0 %v12812_v11  ;;  %8727 = vmatprep.subr.bf16.mxu1 %v12814_v14  ;;  %v2365_v10 = vld [vmem:[#allocation10 + $0x628] sm:$0xff]  ;;  %v12851_v11 = vcombine.low %v2352_v21, %v2356_v57  ;;  %v12853_v14 = vcombine.low %v2353_v52, %v2357_v53  ;;  %v12892_v21 = vcombine.high %v2392_v12, %v2396_v45  ;;  %v15272_v57 = vsub.s32 2, %v15219_v50  ;;  %v2400_v53 = vld [vmem:[#allocation10 + $0x740] sm:$0xff] }
 0x1e9   :  { %v12862_v16 = vcombine.high %v2361_v7, %v2365_v10 }
 0x1eb   :  { %8400 = vmatpush1.bf16.msra.mxu0 %v12811_v22  ;;  %8728 = vmatpush1.bf16.msra.mxu1 %v12813_v23  ;;  %v2369_v22 = vld [vmem:[#allocation10 + $0x648] sm:$0xff] }
 0x1ec   :  { %8401 = vmatprep.subr.bf16.mxu0 %v12820_v24  ;;  %8729 = vmatprep.subr.bf16.mxu1 %v12822_v25  ;;  %v2373_v23 = vld [vmem:[#allocation10 + $0x668] sm:$0xff]  ;;  %v12859_v24 = vcombine.low %v2360_v3, %v2364_v5  ;;  %v12861_v25 = vcombine.low %v2361_v7, %v2365_v10  ;;  %v425_v3 = vrot.slane %v15224_v61, %v15272_v57  ;;  %v2412_v7 = vld [vmem:[#allocation10 + $0x7a0] sm:$0xff] }
 0x1ed   :  { %v12870_v27 = vcombine.high %v2369_v22, %v2373_v23  ;;  %v2409_v10 = vld [vmem:[#allocation10 + $0x788] sm:$0xff] }
 0x1ef   :  { %8402 = vmatpush1.bf16.msra.mxu0 %v12819_v30  ;;  %8730 = vmatpush1.bf16.msra.mxu1 %v12821_v31  ;;  %v2377_v30 = vld [vmem:[#allocation10 + $0x688] sm:$0xff] }
 0x1f0   :  { %8403 = vmatprep.subr.bf16.mxu0 %v12828_v32  ;;  %8731 = vmatprep.subr.bf16.mxu1 %v12830_v33  ;;  %v2381_v31 = vld [vmem:[#allocation10 + $0x6a8] sm:$0xff]  ;;  %v12867_v32 = vcombine.low %v2368_v19, %v2372_v20  ;;  %v12869_v33 = vcombine.low %v2369_v22, %v2373_v23  ;;  %v1850_v20 = vadd.f32 %v15232_v17, %v425_v3  ;;  %v2416_v23 = vld [vmem:[#allocation10 + $0x7c0] sm:$0xff] }
 0x1f1   :  { %v12878_v36 = vcombine.high %v2377_v30, %v2381_v31  ;;  %v2428_v17 = vld [vmem:[#allocation10 + $0x820] sm:$0xff] }
 0x1f2   :  { %vm2105_vm3 = vcmp.gt.f32.partialorder %v1850_v20, 0.0  ;;  %v2448_v3 = vld [vmem:[#allocation10 + $0x8c0] sm:$0xff] }
 0x1f3   :  { %8404 = vmatpush1.bf16.msra.mxu0 %v12827_v39  ;;  %8732 = vmatpush1.bf16.msra.mxu1 %v12829_v40  ;;  %v2385_v39 = vld [vmem:[#allocation10 + $0x6c8] sm:$0xff] }
 0x1f4   :  { %8405 = vmatprep.subr.bf16.mxu0 %v12836_v41  ;;  %8733 = vmatprep.subr.bf16.mxu1 %v12838_v42  ;;  %v2389_v40 = vld [vmem:[#allocation10 + $0x6e8] sm:$0xff]  ;;  %v12875_v41 = vcombine.low %v2376_v28, %v2380_v29  ;;  %v12877_v42 = vcombine.low %v2377_v30, %v2381_v31  ;;  %v2122_v30 = vmul.f32 %v15230_v13, %v1850_v20 }
 0x1f5   :  { %v15263_v48 = vpop.f32.mrb[4].mxu0  ;;  %v15267_v54 = vpop.f32.mrb[4].mxu1  ;;  %v12886_v44 = vcombine.high %v2385_v39, %v2389_v40 }
 0x1f6   :  { %v15265_v51 = vpop.f32.mrb[5].mxu0  ;;  %v15269_v58 = vpop.f32.mrb[5].mxu1 }
 0x1f7   :  { %v1894_v55 = vpop.f32.mrb[6].mxu0  ;;  %8406 = vmatpush1.bf16.msra.mxu0 %v12835_v8  ;;  %8734 = vmatpush1.bf16.msra.mxu1 %v12837_v46  ;;  %v1935_v1 = vpop.f32.mrb[6].mxu1  ;;  %v2393_v8 = vld [vmem:[#allocation10 + $0x708] sm:$0xff] }
 0x1f8   :  { %v1895_v60 = vpop.f32.mrb[7].mxu0  ;;  %8407 = vmatprep.subr.bf16.mxu0 %v12844_v47  ;;  %8735 = vmatprep.subr.bf16.mxu1 %v12846_v49  ;;  %v1936_v6 = vpop.f32.mrb[7].mxu1  ;;  %v2397_v46 = vld [vmem:[#allocation10 + $0x728] sm:$0xff]  ;;  %v12883_v47 = vcombine.low %v2384_v37, %v2388_v38  ;;  %v12885_v49 = vcombine.low %v2385_v39, %v2389_v40  ;;  %v2404_v55 = vld [vmem:[#allocation10 + $0x760] sm:$0xff]  ;;  %v2138_v39 = vsel %vm2105_vm3, %v1850_v20, %v2122_v30 }
 0x1f9   :  { %v12894_v52 = vcombine.high %v2393_v8, %v2397_v46  ;;  %v2405_v60 = vld [vmem:[#allocation10 + $0x768] sm:$0xff]  ;;  %v12893_v1 = vcombine.low %v2393_v8, %v2397_v46  ;;  %v2408_v6 = vld [vmem:[#allocation10 + $0x780] sm:$0xff]  ;;  %v15285_v8 = vpack.c.bf16 %v2138_v39, %v2138_v39 }
 0x1fa   :  { %v12908_v19 = vcombine.high %v2408_v6, %v2412_v7  ;;  %v12907_v28 = vcombine.low %v2408_v6, %v2412_v7  ;;  %v2449_v6 = vld [vmem:[#allocation10 + $0x8c8] sm:$0xff] }
 0x1fb   :  { %8408 = vmatpush1.bf16.msra.mxu0 %v12843_v56  ;;  %8736 = vmatpush1.bf16.msra.mxu1 %v12845_v63  ;;  %v2401_v56 = vld [vmem:[#allocation10 + $0x748] sm:$0xff]  ;;  %v15275_v63 = vsub.s32 5, %v15219_v50 }
 0x1fc   :  { %8409 = vmatprep.subr.bf16.mxu0 %v12852_v0  ;;  %8737 = vmatprep.subr.bf16.mxu1 %v12854_v2  ;;  %v12891_v0 = vcombine.low %v2392_v12, %v2396_v45  ;;  %v12900_v2 = vcombine.high %v2400_v53, %v2404_v55  ;;  %v12902_v5 = vcombine.high %v2401_v56, %v2405_v60  ;;  %v2433_v12 = vld [vmem:[#allocation10 + $0x848] sm:$0xff] }
 0x1fd   :  { %v2437_v45 = vld [vmem:[#allocation10 + $0x868] sm:$0xff] }
 0x1fe   :  { %v2453_v7 = vld [vmem:[#allocation10 + $0x8e8] sm:$0xff] }
 0x1ff   :  { %8410 = vmatpush1.bf16.msra.mxu0 %v12851_v11  ;;  %8738 = vmatpush1.bf16.msra.mxu1 %v12853_v14  ;;  %v2413_v11 = vld [vmem:[#allocation10 + $0x7a8] sm:$0xff]  ;;  %v437_v14 = vrot.slane %v15224_v61, %v15275_v63 }
 0x200   :  { %8411 = vmatprep.subr.bf16.mxu0 %v12860_v15  ;;  %8739 = vmatprep.subr.bf16.mxu1 %v12862_v16  ;;  %v12899_v15 = vcombine.low %v2400_v53, %v2404_v55  ;;  %v12901_v16 = vcombine.low %v2401_v56, %v2405_v60  ;;  %v12910_v22 = vcombine.high %v2409_v10, %v2413_v11  ;;  %v2441_v55 = vld [vmem:[#allocation10 + $0x888] sm:$0xff] }
 0x201   :  { %v12909_v61 = vcombine.low %v2409_v10, %v2413_v11  ;;  %v12934_v53 = vcombine.high %v2433_v12, %v2437_v45  ;;  %v2445_v56 = vld [vmem:[#allocation10 + $0x8a8] sm:$0xff] }
 0x202   :  { %v12941_v11 = vcombine.low %v2441_v55, %v2445_v56  ;;  %v2457_v20 = vld [vmem:[#allocation10 + $0x908] sm:$0xff] }
 0x203   :  { %8412 = vmatpush1.bf16.msra.mxu0 %v12859_v24  ;;  %8740 = vmatpush1.bf16.msra.mxu1 %v12861_v25  ;;  %v2420_v24 = vld [vmem:[#allocation10 + $0x7e0] sm:$0xff]  ;;  %v2417_v25 = vld [vmem:[#allocation10 + $0x7c8] sm:$0xff] }
 0x204   :  { %8413 = vmatprep.subr.bf16.mxu0 %v12868_v26  ;;  %8741 = vmatprep.subr.bf16.mxu1 %v12870_v27  ;;  %v2421_v26 = vld [vmem:[#allocation10 + $0x7e8] sm:$0xff]  ;;  %v1893_v27 = vadd.f32 %v15265_v51, %v437_v14  ;;  %v12916_v29 = vcombine.high %v2416_v23, %v2420_v24  ;;  %v12915_v37 = vcombine.low %v2416_v23, %v2420_v24 }
 0x205   :  { %v12918_v31 = vcombine.high %v2417_v25, %v2421_v26  ;;  %v12917_v51 = vcombine.low %v2417_v25, %v2421_v26  ;;  %v12949_v24 = vcombine.low %v2449_v6, %v2453_v7 }
 0x206   :  { %vm2108_vm4 = vcmp.gt.f32.partialorder %v1893_v27, 0.0 }
 0x207   :  { %8414 = vmatpush1.bf16.msra.mxu0 %v12867_v32  ;;  %8742 = vmatpush1.bf16.msra.mxu1 %v12869_v33  ;;  %v2424_v32 = vld [vmem:[#allocation10 + $0x800] sm:$0xff]  ;;  %v2425_v33 = vld [vmem:[#allocation10 + $0x808] sm:$0xff] }
 0x208   :  { %8415 = vmatprep.subr.bf16.mxu0 %v12876_v34  ;;  %8743 = vmatprep.subr.bf16.mxu1 %v12878_v36  ;;  %v2429_v34 = vld [vmem:[#allocation10 + $0x828] sm:$0xff]  ;;  %v2125_v36 = vmul.f32 %v15230_v13, %v1893_v27  ;;  %v12924_v38 = vcombine.high %v2424_v32, %v2428_v17 }
 0x209   :  { %v12926_v40 = vcombine.high %v2425_v33, %v2429_v34  ;;  %v12925_v46 = vcombine.low %v2425_v33, %v2429_v34  ;;  %v2472_v33 = vld [vmem:[#allocation10 + $0x980] sm:$0xff] }
 0x20a   :  { %v2476_v34 = vld [vmem:[#allocation10 + $0x9a0] sm:$0xff] }
 0x20b   :  { %8416 = vmatpush1.bf16.msra.mxu0 %v12875_v41  ;;  %8744 = vmatpush1.bf16.msra.mxu1 %v12877_v42  ;;  %v2432_v41 = vld [vmem:[#allocation10 + $0x840] sm:$0xff]  ;;  %v12972_v39 = vcombine.high %v2472_v33, %v2476_v34 }
 0x20c   :  { %8417 = vmatprep.subr.bf16.mxu0 %v12884_v43  ;;  %8745 = vmatprep.subr.bf16.mxu1 %v12886_v44  ;;  %v2436_v42 = vld [vmem:[#allocation10 + $0x860] sm:$0xff]  ;;  %v2141_v43 = vsel %vm2108_vm4, %v1893_v27, %v2125_v36  ;;  %v12923_v44 = vcombine.low %v2424_v32, %v2428_v17  ;;  %v2473_v36 = vld [vmem:[#allocation10 + $0x988] sm:$0xff] }
 0x20d   :  { %v12931_v60 = vcombine.low %v2432_v41, %v2436_v42  ;;  %v2464_v27 = vld [vmem:[#allocation10 + $0x940] sm:$0xff] }
 0x20f   :  { %8418 = vmatpush1.bf16.msra.mxu0 %v12883_v47  ;;  %8746 = vmatpush1.bf16.msra.mxu1 %v12885_v49  ;;  %v12932_v47 = vcombine.high %v2432_v41, %v2436_v42  ;;  %v2440_v49 = vld [vmem:[#allocation10 + $0x880] sm:$0xff] }
 0x210   :  { %8419 = vmatprep.subr.bf16.mxu0 %v12892_v21  ;;  %8747 = vmatprep.subr.bf16.mxu1 %v12894_v52  ;;  %v2444_v21 = vld [vmem:[#allocation10 + $0x8a0] sm:$0xff]  ;;  %v15287_v52 = vpack.c.bf16 %v2141_v43, %v2141_v43 }
 0x211   :  { %v12939_v10 = vcombine.low %v2440_v49, %v2444_v21  ;;  %v2480_v42 = vld [vmem:[#allocation10 + $0x9c0] sm:$0xff] }
 0x212   :  { %v2484_v43 = vld [vmem:[#allocation10 + $0x9e0] sm:$0xff] }
 0x213   :  { %8420 = vmatpush1.bf16.msra.mxu0 %v12891_v0  ;;  %8748 = vmatpush1.bf16.msra.mxu1 %v12893_v1  ;;  %v12933_v0 = vcombine.low %v2433_v12, %v2437_v45  ;;  %v12940_v1 = vcombine.high %v2440_v49, %v2444_v21  ;;  %v2481_v12 = vld [vmem:[#allocation10 + $0x9c8] sm:$0xff]  ;;  %v12971_v49 = vcombine.low %v2472_v33, %v2476_v34  ;;  %v2516_v33 = vld [vmem:[#allocation10 + $0xae0] sm:$0xff] }
 0x214   :  { %8421 = vmatprep.subr.bf16.mxu0 %v12900_v2  ;;  %8749 = vmatprep.subr.bf16.mxu1 %v12902_v5  ;;  %v12942_v2 = vcombine.high %v2441_v55, %v2445_v56  ;;  %v2452_v5 = vld [vmem:[#allocation10 + $0x8e0] sm:$0xff]  ;;  %v2485_v45 = vld [vmem:[#allocation10 + $0x9e8] sm:$0xff]  ;;  %v12980_v56 = vcombine.high %v2480_v42, %v2484_v43 }
 0x215   :  { %v12948_v14 = vcombine.high %v2448_v3, %v2452_v5  ;;  %v12947_v23 = vcombine.low %v2448_v3, %v2452_v5  ;;  %v2489_v5 = vld [vmem:[#allocation10 + $0xa08] sm:$0xff] }
 0x216   :  { %v2513_v34 = vld [vmem:[#allocation10 + $0xac8] sm:$0xff] }
 0x217   :  { %8422 = vmatpush1.bf16.msra.mxu0 %v12899_v15  ;;  %8750 = vmatpush1.bf16.msra.mxu1 %v12901_v16  ;;  %v12950_v15 = vcombine.high %v2449_v6, %v2453_v7  ;;  %v2456_v16 = vld [vmem:[#allocation10 + $0x900] sm:$0xff]  ;;  %v2493_v6 = vld [vmem:[#allocation10 + $0xa28] sm:$0xff]  ;;  %v12979_v7 = vcombine.low %v2480_v42, %v2484_v43 }
 0x218   :  { %8423 = vmatprep.subr.bf16.mxu0 %v12908_v19  ;;  %8751 = vmatprep.subr.bf16.mxu1 %v12910_v22  ;;  %v2460_v19 = vld [vmem:[#allocation10 + $0x920] sm:$0xff]  ;;  %v2461_v22 = vld [vmem:[#allocation10 + $0x928] sm:$0xff] }
 0x219   :  { %v12956_v25 = vcombine.high %v2456_v16, %v2460_v19  ;;  %v12958_v26 = vcombine.high %v2457_v20, %v2461_v22  ;;  %v12955_v30 = vcombine.low %v2456_v16, %v2460_v19  ;;  %v2500_v16 = vld [vmem:[#allocation10 + $0xa60] sm:$0xff]  ;;  %v2497_v19 = vld [vmem:[#allocation10 + $0xa48] sm:$0xff] }
 0x21a   :  { %v2524_v42 = vld [vmem:[#allocation10 + $0xb20] sm:$0xff]  ;;  %v2521_v43 = vld [vmem:[#allocation10 + $0xb08] sm:$0xff] }
 0x21b   :  { %8424 = vmatpush1.bf16.msra.mxu0 %v12907_v28  ;;  %8752 = vmatpush1.bf16.msra.mxu1 %v12909_v61  ;;  %v2468_v28 = vld [vmem:[#allocation10 + $0x960] sm:$0xff]  ;;  %v2465_v61 = vld [vmem:[#allocation10 + $0x948] sm:$0xff] }
 0x21c   :  { %8425 = vmatprep.subr.bf16.mxu0 %v12916_v29  ;;  %8753 = vmatprep.subr.bf16.mxu1 %v12918_v31  ;;  %v2469_v29 = vld [vmem:[#allocation10 + $0x968] sm:$0xff]  ;;  %v12957_v31 = vcombine.low %v2457_v20, %v2461_v22  ;;  %v12964_v32 = vcombine.high %v2464_v27, %v2468_v28 }
 0x21d   :  { %v12966_v17 = vcombine.high %v2465_v61, %v2469_v29  ;;  %v2501_v20 = vld [vmem:[#allocation10 + $0xa68] sm:$0xff] }
 0x21f   :  { %8426 = vmatpush1.bf16.msra.mxu0 %v12915_v37  ;;  %8754 = vmatpush1.bf16.msra.mxu1 %v12917_v51  ;;  %v2477_v37 = vld [vmem:[#allocation10 + $0x9a8] sm:$0xff]  ;;  %v12963_v51 = vcombine.low %v2464_v27, %v2468_v28  ;;  %v2508_v27 = vld [vmem:[#allocation10 + $0xaa0] sm:$0xff] }
 0x220   :  { %8436 = vmatprep.subr.bf16.mxu0 %v12924_v38  ;;  %8764 = vmatprep.subr.bf16.mxu1 %v12926_v40  ;;  %v12965_v38 = vcombine.low %v2465_v61, %v2469_v29  ;;  %v12974_v41 = vcombine.high %v2473_v36, %v2477_v37  ;;  %v12973_v55 = vcombine.low %v2473_v36, %v2477_v37  ;;  %v2505_v28 = vld [vmem:[#allocation10 + $0xa88] sm:$0xff] }
 0x221   :  { %v2509_v61 = vld [vmem:[#allocation10 + $0xaa8] sm:$0xff] }
 0x222   :  { %8428 = vmatmul.mubr.bf16.vlgmr.msra.gmra.mrb[16].mxu0 %v15285_v8  ;;  %8756 = vmatmul.mubr.bf16.vlgmr.msra.gmra.mrb[16].mxu1 %v15285_v8  ;;  %v2517_v36 = vld [vmem:[#allocation10 + $0xae8] sm:$0xff] }
 0x223   :  { %8437 = vmatpush1.bf16.msra.mxu0 %v12923_v44  ;;  %8468 = vmatprep.mubr.bf16.mxu0 %v15287_v52 }
 0x224   :  { %8765 = vmatpush1.bf16.msra.mxu1 %v12925_v46  ;;  %8796 = vmatprep.mubr.bf16.mxu1 %v15287_v52 }
 0x225   :  { %8438 = vmatprep.subr.bf16.mxu0 %v12932_v47  ;;  %8766 = vmatprep.subr.bf16.mxu1 %v12934_v53 }
 0x227   :  { %8439 = vmatpush1.bf16.msra.mxu0 %v12931_v60 }
 0x228   :  { %8767 = vmatpush1.bf16.msra.mxu1 %v12933_v0  ;;  %8440 = vmatprep.subr.bf16.mxu0 %v12940_v1  ;;  %v12982_v0 = vcombine.high %v2481_v12, %v2485_v45  ;;  %v2488_v1 = vld [vmem:[#allocation10 + $0xa00] sm:$0xff] }
 0x229   :  { %8768 = vmatprep.subr.bf16.mxu1 %v12942_v2  ;;  %v2492_v2 = vld [vmem:[#allocation10 + $0xa20] sm:$0xff] }
 0x22a   :  { %v12987_v22 = vcombine.low %v2488_v1, %v2492_v2 }
 0x22b   :  { %8441 = vmatpush1.bf16.msra.mxu0 %v12939_v10  ;;  %v12981_v10 = vcombine.low %v2481_v12, %v2485_v45  ;;  %v2525_v12 = vld [vmem:[#allocation10 + $0xb28] sm:$0xff] }
 0x22c   :  { %8769 = vmatpush1.bf16.msra.mxu1 %v12941_v11  ;;  %8442 = vmatprep.subr.bf16.mxu0 %v12948_v14  ;;  %v12988_v11 = vcombine.high %v2488_v1, %v2492_v2  ;;  %v12990_v14 = vcombine.high %v2489_v5, %v2493_v6  ;;  %v2533_v1 = vld [vmem:[#allocation10 + $0xb68] sm:$0xff]  ;;  %v15305_v2 = vsub.s32 7, %v15219_v50 }
 0x22d   :  { %8770 = vmatprep.subr.bf16.mxu1 %v12950_v15  ;;  %v2496_v15 = vld [vmem:[#allocation10 + $0xa40] sm:$0xff] }
 0x22e   :  { %v12995_v29 = vcombine.low %v2496_v15, %v2500_v16 }
 0x22f   :  { %8443 = vmatpush1.bf16.msra.mxu0 %v12947_v23  ;;  %v12989_v23 = vcombine.low %v2489_v5, %v2493_v6  ;;  %v13021_v5 = vcombine.low %v2521_v43, %v2525_v12 }
 0x230   :  { %8771 = vmatpush1.bf16.msra.mxu1 %v12949_v24  ;;  %8444 = vmatprep.subr.bf16.mxu0 %v12956_v25  ;;  %v12996_v24 = vcombine.high %v2496_v15, %v2500_v16  ;;  %v12998_v25 = vcombine.high %v2497_v19, %v2501_v20  ;;  %v2540_v15 = vld [vmem:[#allocation10 + $0xba0] sm:$0xff]  ;;  %v2537_v16 = vld [vmem:[#allocation10 + $0xb88] sm:$0xff] }
 0x231   :  { %8772 = vmatprep.subr.bf16.mxu1 %v12958_v26  ;;  %v2504_v26 = vld [vmem:[#allocation10 + $0xa80] sm:$0xff] }
 0x232   :  { %v13003_v37 = vcombine.low %v2504_v26, %v2508_v27 }
 0x233   :  { %8445 = vmatpush1.bf16.msra.mxu0 %v12955_v30  ;;  %v12997_v30 = vcombine.low %v2497_v19, %v2501_v20  ;;  %v2541_v19 = vld [vmem:[#allocation10 + $0xba8] sm:$0xff] }
 0x234   :  { %8773 = vmatpush1.bf16.msra.mxu1 %v12957_v31  ;;  %8446 = vmatprep.subr.bf16.mxu0 %v12964_v32  ;;  %v13004_v31 = vcombine.high %v2504_v26, %v2508_v27  ;;  %v13006_v32 = vcombine.high %v2505_v28, %v2509_v61  ;;  %v13038_v26 = vcombine.high %v2537_v16, %v2541_v19  ;;  %v2544_v27 = vld [vmem:[#allocation10 + $0xbc0] sm:$0xff] }
 0x235   :  { %v15293_v40 = vpop.f32.mrb[8].mxu0  ;;  %8774 = vmatprep.subr.bf16.mxu1 %v12966_v17  ;;  %v15297_v46 = vpop.f32.mrb[8].mxu1  ;;  %v2512_v17 = vld [vmem:[#allocation10 + $0xac0] sm:$0xff] }
 0x236   :  { %v15295_v44 = vpop.f32.mrb[9].mxu0  ;;  %v15299_v21 = vpop.f32.mrb[9].mxu1  ;;  %v13011_v45 = vcombine.low %v2512_v17, %v2516_v33 }
 0x237   :  { %v1976_v47 = vpop.f32.mrb[10].mxu0  ;;  %8447 = vmatpush1.bf16.msra.mxu0 %v12963_v51  ;;  %v2017_v60 = vpop.f32.mrb[10].mxu1  ;;  %v13005_v51 = vcombine.low %v2505_v28, %v2509_v61  ;;  %v2548_v28 = vld [vmem:[#allocation10 + $0xbe0] sm:$0xff]  ;;  %v2545_v61 = vld [vmem:[#allocation10 + $0xbc8] sm:$0xff] }
 0x238   :  { %8775 = vmatpush1.bf16.msra.mxu1 %v12965_v38  ;;  %v1977_v53 = vpop.f32.mrb[11].mxu0  ;;  %8448 = vmatprep.subr.bf16.mxu0 %v12972_v39  ;;  %v2018_v3 = vpop.f32.mrb[11].mxu1  ;;  %v13012_v38 = vcombine.high %v2512_v17, %v2516_v33  ;;  %v13014_v39 = vcombine.high %v2513_v34, %v2517_v36  ;;  %v13013_v47 = vcombine.low %v2513_v34, %v2517_v36  ;;  %v2532_v60 = vld [vmem:[#allocation10 + $0xb60] sm:$0xff] }
 0x239   :  { %8776 = vmatprep.subr.bf16.mxu1 %v12974_v41  ;;  %v2520_v41 = vld [vmem:[#allocation10 + $0xb00] sm:$0xff]  ;;  %v15302_v53 = vsub.s32 4, %v15219_v50  ;;  %v13044_v17 = vcombine.high %v2544_v27, %v2548_v28 }
 0x23a   :  { %v13019_v3 = vcombine.low %v2520_v41, %v2524_v42  ;;  %v2552_v36 = vld [vmem:[#allocation10 + $0xc00] sm:$0xff] }
 0x23b   :  { %8449 = vmatpush1.bf16.msra.mxu0 %v12971_v49  ;;  %v13020_v49 = vcombine.high %v2520_v41, %v2524_v42 }
 0x23c   :  { %8777 = vmatpush1.bf16.msra.mxu1 %v12973_v55  ;;  %8450 = vmatprep.subr.bf16.mxu0 %v12980_v56  ;;  %v13022_v55 = vcombine.high %v2521_v43, %v2525_v12  ;;  %v2528_v56 = vld [vmem:[#allocation10 + $0xb40] sm:$0xff] }
 0x23d   :  { %8778 = vmatprep.subr.bf16.mxu1 %v12982_v0  ;;  %v2529_v0 = vld [vmem:[#allocation10 + $0xb48] sm:$0xff]  ;;  %v13028_v6 = vcombine.high %v2528_v56, %v2532_v60  ;;  %v2560_v12 = vld [vmem:[#allocation10 + $0xc40] sm:$0xff] }
 0x23f   :  { %8451 = vmatpush1.bf16.msra.mxu0 %v12979_v7  ;;  %v15307_v7 = vld [vmem:[#allocation7] sm:$0xff] }
 0x240   :  { %8779 = vmatpush1.bf16.msra.mxu1 %v12981_v10  ;;  %8452 = vmatprep.subr.bf16.mxu0 %v12988_v11  ;;  %v433_v10 = vrot.slane %v15307_v7, %v15302_v53  ;;  %v13030_v11 = vcombine.high %v2529_v0, %v2533_v1  ;;  %v445_v20 = vrot.slane %v15307_v7, %v15305_v2 }
 0x241   :  { %8780 = vmatprep.subr.bf16.mxu1 %v12990_v14  ;;  %v2536_v14 = vld [vmem:[#allocation10 + $0xb80] sm:$0xff] }
 0x243   :  { %8453 = vmatpush1.bf16.msra.mxu0 %v12987_v22  ;;  %v13027_v22 = vcombine.low %v2528_v56, %v2532_v60  ;;  %v2565_v56 = vld [vmem:[#allocation10 + $0xc68] sm:$0xff] }
 0x244   :  { %8781 = vmatpush1.bf16.msra.mxu1 %v12989_v23  ;;  %8454 = vmatprep.subr.bf16.mxu0 %v12996_v24  ;;  %v13029_v23 = vcombine.low %v2529_v0, %v2533_v1  ;;  %v13036_v24 = vcombine.high %v2536_v14, %v2540_v15 }
 0x245   :  { %8782 = vmatprep.subr.bf16.mxu1 %v12998_v25  ;;  %v1891_v25 = vadd.f32 %v15263_v48, %v433_v10  ;;  %v2556_v48 = vld [vmem:[#allocation10 + $0xc20] sm:$0xff] }
 0x246   :  { %v13052_v41 = vcombine.high %v2552_v36, %v2556_v48 }
 0x247   :  { %8455 = vmatpush1.bf16.msra.mxu0 %v12995_v29  ;;  %v2549_v29 = vld [vmem:[#allocation10 + $0xbe8] sm:$0xff]  ;;  %v2124_v33 = vmul.f32 %v15230_v13, %v1891_v25  ;;  %vm2107_vm5 = vcmp.gt.f32.partialorder %v1891_v25, 0.0 }
 0x248   :  { %8783 = vmatpush1.bf16.msra.mxu1 %v12997_v30  ;;  %8456 = vmatprep.subr.bf16.mxu0 %v13004_v31  ;;  %v1934_v30 = vadd.f32 %v15269_v58, %v445_v20  ;;  %v13035_v31 = vcombine.low %v2536_v14, %v2540_v15  ;;  %v13046_v34 = vcombine.high %v2545_v61, %v2549_v29  ;;  %v2573_v14 = vld [vmem:[#allocation10 + $0xca8] sm:$0xff] }
 0x249   :  { %8784 = vmatprep.subr.bf16.mxu1 %v13006_v32  ;;  %v13037_v32 = vcombine.low %v2537_v16, %v2541_v19  ;;  %v13045_v58 = vcombine.low %v2545_v61, %v2549_v29  ;;  %v2140_v42 = vsel %vm2107_vm5, %v1891_v25, %v2124_v33  ;;  %v2581_v25 = vld [vmem:[#allocation10 + $0xce8] sm:$0xff]  ;;  %v2584_v29 = vld [vmem:[#allocation10 + $0xd00] sm:$0xff] }
 0x24a   :  { %vm2110_vm6 = vcmp.gt.f32.partialorder %v1934_v30, 0.0  ;;  %v15317_v60 = vpack.c.bf16 %v2140_v42, %v2140_v42 }
 0x24b   :  { %8457 = vmatpush1.bf16.msra.mxu0 %v13003_v37  ;;  %v2553_v37 = vld [vmem:[#allocation10 + $0xc08] sm:$0xff] }
 0x24c   :  { %8785 = vmatpush1.bf16.msra.mxu1 %v13005_v51  ;;  %8458 = vmatprep.subr.bf16.mxu0 %v13012_v38  ;;  %v2557_v51 = vld [vmem:[#allocation10 + $0xc28] sm:$0xff]  ;;  %v2127_v38 = vmul.f32 %v15230_v13, %v1934_v30 }
 0x24d   :  { %8786 = vmatprep.subr.bf16.mxu1 %v13014_v39  ;;  %v13043_v39 = vcombine.low %v2544_v27, %v2548_v28  ;;  %v13054_v43 = vcombine.high %v2553_v37, %v2557_v51  ;;  %v13053_v0 = vcombine.low %v2553_v37, %v2557_v51  ;;  %v2596_v37 = vld [vmem:[#allocation10 + $0xd60] sm:$0xff]  ;;  %v2593_v51 = vld [vmem:[#allocation10 + $0xd48] sm:$0xff] }
 0x24f   :  { %8459 = vmatpush1.bf16.msra.mxu0 %v13011_v45  ;;  %v2564_v45 = vld [vmem:[#allocation10 + $0xc60] sm:$0xff] }
 0x250   :  { %8787 = vmatpush1.bf16.msra.mxu1 %v13013_v47  ;;  %8460 = vmatprep.subr.bf16.mxu0 %v13020_v49  ;;  %v2143_v47 = vsel %vm2110_vm6, %v1934_v30, %v2127_v38  ;;  %v13051_v49 = vcombine.low %v2552_v36, %v2556_v48  ;;  %v13060_v1 = vcombine.high %v2560_v12, %v2564_v45  ;;  %v2588_v30 = vld [vmem:[#allocation10 + $0xd20] sm:$0xff]  ;;  %v2597_v38 = vld [vmem:[#allocation10 + $0xd68] sm:$0xff] }
 0x251   :  { %8788 = vmatprep.subr.bf16.mxu1 %v13022_v55  ;;  %v2561_v55 = vld [vmem:[#allocation10 + $0xc48] sm:$0xff]  ;;  %v13059_v15 = vcombine.low %v2560_v12, %v2564_v45  ;;  %v2592_v48 = vld [vmem:[#allocation10 + $0xd40] sm:$0xff]  ;;  %v13094_v42 = vcombine.high %v2593_v51, %v2597_v38 }
 0x252   :  { %v13062_v10 = vcombine.high %v2561_v55, %v2565_v56  ;;  %v13061_v16 = vcombine.low %v2561_v55, %v2565_v56  ;;  %v2604_v12 = vld [vmem:[#allocation10 + $0xda0] sm:$0xff]  ;;  %v2601_v45 = vld [vmem:[#allocation10 + $0xd88] sm:$0xff]  ;;  %v13093_v55 = vcombine.low %v2593_v51, %v2597_v38 }
 0x253   :  { %8461 = vmatpush1.bf16.msra.mxu0 %v13019_v3  ;;  %v2568_v3 = vld [vmem:[#allocation10 + $0xc80] sm:$0xff] }
 0x254   :  { %8789 = vmatpush1.bf16.msra.mxu1 %v13021_v5  ;;  %8462 = vmatprep.subr.bf16.mxu0 %v13028_v6  ;;  %v2572_v5 = vld [vmem:[#allocation10 + $0xca0] sm:$0xff]  ;;  %v15319_v6 = vpack.c.bf16 %v2143_v47, %v2143_v47  ;;  %v2605_v47 = vld [vmem:[#allocation10 + $0xda8] sm:$0xff] }
 0x255   :  { %8790 = vmatprep.subr.bf16.mxu1 %v13030_v11  ;;  %v2569_v11 = vld [vmem:[#allocation10 + $0xc88] sm:$0xff]  ;;  %v13068_v19 = vcombine.high %v2568_v3, %v2572_v5 }
 0x256   :  { %v13070_v20 = vcombine.high %v2569_v11, %v2573_v14  ;;  %v13069_v27 = vcombine.low %v2569_v11, %v2573_v14  ;;  %v2609_v11 = vld [vmem:[#allocation10 + $0xdc8] sm:$0xff] }
 0x257   :  { %8463 = vmatpush1.bf16.msra.mxu0 %v13027_v22  ;;  %v2576_v22 = vld [vmem:[#allocation10 + $0xcc0] sm:$0xff]  ;;  %v2613_v14 = vld [vmem:[#allocation10 + $0xde8] sm:$0xff] }
 0x258   :  { %8791 = vmatpush1.bf16.msra.mxu1 %v13029_v23  ;;  %8464 = vmatprep.subr.bf16.mxu0 %v13036_v24  ;;  %v2580_v23 = vld [vmem:[#allocation10 + $0xce0] sm:$0xff]  ;;  %v2577_v24 = vld [vmem:[#allocation10 + $0xcc8] sm:$0xff] }
 0x259   :  { %8792 = vmatprep.subr.bf16.mxu1 %v13038_v26  ;;  %v13067_v26 = vcombine.low %v2568_v3, %v2572_v5  ;;  %v13076_v28 = vcombine.high %v2576_v22, %v2580_v23  ;;  %v13078_v61 = vcombine.high %v2577_v24, %v2581_v25  ;;  %v13077_v33 = vcombine.low %v2577_v24, %v2581_v25  ;;  %v2608_v3 = vld [vmem:[#allocation10 + $0xdc0] sm:$0xff] }
 0x25a   :  { %v2612_v5 = vld [vmem:[#allocation10 + $0xde0] sm:$0xff] }
 0x25b   :  { %8465 = vmatpush1.bf16.msra.mxu0 %v13035_v31  ;;  %v2585_v31 = vld [vmem:[#allocation10 + $0xd08] sm:$0xff]  ;;  %v13108_v24 = vcombine.high %v2608_v3, %v2612_v5 }
 0x25c   :  { %8793 = vmatpush1.bf16.msra.mxu1 %v13037_v32  ;;  %8466 = vmatprep.subr.bf16.mxu0 %v13044_v17  ;;  %v2589_v32 = vld [vmem:[#allocation10 + $0xd28] sm:$0xff]  ;;  %v13075_v17 = vcombine.low %v2576_v22, %v2580_v23  ;;  %v13101_v23 = vcombine.low %v2601_v45, %v2605_v47 }
 0x25d   :  { %8794 = vmatprep.subr.bf16.mxu1 %v13046_v34  ;;  %v13084_v34 = vcombine.high %v2584_v29, %v2588_v30  ;;  %v13086_v36 = vcombine.high %v2585_v31, %v2589_v32 }
 0x25f   :  { %8467 = vmatpush1.bf16.msra.mxu0 %v13043_v39  ;;  %v13083_v39 = vcombine.low %v2584_v29, %v2588_v30  ;;  %v2617_v29 = vld [vmem:[#allocation10 + $0xe08] sm:$0xff] }
 0x260   :  { %8795 = vmatpush1.bf16.msra.mxu1 %v13045_v58  ;;  %8477 = vmatprep.subr.bf16.mxu0 %v13052_v41  ;;  %v13085_v58 = vcombine.low %v2585_v31, %v2589_v32  ;;  %v13092_v41 = vcombine.high %v2592_v48, %v2596_v37  ;;  %v2621_v30 = vld [vmem:[#allocation10 + $0xe28] sm:$0xff]  ;;  %v13107_v31 = vcombine.low %v2608_v3, %v2612_v5 }
 0x261   :  { %8805 = vmatprep.subr.bf16.mxu1 %v13054_v43  ;;  %v2600_v43 = vld [vmem:[#allocation10 + $0xd80] sm:$0xff]  ;;  %v13109_v32 = vcombine.low %v2609_v11, %v2613_v14  ;;  %v13117_v38 = vcombine.low %v2617_v29, %v2621_v30  ;;  %v2641_v3 = vld [vmem:[#allocation10 + $0xec8] sm:$0xff] }
 0x262   :  { %8469 = vmatmul.mubr.bf16.vlgmr.msra.gmra.mrb[16].mxu0 %v15317_v60  ;;  %v13100_v56 = vcombine.high %v2600_v43, %v2604_v12  ;;  %v2645_v5 = vld [vmem:[#allocation10 + $0xee8] sm:$0xff] }
 0x263   :  { %8797 = vmatmul.mubr.bf16.vlgmr.msra.gmra.mrb[16].mxu1 %v15317_v60  ;;  %8478 = vmatpush1.bf16.msra.mxu0 %v13051_v49  ;;  %v13091_v49 = vcombine.low %v2592_v48, %v2596_v37  ;;  %v2625_v48 = vld [vmem:[#allocation10 + $0xe48] sm:$0xff] }
 0x264   :  { %8509 = vmatprep.mubr.bf16.mxu0 %v15319_v6  ;;  %8806 = vmatpush1.bf16.msra.mxu1 %v13053_v0  ;;  %v2629_v37 = vld [vmem:[#allocation10 + $0xe68] sm:$0xff] }
 0x265   :  { %8837 = vmatprep.mubr.bf16.mxu1 %v15319_v6  ;;  %8479 = vmatprep.subr.bf16.mxu0 %v13060_v1  ;;  %v13102_v1 = vcombine.high %v2601_v45, %v2605_v47  ;;  %v13125_v47 = vcombine.low %v2625_v48, %v2629_v37 }
 0x266   :  { %8807 = vmatprep.subr.bf16.mxu1 %v13062_v10 }
 0x267   :  { %8480 = vmatpush1.bf16.msra.mxu0 %v13059_v15 }
 0x268   :  { %8808 = vmatpush1.bf16.msra.mxu1 %v13061_v16  ;;  %8481 = vmatprep.subr.bf16.mxu0 %v13068_v19  ;;  %v13099_v19 = vcombine.low %v2600_v43, %v2604_v12  ;;  %v2633_v43 = vld [vmem:[#allocation10 + $0xe88] sm:$0xff] }
 0x269   :  { %8809 = vmatprep.subr.bf16.mxu1 %v13070_v20  ;;  %v2637_v12 = vld [vmem:[#allocation10 + $0xea8] sm:$0xff] }
 0x26b   :  { %8482 = vmatpush1.bf16.msra.mxu0 %v13067_v26  ;;  %v13110_v26 = vcombine.high %v2609_v11, %v2613_v14  ;;  %v13133_v14 = vcombine.low %v2633_v43, %v2637_v12 }
 0x26c   :  { %8810 = vmatpush1.bf16.msra.mxu1 %v13069_v27  ;;  %8483 = vmatprep.subr.bf16.mxu0 %v13076_v28  ;;  %v2616_v27 = vld [vmem:[#allocation10 + $0xe00] sm:$0xff] }
 0x26d   :  { %8811 = vmatprep.subr.bf16.mxu1 %v13078_v61  ;;  %v2620_v28 = vld [vmem:[#allocation10 + $0xe20] sm:$0xff] }
 0x26e   :  { %v13115_v51 = vcombine.low %v2616_v27, %v2620_v28 }
 0x26f   :  { %8484 = vmatpush1.bf16.msra.mxu0 %v13075_v17  ;;  %v13116_v17 = vcombine.high %v2616_v27, %v2620_v28  ;;  %v13141_v27 = vcombine.low %v2641_v3, %v2645_v5 }
 0x270   :  { %8812 = vmatpush1.bf16.msra.mxu1 %v13077_v33  ;;  %8485 = vmatprep.subr.bf16.mxu0 %v13084_v34  ;;  %v13118_v33 = vcombine.high %v2617_v29, %v2621_v30  ;;  %v2624_v34 = vld [vmem:[#allocation10 + $0xe40] sm:$0xff] }
 0x271   :  { %8813 = vmatprep.subr.bf16.mxu1 %v13086_v36  ;;  %v2628_v36 = vld [vmem:[#allocation10 + $0xe60] sm:$0xff] }
 0x272   :  { %v13123_v45 = vcombine.low %v2624_v34, %v2628_v36  ;;  %v2656_v30 = vld [vmem:[#allocation10 + $0xf40] sm:$0xff] }
 0x273   :  { %8486 = vmatpush1.bf16.msra.mxu0 %v13083_v39  ;;  %v13124_v39 = vcombine.high %v2624_v34, %v2628_v36  ;;  %v15336_v34 = vld [vmem:[#allocation7 + $0x8] sm:$0xff] }
 0x274   :  { %8814 = vmatpush1.bf16.msra.mxu1 %v13085_v58  ;;  %8487 = vmatprep.subr.bf16.mxu0 %v13092_v41  ;;  %v13126_v58 = vcombine.high %v2625_v48, %v2629_v37  ;;  %v2632_v41 = vld [vmem:[#allocation10 + $0xe80] sm:$0xff] }
 0x275   :  { %v15325_v0 = vpop.f32.mrb[12].mxu0  ;;  %8815 = vmatprep.subr.bf16.mxu1 %v13094_v42  ;;  %v15329_v15 = vpop.f32.mrb[12].mxu1  ;;  %v2636_v42 = vld [vmem:[#allocation10 + $0xea0] sm:$0xff] }
 0x276   :  { %v15327_v10 = vpop.f32.mrb[13].mxu0  ;;  %v15331_v20 = vpop.f32.mrb[13].mxu1  ;;  %v13131_v11 = vcombine.low %v2632_v41, %v2636_v42 }
 0x277   :  { %v2058_v16 = vpop.f32.mrb[14].mxu0  ;;  %8488 = vmatpush1.bf16.msra.mxu0 %v13091_v49  ;;  %v2099_v25 = vpop.f32.mrb[14].mxu1  ;;  %v13132_v49 = vcombine.high %v2632_v41, %v2636_v42  ;;  %v453_v41 = vrot.slane %v15336_v34, %v15222_v59 }
 0x278   :  { %8816 = vmatpush1.bf16.msra.mxu1 %v13093_v55  ;;  %v2059_v22 = vpop.f32.mrb[15].mxu0  ;;  %8489 = vmatprep.subr.bf16.mxu0 %v13100_v56  ;;  %v2100_v61 = vpop.f32.mrb[15].mxu1  ;;  %v13134_v55 = vcombine.high %v2633_v43, %v2637_v12  ;;  %v2640_v56 = vld [vmem:[#allocation10 + $0xec0] sm:$0xff]  ;;  %v2653_v25 = vld [vmem:[#allocation10 + $0xf28] sm:$0xff] }
 0x279   :  { %8817 = vmatprep.subr.bf16.mxu1 %v13102_v1  ;;  %v2644_v1 = vld [vmem:[#allocation10 + $0xee0] sm:$0xff]  ;;  %v15334_v61 = vsub.s32 6, %v15219_v50 }
 0x27a   :  { %v13140_v16 = vcombine.high %v2640_v56, %v2644_v1  ;;  %v2648_v22 = vld [vmem:[#allocation10 + $0xf00] sm:$0xff] }
 0x27b   :  { %8490 = vmatpush1.bf16.msra.mxu0 %v13099_v19  ;;  %v13142_v19 = vcombine.high %v2641_v3, %v2645_v5  ;;  %v441_v37 = vrot.slane %v15307_v7, %v15334_v61  ;;  %v2672_v7 = vld [vmem:[#allocation10 + $0xfc0] sm:$0xff] }
 0x27c   :  { %8818 = vmatpush1.bf16.msra.mxu1 %v13101_v23  ;;  %8491 = vmatprep.subr.bf16.mxu0 %v13108_v24  ;;  %v2652_v23 = vld [vmem:[#allocation10 + $0xf20] sm:$0xff]  ;;  %v2649_v24 = vld [vmem:[#allocation10 + $0xf08] sm:$0xff] }
 0x27d   :  { %8819 = vmatprep.subr.bf16.mxu1 %v13110_v26  ;;  %v13139_v26 = vcombine.low %v2640_v56, %v2644_v1  ;;  %v13148_v28 = vcombine.high %v2648_v22, %v2652_v23  ;;  %v13150_v29 = vcombine.high %v2649_v24, %v2653_v25  ;;  %v13149_v36 = vcombine.low %v2649_v24, %v2653_v25  ;;  %v2677_v56 = vld [vmem:[#allocation10 + $0xfe8] sm:$0xff] }
 0x27e   :  { %v1975_v1 = vadd.f32 %v15295_v44, %v453_v41  ;;  %v2701_v41 = vld [vmem:[#allocation10 + $0x10a8] sm:$0xff] }
 0x27f   :  { %8492 = vmatpush1.bf16.msra.mxu0 %v13107_v31  ;;  %v2660_v31 = vld [vmem:[#allocation10 + $0xf60] sm:$0xff] }
 0x280   :  { %8820 = vmatpush1.bf16.msra.mxu1 %v13109_v32  ;;  %8493 = vmatprep.subr.bf16.mxu0 %v13116_v17  ;;  %v2657_v32 = vld [vmem:[#allocation10 + $0xf48] sm:$0xff]  ;;  %v13156_v48 = vcombine.high %v2656_v30, %v2660_v31  ;;  %v13155_v42 = vcombine.low %v2656_v30, %v2660_v31  ;;  %v2129_v24 = vmul.f32 %v15230_v13, %v1975_v1  ;;  %vm2112_vm8 = vcmp.gt.f32.partialorder %v1975_v1, 0.0  ;;  %v2692_v30 = vld [vmem:[#allocation10 + $0x1060] sm:$0xff] }
 0x281   :  { %8821 = vmatprep.subr.bf16.mxu1 %v13118_v33  ;;  %v2661_v17 = vld [vmem:[#allocation10 + $0xf68] sm:$0xff]  ;;  %v13147_v33 = vcombine.low %v2648_v22, %v2652_v23 }
 0x282   :  { %v13158_v50 = vcombine.high %v2657_v32, %v2661_v17  ;;  %v13157_v43 = vcombine.low %v2657_v32, %v2661_v17  ;;  %v2681_v22 = vld [vmem:[#allocation10 + $0x1008] sm:$0xff]  ;;  %v2145_v31 = vsel %vm2112_vm8, %v1975_v1, %v2129_v24 }
 0x283   :  { %8494 = vmatpush1.bf16.msra.mxu0 %v13115_v51  ;;  %v2664_v51 = vld [vmem:[#allocation10 + $0xf80] sm:$0xff]  ;;  %v2685_v23 = vld [vmem:[#allocation10 + $0x1028] sm:$0xff] }
 0x284   :  { %8822 = vmatpush1.bf16.msra.mxu1 %v13117_v38  ;;  %8495 = vmatprep.subr.bf16.mxu0 %v13124_v39  ;;  %v2668_v38 = vld [vmem:[#allocation10 + $0xfa0] sm:$0xff]  ;;  %v2665_v39 = vld [vmem:[#allocation10 + $0xf88] sm:$0xff] }
 0x285   :  { %8823 = vmatprep.subr.bf16.mxu1 %v13126_v58  ;;  %v2669_v58 = vld [vmem:[#allocation10 + $0xfa8] sm:$0xff]  ;;  %v13164_v12 = vcombine.high %v2664_v51, %v2668_v38  ;;  %v13163_v3 = vcombine.low %v2664_v51, %v2668_v38  ;;  %v2700_v51 = vld [vmem:[#allocation10 + $0x10a0] sm:$0xff]  ;;  %v15348_v38 = vpack.c.bf16 %v2145_v31, %v2145_v31 }
 0x286   :  { %v13165_v5 = vcombine.low %v2665_v39, %v2669_v58  ;;  %v2689_v17 = vld [vmem:[#allocation10 + $0x1048] sm:$0xff] }
 0x287   :  { %8496 = vmatpush1.bf16.msra.mxu0 %v13123_v45  ;;  %v1932_v45 = vadd.f32 %v15267_v54, %v441_v37  ;;  %v2684_v54 = vld [vmem:[#allocation10 + $0x1020] sm:$0xff] }
 0x288   :  { %8824 = vmatpush1.bf16.msra.mxu1 %v13125_v47  ;;  %8497 = vmatprep.subr.bf16.mxu0 %v13132_v49  ;;  %v13166_v47 = vcombine.high %v2665_v39, %v2669_v58  ;;  %v2676_v49 = vld [vmem:[#allocation10 + $0xfe0] sm:$0xff]  ;;  %v2697_v58 = vld [vmem:[#allocation10 + $0x1088] sm:$0xff] }
 0x289   :  { %8825 = vmatprep.subr.bf16.mxu1 %v13134_v55  ;;  %v2673_v55 = vld [vmem:[#allocation10 + $0xfc8] sm:$0xff]  ;;  %vm2109_vm7 = vcmp.gt.f32.partialorder %v1932_v45, 0.0  ;;  %v13171_v25 = vcombine.low %v2672_v7, %v2676_v49  ;;  %v13197_v1 = vcombine.low %v2697_v58, %v2701_v41 }
 0x28a   :  { %v13173_v44 = vcombine.low %v2673_v55, %v2677_v56 }
 0x28b   :  { %8498 = vmatpush1.bf16.msra.mxu0 %v13131_v11  ;;  %v13172_v11 = vcombine.high %v2672_v7, %v2676_v49  ;;  %v2708_v7 = vld [vmem:[#allocation10 + $0x10e0] sm:$0xff]  ;;  %v2705_v49 = vld [vmem:[#allocation10 + $0x10c8] sm:$0xff] }
 0x28c   :  { %8826 = vmatpush1.bf16.msra.mxu1 %v13133_v14  ;;  %8499 = vmatprep.subr.bf16.mxu0 %v13140_v16  ;;  %v2126_v14 = vmul.f32 %v15230_v13, %v1932_v45  ;;  %v13174_v16 = vcombine.high %v2673_v55, %v2677_v56  ;;  %v2709_v55 = vld [vmem:[#allocation10 + $0x10e8] sm:$0xff] }
 0x28d   :  { %8827 = vmatprep.subr.bf16.mxu1 %v13142_v19  ;;  %v2680_v19 = vld [vmem:[#allocation10 + $0x1000] sm:$0xff] }
 0x28e   :  { %v13179_v32 = vcombine.low %v2680_v19, %v2684_v54 }
 0x28f   :  { %8500 = vmatpush1.bf16.msra.mxu0 %v13139_v26  ;;  %v13180_v26 = vcombine.high %v2680_v19, %v2684_v54  ;;  %v2717_v19 = vld [vmem:[#allocation10 + $0x1128] sm:$0xff] }
 0x290   :  { %8828 = vmatpush1.bf16.msra.mxu1 %v13141_v27  ;;  %8501 = vmatprep.subr.bf16.mxu0 %v13148_v28  ;;  %v2142_v27 = vsel %vm2109_vm7, %v1932_v45, %v2126_v14  ;;  %v13182_v28 = vcombine.high %v2681_v22, %v2685_v23  ;;  %v13198_v45 = vcombine.high %v2697_v58, %v2701_v41  ;;  %v2716_v14 = vld [vmem:[#allocation10 + $0x1120] sm:$0xff] }
 0x291   :  { %8829 = vmatprep.subr.bf16.mxu1 %v13150_v29  ;;  %v2688_v29 = vld [vmem:[#allocation10 + $0x1040] sm:$0xff] }
 0x292   :  { %v13188_v37 = vcombine.high %v2688_v29, %v2692_v30  ;;  %v2736_v58 = vld [vmem:[#allocation10 + $0x11c0] sm:$0xff] }
 0x293   :  { %8502 = vmatpush1.bf16.msra.mxu0 %v13147_v33  ;;  %v2693_v33 = vld [vmem:[#allocation10 + $0x1068] sm:$0xff]  ;;  %v2740_v41 = vld [vmem:[#allocation10 + $0x11e0] sm:$0xff] }
 0x294   :  { %8830 = vmatpush1.bf16.msra.mxu1 %v13149_v36  ;;  %8503 = vmatprep.subr.bf16.mxu0 %v13156_v48  ;;  %v15346_v36 = vpack.c.bf16 %v2142_v27, %v2142_v27  ;;  %v13181_v48 = vcombine.low %v2681_v22, %v2685_v23  ;;  %v13190_v39 = vcombine.high %v2689_v17, %v2693_v33  ;;  %v2725_v27 = vld [vmem:[#allocation10 + $0x1168] sm:$0xff] }
 0x295   :  { %8831 = vmatprep.subr.bf16.mxu1 %v13158_v50  ;;  %v2696_v50 = vld [vmem:[#allocation10 + $0x1080] sm:$0xff]  ;;  %v13205_v22 = vcombine.low %v2705_v49, %v2709_v55 }
 0x296   :  { %v13195_v56 = vcombine.low %v2696_v50, %v2700_v51 }
 0x297   :  { %8504 = vmatpush1.bf16.msra.mxu0 %v13155_v42  ;;  %v13187_v42 = vcombine.low %v2688_v29, %v2692_v30 }
 0x298   :  { %8832 = vmatpush1.bf16.msra.mxu1 %v13157_v43  ;;  %8505 = vmatprep.subr.bf16.mxu0 %v13164_v12  ;;  %v13189_v43 = vcombine.low %v2689_v17, %v2693_v33  ;;  %v13196_v12 = vcombine.high %v2696_v50, %v2700_v51  ;;  %v2732_v17 = vld [vmem:[#allocation10 + $0x11a0] sm:$0xff]  ;;  %v2729_v33 = vld [vmem:[#allocation10 + $0x1188] sm:$0xff] }
 0x299   :  { %8833 = vmatprep.subr.bf16.mxu1 %v13166_v47  ;;  %v2704_v47 = vld [vmem:[#allocation10 + $0x10c0] sm:$0xff] }
 0x29a   :  { %v13203_v54 = vcombine.low %v2704_v47, %v2708_v7 }
 0x29b   :  { %8506 = vmatpush1.bf16.msra.mxu0 %v13163_v3  ;;  %v13204_v3 = vcombine.high %v2704_v47, %v2708_v7  ;;  %v13236_v47 = vcombine.high %v2736_v58, %v2740_v41 }
 0x29c   :  { %8834 = vmatpush1.bf16.msra.mxu1 %v13165_v5  ;;  %8507 = vmatprep.subr.bf16.mxu0 %v13172_v11  ;;  %v13206_v5 = vcombine.high %v2705_v49, %v2709_v55  ;;  %v2712_v11 = vld [vmem:[#allocation10 + $0x1100] sm:$0xff] }
 0x29d   :  { %8835 = vmatprep.subr.bf16.mxu1 %v13174_v16  ;;  %v2713_v16 = vld [vmem:[#allocation10 + $0x1108] sm:$0xff]  ;;  %v13212_v23 = vcombine.high %v2712_v11, %v2716_v14  ;;  %v2744_v49 = vld [vmem:[#allocation10 + $0x1200] sm:$0xff] }
 0x29e   :  { %v13214_v24 = vcombine.high %v2713_v16, %v2717_v19  ;;  %v13213_v29 = vcombine.low %v2713_v16, %v2717_v19  ;;  %v2748_v55 = vld [vmem:[#allocation10 + $0x1220] sm:$0xff] }
 0x29f   :  { %8508 = vmatpush1.bf16.msra.mxu0 %v13171_v25  ;;  %v2720_v25 = vld [vmem:[#allocation10 + $0x1140] sm:$0xff] }
 0x2a0   :  { %8836 = vmatpush1.bf16.msra.mxu1 %v13173_v44  ;;  %8518 = vmatprep.subr.bf16.mxu0 %v13180_v26  ;;  %v2724_v44 = vld [vmem:[#allocation10 + $0x1160] sm:$0xff]  ;;  %v2721_v26 = vld [vmem:[#allocation10 + $0x1148] sm:$0xff] }
 0x2a1   :  { %8846 = vmatprep.subr.bf16.mxu1 %v13182_v28  ;;  %v13211_v28 = vcombine.low %v2712_v11, %v2716_v14  ;;  %v13220_v30 = vcombine.high %v2720_v25, %v2724_v44  ;;  %v13222_v31 = vcombine.high %v2721_v26, %v2725_v27  ;;  %v13221_v50 = vcombine.low %v2721_v26, %v2725_v27  ;;  %v2752_v16 = vld [vmem:[#allocation10 + $0x1240] sm:$0xff] }
 0x2a2   :  { %8510 = vmatmul.mubr.bf16.vlgmr.msra.gmra.mrb[16].mxu0 %v15346_v36  ;;  %v13244_v11 = vcombine.high %v2744_v49, %v2748_v55  ;;  %v2756_v19 = vld [vmem:[#allocation10 + $0x1260] sm:$0xff] }
 0x2a3   :  { %8838 = vmatmul.mubr.bf16.vlgmr.msra.gmra.mrb[16].mxu1 %v15346_v36  ;;  %8519 = vmatpush1.bf16.msra.mxu0 %v13179_v32  ;;  %v2728_v32 = vld [vmem:[#allocation10 + $0x1180] sm:$0xff] }
 0x2a4   :  { %8550 = vmatprep.mubr.bf16.mxu0 %v15348_v38  ;;  %8847 = vmatpush1.bf16.msra.mxu1 %v13181_v48  ;;  %v2733_v48 = vld [vmem:[#allocation10 + $0x11a8] sm:$0xff]  ;;  %v13228_v51 = vcombine.high %v2728_v32, %v2732_v17  ;;  %v2760_v26 = vld [vmem:[#allocation10 + $0x1280] sm:$0xff] }
 0x2a5   :  { %8878 = vmatprep.mubr.bf16.mxu1 %v15348_v38  ;;  %8520 = vmatprep.subr.bf16.mxu0 %v13188_v37  ;;  %v13219_v37 = vcombine.low %v2720_v25, %v2724_v44  ;;  %v13252_v25 = vcombine.high %v2752_v16, %v2756_v19  ;;  %v2764_v27 = vld [vmem:[#allocation10 + $0x12a0] sm:$0xff] }
 0x2a6   :  { %8848 = vmatprep.subr.bf16.mxu1 %v13190_v39  ;;  %v13230_v39 = vcombine.high %v2729_v33, %v2733_v48 }
 0x2a7   :  { %8521 = vmatpush1.bf16.msra.mxu0 %v13187_v42  ;;  %v2737_v42 = vld [vmem:[#allocation10 + $0x11c8] sm:$0xff] }
 0x2a8   :  { %8849 = vmatpush1.bf16.msra.mxu1 %v13189_v43  ;;  %8522 = vmatprep.subr.bf16.mxu0 %v13196_v12  ;;  %v2741_v43 = vld [vmem:[#allocation10 + $0x11e8] sm:$0xff]  ;;  %v13227_v12 = vcombine.low %v2728_v32, %v2732_v17  ;;  %v13260_v32 = vcombine.high %v2760_v26, %v2764_v27 }
 0x2a9   :  { %8850 = vmatprep.subr.bf16.mxu1 %v13198_v45  ;;  %v13229_v45 = vcombine.low %v2729_v33, %v2733_v48  ;;  %v13238_v7 = vcombine.high %v2737_v42, %v2741_v43  ;;  %v2768_v33 = vld [vmem:[#allocation10 + $0x12c0] sm:$0xff] }
 0x2aa   :  { %v2772_v48 = vld [vmem:[#allocation10 + $0x12e0] sm:$0xff] }
 0x2ab   :  { %8523 = vmatpush1.bf16.msra.mxu0 %v13195_v56  ;;  %v2745_v56 = vld [vmem:[#allocation10 + $0x1208] sm:$0xff] }
 0x2ac   :  { %8851 = vmatpush1.bf16.msra.mxu1 %v13197_v1  ;;  %8524 = vmatprep.subr.bf16.mxu0 %v13204_v3  ;;  %v2749_v1 = vld [vmem:[#allocation10 + $0x1228] sm:$0xff]  ;;  %v13235_v3 = vcombine.low %v2736_v58, %v2740_v41  ;;  %v13268_v58 = vcombine.high %v2768_v33, %v2772_v48 }
 0x2ad   :  { %8852 = vmatprep.subr.bf16.mxu1 %v13206_v5  ;;  %v13237_v5 = vcombine.low %v2737_v42, %v2741_v43  ;;  %v13246_v14 = vcombine.high %v2745_v56, %v2749_v1  ;;  %v2776_v42 = vld [vmem:[#allocation10 + $0x1300] sm:$0xff] }
 0x2ae   :  { %v2780_v43 = vld [vmem:[#allocation10 + $0x1320] sm:$0xff] }
 0x2af   :  { %8525 = vmatpush1.bf16.msra.mxu0 %v13203_v54  ;;  %v2753_v54 = vld [vmem:[#allocation10 + $0x1248] sm:$0xff] }
 0x2b0   :  { %8853 = vmatpush1.bf16.msra.mxu1 %v13205_v22  ;;  %8526 = vmatprep.subr.bf16.mxu0 %v13212_v23  ;;  %v2757_v22 = vld [vmem:[#allocation10 + $0x1268] sm:$0xff]  ;;  %v13243_v23 = vcombine.low %v2744_v49, %v2748_v55  ;;  %v13276_v49 = vcombine.high %v2776_v42, %v2780_v43 }
 0x2b1   :  { %8854 = vmatprep.subr.bf16.mxu1 %v13214_v24  ;;  %v13245_v24 = vcombine.low %v2745_v56, %v2749_v1  ;;  %v13254_v44 = vcombine.high %v2753_v54, %v2757_v22  ;;  %v2784_v56 = vld [vmem:[#allocation10 + $0x1340] sm:$0xff] }
 0x2b2   :  { %v2788_v1 = vld [vmem:[#allocation10 + $0x1360] sm:$0xff] }
 0x2b3   :  { %8527 = vmatpush1.bf16.msra.mxu0 %v13211_v28  ;;  %v2761_v28 = vld [vmem:[#allocation10 + $0x1288] sm:$0xff] }
 0x2b4   :  { %8855 = vmatpush1.bf16.msra.mxu1 %v13213_v29  ;;  %8528 = vmatprep.subr.bf16.mxu0 %v13220_v30  ;;  %v2765_v29 = vld [vmem:[#allocation10 + $0x12a8] sm:$0xff]  ;;  %v13251_v30 = vcombine.low %v2752_v16, %v2756_v19  ;;  %v13284_v16 = vcombine.high %v2784_v56, %v2788_v1  ;;  %v449_v19 = vrot.slane %v15336_v34, %v15242_v9 }
 0x2b5   :  { %8856 = vmatprep.subr.bf16.mxu1 %v13222_v31  ;;  %v13253_v31 = vcombine.low %v2753_v54, %v2757_v22  ;;  %v13262_v17 = vcombine.high %v2761_v28, %v2765_v29  ;;  %v2792_v22 = vld [vmem:[#allocation10 + $0x1380] sm:$0xff] }
 0x2b7   :  { %8529 = vmatpush1.bf16.msra.mxu0 %v13219_v37  ;;  %v2769_v37 = vld [vmem:[#allocation10 + $0x12c8] sm:$0xff] }
 0x2b8   :  { %8857 = vmatpush1.bf16.msra.mxu1 %v13221_v50  ;;  %8530 = vmatprep.subr.bf16.mxu0 %v13228_v51  ;;  %v2773_v50 = vld [vmem:[#allocation10 + $0x12e8] sm:$0xff]  ;;  %v13259_v51 = vcombine.low %v2760_v26, %v2764_v27  ;;  %v13283_v26 = vcombine.low %v2784_v56, %v2788_v1  ;;  %v2820_v56 = vld [vmem:[#allocation10 + $0x1460] sm:$0xff] }
 0x2b9   :  { %8858 = vmatprep.subr.bf16.mxu1 %v13230_v39  ;;  %v13261_v39 = vcombine.low %v2761_v28, %v2765_v29  ;;  %v13270_v41 = vcombine.high %v2769_v37, %v2773_v50  ;;  %v1973_v29 = vadd.f32 %v15293_v40, %v449_v19  ;;  %v2812_v40 = vld [vmem:[#allocation10 + $0x1420] sm:$0xff] }
 0x2bb   :  { %8531 = vmatpush1.bf16.msra.mxu0 %v13227_v12  ;;  %v2777_v12 = vld [vmem:[#allocation10 + $0x1308] sm:$0xff]  ;;  %vm2111_vm9 = vcmp.gt.f32.partialorder %v1973_v29, 0.0 }
 0x2bc   :  { %8859 = vmatpush1.bf16.msra.mxu1 %v13229_v45  ;;  %8532 = vmatprep.subr.bf16.mxu0 %v13236_v47  ;;  %v2781_v45 = vld [vmem:[#allocation10 + $0x1328] sm:$0xff]  ;;  %v13267_v47 = vcombine.low %v2768_v33, %v2772_v48 }
 0x2bd   :  { %8860 = vmatprep.subr.bf16.mxu1 %v13238_v7  ;;  %v13269_v7 = vcombine.low %v2769_v37, %v2773_v50  ;;  %v13278_v55 = vcombine.high %v2777_v12, %v2781_v45  ;;  %v2805_v33 = vld [vmem:[#allocation10 + $0x13e8] sm:$0xff] }
 0x2bf   :  { %8533 = vmatpush1.bf16.msra.mxu0 %v13235_v3  ;;  %v2785_v3 = vld [vmem:[#allocation10 + $0x1348] sm:$0xff] }
 0x2c0   :  { %8861 = vmatpush1.bf16.msra.mxu1 %v13237_v5  ;;  %8534 = vmatprep.subr.bf16.mxu0 %v13244_v11  ;;  %v2789_v5 = vld [vmem:[#allocation10 + $0x1368] sm:$0xff]  ;;  %v13275_v11 = vcombine.low %v2776_v42, %v2780_v43 }
 0x2c1   :  { %8862 = vmatprep.subr.bf16.mxu1 %v13246_v14  ;;  %v13277_v14 = vcombine.low %v2777_v12, %v2781_v45  ;;  %v13286_v54 = vcombine.high %v2785_v3, %v2789_v5  ;;  %v13285_v27 = vcombine.low %v2785_v3, %v2789_v5  ;;  %v2809_v42 = vld [vmem:[#allocation10 + $0x1408] sm:$0xff] }
 0x2c2   :  { %v2813_v43 = vld [vmem:[#allocation10 + $0x1428] sm:$0xff] }
 0x2c3   :  { %8535 = vmatpush1.bf16.msra.mxu0 %v13243_v23  ;;  %v2796_v23 = vld [vmem:[#allocation10 + $0x13a0] sm:$0xff]  ;;  %v2817_v5 = vld [vmem:[#allocation10 + $0x1448] sm:$0xff] }
 0x2c4   :  { %8863 = vmatpush1.bf16.msra.mxu1 %v13245_v24  ;;  %8536 = vmatprep.subr.bf16.mxu0 %v13252_v25  ;;  %v2793_v24 = vld [vmem:[#allocation10 + $0x1388] sm:$0xff]  ;;  %v13292_v28 = vcombine.high %v2792_v22, %v2796_v23  ;;  %v13291_v37 = vcombine.low %v2792_v22, %v2796_v23  ;;  %v2828_v22 = vld [vmem:[#allocation10 + $0x14a0] sm:$0xff] }
 0x2c5   :  { %8864 = vmatprep.subr.bf16.mxu1 %v13254_v44  ;;  %v2797_v25 = vld [vmem:[#allocation10 + $0x13a8] sm:$0xff]  ;;  %v461_v44 = vrot.slane %v15336_v34, %v15245_v18 }
 0x2c6   :  { %v13293_v50 = vcombine.low %v2793_v24, %v2797_v25 }
 0x2c7   :  { %8537 = vmatpush1.bf16.msra.mxu0 %v13251_v30  ;;  %v13294_v30 = vcombine.high %v2793_v24, %v2797_v25  ;;  %v2016_v48 = vadd.f32 %v15299_v21, %v461_v44  ;;  %v2825_v25 = vld [vmem:[#allocation10 + $0x1488] sm:$0xff] }
 0x2c8   :  { %8865 = vmatpush1.bf16.msra.mxu1 %v13253_v31  ;;  %8538 = vmatprep.subr.bf16.mxu0 %v13260_v32  ;;  %v2800_v31 = vld [vmem:[#allocation10 + $0x13c0] sm:$0xff]  ;;  %v2829_v44 = vld [vmem:[#allocation10 + $0x14a8] sm:$0xff] }
 0x2c9   :  { %8866 = vmatprep.subr.bf16.mxu1 %v13262_v17  ;;  %v2804_v32 = vld [vmem:[#allocation10 + $0x13e0] sm:$0xff]  ;;  %v2801_v17 = vld [vmem:[#allocation10 + $0x13c8] sm:$0xff]  ;;  %v2131_v12 = vmul.f32 %v15230_v13, %v2016_v48  ;;  %vm2114_vm10 = vcmp.gt.f32.partialorder %v2016_v48, 0.0 }
 0x2ca   :  { %v13299_v45 = vcombine.low %v2800_v31, %v2804_v32  ;;  %v13301_v21 = vcombine.low %v2801_v17, %v2805_v33 }
 0x2cb   :  { %8539 = vmatpush1.bf16.msra.mxu0 %v13259_v51  ;;  %v13300_v51 = vcombine.high %v2800_v31, %v2804_v32  ;;  %v2147_v1 = vsel %vm2114_vm10, %v2016_v48, %v2131_v12  ;;  %v2836_v31 = vld [vmem:[#allocation10 + $0x14e0] sm:$0xff]  ;;  %v2833_v32 = vld [vmem:[#allocation10 + $0x14c8] sm:$0xff]  ;;  %v13325_v48 = vcombine.low %v2825_v25, %v2829_v44 }
 0x2cc   :  { %8867 = vmatpush1.bf16.msra.mxu1 %v13261_v39  ;;  %8540 = vmatprep.subr.bf16.mxu0 %v13268_v58  ;;  %v2128_v39 = vmul.f32 %v15230_v13, %v1973_v29  ;;  %v13302_v58 = vcombine.high %v2801_v17, %v2805_v33  ;;  %v15364_v23 = vpack.c.bf16 %v2147_v1, %v2147_v1  ;;  %v2837_v17 = vld [vmem:[#allocation10 + $0x14e8] sm:$0xff] }
 0x2cd   :  { %8868 = vmatprep.subr.bf16.mxu1 %v13270_v41  ;;  %v2808_v41 = vld [vmem:[#allocation10 + $0x1400] sm:$0xff] }
 0x2ce   :  { %v13307_v3 = vcombine.low %v2808_v41, %v2812_v40 }
 0x2cf   :  { %8541 = vmatpush1.bf16.msra.mxu0 %v13267_v47  ;;  %v13308_v47 = vcombine.high %v2808_v41, %v2812_v40  ;;  %v2845_v41 = vld [vmem:[#allocation10 + $0x1528] sm:$0xff] }
 0x2d0   :  { %8869 = vmatpush1.bf16.msra.mxu1 %v13269_v7  ;;  %8542 = vmatprep.subr.bf16.mxu0 %v13276_v49  ;;  %v2144_v7 = vsel %vm2111_vm9, %v1973_v29, %v2128_v39  ;;  %v13310_v49 = vcombine.high %v2809_v42, %v2813_v43  ;;  %v13326_v29 = vcombine.high %v2825_v25, %v2829_v44  ;;  %v2844_v39 = vld [vmem:[#allocation10 + $0x1520] sm:$0xff] }
 0x2d1   :  { %8870 = vmatprep.subr.bf16.mxu1 %v13278_v55  ;;  %v2816_v55 = vld [vmem:[#allocation10 + $0x1440] sm:$0xff] }
 0x2d2   :  { %v13316_v19 = vcombine.high %v2816_v55, %v2820_v56  ;;  %v2864_v25 = vld [vmem:[#allocation10 + $0x15c0] sm:$0xff] }
 0x2d3   :  { %8543 = vmatpush1.bf16.msra.mxu0 %v13275_v11  ;;  %v2821_v11 = vld [vmem:[#allocation10 + $0x1468] sm:$0xff]  ;;  %v2868_v44 = vld [vmem:[#allocation10 + $0x15e0] sm:$0xff] }
 0x2d4   :  { %8871 = vmatpush1.bf16.msra.mxu1 %v13277_v14  ;;  %8544 = vmatprep.subr.bf16.mxu0 %v13284_v16  ;;  %v15362_v14 = vpack.c.bf16 %v2144_v7, %v2144_v7  ;;  %v13309_v16 = vcombine.low %v2809_v42, %v2813_v43  ;;  %v13318_v24 = vcombine.high %v2817_v5, %v2821_v11  ;;  %v2853_v7 = vld [vmem:[#allocation10 + $0x1568] sm:$0xff] }
 0x2d5   :  { %8872 = vmatprep.subr.bf16.mxu1 %v13286_v54  ;;  %v2824_v54 = vld [vmem:[#allocation10 + $0x1480] sm:$0xff]  ;;  %v13333_v42 = vcombine.low %v2833_v32, %v2837_v17 }
 0x2d6   :  { %v13323_v33 = vcombine.low %v2824_v54, %v2828_v22 }
 0x2d7   :  { %8545 = vmatpush1.bf16.msra.mxu0 %v13283_v26  ;;  %v13315_v26 = vcombine.low %v2816_v55, %v2820_v56 }
 0x2d8   :  { %8873 = vmatpush1.bf16.msra.mxu1 %v13285_v27  ;;  %8546 = vmatprep.subr.bf16.mxu0 %v13292_v28  ;;  %v13317_v27 = vcombine.low %v2817_v5, %v2821_v11  ;;  %v13324_v28 = vcombine.high %v2824_v54, %v2828_v22  ;;  %v2860_v5 = vld [vmem:[#allocation10 + $0x15a0] sm:$0xff]  ;;  %v2857_v11 = vld [vmem:[#allocation10 + $0x1588] sm:$0xff] }
 0x2d9   :  { %8874 = vmatprep.subr.bf16.mxu1 %v13294_v30  ;;  %v2832_v30 = vld [vmem:[#allocation10 + $0x14c0] sm:$0xff] }
 0x2da   :  { %v13331_v40 = vcombine.low %v2832_v30, %v2836_v31 }
 0x2db   :  { %8547 = vmatpush1.bf16.msra.mxu0 %v13291_v37  ;;  %v13332_v37 = vcombine.high %v2832_v30, %v2836_v31  ;;  %v13364_v30 = vcombine.high %v2864_v25, %v2868_v44 }
 0x2dc   :  { %8875 = vmatpush1.bf16.msra.mxu1 %v13293_v50  ;;  %8548 = vmatprep.subr.bf16.mxu0 %v13300_v51  ;;  %v13334_v50 = vcombine.high %v2833_v32, %v2837_v17  ;;  %v2840_v51 = vld [vmem:[#allocation10 + $0x1500] sm:$0xff] }
 0x2dd   :  { %8876 = vmatprep.subr.bf16.mxu1 %v13302_v58  ;;  %v2841_v58 = vld [vmem:[#allocation10 + $0x1508] sm:$0xff]  ;;  %v13340_v43 = vcombine.high %v2840_v51, %v2844_v39  ;;  %v2872_v32 = vld [vmem:[#allocation10 + $0x1600] sm:$0xff] }
 0x2de   :  { %v13342_v12 = vcombine.high %v2841_v58, %v2845_v41  ;;  %v13341_v55 = vcombine.low %v2841_v58, %v2845_v41  ;;  %v2876_v17 = vld [vmem:[#allocation10 + $0x1620] sm:$0xff] }
 0x2df   :  { %8549 = vmatpush1.bf16.msra.mxu0 %v13299_v45  ;;  %v2848_v45 = vld [vmem:[#allocation10 + $0x1540] sm:$0xff] }
 0x2e0   :  { %8877 = vmatpush1.bf16.msra.mxu1 %v13301_v21  ;;  %8559 = vmatprep.subr.bf16.mxu0 %v13308_v47  ;;  %v2852_v21 = vld [vmem:[#allocation10 + $0x1560] sm:$0xff]  ;;  %v2849_v47 = vld [vmem:[#allocation10 + $0x1548] sm:$0xff] }
 0x2e1   :  { %8887 = vmatprep.subr.bf16.mxu1 %v13310_v49  ;;  %v13339_v49 = vcombine.low %v2840_v51, %v2844_v39  ;;  %v13348_v56 = vcombine.high %v2848_v45, %v2852_v21  ;;  %v13350_v1 = vcombine.high %v2849_v47, %v2853_v7  ;;  %v13349_v54 = vcombine.low %v2849_v47, %v2853_v7  ;;  %v2880_v58 = vld [vmem:[#allocation10 + $0x1640] sm:$0xff] }
 0x2e2   :  { %8551 = vmatmul.mubr.bf16.vlgmr.msra.gmra.mrb[16].mxu0 %v15362_v14  ;;  %v13372_v51 = vcombine.high %v2872_v32, %v2876_v17  ;;  %v2884_v41 = vld [vmem:[#allocation10 + $0x1660] sm:$0xff] }
 0x2e3   :  { %8879 = vmatmul.mubr.bf16.vlgmr.msra.gmra.mrb[16].mxu1 %v15362_v14  ;;  %8560 = vmatpush1.bf16.msra.mxu0 %v13307_v3  ;;  %v2856_v3 = vld [vmem:[#allocation10 + $0x1580] sm:$0xff] }
 0x2e4   :  { %8591 = vmatprep.mubr.bf16.mxu0 %v15364_v23  ;;  %8888 = vmatpush1.bf16.msra.mxu1 %v13309_v16  ;;  %v2861_v16 = vld [vmem:[#allocation10 + $0x15a8] sm:$0xff]  ;;  %v13356_v22 = vcombine.high %v2856_v3, %v2860_v5  ;;  %v2888_v47 = vld [vmem:[#allocation10 + $0x1680] sm:$0xff] }
 0x2e5   :  { %8919 = vmatprep.mubr.bf16.mxu1 %v15364_v23  ;;  %8561 = vmatprep.subr.bf16.mxu0 %v13316_v19  ;;  %v13347_v19 = vcombine.low %v2848_v45, %v2852_v21  ;;  %v13380_v45 = vcombine.high %v2880_v58, %v2884_v41  ;;  %v2892_v7 = vld [vmem:[#allocation10 + $0x16a0] sm:$0xff] }
 0x2e6   :  { %8889 = vmatprep.subr.bf16.mxu1 %v13318_v24  ;;  %v13358_v24 = vcombine.high %v2857_v11, %v2861_v16 }
 0x2e7   :  { %8562 = vmatpush1.bf16.msra.mxu0 %v13315_v26  ;;  %v2865_v26 = vld [vmem:[#allocation10 + $0x15c8] sm:$0xff] }
 0x2e8   :  { %8890 = vmatpush1.bf16.msra.mxu1 %v13317_v27  ;;  %8563 = vmatprep.subr.bf16.mxu0 %v13324_v28  ;;  %v2869_v27 = vld [vmem:[#allocation10 + $0x15e8] sm:$0xff]  ;;  %v13355_v28 = vcombine.low %v2856_v3, %v2860_v5  ;;  %v13388_v3 = vcombine.high %v2888_v47, %v2892_v7 }
 0x2e9   :  { %8891 = vmatprep.subr.bf16.mxu1 %v13326_v29  ;;  %v13357_v29 = vcombine.low %v2857_v11, %v2861_v16  ;;  %v13366_v31 = vcombine.high %v2865_v26, %v2869_v27  ;;  %v2896_v11 = vld [vmem:[#allocation10 + $0x16c0] sm:$0xff] }
 0x2ea   :  { %v2900_v16 = vld [vmem:[#allocation10 + $0x16e0] sm:$0xff] }
 0x2eb   :  { %8564 = vmatpush1.bf16.msra.mxu0 %v13323_v33  ;;  %v2873_v33 = vld [vmem:[#allocation10 + $0x1608] sm:$0xff] }
 0x2ec   :  { %8892 = vmatpush1.bf16.msra.mxu1 %v13325_v48  ;;  %8565 = vmatprep.subr.bf16.mxu0 %v13332_v37  ;;  %v2877_v48 = vld [vmem:[#allocation10 + $0x1628] sm:$0xff]  ;;  %v13363_v37 = vcombine.low %v2864_v25, %v2868_v44  ;;  %v13396_v25 = vcombine.high %v2896_v11, %v2900_v16 }
 0x2ed   :  { %8893 = vmatprep.subr.bf16.mxu1 %v13334_v50  ;;  %v13365_v50 = vcombine.low %v2865_v26, %v2869_v27  ;;  %v13374_v39 = vcombine.high %v2873_v33, %v2877_v48  ;;  %v2904_v26 = vld [vmem:[#allocation10 + $0x1700] sm:$0xff] }
 0x2ee   :  { %v2908_v27 = vld [vmem:[#allocation10 + $0x1720] sm:$0xff] }
 0x2ef   :  { %8566 = vmatpush1.bf16.msra.mxu0 %v13331_v40  ;;  %v2881_v40 = vld [vmem:[#allocation10 + $0x1648] sm:$0xff] }
 0x2f0   :  { %8894 = vmatpush1.bf16.msra.mxu1 %v13333_v42  ;;  %8567 = vmatprep.subr.bf16.mxu0 %v13340_v43  ;;  %v2885_v42 = vld [vmem:[#allocation10 + $0x1668] sm:$0xff]  ;;  %v13371_v43 = vcombine.low %v2872_v32, %v2876_v17  ;;  %v13404_v32 = vcombine.high %v2904_v26, %v2908_v27 }
 0x2f1   :  { %8895 = vmatprep.subr.bf16.mxu1 %v13342_v12  ;;  %v13373_v12 = vcombine.low %v2873_v33, %v2877_v48  ;;  %v13382_v21 = vcombine.high %v2881_v40, %v2885_v42  ;;  %v2912_v33 = vld [vmem:[#allocation10 + $0x1740] sm:$0xff] }
 0x2f2   :  { %v2916_v48 = vld [vmem:[#allocation10 + $0x1760] sm:$0xff] }
 0x2f3   :  { %8568 = vmatpush1.bf16.msra.mxu0 %v13339_v49  ;;  %v2889_v49 = vld [vmem:[#allocation10 + $0x1688] sm:$0xff] }
 0x2f4   :  { %8896 = vmatpush1.bf16.msra.mxu1 %v13341_v55  ;;  %8569 = vmatprep.subr.bf16.mxu0 %v13348_v56  ;;  %v2893_v55 = vld [vmem:[#allocation10 + $0x16a8] sm:$0xff]  ;;  %v13379_v56 = vcombine.low %v2880_v58, %v2884_v41  ;;  %v13412_v58 = vcombine.high %v2912_v33, %v2916_v48  ;;  %v457_v41 = vrot.slane %v15336_v34, %v15272_v57 }
 0x2f5   :  { %8897 = vmatprep.subr.bf16.mxu1 %v13350_v1  ;;  %v13381_v1 = vcombine.low %v2881_v40, %v2885_v42  ;;  %v13390_v5 = vcombine.high %v2889_v49, %v2893_v55  ;;  %v2920_v42 = vld [vmem:[#allocation10 + $0x1780] sm:$0xff] }
 0x2f7   :  { %8570 = vmatpush1.bf16.msra.mxu0 %v13347_v19  ;;  %v2897_v19 = vld [vmem:[#allocation10 + $0x16c8] sm:$0xff] }
 0x2f8   :  { %8898 = vmatpush1.bf16.msra.mxu1 %v13349_v54  ;;  %8571 = vmatprep.subr.bf16.mxu0 %v13356_v22  ;;  %v2901_v54 = vld [vmem:[#allocation10 + $0x16e8] sm:$0xff]  ;;  %v13387_v22 = vcombine.low %v2888_v47, %v2892_v7  ;;  %v13411_v47 = vcombine.low %v2912_v33, %v2916_v48 }
 0x2f9   :  { %8899 = vmatprep.subr.bf16.mxu1 %v13358_v24  ;;  %v13389_v24 = vcombine.low %v2889_v49, %v2893_v55  ;;  %v13398_v44 = vcombine.high %v2897_v19, %v2901_v54  ;;  %v2014_v55 = vadd.f32 %v15297_v46, %v457_v41  ;;  %v2940_v46 = vld [vmem:[#allocation10 + $0x1820] sm:$0xff] }
 0x2fa   :  { %v2952_v41 = vld [vmem:[#allocation10 + $0x1880] sm:$0xff] }
 0x2fb   :  { %8572 = vmatpush1.bf16.msra.mxu0 %v13355_v28  ;;  %v2905_v28 = vld [vmem:[#allocation10 + $0x1708] sm:$0xff]  ;;  %vm2113_vm11 = vcmp.gt.f32.partialorder %v2014_v55, 0.0 }
 0x2fc   :  { %8900 = vmatpush1.bf16.msra.mxu1 %v13357_v29  ;;  %8573 = vmatprep.subr.bf16.mxu0 %v13364_v30  ;;  %v2909_v29 = vld [vmem:[#allocation10 + $0x1728] sm:$0xff]  ;;  %v13395_v30 = vcombine.low %v2896_v11, %v2900_v16 }
 0x2fd   :  { %8901 = vmatprep.subr.bf16.mxu1 %v13366_v31  ;;  %v13397_v31 = vcombine.low %v2897_v19, %v2901_v54  ;;  %v13406_v17 = vcombine.high %v2905_v28, %v2909_v29  ;;  %v2933_v11 = vld [vmem:[#allocation10 + $0x17e8] sm:$0xff] }
 0x2ff   :  { %8574 = vmatpush1.bf16.msra.mxu0 %v13363_v37  ;;  %v2913_v37 = vld [vmem:[#allocation10 + $0x1748] sm:$0xff] }
 0x300   :  { %8902 = vmatpush1.bf16.msra.mxu1 %v13365_v50  ;;  %8575 = vmatprep.subr.bf16.mxu0 %v13372_v51  ;;  %v2917_v50 = vld [vmem:[#allocation10 + $0x1768] sm:$0xff]  ;;  %v13403_v51 = vcombine.low %v2904_v26, %v2908_v27 }
 0x301   :  { %8903 = vmatprep.subr.bf16.mxu1 %v13374_v39  ;;  %v13405_v39 = vcombine.low %v2905_v28, %v2909_v29  ;;  %v13414_v40 = vcombine.high %v2913_v37, %v2917_v50  ;;  %v13413_v7 = vcombine.low %v2913_v37, %v2917_v50  ;;  %v2941_v26 = vld [vmem:[#allocation10 + $0x1828] sm:$0xff] }
 0x302   :  { %v2945_v37 = vld [vmem:[#allocation10 + $0x1848] sm:$0xff] }
 0x303   :  { %8576 = vmatpush1.bf16.msra.mxu0 %v13371_v43  ;;  %v2924_v43 = vld [vmem:[#allocation10 + $0x17a0] sm:$0xff]  ;;  %v2949_v50 = vld [vmem:[#allocation10 + $0x1868] sm:$0xff] }
 0x304   :  { %8904 = vmatpush1.bf16.msra.mxu1 %v13373_v12  ;;  %8577 = vmatprep.subr.bf16.mxu0 %v13380_v45  ;;  %v2921_v12 = vld [vmem:[#allocation10 + $0x1788] sm:$0xff]  ;;  %v13420_v49 = vcombine.high %v2920_v42, %v2924_v43  ;;  %v13419_v19 = vcombine.low %v2920_v42, %v2924_v43  ;;  %v13446_v43 = vcombine.high %v2945_v37, %v2949_v50 }
 0x305   :  { %8905 = vmatprep.subr.bf16.mxu1 %v13382_v21  ;;  %v2925_v45 = vld [vmem:[#allocation10 + $0x17a8] sm:$0xff]  ;;  %v469_v21 = vrot.slane %v15336_v34, %v15275_v63 }
 0x306   :  { %v13421_v34 = vcombine.low %v2921_v12, %v2925_v45 }
 0x307   :  { %8578 = vmatpush1.bf16.msra.mxu0 %v13379_v56  ;;  %v13422_v56 = vcombine.high %v2921_v12, %v2925_v45  ;;  %v2057_v16 = vadd.f32 %v15327_v10, %v469_v21  ;;  %v2953_v12 = vld [vmem:[#allocation10 + $0x1888] sm:$0xff] }
 0x308   :  { %8906 = vmatpush1.bf16.msra.mxu1 %v13381_v1  ;;  %8579 = vmatprep.subr.bf16.mxu0 %v13388_v3  ;;  %v2928_v1 = vld [vmem:[#allocation10 + $0x17c0] sm:$0xff]  ;;  %v2957_v45 = vld [vmem:[#allocation10 + $0x18a8] sm:$0xff] }
 0x309   :  { %8907 = vmatprep.subr.bf16.mxu1 %v13390_v5  ;;  %v2932_v3 = vld [vmem:[#allocation10 + $0x17e0] sm:$0xff]  ;;  %v2929_v5 = vld [vmem:[#allocation10 + $0x17c8] sm:$0xff]  ;;  %v2133_v27 = vmul.f32 %v15230_v13, %v2057_v16  ;;  %vm2116_vm12 = vcmp.gt.f32.partialorder %v2057_v16, 0.0 }
 0x30a   :  { %v13428_v54 = vcombine.high %v2928_v1, %v2932_v3  ;;  %v13427_v28 = vcombine.low %v2928_v1, %v2932_v3  ;;  %v13429_v10 = vcombine.low %v2929_v5, %v2933_v11  ;;  %v2961_v1 = vld [vmem:[#allocation10 + $0x18c8] sm:$0xff] }
 0x30b   :  { %8580 = vmatpush1.bf16.msra.mxu0 %v13387_v22  ;;  %v2130_v22 = vmul.f32 %v15230_v13, %v2014_v55  ;;  %v2149_v33 = vsel %vm2116_vm12, %v2057_v16, %v2133_v27  ;;  %v2965_v3 = vld [vmem:[#allocation10 + $0x18e8] sm:$0xff]  ;;  %v2976_v27 = vld [vmem:[#allocation10 + $0x1940] sm:$0xff] }
 0x30c   :  { %8908 = vmatpush1.bf16.msra.mxu1 %v13389_v24  ;;  %8581 = vmatprep.subr.bf16.mxu0 %v13396_v25  ;;  %v13430_v24 = vcombine.high %v2929_v5, %v2933_v11  ;;  %v2936_v25 = vld [vmem:[#allocation10 + $0x1800] sm:$0xff]  ;;  %v15380_v42 = vpack.c.bf16 %v2149_v33, %v2149_v33  ;;  %v13453_v11 = vcombine.low %v2953_v12, %v2957_v45 }
 0x30d   :  { %8909 = vmatprep.subr.bf16.mxu1 %v13398_v44  ;;  %v2937_v44 = vld [vmem:[#allocation10 + $0x1808] sm:$0xff]  ;;  %v13436_v29 = vcombine.high %v2936_v25, %v2940_v46  ;;  %v13435_v48 = vcombine.low %v2936_v25, %v2940_v46  ;;  %v13461_v46 = vcombine.low %v2961_v1, %v2965_v3  ;;  %v2984_v33 = vld [vmem:[#allocation10 + $0x1980] sm:$0xff] }
 0x30f   :  { %8582 = vmatpush1.bf16.msra.mxu0 %v13395_v30  ;;  %v2146_v30 = vsel %vm2113_vm11, %v2014_v55, %v2130_v22  ;;  %v2960_v55 = vld [vmem:[#allocation10 + $0x18c0] sm:$0xff]  ;;  %v2969_v22 = vld [vmem:[#allocation10 + $0x1908] sm:$0xff] }
 0x310   :  { %8910 = vmatpush1.bf16.msra.mxu1 %v13397_v31  ;;  %8583 = vmatprep.subr.bf16.mxu0 %v13404_v32  ;;  %v13438_v31 = vcombine.high %v2937_v44, %v2941_v26  ;;  %v2944_v32 = vld [vmem:[#allocation10 + $0x1840] sm:$0xff] }
 0x311   :  { %8911 = vmatprep.subr.bf16.mxu1 %v13406_v17  ;;  %v2948_v17 = vld [vmem:[#allocation10 + $0x1860] sm:$0xff] }
 0x312   :  { %v13443_v21 = vcombine.low %v2944_v32, %v2948_v17 }
 0x313   :  { %8584 = vmatpush1.bf16.msra.mxu0 %v13403_v51  ;;  %v15378_v51 = vpack.c.bf16 %v2146_v30, %v2146_v30 }
 0x314   :  { %8912 = vmatpush1.bf16.msra.mxu1 %v13405_v39  ;;  %8585 = vmatprep.subr.bf16.mxu0 %v13412_v58  ;;  %v13437_v39 = vcombine.low %v2937_v44, %v2941_v26  ;;  %v13444_v58 = vcombine.high %v2944_v32, %v2948_v17 }
 0x315   :  { %8913 = vmatprep.subr.bf16.mxu1 %v13414_v40  ;;  %v2956_v40 = vld [vmem:[#allocation10 + $0x18a0] sm:$0xff] }
 0x316   :  { %v13451_v5 = vcombine.low %v2952_v41, %v2956_v40 }
 0x317   :  { %8586 = vmatpush1.bf16.msra.mxu0 %v13411_v47  ;;  %v13445_v47 = vcombine.low %v2945_v37, %v2949_v50  ;;  %v2985_v37 = vld [vmem:[#allocation10 + $0x1988] sm:$0xff] }
 0x318   :  { %8914 = vmatpush1.bf16.msra.mxu1 %v13413_v7  ;;  %8587 = vmatprep.subr.bf16.mxu0 %v13420_v49  ;;  %v13452_v7 = vcombine.high %v2952_v41, %v2956_v40  ;;  %v13454_v49 = vcombine.high %v2953_v12, %v2957_v45  ;;  %v2989_v50 = vld [vmem:[#allocation10 + $0x19a8] sm:$0xff]  ;;  %v2996_v12 = vld [vmem:[#allocation10 + $0x19e0] sm:$0xff] }
 0x319   :  { %8915 = vmatprep.subr.bf16.mxu1 %v13422_v56  ;;  %v2964_v56 = vld [vmem:[#allocation10 + $0x18e0] sm:$0xff]  ;;  %v13486_v40 = vcombine.high %v2985_v37, %v2989_v50  ;;  %v2993_v45 = vld [vmem:[#allocation10 + $0x19c8] sm:$0xff] }
 0x31a   :  { %v13460_v16 = vcombine.high %v2960_v55, %v2964_v56  ;;  %v13459_v25 = vcombine.low %v2960_v55, %v2964_v56  ;;  %v3000_v56 = vld [vmem:[#allocation10 + $0x1a00] sm:$0xff] }
 0x31b   :  { %8588 = vmatpush1.bf16.msra.mxu0 %v13419_v19  ;;  %v13462_v19 = vcombine.high %v2961_v1, %v2965_v3  ;;  %v3004_v1 = vld [vmem:[#allocation10 + $0x1a20] sm:$0xff]  ;;  %v3001_v3 = vld [vmem:[#allocation10 + $0x1a08] sm:$0xff] }
 0x31c   :  { %8916 = vmatpush1.bf16.msra.mxu1 %v13421_v34  ;;  %8589 = vmatprep.subr.bf16.mxu0 %v13428_v54  ;;  %v2968_v34 = vld [vmem:[#allocation10 + $0x1900] sm:$0xff] }
 0x31d   :  { %8917 = vmatprep.subr.bf16.mxu1 %v13430_v24  ;;  %v2972_v54 = vld [vmem:[#allocation10 + $0x1920] sm:$0xff]  ;;  %v2973_v24 = vld [vmem:[#allocation10 + $0x1928] sm:$0xff] }
 0x31e   :  { %v13468_v44 = vcombine.high %v2968_v34, %v2972_v54  ;;  %v13470_v26 = vcombine.high %v2969_v22, %v2973_v24  ;;  %v13467_v30 = vcombine.low %v2968_v34, %v2972_v54  ;;  %v3008_v54 = vld [vmem:[#allocation10 + $0x1a40] sm:$0xff] }
 0x31f   :  { %8590 = vmatpush1.bf16.msra.mxu0 %v13427_v28  ;;  %v2980_v28 = vld [vmem:[#allocation10 + $0x1960] sm:$0xff] }
 0x320   :  { %8918 = vmatpush1.bf16.msra.mxu1 %v13429_v10  ;;  %8600 = vmatprep.subr.bf16.mxu0 %v13436_v29  ;;  %v2977_v10 = vld [vmem:[#allocation10 + $0x1948] sm:$0xff]  ;;  %v13476_v32 = vcombine.high %v2976_v27, %v2980_v28 }
 0x321   :  { %8928 = vmatprep.subr.bf16.mxu1 %v13438_v31  ;;  %v2981_v29 = vld [vmem:[#allocation10 + $0x1968] sm:$0xff]  ;;  %v13469_v31 = vcombine.low %v2969_v22, %v2973_v24  ;;  %v3012_v22 = vld [vmem:[#allocation10 + $0x1a60] sm:$0xff] }
 0x322   :  { %8592 = vmatmul.mubr.bf16.vlgmr.msra.gmra.mrb[16].mxu0 %v15378_v51  ;;  %v13478_v17 = vcombine.high %v2977_v10, %v2981_v29  ;;  %v3009_v24 = vld [vmem:[#allocation10 + $0x1a48] sm:$0xff] }
 0x323   :  { %8920 = vmatmul.mubr.bf16.vlgmr.msra.gmra.mrb[16].mxu1 %v15378_v51  ;;  %8601 = vmatpush1.bf16.msra.mxu0 %v13435_v48  ;;  %v2988_v48 = vld [vmem:[#allocation10 + $0x19a0] sm:$0xff] }
 0x324   :  { %8632 = vmatprep.mubr.bf16.mxu0 %v15380_v42  ;;  %8929 = vmatpush1.bf16.msra.mxu1 %v13437_v39  ;;  %v13475_v39 = vcombine.low %v2976_v27, %v2980_v28  ;;  %v13484_v41 = vcombine.high %v2984_v33, %v2988_v48  ;;  %v3016_v28 = vld [vmem:[#allocation10 + $0x1a80] sm:$0xff] }
 0x325   :  { %8960 = vmatprep.mubr.bf16.mxu1 %v15380_v42  ;;  %8602 = vmatprep.subr.bf16.mxu0 %v13444_v58  ;;  %v13477_v58 = vcombine.low %v2977_v10, %v2981_v29  ;;  %v3020_v10 = vld [vmem:[#allocation10 + $0x1aa0] sm:$0xff]  ;;  %v3017_v29 = vld [vmem:[#allocation10 + $0x1a88] sm:$0xff] }
 0x326   :  { %8930 = vmatprep.subr.bf16.mxu1 %v13446_v43  ;;  %v2992_v43 = vld [vmem:[#allocation10 + $0x19c0] sm:$0xff] }
 0x327   :  { %8603 = vmatpush1.bf16.msra.mxu0 %v13443_v21  ;;  %v2997_v21 = vld [vmem:[#allocation10 + $0x19e8] sm:$0xff] }
 0x328   :  { %8931 = vmatpush1.bf16.msra.mxu1 %v13445_v47  ;;  %8604 = vmatprep.subr.bf16.mxu0 %v13452_v7  ;;  %v13483_v47 = vcombine.low %v2984_v33, %v2988_v48  ;;  %v13485_v7 = vcombine.low %v2985_v37, %v2989_v50  ;;  %v13494_v55 = vcombine.high %v2993_v45, %v2997_v21  ;;  %v3024_v48 = vld [vmem:[#allocation10 + $0x1ac0] sm:$0xff]  ;;  %v3025_v50 = vld [vmem:[#allocation10 + $0x1ac8] sm:$0xff] }
 0x329   :  { %8932 = vmatprep.subr.bf16.mxu1 %v13454_v49  ;;  %v13492_v49 = vcombine.high %v2992_v43, %v2996_v12  ;;  %v3028_v37 = vld [vmem:[#allocation10 + $0x1ae0] sm:$0xff] }
 0x32b   :  { %8605 = vmatpush1.bf16.msra.mxu0 %v13451_v5  ;;  %v3005_v5 = vld [vmem:[#allocation10 + $0x1a28] sm:$0xff] }
 0x32c   :  { %8933 = vmatpush1.bf16.msra.mxu1 %v13453_v11  ;;  %8606 = vmatprep.subr.bf16.mxu0 %v13460_v16  ;;  %v13491_v11 = vcombine.low %v2992_v43, %v2996_v12  ;;  %v13493_v16 = vcombine.low %v2993_v45, %v2997_v21  ;;  %v13502_v34 = vcombine.high %v3001_v3, %v3005_v5  ;;  %v3032_v12 = vld [vmem:[#allocation10 + $0x1b00] sm:$0xff]  ;;  %v3033_v21 = vld [vmem:[#allocation10 + $0x1b08] sm:$0xff] }
 0x32d   :  { %8934 = vmatprep.subr.bf16.mxu1 %v13462_v19  ;;  %v13500_v19 = vcombine.high %v3000_v56, %v3004_v1  ;;  %v3036_v45 = vld [vmem:[#allocation10 + $0x1b20] sm:$0xff] }
 0x32f   :  { %8607 = vmatpush1.bf16.msra.mxu0 %v13459_v25  ;;  %v3013_v25 = vld [vmem:[#allocation10 + $0x1a68] sm:$0xff] }
 0x330   :  { %8935 = vmatpush1.bf16.msra.mxu1 %v13461_v46  ;;  %8608 = vmatprep.subr.bf16.mxu0 %v13468_v44  ;;  %v13499_v46 = vcombine.low %v3000_v56, %v3004_v1  ;;  %v13501_v44 = vcombine.low %v3001_v3, %v3005_v5  ;;  %v13510_v27 = vcombine.high %v3009_v24, %v3013_v25  ;;  %v3040_v1 = vld [vmem:[#allocation10 + $0x1b40] sm:$0xff]  ;;  %v3041_v5 = vld [vmem:[#allocation10 + $0x1b48] sm:$0xff] }
 0x331   :  { %8936 = vmatprep.subr.bf16.mxu1 %v13470_v26  ;;  %v13508_v26 = vcombine.high %v3008_v54, %v3012_v22  ;;  %v3044_v3 = vld [vmem:[#allocation10 + $0x1b60] sm:$0xff] }
 0x333   :  { %8609 = vmatpush1.bf16.msra.mxu0 %v13467_v30  ;;  %v3021_v30 = vld [vmem:[#allocation10 + $0x1aa8] sm:$0xff] }
 0x334   :  { %8937 = vmatpush1.bf16.msra.mxu1 %v13469_v31  ;;  %8610 = vmatprep.subr.bf16.mxu0 %v13476_v32  ;;  %v13507_v31 = vcombine.low %v3008_v54, %v3012_v22  ;;  %v13509_v32 = vcombine.low %v3009_v24, %v3013_v25  ;;  %v13518_v33 = vcombine.high %v3017_v29, %v3021_v30  ;;  %v15386_v54 = vld [vmem:[#allocation7 + $0x8] sm:$0xff]  ;;  %v3048_v25 = vld [vmem:[#allocation10 + $0x1b80] sm:$0xff] }
 0x335   :  { %8938 = vmatprep.subr.bf16.mxu1 %v13478_v17  ;;  %v13516_v17 = vcombine.high %v3016_v28, %v3020_v10  ;;  %v465_v22 = vrot.slane %v15386_v54, %v15302_v53 }
 0x337   :  { %8611 = vmatpush1.bf16.msra.mxu0 %v13475_v39  ;;  %v3029_v39 = vld [vmem:[#allocation10 + $0x1ae8] sm:$0xff] }
 0x338   :  { %8939 = vmatpush1.bf16.msra.mxu1 %v13477_v58  ;;  %8612 = vmatprep.subr.bf16.mxu0 %v13484_v41  ;;  %v13515_v58 = vcombine.low %v3016_v28, %v3020_v10  ;;  %v13517_v41 = vcombine.low %v3017_v29, %v3021_v30  ;;  %v13526_v43 = vcombine.high %v3025_v50, %v3029_v39 }
 0x339   :  { %8940 = vmatprep.subr.bf16.mxu1 %v13486_v40  ;;  %v13524_v40 = vcombine.high %v3024_v48, %v3028_v37  ;;  %v13539_v28 = vcombine.low %v3040_v1, %v3044_v3  ;;  %v2055_v30 = vadd.f32 %v15325_v0, %v465_v22  ;;  %v3068_v0 = vld [vmem:[#allocation10 + $0x1c20] sm:$0xff] }
 0x33b   :  { %8613 = vmatpush1.bf16.msra.mxu0 %v13483_v47  ;;  %v3037_v47 = vld [vmem:[#allocation10 + $0x1b28] sm:$0xff]  ;;  %vm2115_vm13 = vcmp.gt.f32.partialorder %v2055_v30, 0.0 }
 0x33c   :  { %8941 = vmatpush1.bf16.msra.mxu1 %v13485_v7  ;;  %8614 = vmatprep.subr.bf16.mxu0 %v13492_v49  ;;  %v13523_v7 = vcombine.low %v3024_v48, %v3028_v37  ;;  %v13525_v49 = vcombine.low %v3025_v50, %v3029_v39  ;;  %v13534_v56 = vcombine.high %v3033_v21, %v3037_v47  ;;  %v3061_v48 = vld [vmem:[#allocation10 + $0x1be8] sm:$0xff] }
 0x33d   :  { %8942 = vmatprep.subr.bf16.mxu1 %v13494_v55  ;;  %v13532_v55 = vcombine.high %v3032_v12, %v3036_v45 }
 0x33f   :  { %8615 = vmatpush1.bf16.msra.mxu0 %v13491_v11  ;;  %v3045_v11 = vld [vmem:[#allocation10 + $0x1b68] sm:$0xff] }
 0x340   :  { %8943 = vmatpush1.bf16.msra.mxu1 %v13493_v16  ;;  %8616 = vmatprep.subr.bf16.mxu0 %v13500_v19  ;;  %v13531_v16 = vcombine.low %v3032_v12, %v3036_v45  ;;  %v13533_v19 = vcombine.low %v3033_v21, %v3037_v47  ;;  %v13542_v24 = vcombine.high %v3041_v5, %v3045_v11  ;;  %v3065_v12 = vld [vmem:[#allocation10 + $0x1c08] sm:$0xff] }
 0x341   :  { %8944 = vmatprep.subr.bf16.mxu1 %v13502_v34  ;;  %v13540_v34 = vcombine.high %v3040_v1, %v3044_v3  ;;  %v13541_v10 = vcombine.low %v3041_v5, %v3045_v11  ;;  %v3069_v45 = vld [vmem:[#allocation10 + $0x1c28] sm:$0xff]  ;;  %v3076_v1 = vld [vmem:[#allocation10 + $0x1c60] sm:$0xff] }
 0x342   :  { %v3073_v11 = vld [vmem:[#allocation10 + $0x1c48] sm:$0xff] }
 0x343   :  { %8617 = vmatpush1.bf16.msra.mxu0 %v13499_v46  ;;  %v3052_v46 = vld [vmem:[#allocation10 + $0x1ba0] sm:$0xff] }
 0x344   :  { %8945 = vmatpush1.bf16.msra.mxu1 %v13501_v44  ;;  %8618 = vmatprep.subr.bf16.mxu0 %v13508_v26  ;;  %v3049_v44 = vld [vmem:[#allocation10 + $0x1b88] sm:$0xff]  ;;  %v13548_v29 = vcombine.high %v3048_v25, %v3052_v46  ;;  %v13547_v50 = vcombine.low %v3048_v25, %v3052_v46  ;;  %v3084_v25 = vld [vmem:[#allocation10 + $0x1ca0] sm:$0xff] }
 0x345   :  { %8946 = vmatprep.subr.bf16.mxu1 %v13510_v27  ;;  %v3053_v26 = vld [vmem:[#allocation10 + $0x1ba8] sm:$0xff]  ;;  %v477_v27 = vrot.slane %v15386_v54, %v15305_v2 }
 0x346   :  { %v13549_v39 = vcombine.low %v3049_v44, %v3053_v26 }
 0x347   :  { %8619 = vmatpush1.bf16.msra.mxu0 %v13507_v31  ;;  %v13550_v31 = vcombine.high %v3049_v44, %v3053_v26  ;;  %v2098_v37 = vadd.f32 %v15331_v20, %v477_v27  ;;  %v3081_v26 = vld [vmem:[#allocation10 + $0x1c88] sm:$0xff] }
 0x348   :  { %8947 = vmatpush1.bf16.msra.mxu1 %v13509_v32  ;;  %8620 = vmatprep.subr.bf16.mxu0 %v13516_v17  ;;  %v3056_v32 = vld [vmem:[#allocation10 + $0x1bc0] sm:$0xff]  ;;  %v3085_v27 = vld [vmem:[#allocation10 + $0x1ca8] sm:$0xff] }
 0x349   :  { %8948 = vmatprep.subr.bf16.mxu1 %v13518_v33  ;;  %v3060_v17 = vld [vmem:[#allocation10 + $0x1be0] sm:$0xff]  ;;  %v3057_v33 = vld [vmem:[#allocation10 + $0x1bc8] sm:$0xff]  ;;  %v2135_v21 = vmul.f32 %v15230_v13, %v2098_v37  ;;  %vm2118_vm14 = vcmp.gt.f32.partialorder %v2098_v37, 0.0 }
 0x34a   :  { %v13555_v47 = vcombine.low %v3056_v32, %v3060_v17  ;;  %v13557_v20 = vcombine.low %v3057_v33, %v3061_v48 }
 0x34b   :  { %8621 = vmatpush1.bf16.msra.mxu0 %v13515_v58  ;;  %v13556_v58 = vcombine.high %v3056_v32, %v3060_v17  ;;  %v2151_v3 = vsel %vm2118_vm14, %v2098_v37, %v2135_v21  ;;  %v3092_v32 = vld [vmem:[#allocation10 + $0x1ce0] sm:$0xff]  ;;  %v3089_v17 = vld [vmem:[#allocation10 + $0x1cc8] sm:$0xff]  ;;  %v13581_v37 = vcombine.low %v3081_v26, %v3085_v27  ;;  %vm15020_vm14 = vmmov 0  }
 0x34c   :  { %8949 = vmatpush1.bf16.msra.mxu1 %v13517_v41  ;;  %8622 = vmatprep.subr.bf16.mxu0 %v13524_v40  ;;  %v2132_v41 = vmul.f32 %v15230_v13, %v2055_v30  ;;  %v13558_v40 = vcombine.high %v3057_v33, %v3061_v48  ;;  %v15398_v46 = vpack.c.bf16 %v2151_v3, %v2151_v3  ;;  %v3093_v33 = vld [vmem:[#allocation10 + $0x1ce8] sm:$0xff] }
 0x34d   :  { %8950 = vmatprep.subr.bf16.mxu1 %v13526_v43  ;;  %v3064_v43 = vld [vmem:[#allocation10 + $0x1c00] sm:$0xff] }
 0x34e   :  { %v13563_v5 = vcombine.low %v3064_v43, %v3068_v0 }
 0x34f   :  { %8623 = vmatpush1.bf16.msra.mxu0 %v13523_v7  ;;  %v13564_v7 = vcombine.high %v3064_v43, %v3068_v0  ;;  %v3101_v43 = vld [vmem:[#allocation10 + $0x1d28] sm:$0xff] }
 0x350   :  { %8951 = vmatpush1.bf16.msra.mxu1 %v13525_v49  ;;  %8624 = vmatprep.subr.bf16.mxu0 %v13532_v55  ;;  %v2148_v49 = vsel %vm2115_vm13, %v2055_v30, %v2132_v41  ;;  %v13566_v55 = vcombine.high %v3065_v12, %v3069_v45  ;;  %v13582_v30 = vcombine.high %v3081_v26, %v3085_v27  ;;  %v3100_v41 = vld [vmem:[#allocation10 + $0x1d20] sm:$0xff] }
 0x351   :  { %8952 = vmatprep.subr.bf16.mxu1 %v13534_v56  ;;  %v3072_v56 = vld [vmem:[#allocation10 + $0x1c40] sm:$0xff] }
 0x352   :  { %v13572_v22 = vcombine.high %v3072_v56, %v3076_v1  ;;  %v3120_v26 = vld [vmem:[#allocation10 + $0x1dc0] sm:$0xff] }
 0x353   :  { %8625 = vmatpush1.bf16.msra.mxu0 %v13531_v16  ;;  %v3077_v16 = vld [vmem:[#allocation10 + $0x1c68] sm:$0xff]  ;;  %v3124_v27 = vld [vmem:[#allocation10 + $0x1de0] sm:$0xff] }
 0x354   :  { %8953 = vmatpush1.bf16.msra.mxu1 %v13533_v19  ;;  %8626 = vmatprep.subr.bf16.mxu0 %v13540_v34  ;;  %v15396_v19 = vpack.c.bf16 %v2148_v49, %v2148_v49  ;;  %v13565_v34 = vcombine.low %v3065_v12, %v3069_v45  ;;  %v13574_v44 = vcombine.high %v3073_v11, %v3077_v16  ;;  %v3109_v49 = vld [vmem:[#allocation10 + $0x1d68] sm:$0xff] }
 0x355   :  { %8954 = vmatprep.subr.bf16.mxu1 %v13542_v24  ;;  %v3080_v24 = vld [vmem:[#allocation10 + $0x1c80] sm:$0xff]  ;;  %v13589_v12 = vcombine.low %v3089_v17, %v3093_v33 }
 0x356   :  { %v13579_v48 = vcombine.low %v3080_v24, %v3084_v25 }
 0x357   :  { %8627 = vmatpush1.bf16.msra.mxu0 %v13539_v28  ;;  %v13571_v28 = vcombine.low %v3072_v56, %v3076_v1 }
 0x358   :  { %8955 = vmatpush1.bf16.msra.mxu1 %v13541_v10  ;;  %8628 = vmatprep.subr.bf16.mxu0 %v13548_v29  ;;  %v13573_v10 = vcombine.low %v3073_v11, %v3077_v16  ;;  %v13580_v29 = vcombine.high %v3080_v24, %v3084_v25  ;;  %v3116_v11 = vld [vmem:[#allocation10 + $0x1da0] sm:$0xff]  ;;  %v3113_v16 = vld [vmem:[#allocation10 + $0x1d88] sm:$0xff] }
 0x359   :  { %8956 = vmatprep.subr.bf16.mxu1 %v13550_v31  ;;  %v3088_v31 = vld [vmem:[#allocation10 + $0x1cc0] sm:$0xff] }
 0x35a   :  { %v13587_v0 = vcombine.low %v3088_v31, %v3092_v32 }
 0x35b   :  { %8629 = vmatpush1.bf16.msra.mxu0 %v13547_v50  ;;  %v13588_v50 = vcombine.high %v3088_v31, %v3092_v32  ;;  %v13620_v31 = vcombine.high %v3120_v26, %v3124_v27 }
 0x35c   :  { %8957 = vmatpush1.bf16.msra.mxu1 %v13549_v39  ;;  %8630 = vmatprep.subr.bf16.mxu0 %v13556_v58  ;;  %v13590_v39 = vcombine.high %v3089_v17, %v3093_v33  ;;  %v3096_v58 = vld [vmem:[#allocation10 + $0x1d00] sm:$0xff] }
 0x35d   :  { %8958 = vmatprep.subr.bf16.mxu1 %v13558_v40  ;;  %v3097_v40 = vld [vmem:[#allocation10 + $0x1d08] sm:$0xff]  ;;  %v13596_v45 = vcombine.high %v3096_v58, %v3100_v41  ;;  %v3128_v17 = vld [vmem:[#allocation10 + $0x1e00] sm:$0xff] }
 0x35e   :  { %v13598_v21 = vcombine.high %v3097_v40, %v3101_v43  ;;  %v13597_v56 = vcombine.low %v3097_v40, %v3101_v43  ;;  %v3132_v33 = vld [vmem:[#allocation10 + $0x1e20] sm:$0xff] }
 0x35f   :  { %8631 = vmatpush1.bf16.msra.mxu0 %v13555_v47  ;;  %v3104_v47 = vld [vmem:[#allocation10 + $0x1d40] sm:$0xff] }
 0x360   :  { %8959 = vmatpush1.bf16.msra.mxu1 %v13557_v20  ;;  %8641 = vmatprep.subr.bf16.mxu0 %v13564_v7  ;;  %v3108_v20 = vld [vmem:[#allocation10 + $0x1d60] sm:$0xff]  ;;  %v3105_v7 = vld [vmem:[#allocation10 + $0x1d48] sm:$0xff] }
 0x361   :  { %8969 = vmatprep.subr.bf16.mxu1 %v13566_v55  ;;  %v13595_v55 = vcombine.low %v3096_v58, %v3100_v41  ;;  %v13604_v1 = vcombine.high %v3104_v47, %v3108_v20  ;;  %v13606_v3 = vcombine.high %v3105_v7, %v3109_v49  ;;  %v13605_v24 = vcombine.low %v3105_v7, %v3109_v49  ;;  %v3136_v40 = vld [vmem:[#allocation10 + $0x1e40] sm:$0xff] }
 0x362   :  { %8633 = vmatmul.mubr.bf16.vlgmr.msra.gmra.mrb[16].mxu0 %v15396_v19  ;;  %v13628_v58 = vcombine.high %v3128_v17, %v3132_v33  ;;  %v3140_v43 = vld [vmem:[#allocation10 + $0x1e60] sm:$0xff] }
 0x363   :  { %8961 = vmatmul.mubr.bf16.vlgmr.msra.gmra.mrb[16].mxu1 %v15396_v19  ;;  %8642 = vmatpush1.bf16.msra.mxu0 %v13563_v5  ;;  %v3112_v5 = vld [vmem:[#allocation10 + $0x1d80] sm:$0xff] }
 0x364   :  { %8673 = vmatprep.mubr.bf16.mxu0 %v15398_v46  ;;  %8970 = vmatpush1.bf16.msra.mxu1 %v13565_v34  ;;  %v3117_v34 = vld [vmem:[#allocation10 + $0x1da8] sm:$0xff]  ;;  %v13612_v25 = vcombine.high %v3112_v5, %v3116_v11  ;;  %v3144_v7 = vld [vmem:[#allocation10 + $0x1e80] sm:$0xff] }
 0x365   :  { %9001 = vmatprep.mubr.bf16.mxu1 %v15398_v46  ;;  %8643 = vmatprep.subr.bf16.mxu0 %v13572_v22  ;;  %v13603_v22 = vcombine.low %v3104_v47, %v3108_v20  ;;  %v13636_v47 = vcombine.high %v3136_v40, %v3140_v43  ;;  %v3148_v49 = vld [vmem:[#allocation10 + $0x1ea0] sm:$0xff] }
 0x366   :  { %8971 = vmatprep.subr.bf16.mxu1 %v13574_v44  ;;  %v13614_v44 = vcombine.high %v3113_v16, %v3117_v34 }
 0x367   :  { %8644 = vmatpush1.bf16.msra.mxu0 %v13571_v28  ;;  %v3121_v28 = vld [vmem:[#allocation10 + $0x1dc8] sm:$0xff] }
 0x368   :  { %8972 = vmatpush1.bf16.msra.mxu1 %v13573_v10  ;;  %8645 = vmatprep.subr.bf16.mxu0 %v13580_v29  ;;  %v3125_v10 = vld [vmem:[#allocation10 + $0x1de8] sm:$0xff]  ;;  %v13611_v29 = vcombine.low %v3112_v5, %v3116_v11  ;;  %v13644_v5 = vcombine.high %v3144_v7, %v3148_v49 }
 0x369   :  { %8973 = vmatprep.subr.bf16.mxu1 %v13582_v30  ;;  %v13613_v30 = vcombine.low %v3113_v16, %v3117_v34  ;;  %v13622_v32 = vcombine.high %v3121_v28, %v3125_v10  ;;  %v3152_v16 = vld [vmem:[#allocation10 + $0x1ec0] sm:$0xff] }
 0x36a   :  { %v3156_v34 = vld [vmem:[#allocation10 + $0x1ee0] sm:$0xff] }
 0x36b   :  { %8646 = vmatpush1.bf16.msra.mxu0 %v13579_v48  ;;  %v3129_v48 = vld [vmem:[#allocation10 + $0x1e08] sm:$0xff] }
 0x36c   :  { %8974 = vmatpush1.bf16.msra.mxu1 %v13581_v37  ;;  %8647 = vmatprep.subr.bf16.mxu0 %v13588_v50  ;;  %v3133_v37 = vld [vmem:[#allocation10 + $0x1e28] sm:$0xff]  ;;  %v13619_v50 = vcombine.low %v3120_v26, %v3124_v27  ;;  %v13652_v26 = vcombine.high %v3152_v16, %v3156_v34 }
 0x36d   :  { %8975 = vmatprep.subr.bf16.mxu1 %v13590_v39  ;;  %v13621_v39 = vcombine.low %v3121_v28, %v3125_v10  ;;  %v13630_v41 = vcombine.high %v3129_v48, %v3133_v37  ;;  %v3160_v28 = vld [vmem:[#allocation10 + $0x1f00] sm:$0xff] }
 0x36e   :  { %v3164_v10 = vld [vmem:[#allocation10 + $0x1f20] sm:$0xff] }
 0x36f   :  { %8648 = vmatpush1.bf16.msra.mxu0 %v13587_v0  ;;  %v3137_v0 = vld [vmem:[#allocation10 + $0x1e48] sm:$0xff] }
 0x370   :  { %8976 = vmatpush1.bf16.msra.mxu1 %v13589_v12  ;;  %8649 = vmatprep.subr.bf16.mxu0 %v13596_v45  ;;  %v3141_v12 = vld [vmem:[#allocation10 + $0x1e68] sm:$0xff]  ;;  %v13627_v45 = vcombine.low %v3128_v17, %v3132_v33  ;;  %v13660_v17 = vcombine.high %v3160_v28, %v3164_v10 }
 0x371   :  { %8977 = vmatprep.subr.bf16.mxu1 %v13598_v21  ;;  %v13629_v21 = vcombine.low %v3129_v48, %v3133_v37  ;;  %v13638_v20 = vcombine.high %v3137_v0, %v3141_v12  ;;  %v3168_v48 = vld [vmem:[#allocation10 + $0x1f40] sm:$0xff] }
 0x372   :  { %v3172_v37 = vld [vmem:[#allocation10 + $0x1f60] sm:$0xff] }
 0x373   :  { %8650 = vmatpush1.bf16.msra.mxu0 %v13595_v55  ;;  %v3145_v55 = vld [vmem:[#allocation10 + $0x1e88] sm:$0xff] }
 0x374   :  { %8978 = vmatpush1.bf16.msra.mxu1 %v13597_v56  ;;  %8651 = vmatprep.subr.bf16.mxu0 %v13604_v1  ;;  %v3149_v56 = vld [vmem:[#allocation10 + $0x1ea8] sm:$0xff]  ;;  %v13635_v1 = vcombine.low %v3136_v40, %v3140_v43  ;;  %v13668_v40 = vcombine.high %v3168_v48, %v3172_v37  ;;  %v473_v43 = vrot.slane %v15386_v54, %v15334_v61 }
 0x375   :  { %8979 = vmatprep.subr.bf16.mxu1 %v13606_v3  ;;  %v13637_v3 = vcombine.low %v3137_v0, %v3141_v12  ;;  %v13646_v11 = vcombine.high %v3145_v55, %v3149_v56  ;;  %v3176_v12 = vld [vmem:[#allocation10 + $0x1f80] sm:$0xff]  ;;  %v3189_v54 = vld [vmem:[#allocation10 + $0x1fe8] sm:$0xff] }
 0x377   :  { %8652 = vmatpush1.bf16.msra.mxu0 %v13603_v22  ;;  %v3153_v22 = vld [vmem:[#allocation10 + $0x1ec8] sm:$0xff] }
 0x378   :  { %8980 = vmatpush1.bf16.msra.mxu1 %v13605_v24  ;;  %8653 = vmatprep.subr.bf16.mxu0 %v13612_v25  ;;  %v3157_v24 = vld [vmem:[#allocation10 + $0x1ee8] sm:$0xff]  ;;  %v13643_v25 = vcombine.low %v3144_v7, %v3148_v49 }
 0x379   :  { %8981 = vmatprep.subr.bf16.mxu1 %v13614_v44  ;;  %v13645_v44 = vcombine.low %v3145_v55, %v3149_v56  ;;  %v13654_v27 = vcombine.high %v3153_v22, %v3157_v24  ;;  %v2096_v55 = vadd.f32 %v15329_v15, %v473_v43  ;;  %v2171_v15 = vld [vmem:[#allocation10 + $0x18] sm:$0xff] }
 0x37a   :  { %v2191_v43 = vld [vmem:[#allocation10 + $0xb8] sm:$0xff] }
 0x37b   :  { %8654 = vmatpush1.bf16.msra.mxu0 %v13611_v29  ;;  %v3161_v29 = vld [vmem:[#allocation10 + $0x1f08] sm:$0xff]  ;;  %vm2117_vm15 = vcmp.gt.f32.partialorder %v2096_v55, 0.0 }
 0x37c   :  { %8982 = vmatpush1.bf16.msra.mxu1 %v13613_v30  ;;  %8655 = vmatprep.subr.bf16.mxu0 %v13620_v31  ;;  %v3165_v30 = vld [vmem:[#allocation10 + $0x1f28] sm:$0xff]  ;;  %v13651_v31 = vcombine.low %v3152_v16, %v3156_v34 }
 0x37d   :  { %8983 = vmatprep.subr.bf16.mxu1 %v13622_v32  ;;  %v13653_v32 = vcombine.low %v3153_v22, %v3157_v24  ;;  %v13662_v33 = vcombine.high %v3161_v29, %v3165_v30  ;;  %v2134_v22 = vmul.f32 %v15230_v13, %v2096_v55 }
 0x37f   :  { %8656 = vmatpush1.bf16.msra.mxu0 %v13619_v50  ;;  %v3169_v50 = vld [vmem:[#allocation10 + $0x1f48] sm:$0xff] }
 0x380   :  { %8984 = vmatpush1.bf16.msra.mxu1 %v13621_v39  ;;  %8657 = vmatprep.subr.bf16.mxu0 %v13628_v58  ;;  %v3173_v39 = vld [vmem:[#allocation10 + $0x1f68] sm:$0xff]  ;;  %v13659_v58 = vcombine.low %v3160_v28, %v3164_v10 }
 0x381   :  { %8985 = vmatprep.subr.bf16.mxu1 %v13630_v41  ;;  %v13661_v41 = vcombine.low %v3161_v29, %v3165_v30  ;;  %v13670_v0 = vcombine.high %v3169_v50, %v3173_v39  ;;  %v13669_v7 = vcombine.low %v3169_v50, %v3173_v39  ;;  %v2150_v29 = vsel %vm2117_vm15, %v2096_v55, %v2134_v22  ;;  %v2186_v39 = vld [vmem:[#allocation10 + $0x90] sm:$0xff] }
 0x383   :  { %8658 = vmatpush1.bf16.msra.mxu0 %v13627_v45  ;;  %v3180_v45 = vld [vmem:[#allocation10 + $0x1fa0] sm:$0xff] }
 0x384   :  { %8986 = vmatpush1.bf16.msra.mxu1 %v13629_v21  ;;  %8659 = vmatprep.subr.bf16.mxu0 %v13636_v47  ;;  %v3177_v21 = vld [vmem:[#allocation10 + $0x1f88] sm:$0xff]  ;;  %v13676_v49 = vcombine.high %v3176_v12, %v3180_v45 }
 0x385   :  { %8987 = vmatprep.subr.bf16.mxu1 %v13638_v20  ;;  %v3181_v47 = vld [vmem:[#allocation10 + $0x1fa8] sm:$0xff]  ;;  %v13667_v20 = vcombine.low %v3168_v48, %v3172_v37  ;;  %v15408_v48 = vpack.c.bf16 %v2150_v29, %v2150_v29 }
 0x386   :  { %v13678_v56 = vcombine.high %v3177_v21, %v3181_v47  ;;  %v13677_v16 = vcombine.low %v3177_v21, %v3181_v47  ;;  %v2194_v47 = vld [vmem:[#allocation10 + $0xd0] sm:$0xff] }
 0x387   :  { %8660 = vmatpush1.bf16.msra.mxu0 %v13635_v1  ;;  %v3184_v1 = vld [vmem:[#allocation10 + $0x1fc0] sm:$0xff] }
 0x388   :  { %8988 = vmatpush1.bf16.msra.mxu1 %v13637_v3  ;;  %8661 = vmatprep.subr.bf16.mxu0 %v13644_v5  ;;  %v3188_v3 = vld [vmem:[#allocation10 + $0x1fe0] sm:$0xff]  ;;  %v3185_v5 = vld [vmem:[#allocation10 + $0x1fc8] sm:$0xff] }
 0x389   :  { %8989 = vmatprep.subr.bf16.mxu1 %v13646_v11  ;;  %v13675_v11 = vcombine.low %v3176_v12, %v3180_v45  ;;  %v13684_v34 = vcombine.high %v3184_v1, %v3188_v3  ;;  %v13686_v24 = vcombine.high %v3185_v5, %v3189_v54  ;;  %v13685_v28 = vcombine.low %v3185_v5, %v3189_v54  ;;  %v2202_v5 = vld [vmem:[#allocation10 + $0x110] sm:$0xff] }
 0x38a   :  { %v2206_v54 = vld [vmem:[#allocation10 + $0x130] sm:$0xff] }
 0x38b   :  { %8662 = vmatpush1.bf16.msra.mxu0 %v13643_v25  ;;  %v2170_v25 = vld [vmem:[#allocation10 + $0x10] sm:$0xff]  ;;  %v12704_v22 = vcombine.high %v2202_v5, %v2206_v54 }
 0x38c   :  { %8990 = vmatpush1.bf16.msra.mxu1 %v13645_v44  ;;  %8663 = vmatprep.subr.bf16.mxu0 %v13652_v26  ;;  %v2174_v44 = vld [vmem:[#allocation10 + $0x30] sm:$0xff]  ;;  %v2175_v26 = vld [vmem:[#allocation10 + $0x38] sm:$0xff] }
 0x38d   :  { %8991 = vmatprep.subr.bf16.mxu1 %v13654_v27  ;;  %v13683_v27 = vcombine.low %v3184_v1, %v3188_v3  ;;  %v12672_v10 = vcombine.high %v2170_v25, %v2174_v44  ;;  %v12674_v30 = vcombine.high %v2171_v15, %v2175_v26  ;;  %v12671_v13 = vcombine.low %v2170_v25, %v2174_v44  ;;  %v2210_v25 = vld [vmem:[#allocation10 + $0x150] sm:$0xff] }
 0x38e   :  { %v12673_v37 = vcombine.low %v2171_v15, %v2175_v26  ;;  %v2214_v44 = vld [vmem:[#allocation10 + $0x170] sm:$0xff]  ;;  %v2211_v15 = vld [vmem:[#allocation10 + $0x158] sm:$0xff] }
 0x38f   :  { %8664 = vmatpush1.bf16.msra.mxu0 %v13651_v31  ;;  %v2178_v31 = vld [vmem:[#allocation10 + $0x50] sm:$0xff]  ;;  %v2215_v26 = vld [vmem:[#allocation10 + $0x178] sm:$0xff] }
 0x390   :  { %8992 = vmatpush1.bf16.msra.mxu1 %v13653_v32  ;;  %8665 = vmatprep.subr.bf16.mxu0 %v13660_v17  ;;  %v2182_v32 = vld [vmem:[#allocation10 + $0x70] sm:$0xff]  ;;  %v2179_v17 = vld [vmem:[#allocation10 + $0x58] sm:$0xff]  ;;  %v12714_v29 = vcombine.high %v2211_v15, %v2215_v26 }
 0x391   :  { %8993 = vmatprep.subr.bf16.mxu1 %v13662_v33  ;;  %v2183_v33 = vld [vmem:[#allocation10 + $0x78] sm:$0xff]  ;;  %v12680_v50 = vcombine.high %v2178_v31, %v2182_v32 }
 0x392   :  { %v12681_v12 = vcombine.low %v2179_v17, %v2183_v33 }
 0x393   :  { %8666 = vmatpush1.bf16.msra.mxu0 %v13659_v58  ;;  %v2190_v58 = vld [vmem:[#allocation10 + $0xb0] sm:$0xff] }
 0x394   :  { %8994 = vmatpush1.bf16.msra.mxu1 %v13661_v41  ;;  %8667 = vmatprep.subr.bf16.mxu0 %v13668_v40  ;;  %v12682_v41 = vcombine.high %v2179_v17, %v2183_v33  ;;  %v2187_v40 = vld [vmem:[#allocation10 + $0x98] sm:$0xff]  ;;  %v12688_v45 = vcombine.high %v2186_v39, %v2190_v58  ;;  %v12687_v55 = vcombine.low %v2186_v39, %v2190_v58  ;;  %v2226_v39 = vld [vmem:[#allocation10 + $0x1d0] sm:$0xff] }
 0x395   :  { %8995 = vmatprep.subr.bf16.mxu1 %v13670_v0  ;;  %v12679_v0 = vcombine.low %v2178_v31, %v2182_v32  ;;  %v12690_v21 = vcombine.high %v2187_v40, %v2191_v43  ;;  %v2222_v31 = vld [vmem:[#allocation10 + $0x1b0] sm:$0xff]  ;;  %v2219_v32 = vld [vmem:[#allocation10 + $0x198] sm:$0xff]  ;;  %v12711_v17 = vcombine.low %v2210_v25, %v2214_v44  ;;  %v12713_v33 = vcombine.low %v2211_v15, %v2215_v26 }
 0x396   :  { %v2230_v58 = vld [vmem:[#allocation10 + $0x1f0] sm:$0xff]  ;;  %v2255_v15 = vld [vmem:[#allocation10 + $0x2b8] sm:$0xff] }
 0x397   :  { %8668 = vmatpush1.bf16.msra.mxu0 %v13667_v20  ;;  %v2198_v20 = vld [vmem:[#allocation10 + $0xf0] sm:$0xff] }
 0x398   :  { %8996 = vmatpush1.bf16.msra.mxu1 %v13669_v7  ;;  %8669 = vmatprep.subr.bf16.mxu0 %v13676_v49  ;;  %v2195_v7 = vld [vmem:[#allocation10 + $0xd8] sm:$0xff]  ;;  %v12696_v1 = vcombine.high %v2194_v47, %v2198_v20 }
 0x399   :  { %8997 = vmatprep.subr.bf16.mxu1 %v13678_v56  ;;  %v2199_v49 = vld [vmem:[#allocation10 + $0xf8] sm:$0xff]  ;;  %v12689_v56 = vcombine.low %v2187_v40, %v2191_v43 }
 0x39a   :  { %v12698_v3 = vcombine.high %v2195_v7, %v2199_v49  ;;  %v2231_v40 = vld [vmem:[#allocation10 + $0x1f8] sm:$0xff] }
 0x39b   :  { %8670 = vmatpush1.bf16.msra.mxu0 %v13675_v11  ;;  %v2203_v11 = vld [vmem:[#allocation10 + $0x118] sm:$0xff] }
 0x39c   :  { %8998 = vmatpush1.bf16.msra.mxu1 %v13677_v16  ;;  %8671 = vmatprep.subr.bf16.mxu0 %v13684_v34  ;;  %v2207_v16 = vld [vmem:[#allocation10 + $0x138] sm:$0xff]  ;;  %v12697_v34 = vcombine.low %v2195_v7, %v2199_v49  ;;  %v12727_v49 = vcombine.low %v2226_v39, %v2230_v58 }
 0x39d   :  { %8999 = vmatprep.subr.bf16.mxu1 %v13686_v24  ;;  %v12706_v24 = vcombine.high %v2203_v11, %v2207_v16  ;;  %v2239_v7 = vld [vmem:[#allocation10 + $0x238] sm:$0xff] }
 0x39f   :  { %8672 = vmatpush1.bf16.msra.mxu0 %v13683_v27  ;;  %v12703_v27 = vcombine.low %v2202_v5, %v2206_v54  ;;  %v2246_v5 = vld [vmem:[#allocation10 + $0x270] sm:$0xff]  ;;  %v2243_v54 = vld [vmem:[#allocation10 + $0x258] sm:$0xff] }
 0x3a0   :  { %9000 = vmatpush1.bf16.msra.mxu1 %v13685_v28  ;;  %9010 = vmatprep.subr.bf16.mxu0 %v12672_v10  ;;  %v12705_v28 = vcombine.low %v2203_v11, %v2207_v16  ;;  %v12712_v10 = vcombine.high %v2210_v25, %v2214_v44  ;;  %v2247_v11 = vld [vmem:[#allocation10 + $0x278] sm:$0xff]  ;;  %v2254_v25 = vld [vmem:[#allocation10 + $0x2b0] sm:$0xff] }
 0x3a1   :  { %9338 = vmatprep.subr.bf16.mxu1 %v12674_v30  ;;  %v2218_v30 = vld [vmem:[#allocation10 + $0x190] sm:$0xff]  ;;  %v2251_v44 = vld [vmem:[#allocation10 + $0x298] sm:$0xff] }
 0x3a2   :  { %8674 = vmatmul.mubr.bf16.vlgmr.msra.gmra.mrb[16].mxu0 %v15408_v48  ;;  %v12719_v43 = vcombine.low %v2218_v30, %v2222_v31 }
 0x3a3   :  { %9002 = vmatmul.mubr.bf16.vlgmr.msra.gmra.mrb[16].mxu1 %v15408_v48  ;;  %9011 = vmatpush1.bf16.msra.mxu0 %v12671_v13  ;;  %v2223_v13 = vld [vmem:[#allocation10 + $0x1b8] sm:$0xff] }
 0x3a4   :  { %9042 = vmatprep.mubr.bf16.mxu0 %v15237_v35  ;;  %9339 = vmatpush1.bf16.msra.mxu1 %v12673_v37  ;;  %v12720_v37 = vcombine.high %v2218_v30, %v2222_v31  ;;  %v2262_v30 = vld [vmem:[#allocation10 + $0x2f0] sm:$0xff]  ;;  %v2259_v31 = vld [vmem:[#allocation10 + $0x2d8] sm:$0xff] }
 0x3a5   :  { %9370 = vmatprep.mubr.bf16.mxu1 %v15237_v35  ;;  %9012 = vmatprep.subr.bf16.mxu0 %v12680_v50  ;;  %v12695_v35 = vcombine.low %v2194_v47, %v2198_v20  ;;  %v12722_v50 = vcombine.high %v2219_v32, %v2223_v13  ;;  %v2238_v47 = vld [vmem:[#allocation10 + $0x230] sm:$0xff]  ;;  %v2235_v20 = vld [vmem:[#allocation10 + $0x218] sm:$0xff] }
 0x3a6   :  { %9340 = vmatprep.subr.bf16.mxu1 %v12682_v41  ;;  %v2227_v41 = vld [vmem:[#allocation10 + $0x1d8] sm:$0xff] }
 0x3a7   :  { %9013 = vmatpush1.bf16.msra.mxu0 %v12679_v0  ;;  %v12721_v0 = vcombine.low %v2219_v32, %v2223_v13  ;;  %v2263_v32 = vld [vmem:[#allocation10 + $0x2f8] sm:$0xff] }
 0x3a8   :  { %9341 = vmatpush1.bf16.msra.mxu1 %v12681_v12  ;;  %9014 = vmatprep.subr.bf16.mxu0 %v12688_v45  ;;  %v12728_v12 = vcombine.high %v2226_v39, %v2230_v58  ;;  %v12730_v45 = vcombine.high %v2227_v41, %v2231_v40  ;;  %v2270_v39 = vld [vmem:[#allocation10 + $0x330] sm:$0xff]  ;;  %v2267_v58 = vld [vmem:[#allocation10 + $0x318] sm:$0xff] }
 0x3a9   :  { %9342 = vmatprep.subr.bf16.mxu1 %v12690_v21  ;;  %v2234_v21 = vld [vmem:[#allocation10 + $0x210] sm:$0xff] }
 0x3aa   :  { %v12735_v16 = vcombine.low %v2234_v21, %v2238_v47 }
 0x3ab   :  { %9015 = vmatpush1.bf16.msra.mxu0 %v12687_v55  ;;  %v12729_v55 = vcombine.low %v2227_v41, %v2231_v40  ;;  %v2271_v41 = vld [vmem:[#allocation10 + $0x338] sm:$0xff] }
 0x3ac   :  { %9343 = vmatpush1.bf16.msra.mxu1 %v12689_v56  ;;  %9016 = vmatprep.subr.bf16.mxu0 %v12696_v1  ;;  %v12736_v56 = vcombine.high %v2234_v21, %v2238_v47  ;;  %v12738_v1 = vcombine.high %v2235_v20, %v2239_v7  ;;  %v2278_v21 = vld [vmem:[#allocation10 + $0x370] sm:$0xff]  ;;  %v2275_v47 = vld [vmem:[#allocation10 + $0x358] sm:$0xff] }
 0x3ad   :  { %9344 = vmatprep.subr.bf16.mxu1 %v12698_v3  ;;  %v2242_v3 = vld [vmem:[#allocation10 + $0x250] sm:$0xff] }
 0x3ae   :  { %v12743_v26 = vcombine.low %v2242_v3, %v2246_v5 }
 0x3af   :  { %9017 = vmatpush1.bf16.msra.mxu0 %v12695_v35  ;;  %v12737_v35 = vcombine.low %v2235_v20, %v2239_v7  ;;  %v2279_v20 = vld [vmem:[#allocation10 + $0x378] sm:$0xff] }
 0x3b0   :  { %9345 = vmatpush1.bf16.msra.mxu1 %v12697_v34  ;;  %9018 = vmatprep.subr.bf16.mxu0 %v12704_v22  ;;  %v12744_v34 = vcombine.high %v2242_v3, %v2246_v5  ;;  %v12746_v22 = vcombine.high %v2243_v54, %v2247_v11  ;;  %v2286_v3 = vld [vmem:[#allocation10 + $0x3b0] sm:$0xff]  ;;  %v2283_v5 = vld [vmem:[#allocation10 + $0x398] sm:$0xff] }
 0x3b1   :  { %9346 = vmatprep.subr.bf16.mxu1 %v12706_v24  ;;  %v2250_v24 = vld [vmem:[#allocation10 + $0x290] sm:$0xff] }
 0x3b2   :  { %v12751_v13 = vcombine.low %v2250_v24, %v2254_v25 }
 0x3b3   :  { %9019 = vmatpush1.bf16.msra.mxu0 %v12703_v27  ;;  %v12745_v27 = vcombine.low %v2243_v54, %v2247_v11  ;;  %v2287_v54 = vld [vmem:[#allocation10 + $0x3b8] sm:$0xff] }
 0x3b4   :  { %9347 = vmatpush1.bf16.msra.mxu1 %v12705_v28  ;;  %9020 = vmatprep.subr.bf16.mxu0 %v12712_v10  ;;  %v12752_v28 = vcombine.high %v2250_v24, %v2254_v25  ;;  %v12754_v10 = vcombine.high %v2251_v44, %v2255_v15  ;;  %v2294_v24 = vld [vmem:[#allocation10 + $0x3f0] sm:$0xff]  ;;  %v2291_v25 = vld [vmem:[#allocation10 + $0x3d8] sm:$0xff] }
 0x3b5   :  { %9348 = vmatprep.subr.bf16.mxu1 %v12714_v29  ;;  %v2258_v29 = vld [vmem:[#allocation10 + $0x2d0] sm:$0xff] }
 0x3b6   :  { %v12759_v40 = vcombine.low %v2258_v29, %v2262_v30 }
 0x3b7   :  { %9021 = vmatpush1.bf16.msra.mxu0 %v12711_v17  ;;  %v12753_v17 = vcombine.low %v2251_v44, %v2255_v15  ;;  %v2295_v44 = vld [vmem:[#allocation10 + $0x3f8] sm:$0xff] }
 0x3b8   :  { %9349 = vmatpush1.bf16.msra.mxu1 %v12713_v33  ;;  %9022 = vmatprep.subr.bf16.mxu0 %v12720_v37  ;;  %v12760_v33 = vcombine.high %v2258_v29, %v2262_v30  ;;  %v12762_v37 = vcombine.high %v2259_v31, %v2263_v32  ;;  %v2302_v29 = vld [vmem:[#allocation10 + $0x430] sm:$0xff]  ;;  %v2299_v30 = vld [vmem:[#allocation10 + $0x418] sm:$0xff] }
 0x3b9   :  { %9350 = vmatprep.subr.bf16.mxu1 %v12722_v50  ;;  %v2266_v50 = vld [vmem:[#allocation10 + $0x310] sm:$0xff] }
 0x3ba   :  { %v12767_v7 = vcombine.low %v2266_v50, %v2270_v39 }
 0x3bb   :  { %9023 = vmatpush1.bf16.msra.mxu0 %v12719_v43  ;;  %v12761_v43 = vcombine.low %v2259_v31, %v2263_v32  ;;  %v2303_v31 = vld [vmem:[#allocation10 + $0x438] sm:$0xff] }
 0x3bc   :  { %9351 = vmatpush1.bf16.msra.mxu1 %v12721_v0  ;;  %9024 = vmatprep.subr.bf16.mxu0 %v12728_v12  ;;  %v12768_v0 = vcombine.high %v2266_v50, %v2270_v39  ;;  %v12770_v12 = vcombine.high %v2267_v58, %v2271_v41  ;;  %v2310_v50 = vld [vmem:[#allocation10 + $0x470] sm:$0xff] }
 0x3bd   :  { %9352 = vmatprep.subr.bf16.mxu1 %v12730_v45  ;;  %v2274_v45 = vld [vmem:[#allocation10 + $0x350] sm:$0xff] }
 0x3be   :  { %v12775_v11 = vcombine.low %v2274_v45, %v2278_v21 }
 0x3bf   :  { %9025 = vmatpush1.bf16.msra.mxu0 %v12727_v49  ;;  %v12769_v49 = vcombine.low %v2267_v58, %v2271_v41  ;;  %v2307_v58 = vld [vmem:[#allocation10 + $0x458] sm:$0xff] }
 0x3c0   :  { %9353 = vmatpush1.bf16.msra.mxu1 %v12729_v55  ;;  %9026 = vmatprep.subr.bf16.mxu0 %v12736_v56  ;;  %v12776_v55 = vcombine.high %v2274_v45, %v2278_v21  ;;  %v12778_v56 = vcombine.high %v2275_v47, %v2279_v20  ;;  %v2311_v41 = vld [vmem:[#allocation10 + $0x478] sm:$0xff] }
 0x3c1   :  { %9354 = vmatprep.subr.bf16.mxu1 %v12738_v1  ;;  %v2282_v1 = vld [vmem:[#allocation10 + $0x390] sm:$0xff]  ;;  %v12810_v45 = vcombine.high %v2307_v58, %v2311_v41  ;;  %v2315_v21 = vld [vmem:[#allocation10 + $0x498] sm:$0xff] }
 0x3c2   :  { %v12783_v15 = vcombine.low %v2282_v1, %v2286_v3 }
 0x3c3   :  { %9027 = vmatpush1.bf16.msra.mxu0 %v12735_v16  ;;  %v12777_v16 = vcombine.low %v2275_v47, %v2279_v20  ;;  %v2319_v47 = vld [vmem:[#allocation10 + $0x4b8] sm:$0xff] }
 0x3c4   :  { %9355 = vmatpush1.bf16.msra.mxu1 %v12737_v35  ;;  %9028 = vmatprep.subr.bf16.mxu0 %v12744_v34  ;;  %v12784_v35 = vcombine.high %v2282_v1, %v2286_v3  ;;  %v12786_v34 = vcombine.high %v2283_v5, %v2287_v54  ;;  %v2326_v1 = vld [vmem:[#allocation10 + $0x4f0] sm:$0xff]  ;;  %v2323_v3 = vld [vmem:[#allocation10 + $0x4d8] sm:$0xff] }
 0x3c5   :  { %9356 = vmatprep.subr.bf16.mxu1 %v12746_v22  ;;  %v2290_v22 = vld [vmem:[#allocation10 + $0x3d0] sm:$0xff] }
 0x3c6   :  { %v12791_v32 = vcombine.low %v2290_v22, %v2294_v24 }
 0x3c7   :  { %9029 = vmatpush1.bf16.msra.mxu0 %v12743_v26  ;;  %v12785_v26 = vcombine.low %v2283_v5, %v2287_v54  ;;  %v2327_v5 = vld [vmem:[#allocation10 + $0x4f8] sm:$0xff] }
 0x3c8   :  { %9357 = vmatpush1.bf16.msra.mxu1 %v12745_v27  ;;  %9030 = vmatprep.subr.bf16.mxu0 %v12752_v28  ;;  %v12792_v27 = vcombine.high %v2290_v22, %v2294_v24  ;;  %v12794_v28 = vcombine.high %v2291_v25, %v2295_v44  ;;  %v2331_v22 = vld [vmem:[#allocation10 + $0x518] sm:$0xff] }
 0x3c9   :  { %9358 = vmatprep.subr.bf16.mxu1 %v12754_v10  ;;  %v2298_v10 = vld [vmem:[#allocation10 + $0x410] sm:$0xff]  ;;  %v2335_v24 = vld [vmem:[#allocation10 + $0x538] sm:$0xff] }
 0x3ca   :  { %v12799_v39 = vcombine.low %v2298_v10, %v2302_v29 }
 0x3cb   :  { %9031 = vmatpush1.bf16.msra.mxu0 %v12751_v13  ;;  %v12793_v13 = vcombine.low %v2291_v25, %v2295_v44  ;;  %v12825_v25 = vcombine.low %v2323_v3, %v2327_v5 }
 0x3cc   :  { %9359 = vmatpush1.bf16.msra.mxu1 %v12753_v17  ;;  %9032 = vmatprep.subr.bf16.mxu0 %v12760_v33  ;;  %v12800_v17 = vcombine.high %v2298_v10, %v2302_v29  ;;  %v12802_v33 = vcombine.high %v2299_v30, %v2303_v31  ;;  %v2343_v10 = vld [vmem:[#allocation10 + $0x578] sm:$0xff] }
 0x3cd   :  { %9360 = vmatprep.subr.bf16.mxu1 %v12762_v37  ;;  %v2306_v37 = vld [vmem:[#allocation10 + $0x450] sm:$0xff] }
 0x3ce   :  { %v12807_v20 = vcombine.low %v2306_v37, %v2310_v50 }
 0x3cf   :  { %9033 = vmatpush1.bf16.msra.mxu0 %v12759_v40  ;;  %v12801_v40 = vcombine.low %v2299_v30, %v2303_v31  ;;  %v12833_v30 = vcombine.low %v2331_v22, %v2335_v24 }
 0x3d0   :  { %9361 = vmatpush1.bf16.msra.mxu1 %v12761_v43  ;;  %9034 = vmatprep.subr.bf16.mxu0 %v12768_v0  ;;  %v12808_v43 = vcombine.high %v2306_v37, %v2310_v50  ;;  %v2314_v0 = vld [vmem:[#allocation10 + $0x490] sm:$0xff]  ;;  %v2351_v37 = vld [vmem:[#allocation10 + $0x5b8] sm:$0xff] }
 0x3d1   :  { %9362 = vmatprep.subr.bf16.mxu1 %v12770_v12  ;;  %v2318_v12 = vld [vmem:[#allocation10 + $0x4b0] sm:$0xff] }
 0x3d2   :  { %v12815_v54 = vcombine.low %v2314_v0, %v2318_v12 }
 0x3d3   :  { %9035 = vmatpush1.bf16.msra.mxu0 %v12767_v7  ;;  %v12809_v7 = vcombine.low %v2307_v58, %v2311_v41 }
 0x3d4   :  { %9363 = vmatpush1.bf16.msra.mxu1 %v12769_v49  ;;  %9036 = vmatprep.subr.bf16.mxu0 %v12776_v55  ;;  %v12816_v49 = vcombine.high %v2314_v0, %v2318_v12  ;;  %v12818_v55 = vcombine.high %v2315_v21, %v2319_v47  ;;  %v2355_v0 = vld [vmem:[#allocation10 + $0x5d8] sm:$0xff] }
 0x3d5   :  { %9364 = vmatprep.subr.bf16.mxu1 %v12778_v56  ;;  %v2322_v56 = vld [vmem:[#allocation10 + $0x4d0] sm:$0xff]  ;;  %v2359_v12 = vld [vmem:[#allocation10 + $0x5f8] sm:$0xff] }
 0x3d7   :  { %9037 = vmatpush1.bf16.msra.mxu0 %v12775_v11  ;;  %v12824_v11 = vcombine.high %v2322_v56, %v2326_v1 }
 0x3d8   :  { %9365 = vmatpush1.bf16.msra.mxu1 %v12777_v16  ;;  %9038 = vmatprep.subr.bf16.mxu0 %v12784_v35  ;;  %v12826_v16 = vcombine.high %v2323_v3, %v2327_v5  ;;  %v2330_v35 = vld [vmem:[#allocation10 + $0x510] sm:$0xff]  ;;  %v12857_v3 = vcombine.low %v2355_v0, %v2359_v12 }
 0x3d9   :  { %9366 = vmatprep.subr.bf16.mxu1 %v12786_v34  ;;  %v2334_v34 = vld [vmem:[#allocation10 + $0x530] sm:$0xff] }
 0x3da   :  { %v12832_v44 = vcombine.high %v2330_v35, %v2334_v34  ;;  %v12831_v29 = vcombine.low %v2330_v35, %v2334_v34  ;;  %v2375_v35 = vld [vmem:[#allocation10 + $0x678] sm:$0xff] }
 0x3db   :  { %9039 = vmatpush1.bf16.msra.mxu0 %v12783_v15  ;;  %v12834_v15 = vcombine.high %v2331_v22, %v2335_v24 }
 0x3dc   :  { %9367 = vmatpush1.bf16.msra.mxu1 %v12785_v26  ;;  %9040 = vmatprep.subr.bf16.mxu0 %v12792_v27  ;;  %v2338_v26 = vld [vmem:[#allocation10 + $0x550] sm:$0xff] }
 0x3dd   :  { %9368 = vmatprep.subr.bf16.mxu1 %v12794_v28  ;;  %v2342_v27 = vld [vmem:[#allocation10 + $0x570] sm:$0xff]  ;;  %v2339_v28 = vld [vmem:[#allocation10 + $0x558] sm:$0xff] }
 0x3de   :  { %v12840_v31 = vcombine.high %v2338_v26, %v2342_v27  ;;  %v12839_v50 = vcombine.low %v2338_v26, %v2342_v27  ;;  %v2383_v26 = vld [vmem:[#allocation10 + $0x6b8] sm:$0xff] }
 0x3df   :  { %9041 = vmatpush1.bf16.msra.mxu0 %v12791_v32  ;;  %v12842_v32 = vcombine.high %v2339_v28, %v2343_v10 }
 0x3e0   :  { %9369 = vmatpush1.bf16.msra.mxu1 %v12793_v13  ;;  %9051 = vmatprep.subr.bf16.mxu0 %v12800_v17  ;;  %v2346_v13 = vld [vmem:[#allocation10 + $0x590] sm:$0xff] }
 0x3e1   :  { %9379 = vmatprep.subr.bf16.mxu1 %v12802_v33  ;;  %v2350_v17 = vld [vmem:[#allocation10 + $0x5b0] sm:$0xff]  ;;  %v2347_v33 = vld [vmem:[#allocation10 + $0x598] sm:$0xff] }
 0x3e2   :  { %9043 = vmatmul.mubr.bf16.vlgmr.msra.gmra.mrb[20].mxu0 %v15255_v62  ;;  %v12848_v58 = vcombine.high %v2346_v13, %v2350_v17  ;;  %v12850_v41 = vcombine.high %v2347_v33, %v2351_v37 }
 0x3e3   :  { %9371 = vmatmul.mubr.bf16.vlgmr.msra.gmra.mrb[20].mxu1 %v15255_v62  ;;  %9052 = vmatpush1.bf16.msra.mxu0 %v12799_v39  ;;  %v12817_v62 = vcombine.low %v2315_v21, %v2319_v47  ;;  %v12841_v39 = vcombine.low %v2339_v28, %v2343_v10  ;;  %v12849_v21 = vcombine.low %v2347_v33, %v2351_v37 }
 0x3e4   :  { %9083 = vmatprep.mubr.bf16.mxu0 %v15257_v4  ;;  %9380 = vmatpush1.bf16.msra.mxu1 %v12801_v40  ;;  %v2354_v40 = vld [vmem:[#allocation10 + $0x5d0] sm:$0xff] }
 0x3e5   :  { %9411 = vmatprep.mubr.bf16.mxu1 %v15257_v4  ;;  %9053 = vmatprep.subr.bf16.mxu0 %v12808_v43  ;;  %v12823_v4 = vcombine.low %v2322_v56, %v2326_v1  ;;  %v2358_v43 = vld [vmem:[#allocation10 + $0x5f0] sm:$0xff]  ;;  %v2367_v56 = vld [vmem:[#allocation10 + $0x638] sm:$0xff] }
 0x3e6   :  { %9381 = vmatprep.subr.bf16.mxu1 %v12810_v45  ;;  %v12847_v45 = vcombine.low %v2346_v13, %v2350_v17  ;;  %v12856_v47 = vcombine.high %v2354_v40, %v2358_v43  ;;  %v12855_v1 = vcombine.low %v2354_v40, %v2358_v43  ;;  %v2391_v13 = vld [vmem:[#allocation10 + $0x6f8] sm:$0xff] }
 0x3e7   :  { %9054 = vmatpush1.bf16.msra.mxu0 %v12807_v20  ;;  %v12858_v20 = vcombine.high %v2355_v0, %v2359_v12  ;;  %v2399_v40 = vld [vmem:[#allocation10 + $0x738] sm:$0xff] }
 0x3e8   :  { %9382 = vmatpush1.bf16.msra.mxu1 %v12809_v7  ;;  %9055 = vmatprep.subr.bf16.mxu0 %v12816_v49  ;;  %v2362_v7 = vld [vmem:[#allocation10 + $0x610] sm:$0xff] }
 0x3e9   :  { %9383 = vmatprep.subr.bf16.mxu1 %v12818_v55  ;;  %v2366_v49 = vld [vmem:[#allocation10 + $0x630] sm:$0xff]  ;;  %v2363_v55 = vld [vmem:[#allocation10 + $0x618] sm:$0xff] }
 0x3ea   :  { %v12864_v5 = vcombine.high %v2362_v7, %v2366_v49  ;;  %v12863_v34 = vcombine.low %v2362_v7, %v2366_v49  ;;  %v12865_v22 = vcombine.low %v2363_v55, %v2367_v56  ;;  %v2407_v7 = vld [vmem:[#allocation10 + $0x778] sm:$0xff] }
 0x3eb   :  { %9056 = vmatpush1.bf16.msra.mxu0 %v12815_v54  ;;  %v12866_v54 = vcombine.high %v2363_v55, %v2367_v56 }
 0x3ec   :  { %9384 = vmatpush1.bf16.msra.mxu1 %v12817_v62  ;;  %9057 = vmatprep.subr.bf16.mxu0 %v12824_v11  ;;  %v2370_v62 = vld [vmem:[#allocation10 + $0x650] sm:$0xff] }
 0x3ed   :  { %9385 = vmatprep.subr.bf16.mxu1 %v12826_v16  ;;  %v2374_v11 = vld [vmem:[#allocation10 + $0x670] sm:$0xff]  ;;  %v2371_v16 = vld [vmem:[#allocation10 + $0x658] sm:$0xff] }
 0x3ee   :  { %v12872_v24 = vcombine.high %v2370_v62, %v2374_v11  ;;  %v12871_v27 = vcombine.low %v2370_v62, %v2374_v11  ;;  %v12873_v28 = vcombine.low %v2371_v16, %v2375_v35  ;;  %v2415_v62 = vld [vmem:[#allocation10 + $0x7b8] sm:$0xff] }
 0x3ef   :  { %9058 = vmatpush1.bf16.msra.mxu0 %v12823_v4  ;;  %v12874_v4 = vcombine.high %v2371_v16, %v2375_v35 }
 0x3f0   :  { %9386 = vmatpush1.bf16.msra.mxu1 %v12825_v25  ;;  %9059 = vmatprep.subr.bf16.mxu0 %v12832_v44  ;;  %v2378_v25 = vld [vmem:[#allocation10 + $0x690] sm:$0xff] }
 0x3f1   :  { %9387 = vmatprep.subr.bf16.mxu1 %v12834_v15  ;;  %v2382_v44 = vld [vmem:[#allocation10 + $0x6b0] sm:$0xff]  ;;  %v2379_v15 = vld [vmem:[#allocation10 + $0x698] sm:$0xff] }
 0x3f2   :  { %v12880_v10 = vcombine.high %v2378_v25, %v2382_v44  ;;  %v12879_v17 = vcombine.low %v2378_v25, %v2382_v44  ;;  %v12881_v33 = vcombine.low %v2379_v15, %v2383_v26  ;;  %v2423_v25 = vld [vmem:[#allocation10 + $0x7f8] sm:$0xff] }
 0x3f3   :  { %9060 = vmatpush1.bf16.msra.mxu0 %v12831_v29  ;;  %v12882_v29 = vcombine.high %v2379_v15, %v2383_v26 }
 0x3f4   :  { %9388 = vmatpush1.bf16.msra.mxu1 %v12833_v30  ;;  %9061 = vmatprep.subr.bf16.mxu0 %v12840_v31  ;;  %v2386_v30 = vld [vmem:[#allocation10 + $0x6d0] sm:$0xff] }
 0x3f5   :  { %9389 = vmatprep.subr.bf16.mxu1 %v12842_v32  ;;  %v2390_v31 = vld [vmem:[#allocation10 + $0x6f0] sm:$0xff]  ;;  %v2387_v32 = vld [vmem:[#allocation10 + $0x6d8] sm:$0xff] }
 0x3f6   :  { %v12888_v37 = vcombine.high %v2386_v30, %v2390_v31  ;;  %v12887_v43 = vcombine.low %v2386_v30, %v2390_v31  ;;  %v12889_v0 = vcombine.low %v2387_v32, %v2391_v13  ;;  %v2431_v30 = vld [vmem:[#allocation10 + $0x838] sm:$0xff] }
 0x3f7   :  { %9062 = vmatpush1.bf16.msra.mxu0 %v12839_v50  ;;  %v12890_v50 = vcombine.high %v2387_v32, %v2391_v13 }
 0x3f8   :  { %9390 = vmatpush1.bf16.msra.mxu1 %v12841_v39  ;;  %9063 = vmatprep.subr.bf16.mxu0 %v12848_v58  ;;  %v2394_v39 = vld [vmem:[#allocation10 + $0x710] sm:$0xff] }
 0x3f9   :  { %9391 = vmatprep.subr.bf16.mxu1 %v12850_v41  ;;  %v2398_v58 = vld [vmem:[#allocation10 + $0x730] sm:$0xff]  ;;  %v2395_v41 = vld [vmem:[#allocation10 + $0x718] sm:$0xff] }
 0x3fa   :  { %v12896_v12 = vcombine.high %v2394_v39, %v2398_v58  ;;  %v12895_v49 = vcombine.low %v2394_v39, %v2398_v58  ;;  %v12897_v55 = vcombine.low %v2395_v41, %v2399_v40  ;;  %v2435_v39 = vld [vmem:[#allocation10 + $0x858] sm:$0xff] }
 0x3fb   :  { %9064 = vmatpush1.bf16.msra.mxu0 %v12847_v45  ;;  %v12898_v45 = vcombine.high %v2395_v41, %v2399_v40  ;;  %v2439_v58 = vld [vmem:[#allocation10 + $0x878] sm:$0xff] }
 0x3fc   :  { %9392 = vmatpush1.bf16.msra.mxu1 %v12849_v21  ;;  %9065 = vmatprep.subr.bf16.mxu0 %v12856_v47  ;;  %v2402_v21 = vld [vmem:[#allocation10 + $0x750] sm:$0xff] }
 0x3fd   :  { %9393 = vmatprep.subr.bf16.mxu1 %v12858_v20  ;;  %v2406_v47 = vld [vmem:[#allocation10 + $0x770] sm:$0xff]  ;;  %v2403_v20 = vld [vmem:[#allocation10 + $0x758] sm:$0xff] }
 0x3fe   :  { %v12904_v56 = vcombine.high %v2402_v21, %v2406_v47  ;;  %v12903_v11 = vcombine.low %v2402_v21, %v2406_v47  ;;  %v12905_v16 = vcombine.low %v2403_v20, %v2407_v7  ;;  %v2447_v21 = vld [vmem:[#allocation10 + $0x8b8] sm:$0xff] }
 0x3ff   :  { %9066 = vmatpush1.bf16.msra.mxu0 %v12855_v1  ;;  %v12906_v1 = vcombine.high %v2403_v20, %v2407_v7  ;;  %v12937_v20 = vcombine.low %v2435_v39, %v2439_v58 }
 0x400   :  { %9394 = vmatpush1.bf16.msra.mxu1 %v12857_v3  ;;  %9067 = vmatprep.subr.bf16.mxu0 %v12864_v5  ;;  %v2410_v3 = vld [vmem:[#allocation10 + $0x790] sm:$0xff] }
 0x401   :  { %9395 = vmatprep.subr.bf16.mxu1 %v12866_v54  ;;  %v2414_v5 = vld [vmem:[#allocation10 + $0x7b0] sm:$0xff]  ;;  %v2411_v54 = vld [vmem:[#allocation10 + $0x798] sm:$0xff] }
 0x402   :  { %v12912_v35 = vcombine.high %v2410_v3, %v2414_v5  ;;  %v12911_v44 = vcombine.low %v2410_v3, %v2414_v5  ;;  %v12913_v15 = vcombine.low %v2411_v54, %v2415_v62  ;;  %v2455_v3 = vld [vmem:[#allocation10 + $0x8f8] sm:$0xff] }
 0x403   :  { %9068 = vmatpush1.bf16.msra.mxu0 %v12863_v34  ;;  %v12914_v34 = vcombine.high %v2411_v54, %v2415_v62 }
 0x404   :  { %9396 = vmatpush1.bf16.msra.mxu1 %v12865_v22  ;;  %9069 = vmatprep.subr.bf16.mxu0 %v12872_v24  ;;  %v2418_v22 = vld [vmem:[#allocation10 + $0x7d0] sm:$0xff] }
 0x405   :  { %9397 = vmatprep.subr.bf16.mxu1 %v12874_v4  ;;  %v2422_v24 = vld [vmem:[#allocation10 + $0x7f0] sm:$0xff]  ;;  %v2419_v4 = vld [vmem:[#allocation10 + $0x7d8] sm:$0xff] }
 0x406   :  { %v12920_v26 = vcombine.high %v2418_v22, %v2422_v24  ;;  %v12919_v31 = vcombine.low %v2418_v22, %v2422_v24  ;;  %v12921_v32 = vcombine.low %v2419_v4, %v2423_v25 }
 0x407   :  { %9070 = vmatpush1.bf16.msra.mxu0 %v12871_v27  ;;  %v12922_v27 = vcombine.high %v2419_v4, %v2423_v25  ;;  %v2466_v25 = vld [vmem:[#allocation10 + $0x950] sm:$0xff] }
 0x408   :  { %9398 = vmatpush1.bf16.msra.mxu1 %v12873_v28  ;;  %9071 = vmatprep.subr.bf16.mxu0 %v12880_v10  ;;  %v2426_v28 = vld [vmem:[#allocation10 + $0x810] sm:$0xff] }
 0x409   :  { %9399 = vmatprep.subr.bf16.mxu1 %v12882_v29  ;;  %v2430_v10 = vld [vmem:[#allocation10 + $0x830] sm:$0xff]  ;;  %v2427_v29 = vld [vmem:[#allocation10 + $0x818] sm:$0xff] }
 0x40a   :  { %v12928_v13 = vcombine.high %v2426_v28, %v2430_v10  ;;  %v12929_v41 = vcombine.low %v2427_v29, %v2431_v30 }
 0x40b   :  { %9072 = vmatpush1.bf16.msra.mxu0 %v12879_v17  ;;  %v12930_v17 = vcombine.high %v2427_v29, %v2431_v30  ;;  %v2474_v30 = vld [vmem:[#allocation10 + $0x990] sm:$0xff] }
 0x40c   :  { %9400 = vmatpush1.bf16.msra.mxu1 %v12881_v33  ;;  %9073 = vmatprep.subr.bf16.mxu0 %v12888_v37  ;;  %v2434_v33 = vld [vmem:[#allocation10 + $0x850] sm:$0xff] }
 0x40d   :  { %9401 = vmatprep.subr.bf16.mxu1 %v12890_v50  ;;  %v2438_v37 = vld [vmem:[#allocation10 + $0x870] sm:$0xff]  ;;  %v12927_v50 = vcombine.low %v2426_v28, %v2430_v10 }
 0x40e   :  { %v12936_v40 = vcombine.high %v2434_v33, %v2438_v37  ;;  %v12935_v47 = vcombine.low %v2434_v33, %v2438_v37 }
 0x40f   :  { %9074 = vmatpush1.bf16.msra.mxu0 %v12887_v43  ;;  %v2442_v43 = vld [vmem:[#allocation10 + $0x890] sm:$0xff] }
 0x410   :  { %9402 = vmatpush1.bf16.msra.mxu1 %v12889_v0  ;;  %9075 = vmatprep.subr.bf16.mxu0 %v12896_v12  ;;  %v2446_v0 = vld [vmem:[#allocation10 + $0x8b0] sm:$0xff]  ;;  %v12938_v12 = vcombine.high %v2435_v39, %v2439_v58 }
 0x411   :  { %9403 = vmatprep.subr.bf16.mxu1 %v12898_v45  ;;  %v2443_v45 = vld [vmem:[#allocation10 + $0x898] sm:$0xff]  ;;  %v12944_v7 = vcombine.high %v2442_v43, %v2446_v0  ;;  %v12943_v5 = vcombine.low %v2442_v43, %v2446_v0  ;;  %v2482_v39 = vld [vmem:[#allocation10 + $0x9d0] sm:$0xff] }
 0x412   :  { %v2486_v58 = vld [vmem:[#allocation10 + $0x9f0] sm:$0xff] }
 0x413   :  { %9076 = vmatpush1.bf16.msra.mxu0 %v12895_v49  ;;  %v12946_v49 = vcombine.high %v2443_v45, %v2447_v21 }
 0x414   :  { %9404 = vmatpush1.bf16.msra.mxu1 %v12897_v55  ;;  %9077 = vmatprep.subr.bf16.mxu0 %v12904_v56  ;;  %v2450_v55 = vld [vmem:[#allocation10 + $0x8d0] sm:$0xff] }
 0x415   :  { %9405 = vmatprep.subr.bf16.mxu1 %v12906_v1  ;;  %v2454_v56 = vld [vmem:[#allocation10 + $0x8f0] sm:$0xff]  ;;  %v2451_v1 = vld [vmem:[#allocation10 + $0x8d8] sm:$0xff] }
 0x416   :  { %v12952_v54 = vcombine.high %v2450_v55, %v2454_v56  ;;  %v12954_v62 = vcombine.high %v2451_v1, %v2455_v3  ;;  %v12953_v22 = vcombine.low %v2451_v1, %v2455_v3  ;;  %v2498_v3 = vld [vmem:[#allocation10 + $0xa50] sm:$0xff] }
 0x417   :  { %9078 = vmatpush1.bf16.msra.mxu0 %v12903_v11  ;;  %v2458_v11 = vld [vmem:[#allocation10 + $0x910] sm:$0xff] }
 0x418   :  { %9406 = vmatpush1.bf16.msra.mxu1 %v12905_v16  ;;  %9079 = vmatprep.subr.bf16.mxu0 %v12912_v35  ;;  %v2462_v16 = vld [vmem:[#allocation10 + $0x930] sm:$0xff]  ;;  %v2459_v35 = vld [vmem:[#allocation10 + $0x918] sm:$0xff] }
 0x419   :  { %9407 = vmatprep.subr.bf16.mxu1 %v12914_v34  ;;  %v2463_v34 = vld [vmem:[#allocation10 + $0x938] sm:$0xff]  ;;  %v12960_v24 = vcombine.high %v2458_v11, %v2462_v16 }
 0x41a   :  { %v12962_v4 = vcombine.high %v2459_v35, %v2463_v34  ;;  %v12961_v28 = vcombine.low %v2459_v35, %v2463_v34  ;;  %v2506_v34 = vld [vmem:[#allocation10 + $0xa90] sm:$0xff] }
 0x41b   :  { %9080 = vmatpush1.bf16.msra.mxu0 %v12911_v44  ;;  %v2470_v44 = vld [vmem:[#allocation10 + $0x970] sm:$0xff] }
 0x41c   :  { %9408 = vmatpush1.bf16.msra.mxu1 %v12913_v15  ;;  %9081 = vmatprep.subr.bf16.mxu0 %v12920_v26  ;;  %v2467_v15 = vld [vmem:[#allocation10 + $0x958] sm:$0xff]  ;;  %v12968_v10 = vcombine.high %v2466_v25, %v2470_v44 }
 0x41d   :  { %9409 = vmatprep.subr.bf16.mxu1 %v12922_v27  ;;  %v2471_v26 = vld [vmem:[#allocation10 + $0x978] sm:$0xff]  ;;  %v12959_v27 = vcombine.low %v2458_v11, %v2462_v16 }
 0x41e   :  { %v12970_v29 = vcombine.high %v2467_v15, %v2471_v26  ;;  %v12969_v33 = vcombine.low %v2467_v15, %v2471_v26  ;;  %v2514_v26 = vld [vmem:[#allocation10 + $0xad0] sm:$0xff] }
 0x41f   :  { %9082 = vmatpush1.bf16.msra.mxu0 %v12919_v31  ;;  %v2478_v31 = vld [vmem:[#allocation10 + $0x9b0] sm:$0xff] }
 0x420   :  { %9410 = vmatpush1.bf16.msra.mxu1 %v12921_v32  ;;  %9092 = vmatprep.subr.bf16.mxu0 %v12928_v13  ;;  %v2475_v32 = vld [vmem:[#allocation10 + $0x998] sm:$0xff]  ;;  %v12976_v37 = vcombine.high %v2474_v30, %v2478_v31  ;;  %v12975_v43 = vcombine.low %v2474_v30, %v2478_v31 }
 0x421   :  { %9420 = vmatprep.subr.bf16.mxu1 %v12930_v17  ;;  %v2479_v13 = vld [vmem:[#allocation10 + $0x9b8] sm:$0xff]  ;;  %v12967_v17 = vcombine.low %v2466_v25, %v2470_v44 }
 0x422   :  { %9084 = vmatmul.mubr.bf16.vlgmr.msra.gmra.mrb[20].mxu0 %v15285_v8  ;;  %v12977_v0 = vcombine.low %v2475_v32, %v2479_v13 }
 0x423   :  { %9412 = vmatmul.mubr.bf16.vlgmr.msra.gmra.mrb[20].mxu1 %v15285_v8  ;;  %9093 = vmatpush1.bf16.msra.mxu0 %v12927_v50  ;;  %v12945_v8 = vcombine.low %v2443_v45, %v2447_v21  ;;  %v12978_v50 = vcombine.high %v2475_v32, %v2479_v13  ;;  %v2490_v21 = vld [vmem:[#allocation10 + $0xa10] sm:$0xff] }
 0x424   :  { %9124 = vmatprep.mubr.bf16.mxu0 %v15287_v52  ;;  %9421 = vmatpush1.bf16.msra.mxu1 %v12929_v41  ;;  %v2483_v41 = vld [vmem:[#allocation10 + $0x9d8] sm:$0xff]  ;;  %v2522_v13 = vld [vmem:[#allocation10 + $0xb10] sm:$0xff] }
 0x425   :  { %9452 = vmatprep.mubr.bf16.mxu1 %v15287_v52  ;;  %9094 = vmatprep.subr.bf16.mxu0 %v12936_v40  ;;  %v12951_v52 = vcombine.low %v2450_v55, %v2454_v56  ;;  %v2487_v40 = vld [vmem:[#allocation10 + $0x9f8] sm:$0xff] }
 0x426   :  { %9422 = vmatprep.subr.bf16.mxu1 %v12938_v12  ;;  %v12984_v12 = vcombine.high %v2482_v39, %v2486_v58  ;;  %v12986_v45 = vcombine.high %v2483_v41, %v2487_v40  ;;  %v12985_v55 = vcombine.low %v2483_v41, %v2487_v40  ;;  %v2530_v40 = vld [vmem:[#allocation10 + $0xb50] sm:$0xff] }
 0x427   :  { %9095 = vmatpush1.bf16.msra.mxu0 %v12935_v47  ;;  %v2494_v47 = vld [vmem:[#allocation10 + $0xa30] sm:$0xff] }
 0x428   :  { %9423 = vmatpush1.bf16.msra.mxu1 %v12937_v20  ;;  %9096 = vmatprep.subr.bf16.mxu0 %v12944_v7  ;;  %v2491_v20 = vld [vmem:[#allocation10 + $0xa18] sm:$0xff]  ;;  %v12992_v56 = vcombine.high %v2490_v21, %v2494_v47 }
 0x429   :  { %9424 = vmatprep.subr.bf16.mxu1 %v12946_v49  ;;  %v2495_v7 = vld [vmem:[#allocation10 + $0xa38] sm:$0xff]  ;;  %v12983_v49 = vcombine.low %v2482_v39, %v2486_v58 }
 0x42a   :  { %v12994_v1 = vcombine.high %v2491_v20, %v2495_v7  ;;  %v12993_v11 = vcombine.low %v2491_v20, %v2495_v7  ;;  %v2538_v7 = vld [vmem:[#allocation10 + $0xb90] sm:$0xff] }
 0x42b   :  { %9097 = vmatpush1.bf16.msra.mxu0 %v12943_v5  ;;  %v2502_v5 = vld [vmem:[#allocation10 + $0xa70] sm:$0xff] }
 0x42c   :  { %9425 = vmatpush1.bf16.msra.mxu1 %v12945_v8  ;;  %9098 = vmatprep.subr.bf16.mxu0 %v12952_v54  ;;  %v2499_v8 = vld [vmem:[#allocation10 + $0xa58] sm:$0xff]  ;;  %v13000_v16 = vcombine.high %v2498_v3, %v2502_v5 }
 0x42d   :  { %9426 = vmatprep.subr.bf16.mxu1 %v12954_v62  ;;  %v2503_v54 = vld [vmem:[#allocation10 + $0xa78] sm:$0xff]  ;;  %v12991_v62 = vcombine.low %v2490_v21, %v2494_v47 }
 0x42e   :  { %v13002_v35 = vcombine.high %v2499_v8, %v2503_v54  ;;  %v13001_v25 = vcombine.low %v2499_v8, %v2503_v54  ;;  %v2546_v54 = vld [vmem:[#allocation10 + $0xbd0] sm:$0xff] }
 0x42f   :  { %9099 = vmatpush1.bf16.msra.mxu0 %v12951_v52  ;;  %v2510_v52 = vld [vmem:[#allocation10 + $0xab0] sm:$0xff] }
 0x430   :  { %9427 = vmatpush1.bf16.msra.mxu1 %v12953_v22  ;;  %9100 = vmatprep.subr.bf16.mxu0 %v12960_v24  ;;  %v2507_v22 = vld [vmem:[#allocation10 + $0xa98] sm:$0xff]  ;;  %v13008_v44 = vcombine.high %v2506_v34, %v2510_v52 }
 0x431   :  { %9428 = vmatprep.subr.bf16.mxu1 %v12962_v4  ;;  %v2511_v24 = vld [vmem:[#allocation10 + $0xab8] sm:$0xff]  ;;  %v12999_v4 = vcombine.low %v2498_v3, %v2502_v5 }
 0x432   :  { %v13010_v15 = vcombine.high %v2507_v22, %v2511_v24  ;;  %v13009_v30 = vcombine.low %v2507_v22, %v2511_v24  ;;  %v2554_v24 = vld [vmem:[#allocation10 + $0xc10] sm:$0xff] }
 0x433   :  { %9101 = vmatpush1.bf16.msra.mxu0 %v12959_v27  ;;  %v2518_v27 = vld [vmem:[#allocation10 + $0xaf0] sm:$0xff] }
 0x434   :  { %9429 = vmatpush1.bf16.msra.mxu1 %v12961_v28  ;;  %9102 = vmatprep.subr.bf16.mxu0 %v12968_v10  ;;  %v2515_v28 = vld [vmem:[#allocation10 + $0xad8] sm:$0xff]  ;;  %v13016_v31 = vcombine.high %v2514_v26, %v2518_v27 }
 0x435   :  { %9430 = vmatprep.subr.bf16.mxu1 %v12970_v29  ;;  %v2519_v10 = vld [vmem:[#allocation10 + $0xaf8] sm:$0xff]  ;;  %v13007_v29 = vcombine.low %v2506_v34, %v2510_v52 }
 0x436   :  { %v13018_v32 = vcombine.high %v2515_v28, %v2519_v10  ;;  %v13017_v39 = vcombine.low %v2515_v28, %v2519_v10  ;;  %v2562_v10 = vld [vmem:[#allocation10 + $0xc50] sm:$0xff] }
 0x437   :  { %9103 = vmatpush1.bf16.msra.mxu0 %v12967_v17  ;;  %v2526_v17 = vld [vmem:[#allocation10 + $0xb30] sm:$0xff] }
 0x438   :  { %9431 = vmatpush1.bf16.msra.mxu1 %v12969_v33  ;;  %9104 = vmatprep.subr.bf16.mxu0 %v12976_v37  ;;  %v2523_v33 = vld [vmem:[#allocation10 + $0xb18] sm:$0xff]  ;;  %v13024_v58 = vcombine.high %v2522_v13, %v2526_v17 }
 0x439   :  { %9432 = vmatprep.subr.bf16.mxu1 %v12978_v50  ;;  %v2527_v37 = vld [vmem:[#allocation10 + $0xb38] sm:$0xff]  ;;  %v13015_v50 = vcombine.low %v2514_v26, %v2518_v27 }
 0x43a   :  { %v13026_v41 = vcombine.high %v2523_v33, %v2527_v37  ;;  %v13025_v21 = vcombine.low %v2523_v33, %v2527_v37  ;;  %v2570_v33 = vld [vmem:[#allocation10 + $0xc90] sm:$0xff] }
 0x43b   :  { %9105 = vmatpush1.bf16.msra.mxu0 %v12975_v43  ;;  %v2534_v43 = vld [vmem:[#allocation10 + $0xb70] sm:$0xff] }
 0x43c   :  { %9433 = vmatpush1.bf16.msra.mxu1 %v12977_v0  ;;  %9106 = vmatprep.subr.bf16.mxu0 %v12984_v12  ;;  %v2531_v0 = vld [vmem:[#allocation10 + $0xb58] sm:$0xff]  ;;  %v13032_v47 = vcombine.high %v2530_v40, %v2534_v43  ;;  %v2574_v37 = vld [vmem:[#allocation10 + $0xcb0] sm:$0xff] }
 0x43d   :  { %9434 = vmatprep.subr.bf16.mxu1 %v12986_v45  ;;  %v2535_v12 = vld [vmem:[#allocation10 + $0xb78] sm:$0xff]  ;;  %v13023_v45 = vcombine.low %v2522_v13, %v2526_v17 }
 0x43e   :  { %v13034_v20 = vcombine.high %v2531_v0, %v2535_v12  ;;  %v13033_v3 = vcombine.low %v2531_v0, %v2535_v12  ;;  %v2578_v12 = vld [vmem:[#allocation10 + $0xcd0] sm:$0xff] }
 0x43f   :  { %9107 = vmatpush1.bf16.msra.mxu0 %v12983_v49  ;;  %v2542_v49 = vld [vmem:[#allocation10 + $0xbb0] sm:$0xff] }
 0x440   :  { %9435 = vmatpush1.bf16.msra.mxu1 %v12985_v55  ;;  %9108 = vmatprep.subr.bf16.mxu0 %v12992_v56  ;;  %v2539_v55 = vld [vmem:[#allocation10 + $0xb98] sm:$0xff]  ;;  %v13040_v5 = vcombine.high %v2538_v7, %v2542_v49 }
 0x441   :  { %9436 = vmatprep.subr.bf16.mxu1 %v12994_v1  ;;  %v2543_v56 = vld [vmem:[#allocation10 + $0xbb8] sm:$0xff]  ;;  %v13031_v1 = vcombine.low %v2530_v40, %v2534_v43  ;;  %v13072_v43 = vcombine.high %v2570_v33, %v2574_v37 }
 0x442   :  { %v13042_v8 = vcombine.high %v2539_v55, %v2543_v56  ;;  %v13041_v34 = vcombine.low %v2539_v55, %v2543_v56  ;;  %v2586_v55 = vld [vmem:[#allocation10 + $0xd10] sm:$0xff] }
 0x443   :  { %9109 = vmatpush1.bf16.msra.mxu0 %v12991_v62  ;;  %v2550_v62 = vld [vmem:[#allocation10 + $0xbf0] sm:$0xff] }
 0x444   :  { %9437 = vmatpush1.bf16.msra.mxu1 %v12993_v11  ;;  %9110 = vmatprep.subr.bf16.mxu0 %v13000_v16  ;;  %v2547_v11 = vld [vmem:[#allocation10 + $0xbd8] sm:$0xff]  ;;  %v13048_v52 = vcombine.high %v2546_v54, %v2550_v62  ;;  %v2590_v56 = vld [vmem:[#allocation10 + $0xd30] sm:$0xff] }
 0x445   :  { %9438 = vmatprep.subr.bf16.mxu1 %v13002_v35  ;;  %v2551_v16 = vld [vmem:[#allocation10 + $0xbf8] sm:$0xff]  ;;  %v13039_v35 = vcombine.low %v2538_v7, %v2542_v49 }
 0x446   :  { %v13050_v22 = vcombine.high %v2547_v11, %v2551_v16  ;;  %v13049_v26 = vcombine.low %v2547_v11, %v2551_v16  ;;  %v2598_v11 = vld [vmem:[#allocation10 + $0xd70] sm:$0xff]  ;;  %v2595_v16 = vld [vmem:[#allocation10 + $0xd58] sm:$0xff] }
 0x447   :  { %9111 = vmatpush1.bf16.msra.mxu0 %v12999_v4  ;;  %v2558_v4 = vld [vmem:[#allocation10 + $0xc30] sm:$0xff] }
 0x448   :  { %9439 = vmatpush1.bf16.msra.mxu1 %v13001_v25  ;;  %9112 = vmatprep.subr.bf16.mxu0 %v13008_v44  ;;  %v2555_v25 = vld [vmem:[#allocation10 + $0xc18] sm:$0xff]  ;;  %v13056_v27 = vcombine.high %v2554_v24, %v2558_v4 }
 0x449   :  { %9440 = vmatprep.subr.bf16.mxu1 %v13010_v15  ;;  %v2559_v44 = vld [vmem:[#allocation10 + $0xc38] sm:$0xff]  ;;  %v13047_v15 = vcombine.low %v2546_v54, %v2550_v62  ;;  %v2594_v62 = vld [vmem:[#allocation10 + $0xd50] sm:$0xff] }
 0x44a   :  { %v13058_v28 = vcombine.high %v2555_v25, %v2559_v44  ;;  %v13057_v13 = vcombine.low %v2555_v25, %v2559_v44  ;;  %v2606_v25 = vld [vmem:[#allocation10 + $0xdb0] sm:$0xff]  ;;  %v2603_v44 = vld [vmem:[#allocation10 + $0xd98] sm:$0xff] }
 0x44b   :  { %9113 = vmatpush1.bf16.msra.mxu0 %v13007_v29  ;;  %v2566_v29 = vld [vmem:[#allocation10 + $0xc70] sm:$0xff] }
 0x44c   :  { %9441 = vmatpush1.bf16.msra.mxu1 %v13009_v30  ;;  %9114 = vmatprep.subr.bf16.mxu0 %v13016_v31  ;;  %v13055_v30 = vcombine.low %v2554_v24, %v2558_v4  ;;  %v2563_v31 = vld [vmem:[#allocation10 + $0xc58] sm:$0xff]  ;;  %v13064_v17 = vcombine.high %v2562_v10, %v2566_v29  ;;  %v2602_v4 = vld [vmem:[#allocation10 + $0xd90] sm:$0xff] }
 0x44d   :  { %9442 = vmatprep.subr.bf16.mxu1 %v13018_v32  ;;  %v2567_v32 = vld [vmem:[#allocation10 + $0xc78] sm:$0xff] }
 0x44e   :  { %v13065_v40 = vcombine.low %v2563_v31, %v2567_v32 }
 0x44f   :  { %9115 = vmatpush1.bf16.msra.mxu0 %v13015_v50  ;;  %v13066_v50 = vcombine.high %v2563_v31, %v2567_v32  ;;  %v2614_v31 = vld [vmem:[#allocation10 + $0xdf0] sm:$0xff] }
 0x450   :  { %9443 = vmatpush1.bf16.msra.mxu1 %v13017_v39  ;;  %9116 = vmatprep.subr.bf16.mxu0 %v13024_v58  ;;  %v2571_v39 = vld [vmem:[#allocation10 + $0xc98] sm:$0xff] }
 0x451   :  { %9444 = vmatprep.subr.bf16.mxu1 %v13026_v41  ;;  %v2575_v58 = vld [vmem:[#allocation10 + $0xcb8] sm:$0xff]  ;;  %v13063_v41 = vcombine.low %v2562_v10, %v2566_v29 }
 0x452   :  { %v13074_v0 = vcombine.high %v2571_v39, %v2575_v58 }
 0x453   :  { %9117 = vmatpush1.bf16.msra.mxu0 %v13023_v45  ;;  %v2582_v45 = vld [vmem:[#allocation10 + $0xcf0] sm:$0xff] }
 0x454   :  { %9445 = vmatpush1.bf16.msra.mxu1 %v13025_v21  ;;  %9118 = vmatprep.subr.bf16.mxu0 %v13032_v47  ;;  %v2579_v21 = vld [vmem:[#allocation10 + $0xcd8] sm:$0xff]  ;;  %v13080_v7 = vcombine.high %v2578_v12, %v2582_v45 }
 0x455   :  { %9446 = vmatprep.subr.bf16.mxu1 %v13034_v20  ;;  %v2583_v47 = vld [vmem:[#allocation10 + $0xcf8] sm:$0xff]  ;;  %v13071_v20 = vcombine.low %v2570_v33, %v2574_v37 }
 0x456   :  { %v13082_v49 = vcombine.high %v2579_v21, %v2583_v47  ;;  %v2615_v33 = vld [vmem:[#allocation10 + $0xdf8] sm:$0xff] }
 0x457   :  { %9119 = vmatpush1.bf16.msra.mxu0 %v13031_v1  ;;  %v2587_v1 = vld [vmem:[#allocation10 + $0xd18] sm:$0xff] }
 0x458   :  { %9447 = vmatpush1.bf16.msra.mxu1 %v13033_v3  ;;  %9120 = vmatprep.subr.bf16.mxu0 %v13040_v5  ;;  %v2591_v3 = vld [vmem:[#allocation10 + $0xd38] sm:$0xff]  ;;  %v13081_v5 = vcombine.low %v2579_v21, %v2583_v47  ;;  %v2622_v21 = vld [vmem:[#allocation10 + $0xe30] sm:$0xff] }
 0x459   :  { %9448 = vmatprep.subr.bf16.mxu1 %v13042_v8  ;;  %v13088_v8 = vcombine.high %v2586_v55, %v2590_v56  ;;  %v13090_v54 = vcombine.high %v2587_v1, %v2591_v3  ;;  %v2619_v47 = vld [vmem:[#allocation10 + $0xe18] sm:$0xff] }
 0x45b   :  { %9121 = vmatpush1.bf16.msra.mxu0 %v13039_v35  ;;  %v2599_v35 = vld [vmem:[#allocation10 + $0xd78] sm:$0xff] }
 0x45c   :  { %9449 = vmatpush1.bf16.msra.mxu1 %v13041_v34  ;;  %9122 = vmatprep.subr.bf16.mxu0 %v13048_v52  ;;  %v13087_v34 = vcombine.low %v2586_v55, %v2590_v56  ;;  %v13089_v52 = vcombine.low %v2587_v1, %v2591_v3  ;;  %v13098_v24 = vcombine.high %v2595_v16, %v2599_v35  ;;  %v2626_v56 = vld [vmem:[#allocation10 + $0xe50] sm:$0xff]  ;;  %v2627_v3 = vld [vmem:[#allocation10 + $0xe58] sm:$0xff] }
 0x45d   :  { %9450 = vmatprep.subr.bf16.mxu1 %v13050_v22  ;;  %v13096_v22 = vcombine.high %v2594_v62, %v2598_v11  ;;  %v2630_v1 = vld [vmem:[#allocation10 + $0xe70] sm:$0xff] }
 0x45f   :  { %9123 = vmatpush1.bf16.msra.mxu0 %v13047_v15  ;;  %v2607_v15 = vld [vmem:[#allocation10 + $0xdb8] sm:$0xff] }
 0x460   :  { %9451 = vmatpush1.bf16.msra.mxu1 %v13049_v26  ;;  %9133 = vmatprep.subr.bf16.mxu0 %v13056_v27  ;;  %v13095_v26 = vcombine.low %v2594_v62, %v2598_v11  ;;  %v13097_v27 = vcombine.low %v2595_v16, %v2599_v35  ;;  %v13106_v29 = vcombine.high %v2603_v44, %v2607_v15  ;;  %v2634_v11 = vld [vmem:[#allocation10 + $0xe90] sm:$0xff]  ;;  %v2635_v35 = vld [vmem:[#allocation10 + $0xe98] sm:$0xff] }
 0x461   :  { %9461 = vmatprep.subr.bf16.mxu1 %v13058_v28  ;;  %v13104_v28 = vcombine.high %v2602_v4, %v2606_v25  ;;  %v2638_v16 = vld [vmem:[#allocation10 + $0xeb0] sm:$0xff] }
 0x462   :  { %9125 = vmatmul.mubr.bf16.vlgmr.msra.gmra.mrb[20].mxu0 %v15317_v60 }
 0x463   :  { %9453 = vmatmul.mubr.bf16.vlgmr.msra.gmra.mrb[20].mxu1 %v15317_v60  ;;  %9134 = vmatpush1.bf16.msra.mxu0 %v13055_v30  ;;  %v13073_v60 = vcombine.low %v2571_v39, %v2575_v58  ;;  %v2610_v30 = vld [vmem:[#allocation10 + $0xdd0] sm:$0xff]  ;;  %v13103_v39 = vcombine.low %v2602_v4, %v2606_v25 }
 0x464   :  { %9165 = vmatprep.mubr.bf16.mxu0 %v15319_v6  ;;  %9462 = vmatpush1.bf16.msra.mxu1 %v13057_v13  ;;  %v2642_v25 = vld [vmem:[#allocation10 + $0xed0] sm:$0xff] }
 0x465   :  { %9493 = vmatprep.mubr.bf16.mxu1 %v15319_v6  ;;  %9135 = vmatprep.subr.bf16.mxu0 %v13064_v17  ;;  %v13079_v6 = vcombine.low %v2578_v12, %v2582_v45  ;;  %v2611_v17 = vld [vmem:[#allocation10 + $0xdd8] sm:$0xff]  ;;  %v2618_v45 = vld [vmem:[#allocation10 + $0xe10] sm:$0xff] }
 0x466   :  { %9463 = vmatprep.subr.bf16.mxu1 %v13066_v50  ;;  %v13114_v12 = vcombine.high %v2611_v17, %v2615_v33 }
 0x467   :  { %9136 = vmatpush1.bf16.msra.mxu0 %v13063_v41 }
 0x468   :  { %9464 = vmatpush1.bf16.msra.mxu1 %v13065_v40  ;;  %9137 = vmatprep.subr.bf16.mxu0 %v13072_v43  ;;  %v13105_v40 = vcombine.low %v2603_v44, %v2607_v15  ;;  %v13112_v43 = vcombine.high %v2610_v30, %v2614_v31  ;;  %v2646_v44 = vld [vmem:[#allocation10 + $0xef0] sm:$0xff]  ;;  %v2643_v15 = vld [vmem:[#allocation10 + $0xed8] sm:$0xff] }
 0x469   :  { %9465 = vmatprep.subr.bf16.mxu1 %v13074_v0 }
 0x46b   :  { %9138 = vmatpush1.bf16.msra.mxu0 %v13071_v20  ;;  %v2623_v20 = vld [vmem:[#allocation10 + $0xe38] sm:$0xff] }
 0x46c   :  { %9466 = vmatpush1.bf16.msra.mxu1 %v13073_v60  ;;  %9139 = vmatprep.subr.bf16.mxu0 %v13080_v7  ;;  %v13111_v60 = vcombine.low %v2610_v30, %v2614_v31  ;;  %v13113_v7 = vcombine.low %v2611_v17, %v2615_v33  ;;  %v13122_v55 = vcombine.high %v2619_v47, %v2623_v20  ;;  %v2650_v31 = vld [vmem:[#allocation10 + $0xf10] sm:$0xff]  ;;  %v2651_v33 = vld [vmem:[#allocation10 + $0xf18] sm:$0xff] }
 0x46d   :  { %9467 = vmatprep.subr.bf16.mxu1 %v13082_v49  ;;  %v13120_v49 = vcombine.high %v2618_v45, %v2622_v21  ;;  %v2654_v17 = vld [vmem:[#allocation10 + $0xf30] sm:$0xff] }
 0x46f   :  { %9140 = vmatpush1.bf16.msra.mxu0 %v13079_v6  ;;  %v2631_v6 = vld [vmem:[#allocation10 + $0xe78] sm:$0xff] }
 0x470   :  { %9468 = vmatpush1.bf16.msra.mxu1 %v13081_v5  ;;  %9141 = vmatprep.subr.bf16.mxu0 %v13088_v8  ;;  %v13119_v5 = vcombine.low %v2618_v45, %v2622_v21  ;;  %v13121_v8 = vcombine.low %v2619_v47, %v2623_v20  ;;  %v13130_v62 = vcombine.high %v2627_v3, %v2631_v6  ;;  %v2663_v45 = vld [vmem:[#allocation10 + $0xf78] sm:$0xff] }
 0x471   :  { %9469 = vmatprep.subr.bf16.mxu1 %v13090_v54  ;;  %v13128_v54 = vcombine.high %v2626_v56, %v2630_v1  ;;  %v13151_v21 = vcombine.low %v2650_v31, %v2654_v17 }
 0x473   :  { %9142 = vmatpush1.bf16.msra.mxu0 %v13087_v34  ;;  %v2639_v34 = vld [vmem:[#allocation10 + $0xeb8] sm:$0xff] }
 0x474   :  { %9470 = vmatpush1.bf16.msra.mxu1 %v13089_v52  ;;  %9143 = vmatprep.subr.bf16.mxu0 %v13096_v22  ;;  %v13127_v52 = vcombine.low %v2626_v56, %v2630_v1  ;;  %v13129_v22 = vcombine.low %v2627_v3, %v2631_v6  ;;  %v13138_v4 = vcombine.high %v2635_v35, %v2639_v34  ;;  %v2671_v56 = vld [vmem:[#allocation10 + $0xfb8] sm:$0xff] }
 0x475   :  { %v15426_v10 = vpop.f32.mrb[16].mxu0  ;;  %9471 = vmatprep.subr.bf16.mxu1 %v13098_v24  ;;  %v13136_v24 = vcombine.high %v2634_v11, %v2638_v16 }
 0x476   :  { %v15428_v32 = vpop.f32.mrb[16].mxu1  ;;  %v15430_v13 = vpop.f32.mrb[17].mxu0 }
 0x477   :  { %v15432_v37 = vpop.f32.mrb[17].mxu1  ;;  %v8679_v50 = vpop.f32.mrb[18].mxu0  ;;  %9144 = vmatpush1.bf16.msra.mxu0 %v13095_v26  ;;  %v2647_v26 = vld [vmem:[#allocation10 + $0xef8] sm:$0xff] }
 0x478   :  { %v9007_v58 = vpop.f32.mrb[18].mxu1  ;;  %9472 = vmatpush1.bf16.msra.mxu1 %v13097_v27  ;;  %v8680_v41 = vpop.f32.mrb[19].mxu0  ;;  %9145 = vmatprep.subr.bf16.mxu0 %v13104_v28  ;;  %v13135_v27 = vcombine.low %v2634_v11, %v2638_v16  ;;  %v13137_v28 = vcombine.low %v2635_v35, %v2639_v34  ;;  %v13146_v30 = vcombine.high %v2643_v15, %v2647_v26  ;;  %v2655_v50 = vld [vmem:[#allocation10 + $0xf38] sm:$0xff] }
 0x479   :  { %v9008_v0 = vpop.f32.mrb[19].mxu1  ;;  %9473 = vmatprep.subr.bf16.mxu1 %v13106_v29  ;;  %v13144_v29 = vcombine.high %v2642_v25, %v2646_v44  ;;  %v13145_v58 = vcombine.low %v2643_v15, %v2647_v26  ;;  %v13152_v41 = vcombine.high %v2650_v31, %v2654_v17  ;;  %v13153_v47 = vcombine.low %v2651_v33, %v2655_v50  ;;  %v2679_v11 = vld [vmem:[#allocation10 + $0xff8] sm:$0xff] }
 0x47a   :  { %v2662_v0 = vld [vmem:[#allocation10 + $0xf70] sm:$0xff]  ;;  %v2691_v31 = vld [vmem:[#allocation10 + $0x1058] sm:$0xff] }
 0x47b   :  { %9146 = vmatpush1.bf16.msra.mxu0 %v13103_v39  ;;  %v13143_v39 = vcombine.low %v2642_v25, %v2646_v44  ;;  %v2687_v25 = vld [vmem:[#allocation10 + $0x1038] sm:$0xff] }
 0x47c   :  { %9474 = vmatpush1.bf16.msra.mxu1 %v13105_v40  ;;  %9147 = vmatprep.subr.bf16.mxu0 %v13112_v43  ;;  %v13154_v40 = vcombine.high %v2651_v33, %v2655_v50  ;;  %v2658_v43 = vld [vmem:[#allocation10 + $0xf50] sm:$0xff]  ;;  %v2695_v17 = vld [vmem:[#allocation10 + $0x1078] sm:$0xff] }
 0x47d   :  { %9475 = vmatprep.subr.bf16.mxu1 %v13114_v12  ;;  %v2659_v12 = vld [vmem:[#allocation10 + $0xf58] sm:$0xff]  ;;  %v13160_v20 = vcombine.high %v2658_v43, %v2662_v0  ;;  %v13159_v1 = vcombine.low %v2658_v43, %v2662_v0 }
 0x47e   :  { %v13161_v3 = vcombine.low %v2659_v12, %v2663_v45  ;;  %v2703_v43 = vld [vmem:[#allocation10 + $0x10b8] sm:$0xff] }
 0x47f   :  { %9148 = vmatpush1.bf16.msra.mxu0 %v13111_v60  ;;  %v13162_v60 = vcombine.high %v2659_v12, %v2663_v45  ;;  %v13193_v12 = vcombine.low %v2691_v31, %v2695_v17 }
 0x480   :  { %9476 = vmatpush1.bf16.msra.mxu1 %v13113_v7  ;;  %9149 = vmatprep.subr.bf16.mxu0 %v13120_v49  ;;  %v2666_v7 = vld [vmem:[#allocation10 + $0xf90] sm:$0xff] }
 0x481   :  { %9477 = vmatprep.subr.bf16.mxu1 %v13122_v55  ;;  %v2670_v49 = vld [vmem:[#allocation10 + $0xfb0] sm:$0xff]  ;;  %v2667_v55 = vld [vmem:[#allocation10 + $0xf98] sm:$0xff] }
 0x482   :  { %v13168_v6 = vcombine.high %v2666_v7, %v2670_v49  ;;  %v13167_v16 = vcombine.low %v2666_v7, %v2670_v49  ;;  %v13169_v35 = vcombine.low %v2667_v55, %v2671_v56  ;;  %v2711_v7 = vld [vmem:[#allocation10 + $0x10f8] sm:$0xff] }
 0x483   :  { %9150 = vmatpush1.bf16.msra.mxu0 %v13119_v5  ;;  %v13170_v5 = vcombine.high %v2667_v55, %v2671_v56 }
 0x484   :  { %9478 = vmatpush1.bf16.msra.mxu1 %v13121_v8  ;;  %9151 = vmatprep.subr.bf16.mxu0 %v13128_v54  ;;  %v2674_v8 = vld [vmem:[#allocation10 + $0xfd0] sm:$0xff] }
 0x485   :  { %9479 = vmatprep.subr.bf16.mxu1 %v13130_v62  ;;  %v2678_v54 = vld [vmem:[#allocation10 + $0xff0] sm:$0xff]  ;;  %v2675_v62 = vld [vmem:[#allocation10 + $0xfd8] sm:$0xff] }
 0x486   :  { %v13176_v34 = vcombine.high %v2674_v8, %v2678_v54  ;;  %v13175_v44 = vcombine.low %v2674_v8, %v2678_v54  ;;  %v13177_v15 = vcombine.low %v2675_v62, %v2679_v11 }
 0x487   :  { %9152 = vmatpush1.bf16.msra.mxu0 %v13127_v52  ;;  %v13178_v52 = vcombine.high %v2675_v62, %v2679_v11  ;;  %v2722_v11 = vld [vmem:[#allocation10 + $0x1150] sm:$0xff] }
 0x488   :  { %9480 = vmatpush1.bf16.msra.mxu1 %v13129_v22  ;;  %9153 = vmatprep.subr.bf16.mxu0 %v13136_v24  ;;  %v2682_v22 = vld [vmem:[#allocation10 + $0x1010] sm:$0xff] }
 0x489   :  { %9481 = vmatprep.subr.bf16.mxu1 %v13138_v4  ;;  %v2686_v24 = vld [vmem:[#allocation10 + $0x1030] sm:$0xff]  ;;  %v2683_v4 = vld [vmem:[#allocation10 + $0x1018] sm:$0xff] }
 0x48a   :  { %v13184_v26 = vcombine.high %v2682_v22, %v2686_v24  ;;  %v13185_v33 = vcombine.low %v2683_v4, %v2687_v25 }
 0x48b   :  { %9154 = vmatpush1.bf16.msra.mxu0 %v13135_v27  ;;  %v13186_v27 = vcombine.high %v2683_v4, %v2687_v25  ;;  %v2730_v25 = vld [vmem:[#allocation10 + $0x1190] sm:$0xff] }
 0x48c   :  { %9482 = vmatpush1.bf16.msra.mxu1 %v13137_v28  ;;  %9155 = vmatprep.subr.bf16.mxu0 %v13144_v29  ;;  %v2690_v28 = vld [vmem:[#allocation10 + $0x1050] sm:$0xff] }
 0x48d   :  { %9483 = vmatprep.subr.bf16.mxu1 %v13146_v30  ;;  %v2694_v29 = vld [vmem:[#allocation10 + $0x1070] sm:$0xff]  ;;  %v13183_v30 = vcombine.low %v2682_v22, %v2686_v24 }
 0x48e   :  { %v13192_v50 = vcombine.high %v2690_v28, %v2694_v29  ;;  %v13191_v0 = vcombine.low %v2690_v28, %v2694_v29 }
 0x48f   :  { %9156 = vmatpush1.bf16.msra.mxu0 %v13143_v39  ;;  %v2698_v39 = vld [vmem:[#allocation10 + $0x1090] sm:$0xff] }
 0x490   :  { %9484 = vmatpush1.bf16.msra.mxu1 %v13145_v58  ;;  %9157 = vmatprep.subr.bf16.mxu0 %v13152_v41  ;;  %v2702_v58 = vld [vmem:[#allocation10 + $0x10b0] sm:$0xff]  ;;  %v13194_v41 = vcombine.high %v2691_v31, %v2695_v17 }
 0x491   :  { %9485 = vmatprep.subr.bf16.mxu1 %v13154_v40  ;;  %v2699_v40 = vld [vmem:[#allocation10 + $0x1098] sm:$0xff]  ;;  %v13200_v45 = vcombine.high %v2698_v39, %v2702_v58  ;;  %v13199_v49 = vcombine.low %v2698_v39, %v2702_v58  ;;  %v2738_v31 = vld [vmem:[#allocation10 + $0x11d0] sm:$0xff] }
 0x492   :  { %v2742_v17 = vld [vmem:[#allocation10 + $0x11f0] sm:$0xff] }
 0x493   :  { %9158 = vmatpush1.bf16.msra.mxu0 %v13151_v21  ;;  %v13202_v21 = vcombine.high %v2699_v40, %v2703_v43 }
 0x494   :  { %9486 = vmatpush1.bf16.msra.mxu1 %v13153_v47  ;;  %9159 = vmatprep.subr.bf16.mxu0 %v13160_v20  ;;  %v2706_v47 = vld [vmem:[#allocation10 + $0x10d0] sm:$0xff] }
 0x495   :  { %9487 = vmatprep.subr.bf16.mxu1 %v13162_v60  ;;  %v2710_v20 = vld [vmem:[#allocation10 + $0x10f0] sm:$0xff]  ;;  %v2707_v60 = vld [vmem:[#allocation10 + $0x10d8] sm:$0xff] }
 0x496   :  { %v13208_v55 = vcombine.high %v2706_v47, %v2710_v20  ;;  %v13210_v56 = vcombine.high %v2707_v60, %v2711_v7  ;;  %v13209_v8 = vcombine.low %v2707_v60, %v2711_v7  ;;  %v2754_v7 = vld [vmem:[#allocation10 + $0x1250] sm:$0xff] }
 0x497   :  { %9160 = vmatpush1.bf16.msra.mxu0 %v13159_v1  ;;  %v2714_v1 = vld [vmem:[#allocation10 + $0x1110] sm:$0xff] }
 0x498   :  { %9488 = vmatpush1.bf16.msra.mxu1 %v13161_v3  ;;  %9161 = vmatprep.subr.bf16.mxu0 %v13168_v6  ;;  %v2718_v3 = vld [vmem:[#allocation10 + $0x1130] sm:$0xff]  ;;  %v2715_v6 = vld [vmem:[#allocation10 + $0x1118] sm:$0xff] }
 0x499   :  { %9489 = vmatprep.subr.bf16.mxu1 %v13170_v5  ;;  %v2719_v5 = vld [vmem:[#allocation10 + $0x1138] sm:$0xff]  ;;  %v13216_v54 = vcombine.high %v2714_v1, %v2718_v3 }
 0x49a   :  { %v13218_v62 = vcombine.high %v2715_v6, %v2719_v5  ;;  %v13217_v22 = vcombine.low %v2715_v6, %v2719_v5  ;;  %v2762_v5 = vld [vmem:[#allocation10 + $0x1290] sm:$0xff] }
 0x49b   :  { %9162 = vmatpush1.bf16.msra.mxu0 %v13167_v16  ;;  %v2726_v16 = vld [vmem:[#allocation10 + $0x1170] sm:$0xff] }
 0x49c   :  { %9490 = vmatpush1.bf16.msra.mxu1 %v13169_v35  ;;  %9163 = vmatprep.subr.bf16.mxu0 %v13176_v34  ;;  %v2723_v35 = vld [vmem:[#allocation10 + $0x1158] sm:$0xff]  ;;  %v13224_v24 = vcombine.high %v2722_v11, %v2726_v16 }
 0x49d   :  { %9491 = vmatprep.subr.bf16.mxu1 %v13178_v52  ;;  %v2727_v34 = vld [vmem:[#allocation10 + $0x1178] sm:$0xff]  ;;  %v13215_v52 = vcombine.low %v2714_v1, %v2718_v3 }
 0x49e   :  { %v13226_v4 = vcombine.high %v2723_v35, %v2727_v34  ;;  %v13225_v28 = vcombine.low %v2723_v35, %v2727_v34  ;;  %v2770_v34 = vld [vmem:[#allocation10 + $0x12d0] sm:$0xff] }
 0x49f   :  { %9164 = vmatpush1.bf16.msra.mxu0 %v13175_v44  ;;  %v2734_v44 = vld [vmem:[#allocation10 + $0x11b0] sm:$0xff] }
 0x4a0   :  { %9492 = vmatpush1.bf16.msra.mxu1 %v13177_v15  ;;  %9174 = vmatprep.subr.bf16.mxu0 %v13184_v26  ;;  %v2731_v15 = vld [vmem:[#allocation10 + $0x1198] sm:$0xff]  ;;  %v13232_v29 = vcombine.high %v2730_v25, %v2734_v44  ;;  %v13231_v39 = vcombine.low %v2730_v25, %v2734_v44 }
 0x4a1   :  { %9502 = vmatprep.subr.bf16.mxu1 %v13186_v27  ;;  %v2735_v26 = vld [vmem:[#allocation10 + $0x11b8] sm:$0xff]  ;;  %v13223_v27 = vcombine.low %v2722_v11, %v2726_v16 }
 0x4a2   :  { %9166 = vmatmul.mubr.bf16.vlgmr.msra.gmra.mrb[20].mxu0 %v15346_v36  ;;  %v13233_v58 = vcombine.low %v2731_v15, %v2735_v26 }
 0x4a3   :  { %9494 = vmatmul.mubr.bf16.vlgmr.msra.gmra.mrb[20].mxu1 %v15346_v36  ;;  %9175 = vmatpush1.bf16.msra.mxu0 %v13183_v30  ;;  %v13201_v36 = vcombine.low %v2699_v40, %v2703_v43  ;;  %v13234_v30 = vcombine.high %v2731_v15, %v2735_v26  ;;  %v2746_v43 = vld [vmem:[#allocation10 + $0x1210] sm:$0xff] }
 0x4a4   :  { %9206 = vmatprep.mubr.bf16.mxu0 %v15348_v38  ;;  %9503 = vmatpush1.bf16.msra.mxu1 %v13185_v33  ;;  %v2739_v33 = vld [vmem:[#allocation10 + $0x11d8] sm:$0xff]  ;;  %v2778_v26 = vld [vmem:[#allocation10 + $0x1310] sm:$0xff] }
 0x4a5   :  { %9534 = vmatprep.mubr.bf16.mxu1 %v15348_v38  ;;  %9176 = vmatprep.subr.bf16.mxu0 %v13192_v50  ;;  %v13207_v38 = vcombine.low %v2706_v47, %v2710_v20  ;;  %v2743_v50 = vld [vmem:[#allocation10 + $0x11f8] sm:$0xff] }
 0x4a6   :  { %9504 = vmatprep.subr.bf16.mxu1 %v13194_v41  ;;  %v13240_v41 = vcombine.high %v2738_v31, %v2742_v17  ;;  %v13242_v40 = vcombine.high %v2739_v33, %v2743_v50  ;;  %v13241_v47 = vcombine.low %v2739_v33, %v2743_v50  ;;  %v2786_v50 = vld [vmem:[#allocation10 + $0x1350] sm:$0xff] }
 0x4a7   :  { %9177 = vmatpush1.bf16.msra.mxu0 %v13191_v0  ;;  %v2750_v0 = vld [vmem:[#allocation10 + $0x1230] sm:$0xff] }
 0x4a8   :  { %9505 = vmatpush1.bf16.msra.mxu1 %v13193_v12  ;;  %9178 = vmatprep.subr.bf16.mxu0 %v13200_v45  ;;  %v2747_v12 = vld [vmem:[#allocation10 + $0x1218] sm:$0xff]  ;;  %v13248_v20 = vcombine.high %v2746_v43, %v2750_v0 }
 0x4a9   :  { %9506 = vmatprep.subr.bf16.mxu1 %v13202_v21  ;;  %v2751_v45 = vld [vmem:[#allocation10 + $0x1238] sm:$0xff]  ;;  %v13239_v21 = vcombine.low %v2738_v31, %v2742_v17 }
 0x4aa   :  { %v13250_v60 = vcombine.high %v2747_v12, %v2751_v45  ;;  %v13249_v1 = vcombine.low %v2747_v12, %v2751_v45  ;;  %v2794_v45 = vld [vmem:[#allocation10 + $0x1390] sm:$0xff] }
 0x4ab   :  { %9179 = vmatpush1.bf16.msra.mxu0 %v13199_v49  ;;  %v2758_v49 = vld [vmem:[#allocation10 + $0x1270] sm:$0xff] }
 0x4ac   :  { %9507 = vmatpush1.bf16.msra.mxu1 %v13201_v36  ;;  %9180 = vmatprep.subr.bf16.mxu0 %v13208_v55  ;;  %v2755_v36 = vld [vmem:[#allocation10 + $0x1258] sm:$0xff]  ;;  %v13256_v3 = vcombine.high %v2754_v7, %v2758_v49 }
 0x4ad   :  { %9508 = vmatprep.subr.bf16.mxu1 %v13210_v56  ;;  %v2759_v55 = vld [vmem:[#allocation10 + $0x1278] sm:$0xff]  ;;  %v13247_v56 = vcombine.low %v2746_v43, %v2750_v0 }
 0x4ae   :  { %v13258_v6 = vcombine.high %v2755_v36, %v2759_v55  ;;  %v13257_v11 = vcombine.low %v2755_v36, %v2759_v55  ;;  %v2802_v55 = vld [vmem:[#allocation10 + $0x13d0] sm:$0xff] }
 0x4af   :  { %9181 = vmatpush1.bf16.msra.mxu0 %v13207_v38  ;;  %v2766_v38 = vld [vmem:[#allocation10 + $0x12b0] sm:$0xff] }
 0x4b0   :  { %9509 = vmatpush1.bf16.msra.mxu1 %v13209_v8  ;;  %9182 = vmatprep.subr.bf16.mxu0 %v13216_v54  ;;  %v2763_v8 = vld [vmem:[#allocation10 + $0x1298] sm:$0xff]  ;;  %v13264_v16 = vcombine.high %v2762_v5, %v2766_v38 }
 0x4b1   :  { %9510 = vmatprep.subr.bf16.mxu1 %v13218_v62  ;;  %v2767_v54 = vld [vmem:[#allocation10 + $0x12b8] sm:$0xff]  ;;  %v13255_v62 = vcombine.low %v2754_v7, %v2758_v49 }
 0x4b2   :  { %v13266_v35 = vcombine.high %v2763_v8, %v2767_v54  ;;  %v13265_v25 = vcombine.low %v2763_v8, %v2767_v54  ;;  %v2810_v54 = vld [vmem:[#allocation10 + $0x1410] sm:$0xff] }
 0x4b3   :  { %9183 = vmatpush1.bf16.msra.mxu0 %v13215_v52  ;;  %v2774_v52 = vld [vmem:[#allocation10 + $0x12f0] sm:$0xff] }
 0x4b4   :  { %9511 = vmatpush1.bf16.msra.mxu1 %v13217_v22  ;;  %9184 = vmatprep.subr.bf16.mxu0 %v13224_v24  ;;  %v2771_v22 = vld [vmem:[#allocation10 + $0x12d8] sm:$0xff]  ;;  %v13272_v44 = vcombine.high %v2770_v34, %v2774_v52 }
 0x4b5   :  { %9512 = vmatprep.subr.bf16.mxu1 %v13226_v4  ;;  %v2775_v24 = vld [vmem:[#allocation10 + $0x12f8] sm:$0xff]  ;;  %v13263_v4 = vcombine.low %v2762_v5, %v2766_v38 }
 0x4b6   :  { %v13274_v15 = vcombine.high %v2771_v22, %v2775_v24  ;;  %v13273_v31 = vcombine.low %v2771_v22, %v2775_v24  ;;  %v2818_v24 = vld [vmem:[#allocation10 + $0x1450] sm:$0xff] }
 0x4b7   :  { %9185 = vmatpush1.bf16.msra.mxu0 %v13223_v27  ;;  %v2782_v27 = vld [vmem:[#allocation10 + $0x1330] sm:$0xff] }
 0x4b8   :  { %9513 = vmatpush1.bf16.msra.mxu1 %v13225_v28  ;;  %9186 = vmatprep.subr.bf16.mxu0 %v13232_v29  ;;  %v2779_v28 = vld [vmem:[#allocation10 + $0x1318] sm:$0xff]  ;;  %v13280_v17 = vcombine.high %v2778_v26, %v2782_v27 }
 0x4b9   :  { %9514 = vmatprep.subr.bf16.mxu1 %v13234_v30  ;;  %v2783_v29 = vld [vmem:[#allocation10 + $0x1338] sm:$0xff]  ;;  %v13271_v30 = vcombine.low %v2770_v34, %v2774_v52 }
 0x4ba   :  { %v13282_v33 = vcombine.high %v2779_v28, %v2783_v29  ;;  %v13281_v43 = vcombine.low %v2779_v28, %v2783_v29  ;;  %v2826_v28 = vld [vmem:[#allocation10 + $0x1490] sm:$0xff] }
 0x4bb   :  { %9187 = vmatpush1.bf16.msra.mxu0 %v13231_v39  ;;  %v2790_v39 = vld [vmem:[#allocation10 + $0x1370] sm:$0xff] }
 0x4bc   :  { %9515 = vmatpush1.bf16.msra.mxu1 %v13233_v58  ;;  %9188 = vmatprep.subr.bf16.mxu0 %v13240_v41  ;;  %v2787_v58 = vld [vmem:[#allocation10 + $0x1358] sm:$0xff]  ;;  %v13288_v0 = vcombine.high %v2786_v50, %v2790_v39  ;;  %v2830_v29 = vld [vmem:[#allocation10 + $0x14b0] sm:$0xff] }
 0x4bd   :  { %9516 = vmatprep.subr.bf16.mxu1 %v13242_v40  ;;  %v2791_v41 = vld [vmem:[#allocation10 + $0x1378] sm:$0xff]  ;;  %v13279_v40 = vcombine.low %v2778_v26, %v2782_v27 }
 0x4be   :  { %v13290_v12 = vcombine.high %v2787_v58, %v2791_v41  ;;  %v13289_v7 = vcombine.low %v2787_v58, %v2791_v41  ;;  %v2834_v41 = vld [vmem:[#allocation10 + $0x14d0] sm:$0xff] }
 0x4bf   :  { %9189 = vmatpush1.bf16.msra.mxu0 %v13239_v21  ;;  %v2798_v21 = vld [vmem:[#allocation10 + $0x13b0] sm:$0xff] }
 0x4c0   :  { %9517 = vmatpush1.bf16.msra.mxu1 %v13241_v47  ;;  %9190 = vmatprep.subr.bf16.mxu0 %v13248_v20  ;;  %v2795_v47 = vld [vmem:[#allocation10 + $0x1398] sm:$0xff]  ;;  %v13296_v49 = vcombine.high %v2794_v45, %v2798_v21 }
 0x4c1   :  { %9518 = vmatprep.subr.bf16.mxu1 %v13250_v60  ;;  %v2799_v20 = vld [vmem:[#allocation10 + $0x13b8] sm:$0xff]  ;;  %v13287_v60 = vcombine.low %v2786_v50, %v2790_v39  ;;  %v13328_v39 = vcombine.high %v2826_v28, %v2830_v29 }
 0x4c2   :  { %v13298_v36 = vcombine.high %v2795_v47, %v2799_v20  ;;  %v13297_v5 = vcombine.low %v2795_v47, %v2799_v20  ;;  %v2842_v47 = vld [vmem:[#allocation10 + $0x1510] sm:$0xff] }
 0x4c3   :  { %9191 = vmatpush1.bf16.msra.mxu0 %v13247_v56  ;;  %v2806_v56 = vld [vmem:[#allocation10 + $0x13f0] sm:$0xff] }
 0x4c4   :  { %9519 = vmatpush1.bf16.msra.mxu1 %v13249_v1  ;;  %9192 = vmatprep.subr.bf16.mxu0 %v13256_v3  ;;  %v2803_v1 = vld [vmem:[#allocation10 + $0x13d8] sm:$0xff]  ;;  %v13304_v38 = vcombine.high %v2802_v55, %v2806_v56  ;;  %v2846_v20 = vld [vmem:[#allocation10 + $0x1530] sm:$0xff] }
 0x4c5   :  { %9520 = vmatprep.subr.bf16.mxu1 %v13258_v6  ;;  %v2807_v3 = vld [vmem:[#allocation10 + $0x13f8] sm:$0xff]  ;;  %v13295_v6 = vcombine.low %v2794_v45, %v2798_v21 }
 0x4c6   :  { %v13306_v8 = vcombine.high %v2803_v1, %v2807_v3  ;;  %v13305_v34 = vcombine.low %v2803_v1, %v2807_v3  ;;  %v2854_v1 = vld [vmem:[#allocation10 + $0x1570] sm:$0xff]  ;;  %v2851_v3 = vld [vmem:[#allocation10 + $0x1558] sm:$0xff] }
 0x4c7   :  { %9193 = vmatpush1.bf16.msra.mxu0 %v13255_v62  ;;  %v2814_v62 = vld [vmem:[#allocation10 + $0x1430] sm:$0xff] }
 0x4c8   :  { %9521 = vmatpush1.bf16.msra.mxu1 %v13257_v11  ;;  %9194 = vmatprep.subr.bf16.mxu0 %v13264_v16  ;;  %v2811_v11 = vld [vmem:[#allocation10 + $0x1418] sm:$0xff]  ;;  %v13312_v52 = vcombine.high %v2810_v54, %v2814_v62 }
 0x4c9   :  { %9522 = vmatprep.subr.bf16.mxu1 %v13266_v35  ;;  %v2815_v16 = vld [vmem:[#allocation10 + $0x1438] sm:$0xff]  ;;  %v13303_v35 = vcombine.low %v2802_v55, %v2806_v56  ;;  %v2850_v56 = vld [vmem:[#allocation10 + $0x1550] sm:$0xff] }
 0x4ca   :  { %v13314_v22 = vcombine.high %v2811_v11, %v2815_v16  ;;  %v13313_v26 = vcombine.low %v2811_v11, %v2815_v16  ;;  %v2862_v11 = vld [vmem:[#allocation10 + $0x15b0] sm:$0xff]  ;;  %v2859_v16 = vld [vmem:[#allocation10 + $0x1598] sm:$0xff] }
 0x4cb   :  { %9195 = vmatpush1.bf16.msra.mxu0 %v13263_v4  ;;  %v2822_v4 = vld [vmem:[#allocation10 + $0x1470] sm:$0xff] }
 0x4cc   :  { %9523 = vmatpush1.bf16.msra.mxu1 %v13265_v25  ;;  %9196 = vmatprep.subr.bf16.mxu0 %v13272_v44  ;;  %v13311_v25 = vcombine.low %v2810_v54, %v2814_v62  ;;  %v2819_v44 = vld [vmem:[#allocation10 + $0x1458] sm:$0xff]  ;;  %v13320_v27 = vcombine.high %v2818_v24, %v2822_v4  ;;  %v2858_v62 = vld [vmem:[#allocation10 + $0x1590] sm:$0xff] }
 0x4cd   :  { %9524 = vmatprep.subr.bf16.mxu1 %v13274_v15  ;;  %v2823_v15 = vld [vmem:[#allocation10 + $0x1478] sm:$0xff] }
 0x4ce   :  { %v13321_v50 = vcombine.low %v2819_v44, %v2823_v15 }
 0x4cf   :  { %9197 = vmatpush1.bf16.msra.mxu0 %v13271_v30  ;;  %v13322_v30 = vcombine.high %v2819_v44, %v2823_v15  ;;  %v2867_v44 = vld [vmem:[#allocation10 + $0x15d8] sm:$0xff] }
 0x4d0   :  { %9525 = vmatpush1.bf16.msra.mxu1 %v13273_v31  ;;  %9198 = vmatprep.subr.bf16.mxu0 %v13280_v17  ;;  %v2827_v31 = vld [vmem:[#allocation10 + $0x1498] sm:$0xff] }
 0x4d1   :  { %9526 = vmatprep.subr.bf16.mxu1 %v13282_v33  ;;  %v2831_v17 = vld [vmem:[#allocation10 + $0x14b8] sm:$0xff]  ;;  %v13319_v33 = vcombine.low %v2818_v24, %v2822_v4  ;;  %v2866_v4 = vld [vmem:[#allocation10 + $0x15d0] sm:$0xff] }
 0x4d2   :  { %v13330_v58 = vcombine.high %v2827_v31, %v2831_v17  ;;  %v2871_v15 = vld [vmem:[#allocation10 + $0x15f8] sm:$0xff] }
 0x4d3   :  { %9199 = vmatpush1.bf16.msra.mxu0 %v13279_v40  ;;  %v2838_v40 = vld [vmem:[#allocation10 + $0x14f0] sm:$0xff] }
 0x4d4   :  { %9527 = vmatpush1.bf16.msra.mxu1 %v13281_v43  ;;  %9200 = vmatprep.subr.bf16.mxu0 %v13288_v0  ;;  %v2835_v43 = vld [vmem:[#allocation10 + $0x14d8] sm:$0xff]  ;;  %v13336_v45 = vcombine.high %v2834_v41, %v2838_v40 }
 0x4d5   :  { %9528 = vmatprep.subr.bf16.mxu1 %v13290_v12  ;;  %v2839_v0 = vld [vmem:[#allocation10 + $0x14f8] sm:$0xff]  ;;  %v13327_v12 = vcombine.low %v2826_v28, %v2830_v29  ;;  %v13370_v29 = vcombine.high %v2867_v44, %v2871_v15 }
 0x4d6   :  { %v13338_v21 = vcombine.high %v2835_v43, %v2839_v0 }
 0x4d7   :  { %9201 = vmatpush1.bf16.msra.mxu0 %v13287_v60  ;;  %v2843_v60 = vld [vmem:[#allocation10 + $0x1518] sm:$0xff] }
 0x4d8   :  { %9529 = vmatpush1.bf16.msra.mxu1 %v13289_v7  ;;  %9202 = vmatprep.subr.bf16.mxu0 %v13296_v49  ;;  %v2847_v7 = vld [vmem:[#allocation10 + $0x1538] sm:$0xff]  ;;  %v13337_v49 = vcombine.low %v2835_v43, %v2839_v0  ;;  %v2886_v43 = vld [vmem:[#allocation10 + $0x1670] sm:$0xff] }
 0x4d9   :  { %9530 = vmatprep.subr.bf16.mxu1 %v13298_v36  ;;  %v13344_v36 = vcombine.high %v2842_v47, %v2846_v20  ;;  %v13346_v55 = vcombine.high %v2843_v60, %v2847_v7  ;;  %v2883_v0 = vld [vmem:[#allocation10 + $0x1658] sm:$0xff] }
 0x4db   :  { %9203 = vmatpush1.bf16.msra.mxu0 %v13295_v6  ;;  %v2855_v6 = vld [vmem:[#allocation10 + $0x1578] sm:$0xff] }
 0x4dc   :  { %9531 = vmatpush1.bf16.msra.mxu1 %v13297_v5  ;;  %9204 = vmatprep.subr.bf16.mxu0 %v13304_v38  ;;  %v13343_v5 = vcombine.low %v2842_v47, %v2846_v20  ;;  %v13345_v38 = vcombine.low %v2843_v60, %v2847_v7  ;;  %v13354_v54 = vcombine.high %v2851_v3, %v2855_v6  ;;  %v2890_v20 = vld [vmem:[#allocation10 + $0x1690] sm:$0xff]  ;;  %v2891_v7 = vld [vmem:[#allocation10 + $0x1698] sm:$0xff] }
 0x4dd   :  { %9532 = vmatprep.subr.bf16.mxu1 %v13306_v8  ;;  %v13352_v8 = vcombine.high %v2850_v56, %v2854_v1  ;;  %v2894_v60 = vld [vmem:[#allocation10 + $0x16b0] sm:$0xff] }
 0x4df   :  { %9205 = vmatpush1.bf16.msra.mxu0 %v13303_v35  ;;  %v2863_v35 = vld [vmem:[#allocation10 + $0x15b8] sm:$0xff] }
 0x4e0   :  { %9533 = vmatpush1.bf16.msra.mxu1 %v13305_v34  ;;  %9215 = vmatprep.subr.bf16.mxu0 %v13312_v52  ;;  %v13351_v34 = vcombine.low %v2850_v56, %v2854_v1  ;;  %v13353_v52 = vcombine.low %v2851_v3, %v2855_v6  ;;  %v13362_v24 = vcombine.high %v2859_v16, %v2863_v35  ;;  %v2898_v1 = vld [vmem:[#allocation10 + $0x16d0] sm:$0xff]  ;;  %v2899_v6 = vld [vmem:[#allocation10 + $0x16d8] sm:$0xff] }
 0x4e1   :  { %9543 = vmatprep.subr.bf16.mxu1 %v13314_v22  ;;  %v13360_v22 = vcombine.high %v2858_v62, %v2862_v11  ;;  %v2902_v3 = vld [vmem:[#allocation10 + $0x16f0] sm:$0xff] }
 0x4e2   :  { %9207 = vmatmul.mubr.bf16.vlgmr.msra.gmra.mrb[20].mxu0 %v15362_v14 }
 0x4e3   :  { %9535 = vmatmul.mubr.bf16.vlgmr.msra.gmra.mrb[20].mxu1 %v15362_v14  ;;  %9216 = vmatpush1.bf16.msra.mxu0 %v13311_v25  ;;  %v13329_v14 = vcombine.low %v2827_v31, %v2831_v17  ;;  %v2870_v25 = vld [vmem:[#allocation10 + $0x15f0] sm:$0xff]  ;;  %v2875_v17 = vld [vmem:[#allocation10 + $0x1618] sm:$0xff] }
 0x4e4   :  { %9247 = vmatprep.mubr.bf16.mxu0 %v15364_v23  ;;  %9544 = vmatpush1.bf16.msra.mxu1 %v13313_v26  ;;  %v13359_v26 = vcombine.low %v2858_v62, %v2862_v11  ;;  %v13368_v28 = vcombine.high %v2866_v4, %v2870_v25  ;;  %v2878_v31 = vld [vmem:[#allocation10 + $0x1630] sm:$0xff] }
 0x4e5   :  { %9575 = vmatprep.mubr.bf16.mxu1 %v15364_v23  ;;  %9217 = vmatprep.subr.bf16.mxu0 %v13320_v27  ;;  %v13335_v23 = vcombine.low %v2834_v41, %v2838_v40  ;;  %v13361_v27 = vcombine.low %v2859_v16, %v2863_v35  ;;  %v2882_v40 = vld [vmem:[#allocation10 + $0x1650] sm:$0xff]  ;;  %v2907_v35 = vld [vmem:[#allocation10 + $0x1718] sm:$0xff] }
 0x4e6   :  { %9545 = vmatprep.subr.bf16.mxu1 %v13322_v30  ;;  %v2874_v30 = vld [vmem:[#allocation10 + $0x1610] sm:$0xff] }
 0x4e7   :  { %9218 = vmatpush1.bf16.msra.mxu0 %v13319_v33  ;;  %v2879_v33 = vld [vmem:[#allocation10 + $0x1638] sm:$0xff]  ;;  %v2906_v11 = vld [vmem:[#allocation10 + $0x1710] sm:$0xff] }
 0x4e8   :  { %9546 = vmatpush1.bf16.msra.mxu1 %v13321_v50  ;;  %9219 = vmatprep.subr.bf16.mxu0 %v13328_v39  ;;  %v13367_v50 = vcombine.low %v2866_v4, %v2870_v25  ;;  %v13369_v39 = vcombine.low %v2867_v44, %v2871_v15  ;;  %v13378_v41 = vcombine.high %v2875_v17, %v2879_v33  ;;  %v2910_v16 = vld [vmem:[#allocation10 + $0x1730] sm:$0xff]  ;;  %v2915_v15 = vld [vmem:[#allocation10 + $0x1758] sm:$0xff] }
 0x4e9   :  { %9547 = vmatprep.subr.bf16.mxu1 %v13330_v58  ;;  %v13376_v58 = vcombine.high %v2874_v30, %v2878_v31  ;;  %v2914_v25 = vld [vmem:[#allocation10 + $0x1750] sm:$0xff] }
 0x4ea   :  { %v2918_v44 = vld [vmem:[#allocation10 + $0x1770] sm:$0xff] }
 0x4eb   :  { %9220 = vmatpush1.bf16.msra.mxu0 %v13327_v12  ;;  %v2887_v12 = vld [vmem:[#allocation10 + $0x1678] sm:$0xff] }
 0x4ec   :  { %9548 = vmatpush1.bf16.msra.mxu1 %v13329_v14  ;;  %9221 = vmatprep.subr.bf16.mxu0 %v13336_v45  ;;  %v13375_v14 = vcombine.low %v2874_v30, %v2878_v31  ;;  %v13377_v45 = vcombine.low %v2875_v17, %v2879_v33  ;;  %v13386_v47 = vcombine.high %v2883_v0, %v2887_v12  ;;  %v2922_v31 = vld [vmem:[#allocation10 + $0x1790] sm:$0xff]  ;;  %v2923_v33 = vld [vmem:[#allocation10 + $0x1798] sm:$0xff] }
 0x4ed   :  { %9549 = vmatprep.subr.bf16.mxu1 %v13338_v21  ;;  %v13384_v21 = vcombine.high %v2882_v40, %v2886_v43  ;;  %v2926_v17 = vld [vmem:[#allocation10 + $0x17b0] sm:$0xff] }
 0x4ef   :  { %9222 = vmatpush1.bf16.msra.mxu0 %v13335_v23  ;;  %v2895_v23 = vld [vmem:[#allocation10 + $0x16b8] sm:$0xff] }
 0x4f0   :  { %9550 = vmatpush1.bf16.msra.mxu1 %v13337_v49  ;;  %9223 = vmatprep.subr.bf16.mxu0 %v13344_v36  ;;  %v13383_v49 = vcombine.low %v2882_v40, %v2886_v43  ;;  %v13385_v36 = vcombine.low %v2883_v0, %v2887_v12  ;;  %v13394_v56 = vcombine.high %v2891_v7, %v2895_v23  ;;  %v2930_v43 = vld [vmem:[#allocation10 + $0x17d0] sm:$0xff]  ;;  %v2931_v12 = vld [vmem:[#allocation10 + $0x17d8] sm:$0xff] }
 0x4f1   :  { %9551 = vmatprep.subr.bf16.mxu1 %v13346_v55  ;;  %v13392_v55 = vcombine.high %v2890_v20, %v2894_v60  ;;  %v2934_v0 = vld [vmem:[#allocation10 + $0x17f0] sm:$0xff] }
 0x4f3   :  { %9224 = vmatpush1.bf16.msra.mxu0 %v13343_v5  ;;  %v2903_v5 = vld [vmem:[#allocation10 + $0x16f8] sm:$0xff] }
 0x4f4   :  { %9552 = vmatpush1.bf16.msra.mxu1 %v13345_v38  ;;  %9225 = vmatprep.subr.bf16.mxu0 %v13352_v8  ;;  %v13391_v38 = vcombine.low %v2890_v20, %v2894_v60  ;;  %v13393_v8 = vcombine.low %v2891_v7, %v2895_v23  ;;  %v13402_v62 = vcombine.high %v2899_v6, %v2903_v5  ;;  %v2938_v60 = vld [vmem:[#allocation10 + $0x1810] sm:$0xff]  ;;  %v2939_v23 = vld [vmem:[#allocation10 + $0x1818] sm:$0xff] }
 0x4f5   :  { %9553 = vmatprep.subr.bf16.mxu1 %v13354_v54  ;;  %v13400_v54 = vcombine.high %v2898_v1, %v2902_v3  ;;  %v2942_v7 = vld [vmem:[#allocation10 + $0x1830] sm:$0xff] }
 0x4f7   :  { %9226 = vmatpush1.bf16.msra.mxu0 %v13351_v34  ;;  %v2911_v34 = vld [vmem:[#allocation10 + $0x1738] sm:$0xff] }
 0x4f8   :  { %9554 = vmatpush1.bf16.msra.mxu1 %v13353_v52  ;;  %9227 = vmatprep.subr.bf16.mxu0 %v13360_v22  ;;  %v13399_v52 = vcombine.low %v2898_v1, %v2902_v3  ;;  %v13401_v22 = vcombine.low %v2899_v6, %v2903_v5  ;;  %v13410_v4 = vcombine.high %v2907_v35, %v2911_v34  ;;  %v2946_v3 = vld [vmem:[#allocation10 + $0x1850] sm:$0xff] }
 0x4f9   :  { %9555 = vmatprep.subr.bf16.mxu1 %v13362_v24  ;;  %v13408_v24 = vcombine.high %v2906_v11, %v2910_v16  ;;  %v2950_v6 = vld [vmem:[#allocation10 + $0x1870] sm:$0xff]  ;;  %v13439_v5 = vcombine.low %v2938_v60, %v2942_v7 }
 0x4fb   :  { %9228 = vmatpush1.bf16.msra.mxu0 %v13359_v26  ;;  %v2919_v26 = vld [vmem:[#allocation10 + $0x1778] sm:$0xff] }
 0x4fc   :  { %9556 = vmatpush1.bf16.msra.mxu1 %v13361_v27  ;;  %9229 = vmatprep.subr.bf16.mxu0 %v13368_v28  ;;  %v13407_v27 = vcombine.low %v2906_v11, %v2910_v16  ;;  %v13409_v28 = vcombine.low %v2907_v35, %v2911_v34  ;;  %v13418_v30 = vcombine.high %v2915_v15, %v2919_v26  ;;  %v2954_v11 = vld [vmem:[#allocation10 + $0x1890] sm:$0xff]  ;;  %v2955_v34 = vld [vmem:[#allocation10 + $0x1898] sm:$0xff] }
 0x4fd   :  { %9557 = vmatprep.subr.bf16.mxu1 %v13370_v29  ;;  %v13416_v29 = vcombine.high %v2914_v25, %v2918_v44  ;;  %v2958_v16 = vld [vmem:[#allocation10 + $0x18b0] sm:$0xff] }
 0x4ff   :  { %9230 = vmatpush1.bf16.msra.mxu0 %v13367_v50  ;;  %v2927_v50 = vld [vmem:[#allocation10 + $0x17b8] sm:$0xff] }
 0x500   :  { %9558 = vmatpush1.bf16.msra.mxu1 %v13369_v39  ;;  %9231 = vmatprep.subr.bf16.mxu0 %v13376_v58  ;;  %v13415_v39 = vcombine.low %v2914_v25, %v2918_v44  ;;  %v13417_v58 = vcombine.low %v2915_v15, %v2919_v26  ;;  %v13426_v40 = vcombine.high %v2923_v33, %v2927_v50  ;;  %v2962_v44 = vld [vmem:[#allocation10 + $0x18d0] sm:$0xff]  ;;  %v2963_v26 = vld [vmem:[#allocation10 + $0x18d8] sm:$0xff] }
 0x501   :  { %9559 = vmatprep.subr.bf16.mxu1 %v13378_v41  ;;  %v13424_v41 = vcombine.high %v2922_v31, %v2926_v17  ;;  %v2966_v15 = vld [vmem:[#allocation10 + $0x18f0] sm:$0xff] }
 0x503   :  { %9232 = vmatpush1.bf16.msra.mxu0 %v13375_v14  ;;  %v2935_v14 = vld [vmem:[#allocation10 + $0x17f8] sm:$0xff] }
 0x504   :  { %9560 = vmatpush1.bf16.msra.mxu1 %v13377_v45  ;;  %9233 = vmatprep.subr.bf16.mxu0 %v13384_v21  ;;  %v13423_v45 = vcombine.low %v2922_v31, %v2926_v17  ;;  %v13425_v21 = vcombine.low %v2923_v33, %v2927_v50  ;;  %v13434_v20 = vcombine.high %v2931_v12, %v2935_v14  ;;  %v2970_v31 = vld [vmem:[#allocation10 + $0x1910] sm:$0xff]  ;;  %v2971_v33 = vld [vmem:[#allocation10 + $0x1918] sm:$0xff] }
 0x505   :  { %9561 = vmatprep.subr.bf16.mxu1 %v13386_v47  ;;  %v13432_v47 = vcombine.high %v2930_v43, %v2934_v0  ;;  %v2974_v17 = vld [vmem:[#allocation10 + $0x1930] sm:$0xff]  ;;  %v2975_v50 = vld [vmem:[#allocation10 + $0x1938] sm:$0xff] }
 0x507   :  { %9234 = vmatpush1.bf16.msra.mxu0 %v13383_v49  ;;  %v2943_v49 = vld [vmem:[#allocation10 + $0x1838] sm:$0xff] }
 0x508   :  { %9562 = vmatpush1.bf16.msra.mxu1 %v13385_v36  ;;  %9235 = vmatprep.subr.bf16.mxu0 %v13392_v55  ;;  %v13431_v36 = vcombine.low %v2930_v43, %v2934_v0  ;;  %v13433_v55 = vcombine.low %v2931_v12, %v2935_v14  ;;  %v13442_v1 = vcombine.high %v2939_v23, %v2943_v49  ;;  %v2982_v43 = vld [vmem:[#allocation10 + $0x1970] sm:$0xff]  ;;  %v2979_v0 = vld [vmem:[#allocation10 + $0x1958] sm:$0xff] }
 0x509   :  { %9563 = vmatprep.subr.bf16.mxu1 %v13394_v56  ;;  %v13440_v56 = vcombine.high %v2938_v60, %v2942_v7  ;;  %v2983_v12 = vld [vmem:[#allocation10 + $0x1978] sm:$0xff]  ;;  %v13471_v14 = vcombine.low %v2970_v31, %v2974_v17  ;;  %v2990_v60 = vld [vmem:[#allocation10 + $0x19b0] sm:$0xff] }
 0x50a   :  { %v2987_v7 = vld [vmem:[#allocation10 + $0x1998] sm:$0xff] }
 0x50b   :  { %9236 = vmatpush1.bf16.msra.mxu0 %v13391_v38  ;;  %v2947_v38 = vld [vmem:[#allocation10 + $0x1858] sm:$0xff] }
 0x50c   :  { %9564 = vmatpush1.bf16.msra.mxu1 %v13393_v8  ;;  %9237 = vmatprep.subr.bf16.mxu0 %v13400_v54  ;;  %v2951_v8 = vld [vmem:[#allocation10 + $0x1878] sm:$0xff]  ;;  %v13441_v54 = vcombine.low %v2939_v23, %v2943_v49 }
 0x50d   :  { %9565 = vmatprep.subr.bf16.mxu1 %v13402_v62  ;;  %v13448_v62 = vcombine.high %v2946_v3, %v2950_v6  ;;  %v13450_v35 = vcombine.high %v2947_v38, %v2951_v8  ;;  %v2991_v23 = vld [vmem:[#allocation10 + $0x19b8] sm:$0xff] }
 0x50f   :  { %9238 = vmatpush1.bf16.msra.mxu0 %v13399_v52  ;;  %v2959_v52 = vld [vmem:[#allocation10 + $0x18b8] sm:$0xff] }
 0x510   :  { %9566 = vmatpush1.bf16.msra.mxu1 %v13401_v22  ;;  %9239 = vmatprep.subr.bf16.mxu0 %v13408_v24  ;;  %v13447_v22 = vcombine.low %v2946_v3, %v2950_v6  ;;  %v13449_v24 = vcombine.low %v2947_v38, %v2951_v8  ;;  %v13458_v25 = vcombine.high %v2955_v34, %v2959_v52  ;;  %v2998_v3 = vld [vmem:[#allocation10 + $0x19f0] sm:$0xff]  ;;  %v2995_v6 = vld [vmem:[#allocation10 + $0x19d8] sm:$0xff] }
 0x511   :  { %9567 = vmatprep.subr.bf16.mxu1 %v13410_v4  ;;  %v13456_v4 = vcombine.high %v2954_v11, %v2958_v16  ;;  %v13489_v8 = vcombine.low %v2987_v7, %v2991_v23 }
 0x513   :  { %9240 = vmatpush1.bf16.msra.mxu0 %v13407_v27  ;;  %v2967_v27 = vld [vmem:[#allocation10 + $0x18f8] sm:$0xff] }
 0x514   :  { %9568 = vmatpush1.bf16.msra.mxu1 %v13409_v28  ;;  %9241 = vmatprep.subr.bf16.mxu0 %v13416_v29  ;;  %v13455_v28 = vcombine.low %v2954_v11, %v2958_v16  ;;  %v13464_v29 = vcombine.high %v2962_v44, %v2966_v15  ;;  %v3002_v11 = vld [vmem:[#allocation10 + $0x1a10] sm:$0xff] }
 0x515   :  { %9569 = vmatprep.subr.bf16.mxu1 %v13418_v30  ;;  %v13466_v30 = vcombine.high %v2963_v26, %v2967_v27  ;;  %v3006_v16 = vld [vmem:[#allocation10 + $0x1a30] sm:$0xff] }
 0x517   :  { %9242 = vmatpush1.bf16.msra.mxu0 %v13415_v39  ;;  %v13465_v39 = vcombine.low %v2963_v26, %v2967_v27  ;;  %v3015_v26 = vld [vmem:[#allocation10 + $0x1a78] sm:$0xff]  ;;  %v13503_v27 = vcombine.low %v3002_v11, %v3006_v16 }
 0x518   :  { %9570 = vmatpush1.bf16.msra.mxu1 %v13417_v58  ;;  %9243 = vmatprep.subr.bf16.mxu0 %v13424_v41  ;;  %v13472_v58 = vcombine.high %v2970_v31, %v2974_v17  ;;  %v13474_v41 = vcombine.high %v2971_v33, %v2975_v50  ;;  %v3022_v31 = vld [vmem:[#allocation10 + $0x1ab0] sm:$0xff]  ;;  %v3019_v17 = vld [vmem:[#allocation10 + $0x1a98] sm:$0xff] }
 0x519   :  { %9571 = vmatprep.subr.bf16.mxu1 %v13426_v40  ;;  %v2978_v40 = vld [vmem:[#allocation10 + $0x1950] sm:$0xff] }
 0x51a   :  { %v13479_v49 = vcombine.low %v2978_v40, %v2982_v43 }
 0x51b   :  { %9244 = vmatpush1.bf16.msra.mxu0 %v13423_v45  ;;  %v13473_v45 = vcombine.low %v2971_v33, %v2975_v50  ;;  %v3023_v33 = vld [vmem:[#allocation10 + $0x1ab8] sm:$0xff] }
 0x51c   :  { %9572 = vmatpush1.bf16.msra.mxu1 %v13425_v21  ;;  %9245 = vmatprep.subr.bf16.mxu0 %v13432_v47  ;;  %v13480_v21 = vcombine.high %v2978_v40, %v2982_v43  ;;  %v13482_v47 = vcombine.high %v2979_v0, %v2983_v12  ;;  %v3030_v40 = vld [vmem:[#allocation10 + $0x1af0] sm:$0xff]  ;;  %v3027_v43 = vld [vmem:[#allocation10 + $0x1ad8] sm:$0xff] }
 0x51d   :  { %9573 = vmatprep.subr.bf16.mxu1 %v13434_v20  ;;  %v2986_v20 = vld [vmem:[#allocation10 + $0x1990] sm:$0xff] }
 0x51e   :  { %v13487_v38 = vcombine.low %v2986_v20, %v2990_v60 }
 0x51f   :  { %9246 = vmatpush1.bf16.msra.mxu0 %v13431_v36  ;;  %v13481_v36 = vcombine.low %v2979_v0, %v2983_v12  ;;  %v3031_v0 = vld [vmem:[#allocation10 + $0x1af8] sm:$0xff] }
 0x520   :  { %9574 = vmatpush1.bf16.msra.mxu1 %v13433_v55  ;;  %9256 = vmatprep.subr.bf16.mxu0 %v13440_v56  ;;  %v13488_v55 = vcombine.high %v2986_v20, %v2990_v60  ;;  %v13490_v56 = vcombine.high %v2987_v7, %v2991_v23  ;;  %v3038_v20 = vld [vmem:[#allocation10 + $0x1b30] sm:$0xff]  ;;  %v3035_v60 = vld [vmem:[#allocation10 + $0x1b18] sm:$0xff] }
 0x521   :  { %9584 = vmatprep.subr.bf16.mxu1 %v13442_v1  ;;  %v2994_v1 = vld [vmem:[#allocation10 + $0x19d0] sm:$0xff]  ;;  %v3039_v7 = vld [vmem:[#allocation10 + $0x1b38] sm:$0xff] }
 0x522   :  { %9248 = vmatmul.mubr.bf16.vlgmr.msra.gmra.mrb[20].mxu0 %v15378_v51 }
 0x523   :  { %9576 = vmatmul.mubr.bf16.vlgmr.msra.gmra.mrb[20].mxu1 %v15378_v51  ;;  %9257 = vmatpush1.bf16.msra.mxu0 %v13439_v5  ;;  %v13457_v51 = vcombine.low %v2955_v34, %v2959_v52  ;;  %v2999_v5 = vld [vmem:[#allocation10 + $0x19f8] sm:$0xff]  ;;  %v13495_v52 = vcombine.low %v2994_v1, %v2998_v3 }
 0x524   :  { %9288 = vmatprep.mubr.bf16.mxu0 %v15380_v42  ;;  %9585 = vmatpush1.bf16.msra.mxu1 %v13441_v54  ;;  %v13496_v54 = vcombine.high %v2994_v1, %v2998_v3  ;;  %v3007_v34 = vld [vmem:[#allocation10 + $0x1a38] sm:$0xff]  ;;  %v3046_v1 = vld [vmem:[#allocation10 + $0x1b70] sm:$0xff] }
 0x525   :  { %9616 = vmatprep.mubr.bf16.mxu1 %v15380_v42  ;;  %9258 = vmatprep.subr.bf16.mxu0 %v13448_v62  ;;  %v13463_v42 = vcombine.low %v2962_v44, %v2966_v15  ;;  %v13498_v62 = vcombine.high %v2995_v6, %v2999_v5  ;;  %v3014_v44 = vld [vmem:[#allocation10 + $0x1a70] sm:$0xff]  ;;  %v3011_v15 = vld [vmem:[#allocation10 + $0x1a58] sm:$0xff] }
 0x526   :  { %9586 = vmatprep.subr.bf16.mxu1 %v13450_v35  ;;  %v3003_v35 = vld [vmem:[#allocation10 + $0x1a18] sm:$0xff] }
 0x527   :  { %9259 = vmatpush1.bf16.msra.mxu0 %v13447_v22  ;;  %v13497_v22 = vcombine.low %v2995_v6, %v2999_v5  ;;  %v3043_v3 = vld [vmem:[#allocation10 + $0x1b58] sm:$0xff] }
 0x528   :  { %9587 = vmatpush1.bf16.msra.mxu1 %v13449_v24  ;;  %9260 = vmatprep.subr.bf16.mxu0 %v13456_v4  ;;  %v13504_v24 = vcombine.high %v3002_v11, %v3006_v16  ;;  %v13506_v4 = vcombine.high %v3003_v35, %v3007_v34  ;;  %v3047_v6 = vld [vmem:[#allocation10 + $0x1b78] sm:$0xff]  ;;  %v3054_v11 = vld [vmem:[#allocation10 + $0x1bb0] sm:$0xff] }
 0x529   :  { %9588 = vmatprep.subr.bf16.mxu1 %v13458_v25  ;;  %v3010_v25 = vld [vmem:[#allocation10 + $0x1a50] sm:$0xff]  ;;  %v3051_v16 = vld [vmem:[#allocation10 + $0x1b98] sm:$0xff] }
 0x52a   :  { %v13511_v50 = vcombine.low %v3010_v25, %v3014_v44 }
 0x52b   :  { %9261 = vmatpush1.bf16.msra.mxu0 %v13455_v28  ;;  %v13505_v28 = vcombine.low %v3003_v35, %v3007_v34  ;;  %v3055_v35 = vld [vmem:[#allocation10 + $0x1bb8] sm:$0xff] }
 0x52c   :  { %9589 = vmatpush1.bf16.msra.mxu1 %v13457_v51  ;;  %9262 = vmatprep.subr.bf16.mxu0 %v13464_v29  ;;  %v13512_v51 = vcombine.high %v3010_v25, %v3014_v44  ;;  %v13514_v29 = vcombine.high %v3011_v15, %v3015_v26  ;;  %v3062_v25 = vld [vmem:[#allocation10 + $0x1bf0] sm:$0xff]  ;;  %v3059_v44 = vld [vmem:[#allocation10 + $0x1bd8] sm:$0xff] }
 0x52d   :  { %9590 = vmatprep.subr.bf16.mxu1 %v13466_v30  ;;  %v3018_v30 = vld [vmem:[#allocation10 + $0x1a90] sm:$0xff] }
 0x52e   :  { %v13519_v12 = vcombine.low %v3018_v30, %v3022_v31 }
 0x52f   :  { %9263 = vmatpush1.bf16.msra.mxu0 %v13463_v42  ;;  %v13513_v42 = vcombine.low %v3011_v15, %v3015_v26  ;;  %v3063_v15 = vld [vmem:[#allocation10 + $0x1bf8] sm:$0xff] }
 0x530   :  { %9591 = vmatpush1.bf16.msra.mxu1 %v13465_v39  ;;  %9264 = vmatprep.subr.bf16.mxu0 %v13472_v58  ;;  %v13520_v39 = vcombine.high %v3018_v30, %v3022_v31  ;;  %v13522_v58 = vcombine.high %v3019_v17, %v3023_v33  ;;  %v3070_v30 = vld [vmem:[#allocation10 + $0x1c30] sm:$0xff]  ;;  %v3067_v31 = vld [vmem:[#allocation10 + $0x1c18] sm:$0xff] }
 0x531   :  { %9592 = vmatprep.subr.bf16.mxu1 %v13474_v41  ;;  %v3026_v41 = vld [vmem:[#allocation10 + $0x1ad0] sm:$0xff] }
 0x532   :  { %v13527_v23 = vcombine.low %v3026_v41, %v3030_v40 }
 0x533   :  { %9265 = vmatpush1.bf16.msra.mxu0 %v13471_v14  ;;  %v13521_v14 = vcombine.low %v3019_v17, %v3023_v33  ;;  %v3071_v17 = vld [vmem:[#allocation10 + $0x1c38] sm:$0xff] }
 0x534   :  { %9593 = vmatpush1.bf16.msra.mxu1 %v13473_v45  ;;  %9266 = vmatprep.subr.bf16.mxu0 %v13480_v21  ;;  %v13528_v45 = vcombine.high %v3026_v41, %v3030_v40  ;;  %v13530_v21 = vcombine.high %v3027_v43, %v3031_v0  ;;  %v3078_v41 = vld [vmem:[#allocation10 + $0x1c70] sm:$0xff] }
 0x535   :  { %9594 = vmatprep.subr.bf16.mxu1 %v13482_v47  ;;  %v3034_v47 = vld [vmem:[#allocation10 + $0x1b10] sm:$0xff] }
 0x536   :  { %v13535_v5 = vcombine.low %v3034_v47, %v3038_v20 }
 0x537   :  { %9267 = vmatpush1.bf16.msra.mxu0 %v13479_v49  ;;  %v13529_v49 = vcombine.low %v3027_v43, %v3031_v0  ;;  %v3075_v43 = vld [vmem:[#allocation10 + $0x1c58] sm:$0xff] }
 0x538   :  { %9595 = vmatpush1.bf16.msra.mxu1 %v13481_v36  ;;  %9268 = vmatprep.subr.bf16.mxu0 %v13488_v55  ;;  %v13536_v36 = vcombine.high %v3034_v47, %v3038_v20  ;;  %v13538_v55 = vcombine.high %v3035_v60, %v3039_v7  ;;  %v3079_v0 = vld [vmem:[#allocation10 + $0x1c78] sm:$0xff] }
 0x539   :  { %9596 = vmatprep.subr.bf16.mxu1 %v13490_v56  ;;  %v3042_v56 = vld [vmem:[#allocation10 + $0x1b50] sm:$0xff]  ;;  %v13578_v47 = vcombine.high %v3075_v43, %v3079_v0  ;;  %v3083_v20 = vld [vmem:[#allocation10 + $0x1c98] sm:$0xff] }
 0x53a   :  { %v13543_v34 = vcombine.low %v3042_v56, %v3046_v1 }
 0x53b   :  { %9269 = vmatpush1.bf16.msra.mxu0 %v13487_v38  ;;  %v13537_v38 = vcombine.low %v3035_v60, %v3039_v7  ;;  %v3087_v60 = vld [vmem:[#allocation10 + $0x1cb8] sm:$0xff] }
 0x53c   :  { %9597 = vmatpush1.bf16.msra.mxu1 %v13489_v8  ;;  %9270 = vmatprep.subr.bf16.mxu0 %v13496_v54  ;;  %v13544_v8 = vcombine.high %v3042_v56, %v3046_v1  ;;  %v13546_v54 = vcombine.high %v3043_v3, %v3047_v6  ;;  %v3094_v56 = vld [vmem:[#allocation10 + $0x1cf0] sm:$0xff]  ;;  %v3091_v1 = vld [vmem:[#allocation10 + $0x1cd8] sm:$0xff] }
 0x53d   :  { %9598 = vmatprep.subr.bf16.mxu1 %v13498_v62  ;;  %v3050_v62 = vld [vmem:[#allocation10 + $0x1b90] sm:$0xff] }
 0x53e   :  { %v13551_v26 = vcombine.low %v3050_v62, %v3054_v11 }
 0x53f   :  { %9271 = vmatpush1.bf16.msra.mxu0 %v13495_v52  ;;  %v13545_v52 = vcombine.low %v3043_v3, %v3047_v6  ;;  %v3095_v3 = vld [vmem:[#allocation10 + $0x1cf8] sm:$0xff] }
 0x540   :  { %9599 = vmatpush1.bf16.msra.mxu1 %v13497_v22  ;;  %9272 = vmatprep.subr.bf16.mxu0 %v13504_v24  ;;  %v13552_v22 = vcombine.high %v3050_v62, %v3054_v11  ;;  %v13554_v24 = vcombine.high %v3051_v16, %v3055_v35  ;;  %v3099_v62 = vld [vmem:[#allocation10 + $0x1d18] sm:$0xff] }
 0x541   :  { %9600 = vmatprep.subr.bf16.mxu1 %v13506_v4  ;;  %v3058_v4 = vld [vmem:[#allocation10 + $0x1bd0] sm:$0xff]  ;;  %v3103_v11 = vld [vmem:[#allocation10 + $0x1d38] sm:$0xff] }
 0x542   :  { %v13559_v33 = vcombine.low %v3058_v4, %v3062_v25 }
 0x543   :  { %9273 = vmatpush1.bf16.msra.mxu0 %v13503_v27  ;;  %v13553_v27 = vcombine.low %v3051_v16, %v3055_v35  ;;  %v13593_v16 = vcombine.low %v3091_v1, %v3095_v3 }
 0x544   :  { %9601 = vmatpush1.bf16.msra.mxu1 %v13505_v28  ;;  %9274 = vmatprep.subr.bf16.mxu0 %v13512_v51  ;;  %v13560_v28 = vcombine.high %v3058_v4, %v3062_v25  ;;  %v13562_v51 = vcombine.high %v3059_v44, %v3063_v15  ;;  %v3111_v4 = vld [vmem:[#allocation10 + $0x1d78] sm:$0xff] }
 0x545   :  { %9602 = vmatprep.subr.bf16.mxu1 %v13514_v29  ;;  %v3066_v29 = vld [vmem:[#allocation10 + $0x1c10] sm:$0xff] }
 0x546   :  { %v13567_v40 = vcombine.low %v3066_v29, %v3070_v30 }
 0x547   :  { %9275 = vmatpush1.bf16.msra.mxu0 %v13511_v50  ;;  %v13561_v50 = vcombine.low %v3059_v44, %v3063_v15  ;;  %v13601_v44 = vcombine.low %v3099_v62, %v3103_v11 }
 0x548   :  { %9603 = vmatpush1.bf16.msra.mxu1 %v13513_v42  ;;  %9276 = vmatprep.subr.bf16.mxu0 %v13520_v39  ;;  %v13568_v42 = vcombine.high %v3066_v29, %v3070_v30  ;;  %v13570_v39 = vcombine.high %v3067_v31, %v3071_v17  ;;  %v3119_v29 = vld [vmem:[#allocation10 + $0x1db8] sm:$0xff] }
 0x549   :  { %9604 = vmatprep.subr.bf16.mxu1 %v13522_v58  ;;  %v3074_v58 = vld [vmem:[#allocation10 + $0x1c50] sm:$0xff] }
 0x54a   :  { %v13575_v7 = vcombine.low %v3074_v58, %v3078_v41 }
 0x54b   :  { %9277 = vmatpush1.bf16.msra.mxu0 %v13519_v12  ;;  %v13569_v12 = vcombine.low %v3067_v31, %v3071_v17 }
 0x54c   :  { %9605 = vmatpush1.bf16.msra.mxu1 %v13521_v14  ;;  %9278 = vmatprep.subr.bf16.mxu0 %v13528_v45  ;;  %v13576_v14 = vcombine.high %v3074_v58, %v3078_v41  ;;  %v3082_v45 = vld [vmem:[#allocation10 + $0x1c90] sm:$0xff]  ;;  %v3127_v58 = vld [vmem:[#allocation10 + $0x1df8] sm:$0xff] }
 0x54d   :  { %9606 = vmatprep.subr.bf16.mxu1 %v13530_v21  ;;  %v3086_v21 = vld [vmem:[#allocation10 + $0x1cb0] sm:$0xff] }
 0x54e   :  { %v13583_v6 = vcombine.low %v3082_v45, %v3086_v21 }
 0x54f   :  { %9279 = vmatpush1.bf16.msra.mxu0 %v13527_v23  ;;  %v13577_v23 = vcombine.low %v3075_v43, %v3079_v0 }
 0x550   :  { %9607 = vmatpush1.bf16.msra.mxu1 %v13529_v49  ;;  %9280 = vmatprep.subr.bf16.mxu0 %v13536_v36  ;;  %v13584_v49 = vcombine.high %v3082_v45, %v3086_v21  ;;  %v13586_v36 = vcombine.high %v3083_v20, %v3087_v60  ;;  %v3131_v45 = vld [vmem:[#allocation10 + $0x1e18] sm:$0xff] }
 0x551   :  { %9608 = vmatprep.subr.bf16.mxu1 %v13538_v55  ;;  %v3090_v55 = vld [vmem:[#allocation10 + $0x1cd0] sm:$0xff]  ;;  %v3135_v21 = vld [vmem:[#allocation10 + $0x1e38] sm:$0xff] }
 0x553   :  { %9281 = vmatpush1.bf16.msra.mxu0 %v13535_v5  ;;  %v13592_v5 = vcombine.high %v3090_v55, %v3094_v56 }
 0x554   :  { %9609 = vmatpush1.bf16.msra.mxu1 %v13537_v38  ;;  %9282 = vmatprep.subr.bf16.mxu0 %v13544_v8  ;;  %v13594_v38 = vcombine.high %v3091_v1, %v3095_v3  ;;  %v3098_v8 = vld [vmem:[#allocation10 + $0x1d10] sm:$0xff]  ;;  %v13633_v1 = vcombine.low %v3131_v45, %v3135_v21 }
 0x555   :  { %9610 = vmatprep.subr.bf16.mxu1 %v13546_v54  ;;  %v3102_v54 = vld [vmem:[#allocation10 + $0x1d30] sm:$0xff] }
 0x556   :  { %v13600_v35 = vcombine.high %v3098_v8, %v3102_v54  ;;  %v13599_v25 = vcombine.low %v3098_v8, %v3102_v54  ;;  %v3151_v8 = vld [vmem:[#allocation10 + $0x1eb8] sm:$0xff] }
 0x557   :  { %9283 = vmatpush1.bf16.msra.mxu0 %v13543_v34  ;;  %v13602_v34 = vcombine.high %v3099_v62, %v3103_v11 }
 0x558   :  { %9611 = vmatpush1.bf16.msra.mxu1 %v13545_v52  ;;  %9284 = vmatprep.subr.bf16.mxu0 %v13552_v22  ;;  %v3106_v52 = vld [vmem:[#allocation10 + $0x1d50] sm:$0xff] }
 0x559   :  { %9612 = vmatprep.subr.bf16.mxu1 %v13554_v24  ;;  %v3110_v22 = vld [vmem:[#allocation10 + $0x1d70] sm:$0xff]  ;;  %v3107_v24 = vld [vmem:[#allocation10 + $0x1d58] sm:$0xff] }
 0x55a   :  { %v13608_v15 = vcombine.high %v3106_v52, %v3110_v22  ;;  %v13607_v30 = vcombine.low %v3106_v52, %v3110_v22  ;;  %v13609_v31 = vcombine.low %v3107_v24, %v3111_v4  ;;  %v3159_v52 = vld [vmem:[#allocation10 + $0x1ef8] sm:$0xff] }
 0x55b   :  { %9285 = vmatpush1.bf16.msra.mxu0 %v13551_v26  ;;  %v13610_v26 = vcombine.high %v3107_v24, %v3111_v4 }
 0x55c   :  { %9613 = vmatpush1.bf16.msra.mxu1 %v13553_v27  ;;  %9286 = vmatprep.subr.bf16.mxu0 %v13560_v28  ;;  %v3114_v27 = vld [vmem:[#allocation10 + $0x1d90] sm:$0xff] }
 0x55d   :  { %9614 = vmatprep.subr.bf16.mxu1 %v13562_v51  ;;  %v3118_v28 = vld [vmem:[#allocation10 + $0x1db0] sm:$0xff]  ;;  %v3115_v51 = vld [vmem:[#allocation10 + $0x1d98] sm:$0xff] }
 0x55e   :  { %v13616_v17 = vcombine.high %v3114_v27, %v3118_v28  ;;  %v13615_v41 = vcombine.low %v3114_v27, %v3118_v28  ;;  %v3167_v27 = vld [vmem:[#allocation10 + $0x1f38] sm:$0xff] }
 0x55f   :  { %9287 = vmatpush1.bf16.msra.mxu0 %v13559_v33  ;;  %v13618_v33 = vcombine.high %v3115_v51, %v3119_v29 }
 0x560   :  { %9615 = vmatpush1.bf16.msra.mxu1 %v13561_v50  ;;  %9297 = vmatprep.subr.bf16.mxu0 %v13568_v42  ;;  %v3122_v50 = vld [vmem:[#allocation10 + $0x1dd0] sm:$0xff] }
 0x561   :  { %9625 = vmatprep.subr.bf16.mxu1 %v13570_v39  ;;  %v3126_v42 = vld [vmem:[#allocation10 + $0x1df0] sm:$0xff]  ;;  %v3123_v39 = vld [vmem:[#allocation10 + $0x1dd8] sm:$0xff] }
 0x562   :  { %9289 = vmatmul.mubr.bf16.vlgmr.msra.gmra.mrb[20].mxu0 %v15396_v19  ;;  %v13624_v43 = vcombine.high %v3122_v50, %v3126_v42  ;;  %v13626_v0 = vcombine.high %v3123_v39, %v3127_v58 }
 0x563   :  { %9617 = vmatmul.mubr.bf16.vlgmr.msra.gmra.mrb[20].mxu1 %v15396_v19  ;;  %9298 = vmatpush1.bf16.msra.mxu0 %v13567_v40  ;;  %v13585_v19 = vcombine.low %v3083_v20, %v3087_v60  ;;  %v13617_v40 = vcombine.low %v3115_v51, %v3119_v29  ;;  %v13625_v20 = vcombine.low %v3123_v39, %v3127_v58  ;;  %v15450_v39 = vld [vmem:[#allocation7 + $0x10] sm:$0xff] }
 0x564   :  { %9329 = vmatprep.mubr.bf16.mxu0 %v15398_v46  ;;  %9626 = vmatpush1.bf16.msra.mxu1 %v13569_v12  ;;  %v3130_v12 = vld [vmem:[#allocation10 + $0x1e10] sm:$0xff] }
 0x565   :  { %9657 = vmatprep.mubr.bf16.mxu1 %v15398_v46  ;;  %9299 = vmatprep.subr.bf16.mxu0 %v13576_v14  ;;  %v13591_v46 = vcombine.low %v3090_v55, %v3094_v56  ;;  %v3134_v14 = vld [vmem:[#allocation10 + $0x1e30] sm:$0xff]  ;;  %v3143_v55 = vld [vmem:[#allocation10 + $0x1e78] sm:$0xff] }
 0x566   :  { %9627 = vmatprep.subr.bf16.mxu1 %v13578_v47  ;;  %v13623_v47 = vcombine.low %v3122_v50, %v3126_v42  ;;  %v13632_v60 = vcombine.high %v3130_v12, %v3134_v14  ;;  %v13631_v56 = vcombine.low %v3130_v12, %v3134_v14  ;;  %v3175_v50 = vld [vmem:[#allocation10 + $0x1f78] sm:$0xff] }
 0x567   :  { %9300 = vmatpush1.bf16.msra.mxu0 %v13575_v7  ;;  %v13634_v7 = vcombine.high %v3131_v45, %v3135_v21  ;;  %v3179_v12 = vld [vmem:[#allocation10 + $0x1f98] sm:$0xff]  ;;  %v3201_v45 = vrot.slane %v15450_v39, %v15222_v59 }
 0x568   :  { %9628 = vmatpush1.bf16.msra.mxu1 %v13577_v23  ;;  %9301 = vmatprep.subr.bf16.mxu0 %v13584_v49  ;;  %v3138_v23 = vld [vmem:[#allocation10 + $0x1e50] sm:$0xff]  ;;  %v3183_v14 = vld [vmem:[#allocation10 + $0x1fb8] sm:$0xff] }
 0x569   :  { %9629 = vmatprep.subr.bf16.mxu1 %v13586_v36  ;;  %v3142_v49 = vld [vmem:[#allocation10 + $0x1e70] sm:$0xff]  ;;  %v3139_v36 = vld [vmem:[#allocation10 + $0x1e58] sm:$0xff] }
 0x56a   :  { %v13640_v3 = vcombine.high %v3138_v23, %v3142_v49  ;;  %v13639_v54 = vcombine.low %v3138_v23, %v3142_v49  ;;  %v13641_v62 = vcombine.low %v3139_v36, %v3143_v55  ;;  %v3190_v23 = vld [vmem:[#allocation10 + $0x1ff0] sm:$0xff]  ;;  %v3187_v49 = vld [vmem:[#allocation10 + $0x1fd8] sm:$0xff] }
 0x56b   :  { %9302 = vmatpush1.bf16.msra.mxu0 %v13583_v6  ;;  %v13642_v6 = vcombine.high %v3139_v36, %v3143_v55  ;;  %v3191_v36 = vld [vmem:[#allocation10 + $0x1ff8] sm:$0xff]  ;;  %v14094_v55 = vadd.f32 %v15430_v13, %v3201_v45  ;;  %v14318_v45 = vld [vmem:[#allocation12 + $0x104] ss:$16 sps:$4 sm:$0xff]  }
 0x56c   :  { %9630 = vmatpush1.bf16.msra.mxu1 %v13585_v19  ;;  %9303 = vmatprep.subr.bf16.mxu0 %v13592_v5  ;;  %v3146_v19 = vld [vmem:[#allocation10 + $0x1e90] sm:$0xff]  ;;  %v14273_v13 = vld [vmem:[#allocation12 + $0xc] ss:$16 sps:$4 sm:$0xff]  }
 0x56d   :  { %9631 = vmatprep.subr.bf16.mxu1 %v13594_v38  ;;  %v3150_v5 = vld [vmem:[#allocation10 + $0x1eb0] sm:$0xff]  ;;  %v3147_v38 = vld [vmem:[#allocation10 + $0x1e98] sm:$0xff]  ;;  %vm9668_vm0 = vcmp.gt.f32.partialorder %v14094_v55, 0.0 }
 0x56e   :  { %v13648_v11 = vcombine.high %v3146_v19, %v3150_v5  ;;  %v13647_v22 = vcombine.low %v3146_v19, %v3150_v5  ;;  %v13649_v24 = vcombine.low %v3147_v38, %v3151_v8  ;;  %v13690_v19 = vcombine.high %v3187_v49, %v3191_v36 }
 0x56f   :  { %9304 = vmatpush1.bf16.msra.mxu0 %v13591_v46  ;;  %v13650_v46 = vcombine.high %v3147_v38, %v3151_v8  ;;  %v13689_v8 = vcombine.low %v3187_v49, %v3191_v36  ;;  %v14325_v49 = vld [vmem:[#allocation12 + $0x128] ss:$16 sps:$4 sm:$0xff]   ;;  %v14330_v36 = vld [vmem:[#allocation12 + $0x144] ss:$16 sps:$4 sm:$0xff]  }
 0x570   :  { %9632 = vmatpush1.bf16.msra.mxu1 %v13593_v16  ;;  %9305 = vmatprep.subr.bf16.mxu0 %v13600_v35  ;;  %v3154_v16 = vld [vmem:[#allocation10 + $0x1ed0] sm:$0xff] }
 0x571   :  { %9633 = vmatprep.subr.bf16.mxu1 %v13602_v34  ;;  %v3158_v35 = vld [vmem:[#allocation10 + $0x1ef0] sm:$0xff]  ;;  %v3155_v34 = vld [vmem:[#allocation10 + $0x1ed8] sm:$0xff] }
 0x572   :  { %v13656_v4 = vcombine.high %v3154_v16, %v3158_v35  ;;  %v13655_v28 = vcombine.low %v3154_v16, %v3158_v35  ;;  %v13657_v51 = vcombine.low %v3155_v34, %v3159_v52  ;;  %v14276_v16 = vld [vmem:[#allocation12 + $0x24] ss:$16 sps:$4 sm:$0xff]  }
 0x573   :  { %9306 = vmatpush1.bf16.msra.mxu0 %v13599_v25  ;;  %v13658_v25 = vcombine.high %v3155_v34, %v3159_v52  ;;  %v14279_v34 = vld [vmem:[#allocation12 + $0x2c] ss:$16 sps:$4 sm:$0xff]   ;;  %v14274_v52 = vld [vmem:[#allocation12 + $0x20] ss:$16 sps:$4 sm:$0xff]  }
 0x574   :  { %9634 = vmatpush1.bf16.msra.mxu1 %v13601_v44  ;;  %9307 = vmatprep.subr.bf16.mxu0 %v13608_v15  ;;  %v3162_v44 = vld [vmem:[#allocation10 + $0x1f10] sm:$0xff] }
 0x575   :  { %9635 = vmatprep.subr.bf16.mxu1 %v13610_v26  ;;  %v3166_v15 = vld [vmem:[#allocation10 + $0x1f30] sm:$0xff]  ;;  %v3163_v26 = vld [vmem:[#allocation10 + $0x1f18] sm:$0xff] }
 0x576   :  { %v13664_v29 = vcombine.high %v3162_v44, %v3166_v15  ;;  %v13663_v42 = vcombine.low %v3162_v44, %v3166_v15  ;;  %v13665_v58 = vcombine.low %v3163_v26, %v3167_v27  ;;  %v14283_v44 = vld [vmem:[#allocation12 + $0x48] ss:$16 sps:$4 sm:$0xff]   ;;  %v14288_v15 = vld [vmem:[#allocation12 + $0x64] ss:$16 sps:$4 sm:$0xff]  }
 0x577   :  { %9308 = vmatpush1.bf16.msra.mxu0 %v13607_v30  ;;  %v13666_v30 = vcombine.high %v3163_v26, %v3167_v27  ;;  %v14291_v26 = vld [vmem:[#allocation12 + $0x6c] ss:$16 sps:$4 sm:$0xff]   ;;  %v14289_v27 = vld [vmem:[#allocation12 + $0x68] ss:$16 sps:$4 sm:$0xff]  }
 0x578   :  { %9636 = vmatpush1.bf16.msra.mxu1 %v13609_v31  ;;  %9309 = vmatprep.subr.bf16.mxu0 %v13616_v17  ;;  %v3170_v31 = vld [vmem:[#allocation10 + $0x1f50] sm:$0xff] }
 0x579   :  { %9637 = vmatprep.subr.bf16.mxu1 %v13618_v33  ;;  %v3174_v17 = vld [vmem:[#allocation10 + $0x1f70] sm:$0xff]  ;;  %v3171_v33 = vld [vmem:[#allocation10 + $0x1f58] sm:$0xff] }
 0x57a   :  { %v13671_v21 = vcombine.low %v3170_v31, %v3174_v17 }
 0x57b   :  { %9310 = vmatpush1.bf16.msra.mxu0 %v13615_v41  ;;  %v13672_v41 = vcombine.high %v3170_v31, %v3174_v17  ;;  %v14300_v31 = vld [vmem:[#allocation12 + $0xa4] ss:$16 sps:$4 sm:$0xff]   ;;  %v14303_v17 = vld [vmem:[#allocation12 + $0xac] ss:$16 sps:$4 sm:$0xff]  }
 0x57c   :  { %9638 = vmatpush1.bf16.msra.mxu1 %v13617_v40  ;;  %9311 = vmatprep.subr.bf16.mxu0 %v13624_v43  ;;  %v13674_v40 = vcombine.high %v3171_v33, %v3175_v50  ;;  %v3178_v43 = vld [vmem:[#allocation10 + $0x1f90] sm:$0xff] }
 0x57d   :  { %9639 = vmatprep.subr.bf16.mxu1 %v13626_v0  ;;  %v3182_v0 = vld [vmem:[#allocation10 + $0x1fb0] sm:$0xff] }
 0x57f   :  { %9312 = vmatpush1.bf16.msra.mxu0 %v13623_v47  ;;  %v13673_v47 = vcombine.low %v3171_v33, %v3175_v50  ;;  %v14298_v33 = vld [vmem:[#allocation12 + $0xa0] ss:$16 sps:$4 sm:$0xff]   ;;  %v14301_v50 = vld [vmem:[#allocation12 + $0xa8] ss:$16 sps:$4 sm:$0xff]  }
 0x580   :  { %9640 = vmatpush1.bf16.msra.mxu1 %v13625_v20  ;;  %9313 = vmatprep.subr.bf16.mxu0 %v13632_v60  ;;  %v13680_v20 = vcombine.high %v3178_v43, %v3182_v0  ;;  %v13682_v60 = vcombine.high %v3179_v12, %v3183_v14 }
 0x581   :  { %9641 = vmatprep.subr.bf16.mxu1 %v13634_v7  ;;  %v3186_v7 = vld [vmem:[#allocation10 + $0x1fd0] sm:$0xff] }
 0x582   :  { %v13687_v38 = vcombine.low %v3186_v7, %v3190_v23 }
 0x583   :  { %9314 = vmatpush1.bf16.msra.mxu0 %v13631_v56  ;;  %v13679_v56 = vcombine.low %v3178_v43, %v3182_v0  ;;  %v14312_v43 = vld [vmem:[#allocation12 + $0xe4] ss:$16 sps:$4 sm:$0xff]   ;;  %v14315_v0 = vld [vmem:[#allocation12 + $0xec] ss:$16 sps:$4 sm:$0xff]  }
 0x584   :  { %9642 = vmatpush1.bf16.msra.mxu1 %v13633_v1  ;;  %9315 = vmatprep.subr.bf16.mxu0 %v13640_v3  ;;  %v15455_v1 = vstv %s13691_s11  ;;  %v13681_v3 = vcombine.low %v3179_v12, %v3183_v14  ;;  %v14310_v12 = vld [vmem:[#allocation12 + $0xe0] ss:$16 sps:$4 sm:$0xff]   ;;  %v14313_v14 = vld [vmem:[#allocation12 + $0xe8] ss:$16 sps:$4 sm:$0xff]  }
 0x585   :  { %9643 = vmatprep.subr.bf16.mxu1 %v13642_v6  ;;  %v13688_v6 = vcombine.high %v3186_v7, %v3190_v23  ;;  %v9677_v5 = vmul.f32 %v14094_v55, %v15455_v1  ;;  %v14327_v7 = vld [vmem:[#allocation12 + $0x12c] ss:$16 sps:$4 sm:$0xff]   ;;  %v14322_v23 = vld [vmem:[#allocation12 + $0x120] ss:$16 sps:$4 sm:$0xff]  }
 0x587   :  { %9316 = vmatpush1.bf16.msra.mxu0 %v13639_v54  ;;  %v14270_v54 = vld [vmem:[#allocation12 + $0x4] ss:$16 sps:$4 sm:$0xff]  }
 0x588   :  { %9644 = vmatpush1.bf16.msra.mxu1 %v13641_v62  ;;  %9317 = vmatprep.subr.bf16.mxu0 %v13648_v11  ;;  %v14268_v62 = vld [vmem:[#allocation12] ss:$16 sps:$4 sm:$0xff]   ;;  %v9685_v11 = vsel %vm9668_vm0, %v14094_v55, %v9677_v5  ;;  %v14333_v55 = vld [vmem:[#allocation12 + $0x14c] ss:$16 sps:$4 sm:$0xff]  }
 0x589   :  { %9645 = vmatprep.subr.bf16.mxu1 %v13650_v46  ;;  %v14271_v46 = vld [vmem:[#allocation12 + $0x8] ss:$16 sps:$4 sm:$0xff]   ;;  %v9693_v35 = vpack.c.bf16 %v9685_v11, %v9685_v11  ;;  %v14334_v5 = vld [vmem:[#allocation12 + $0x160] ss:$16 sps:$4 sm:$0xff]   ;;  %v14348_v11 = vld [vmem:[#allocation12 + $0x1a4] ss:$16 sps:$4 sm:$0xff]  }
 0x58b   :  { %9318 = vmatpush1.bf16.msra.mxu0 %v13647_v22  ;;  %v14277_v22 = vld [vmem:[#allocation12 + $0x28] ss:$16 sps:$4 sm:$0xff]  }
 0x58c   :  { %9646 = vmatpush1.bf16.msra.mxu1 %v13649_v24  ;;  %9319 = vmatprep.subr.bf16.mxu0 %v13656_v4  ;;  %v14282_v24 = vld [vmem:[#allocation12 + $0x44] ss:$16 sps:$4 sm:$0xff]   ;;  %v14285_v4 = vld [vmem:[#allocation12 + $0x4c] ss:$16 sps:$4 sm:$0xff]  }
 0x58d   :  { %9647 = vmatprep.subr.bf16.mxu1 %v13658_v25  ;;  %v14280_v25 = vld [vmem:[#allocation12 + $0x40] ss:$16 sps:$4 sm:$0xff]  }
 0x58f   :  { %9320 = vmatpush1.bf16.msra.mxu0 %v13655_v28  ;;  %v14294_v28 = vld [vmem:[#allocation12 + $0x84] ss:$16 sps:$4 sm:$0xff]  }
 0x590   :  { %9648 = vmatpush1.bf16.msra.mxu1 %v13657_v51  ;;  %9321 = vmatprep.subr.bf16.mxu0 %v13664_v29  ;;  %v14297_v51 = vld [vmem:[#allocation12 + $0x8c] ss:$16 sps:$4 sm:$0xff]   ;;  %v14292_v29 = vld [vmem:[#allocation12 + $0x80] ss:$16 sps:$4 sm:$0xff]  }
 0x591   :  { %9649 = vmatprep.subr.bf16.mxu1 %v13666_v30  ;;  %v14295_v30 = vld [vmem:[#allocation12 + $0x88] ss:$16 sps:$4 sm:$0xff]  }
 0x593   :  { %9322 = vmatpush1.bf16.msra.mxu0 %v13663_v42  ;;  %v14306_v42 = vld [vmem:[#allocation12 + $0xc4] ss:$16 sps:$4 sm:$0xff]  }
 0x594   :  { %9650 = vmatpush1.bf16.msra.mxu1 %v13665_v58  ;;  %9323 = vmatprep.subr.bf16.mxu0 %v13672_v41  ;;  %v14309_v58 = vld [vmem:[#allocation12 + $0xcc] ss:$16 sps:$4 sm:$0xff]   ;;  %v14304_v41 = vld [vmem:[#allocation12 + $0xc0] ss:$16 sps:$4 sm:$0xff]  }
 0x595   :  { %9651 = vmatprep.subr.bf16.mxu1 %v13674_v40  ;;  %v14307_v40 = vld [vmem:[#allocation12 + $0xc8] ss:$16 sps:$4 sm:$0xff]  }
 0x597   :  { %9324 = vmatpush1.bf16.msra.mxu0 %v13671_v21  ;;  %v14321_v21 = vld [vmem:[#allocation12 + $0x10c] ss:$16 sps:$4 sm:$0xff]  }
 0x598   :  { %9652 = vmatpush1.bf16.msra.mxu1 %v13673_v47  ;;  %9325 = vmatprep.subr.bf16.mxu0 %v13680_v20  ;;  %v14316_v47 = vld [vmem:[#allocation12 + $0x100] ss:$16 sps:$4 sm:$0xff]   ;;  %v14319_v20 = vld [vmem:[#allocation12 + $0x108] ss:$16 sps:$4 sm:$0xff]  }
 0x599   :  { %9653 = vmatprep.subr.bf16.mxu1 %v13682_v60  ;;  %v14324_v60 = vld [vmem:[#allocation12 + $0x124] ss:$16 sps:$4 sm:$0xff]  }
 0x59b   :  { %9326 = vmatpush1.bf16.msra.mxu0 %v13679_v56  ;;  %v14328_v56 = vld [vmem:[#allocation12 + $0x140] ss:$16 sps:$4 sm:$0xff]  }
 0x59c   :  { %9654 = vmatpush1.bf16.msra.mxu1 %v13681_v3  ;;  %9327 = vmatprep.subr.bf16.mxu0 %v13688_v6  ;;  %v14331_v3 = vld [vmem:[#allocation12 + $0x148] ss:$16 sps:$4 sm:$0xff]   ;;  %v14336_v6 = vld [vmem:[#allocation12 + $0x164] ss:$16 sps:$4 sm:$0xff]  }
 0x59d   :  { %9655 = vmatprep.subr.bf16.mxu1 %v13690_v19  ;;  %v14339_v19 = vld [vmem:[#allocation12 + $0x16c] ss:$16 sps:$4 sm:$0xff]  }
 0x59f   :  { %9328 = vmatpush1.bf16.msra.mxu0 %v13687_v38  ;;  %v14337_v38 = vld [vmem:[#allocation12 + $0x168] ss:$16 sps:$4 sm:$0xff]  }
 0x5a0   :  { %9656 = vmatpush1.bf16.msra.mxu1 %v13689_v8  ;;  %11258 = vmatprep.subr.bf16.mxu0 %v14270_v54  ;;  %v14342_v8 = vld [vmem:[#allocation12 + $0x184] ss:$16 sps:$4 sm:$0xff]   ;;  %v14345_v54 = vld [vmem:[#allocation12 + $0x18c] ss:$16 sps:$4 sm:$0xff]  }
 0x5a1   :  { %11422 = vmatprep.subr.bf16.mxu1 %v14273_v13  ;;  %v14340_v13 = vld [vmem:[#allocation12 + $0x180] ss:$16 sps:$4 sm:$0xff]  }
 0x5a2   :  { %9330 = vmatmul.mubr.bf16.vlgmr.msra.gmra.mrb[20].mxu0 %v15408_v48 }
 0x5a3   :  { %9658 = vmatmul.mubr.bf16.vlgmr.msra.gmra.mrb[20].mxu1 %v15408_v48  ;;  %11259 = vmatpush1.bf16.msra.mxu0 %v14268_v62  ;;  %v14286_v48 = vld [vmem:[#allocation12 + $0x60] ss:$16 sps:$4 sm:$0xff]   ;;  %v14343_v62 = vld [vmem:[#allocation12 + $0x188] ss:$16 sps:$4 sm:$0xff]  }
 0x5a4   :  { %11290 = vmatprep.mubr.bf16.mxu0 %v9693_v35  ;;  %11423 = vmatpush1.bf16.msra.mxu1 %v14271_v46  ;;  %v3197_v46 = vrot.slane %v15450_v39, %v15242_v9 }
 0x5a5   :  { %11454 = vmatprep.mubr.bf16.mxu1 %v9693_v35  ;;  %11260 = vmatprep.subr.bf16.mxu0 %v14276_v16  ;;  %v14351_v16 = vld [vmem:[#allocation12 + $0x1ac] ss:$16 sps:$4 sm:$0xff]   ;;  %v3209_v35 = vrot.slane %v15450_v39, %v15245_v18 }
 0x5a6   :  { %11424 = vmatprep.subr.bf16.mxu1 %v14279_v34  ;;  %v14346_v34 = vld [vmem:[#allocation12 + $0x1a0] ss:$16 sps:$4 sm:$0xff]  }
 0x5a7   :  { %11261 = vmatpush1.bf16.msra.mxu0 %v14274_v52  ;;  %v14349_v52 = vld [vmem:[#allocation12 + $0x1a8] ss:$16 sps:$4 sm:$0xff]  }
 0x5a8   :  { %11425 = vmatpush1.bf16.msra.mxu1 %v14277_v22  ;;  %11262 = vmatprep.subr.bf16.mxu0 %v14282_v24  ;;  %v14354_v22 = vld [vmem:[#allocation12 + $0x1c4] ss:$16 sps:$4 sm:$0xff]   ;;  %v14093_v24 = vadd.f32 %v15426_v10, %v3197_v46  ;;  %v14361_v10 = vld [vmem:[#allocation12 + $0x1e8] ss:$16 sps:$4 sm:$0xff]  }
 0x5a9   :  { %11426 = vmatprep.subr.bf16.mxu1 %v14285_v4  ;;  %v14357_v4 = vld [vmem:[#allocation12 + $0x1cc] ss:$16 sps:$4 sm:$0xff]   ;;  %v14414_v46 = vld [vmem:[#allocation12 + $0x304] ss:$16 sps:$4 sm:$0xff]  }
 0x5aa   :  { %vm9667_vm1 = vcmp.gt.f32.partialorder %v14093_v24, 0.0 }
 0x5ab   :  { %11263 = vmatpush1.bf16.msra.mxu0 %v14280_v25  ;;  %v14096_v25 = vadd.f32 %v15432_v37, %v3209_v35  ;;  %v14366_v37 = vld [vmem:[#allocation12 + $0x204] ss:$16 sps:$4 sm:$0xff]   ;;  %v14412_v35 = vld [vmem:[#allocation12 + $0x300] ss:$16 sps:$4 sm:$0xff]  }
 0x5ac   :  { %11427 = vmatpush1.bf16.msra.mxu1 %v14283_v44  ;;  %11264 = vmatprep.subr.bf16.mxu0 %v14288_v15  ;;  %v14352_v44 = vld [vmem:[#allocation12 + $0x1c0] ss:$16 sps:$4 sm:$0xff]   ;;  %v14355_v15 = vld [vmem:[#allocation12 + $0x1c8] ss:$16 sps:$4 sm:$0xff]  }
 0x5ad   :  { %11428 = vmatprep.subr.bf16.mxu1 %v14291_v26  ;;  %v14360_v26 = vld [vmem:[#allocation12 + $0x1e4] ss:$16 sps:$4 sm:$0xff]   ;;  %vm9670_vm2 = vcmp.gt.f32.partialorder %v14096_v25, 0.0 }
 0x5af   :  { %11265 = vmatpush1.bf16.msra.mxu0 %v14286_v48  ;;  %v9676_v48 = vmul.f32 %v14093_v24, %v15455_v1 }
 0x5b0   :  { %11429 = vmatpush1.bf16.msra.mxu1 %v14289_v27  ;;  %11266 = vmatprep.subr.bf16.mxu0 %v14294_v28  ;;  %v14363_v27 = vld [vmem:[#allocation12 + $0x1ec] ss:$16 sps:$4 sm:$0xff]   ;;  %v9679_v28 = vmul.f32 %v14096_v25, %v15455_v1 }
 0x5b1   :  { %11430 = vmatprep.subr.bf16.mxu1 %v14297_v51  ;;  %v14358_v51 = vld [vmem:[#allocation12 + $0x1e0] ss:$16 sps:$4 sm:$0xff]  }
 0x5b3   :  { %11267 = vmatpush1.bf16.msra.mxu0 %v14292_v29  ;;  %v9684_v29 = vsel %vm9667_vm1, %v14093_v24, %v9676_v48  ;;  %v14418_v24 = vld [vmem:[#allocation12 + $0x320] ss:$16 sps:$4 sm:$0xff]   ;;  %v14432_v48 = vld [vmem:[#allocation12 + $0x364] ss:$16 sps:$4 sm:$0xff]  }
 0x5b4   :  { %11431 = vmatpush1.bf16.msra.mxu1 %v14295_v30  ;;  %11268 = vmatprep.subr.bf16.mxu0 %v14300_v31  ;;  %v14369_v30 = vld [vmem:[#allocation12 + $0x20c] ss:$16 sps:$4 sm:$0xff]   ;;  %v14364_v31 = vld [vmem:[#allocation12 + $0x200] ss:$16 sps:$4 sm:$0xff]  }
 0x5b5   :  { %11432 = vmatprep.subr.bf16.mxu1 %v14303_v17  ;;  %v9687_v17 = vsel %vm9670_vm2, %v14096_v25, %v9679_v28  ;;  %v14426_v25 = vld [vmem:[#allocation12 + $0x344] ss:$16 sps:$4 sm:$0xff]   ;;  %v14430_v28 = vld [vmem:[#allocation12 + $0x360] ss:$16 sps:$4 sm:$0xff]  }
 0x5b7   :  { %11269 = vmatpush1.bf16.msra.mxu0 %v14298_v33  ;;  %v9692_v33 = vpack.c.bf16 %v9684_v29, %v9684_v29  ;;  %v14436_v29 = vld [vmem:[#allocation12 + $0x380] ss:$16 sps:$4 sm:$0xff]  }
 0x5b8   :  { %11433 = vmatpush1.bf16.msra.mxu1 %v14301_v50  ;;  %11270 = vmatprep.subr.bf16.mxu0 %v14306_v42  ;;  %v14367_v50 = vld [vmem:[#allocation12 + $0x208] ss:$16 sps:$4 sm:$0xff]   ;;  %v14372_v42 = vld [vmem:[#allocation12 + $0x224] ss:$16 sps:$4 sm:$0xff]  }
 0x5b9   :  { %11434 = vmatprep.subr.bf16.mxu1 %v14309_v58  ;;  %v9695_v58 = vpack.c.bf16 %v9687_v17, %v9687_v17  ;;  %v3205_v17 = vrot.slane %v15450_v39, %v15272_v57 }
 0x5bb   :  { %11271 = vmatpush1.bf16.msra.mxu0 %v14304_v41  ;;  %v14375_v41 = vld [vmem:[#allocation12 + $0x22c] ss:$16 sps:$4 sm:$0xff]  }
 0x5bc   :  { %11435 = vmatpush1.bf16.msra.mxu1 %v14307_v40  ;;  %11272 = vmatprep.subr.bf16.mxu0 %v14312_v43  ;;  %v14370_v40 = vld [vmem:[#allocation12 + $0x220] ss:$16 sps:$4 sm:$0xff]   ;;  %v14373_v43 = vld [vmem:[#allocation12 + $0x228] ss:$16 sps:$4 sm:$0xff]  }
 0x5bd   :  { %11436 = vmatprep.subr.bf16.mxu1 %v14315_v0  ;;  %v14378_v0 = vld [vmem:[#allocation12 + $0x244] ss:$16 sps:$4 sm:$0xff]  }
 0x5bf   :  { %11273 = vmatpush1.bf16.msra.mxu0 %v14310_v12  ;;  %v14381_v12 = vld [vmem:[#allocation12 + $0x24c] ss:$16 sps:$4 sm:$0xff]  }
 0x5c0   :  { %11437 = vmatpush1.bf16.msra.mxu1 %v14313_v14  ;;  %11274 = vmatprep.subr.bf16.mxu0 %v14318_v45  ;;  %v14376_v14 = vld [vmem:[#allocation12 + $0x240] ss:$16 sps:$4 sm:$0xff]   ;;  %v14379_v45 = vld [vmem:[#allocation12 + $0x248] ss:$16 sps:$4 sm:$0xff]  }
 0x5c1   :  { %11438 = vmatprep.subr.bf16.mxu1 %v14321_v21  ;;  %v14384_v21 = vld [vmem:[#allocation12 + $0x264] ss:$16 sps:$4 sm:$0xff]  }
 0x5c3   :  { %11275 = vmatpush1.bf16.msra.mxu0 %v14316_v47  ;;  %v14387_v47 = vld [vmem:[#allocation12 + $0x26c] ss:$16 sps:$4 sm:$0xff]  }
 0x5c4   :  { %11439 = vmatpush1.bf16.msra.mxu1 %v14319_v20  ;;  %11276 = vmatprep.subr.bf16.mxu0 %v14324_v60  ;;  %v14382_v20 = vld [vmem:[#allocation12 + $0x260] ss:$16 sps:$4 sm:$0xff]   ;;  %v14385_v60 = vld [vmem:[#allocation12 + $0x268] ss:$16 sps:$4 sm:$0xff]  }
 0x5c5   :  { %11440 = vmatprep.subr.bf16.mxu1 %v14327_v7  ;;  %v14390_v7 = vld [vmem:[#allocation12 + $0x284] ss:$16 sps:$4 sm:$0xff]  }
 0x5c7   :  { %11277 = vmatpush1.bf16.msra.mxu0 %v14322_v23  ;;  %v14393_v23 = vld [vmem:[#allocation12 + $0x28c] ss:$16 sps:$4 sm:$0xff]  }
 0x5c8   :  { %11441 = vmatpush1.bf16.msra.mxu1 %v14325_v49  ;;  %11278 = vmatprep.subr.bf16.mxu0 %v14330_v36  ;;  %v14388_v49 = vld [vmem:[#allocation12 + $0x280] ss:$16 sps:$4 sm:$0xff]   ;;  %v14391_v36 = vld [vmem:[#allocation12 + $0x288] ss:$16 sps:$4 sm:$0xff]  }
 0x5c9   :  { %11442 = vmatprep.subr.bf16.mxu1 %v14333_v55  ;;  %v14396_v55 = vld [vmem:[#allocation12 + $0x2a4] ss:$16 sps:$4 sm:$0xff]  }
 0x5cb   :  { %11279 = vmatpush1.bf16.msra.mxu0 %v14328_v56  ;;  %v14399_v56 = vld [vmem:[#allocation12 + $0x2ac] ss:$16 sps:$4 sm:$0xff]  }
 0x5cc   :  { %11443 = vmatpush1.bf16.msra.mxu1 %v14331_v3  ;;  %11280 = vmatprep.subr.bf16.mxu0 %v14336_v6  ;;  %v14394_v3 = vld [vmem:[#allocation12 + $0x2a0] ss:$16 sps:$4 sm:$0xff]   ;;  %v14397_v6 = vld [vmem:[#allocation12 + $0x2a8] ss:$16 sps:$4 sm:$0xff]  }
 0x5cd   :  { %11444 = vmatprep.subr.bf16.mxu1 %v14339_v19  ;;  %v14402_v19 = vld [vmem:[#allocation12 + $0x2c4] ss:$16 sps:$4 sm:$0xff]  }
 0x5cf   :  { %11281 = vmatpush1.bf16.msra.mxu0 %v14334_v5  ;;  %v14405_v5 = vld [vmem:[#allocation12 + $0x2cc] ss:$16 sps:$4 sm:$0xff]  }
 0x5d0   :  { %11445 = vmatpush1.bf16.msra.mxu1 %v14337_v38  ;;  %11282 = vmatprep.subr.bf16.mxu0 %v14342_v8  ;;  %v14400_v38 = vld [vmem:[#allocation12 + $0x2c0] ss:$16 sps:$4 sm:$0xff]   ;;  %v14403_v8 = vld [vmem:[#allocation12 + $0x2c8] ss:$16 sps:$4 sm:$0xff]  }
 0x5d1   :  { %11446 = vmatprep.subr.bf16.mxu1 %v14345_v54  ;;  %v14408_v54 = vld [vmem:[#allocation12 + $0x2e4] ss:$16 sps:$4 sm:$0xff]  }
 0x5d3   :  { %11283 = vmatpush1.bf16.msra.mxu0 %v14340_v13  ;;  %v14411_v13 = vld [vmem:[#allocation12 + $0x2ec] ss:$16 sps:$4 sm:$0xff]  }
 0x5d4   :  { %11447 = vmatpush1.bf16.msra.mxu1 %v14343_v62  ;;  %11284 = vmatprep.subr.bf16.mxu0 %v14348_v11  ;;  %v14406_v62 = vld [vmem:[#allocation12 + $0x2e0] ss:$16 sps:$4 sm:$0xff]   ;;  %v14409_v11 = vld [vmem:[#allocation12 + $0x2e8] ss:$16 sps:$4 sm:$0xff]  }
 0x5d5   :  { %11448 = vmatprep.subr.bf16.mxu1 %v14351_v16  ;;  %v14417_v16 = vld [vmem:[#allocation12 + $0x30c] ss:$16 sps:$4 sm:$0xff]  }
 0x5d7   :  { %11285 = vmatpush1.bf16.msra.mxu0 %v14346_v34  ;;  %v14415_v34 = vld [vmem:[#allocation12 + $0x308] ss:$16 sps:$4 sm:$0xff]  }
 0x5d8   :  { %11449 = vmatpush1.bf16.msra.mxu1 %v14349_v52  ;;  %11286 = vmatprep.subr.bf16.mxu0 %v14354_v22  ;;  %v14420_v52 = vld [vmem:[#allocation12 + $0x324] ss:$16 sps:$4 sm:$0xff]   ;;  %v14423_v22 = vld [vmem:[#allocation12 + $0x32c] ss:$16 sps:$4 sm:$0xff]  }
 0x5d9   :  { %11450 = vmatprep.subr.bf16.mxu1 %v14357_v4  ;;  %v14421_v4 = vld [vmem:[#allocation12 + $0x328] ss:$16 sps:$4 sm:$0xff]  }
 0x5db   :  { %11287 = vmatpush1.bf16.msra.mxu0 %v14352_v44  ;;  %v14429_v44 = vld [vmem:[#allocation12 + $0x34c] ss:$16 sps:$4 sm:$0xff]  }
 0x5dc   :  { %11451 = vmatpush1.bf16.msra.mxu1 %v14355_v15  ;;  %11288 = vmatprep.subr.bf16.mxu0 %v14360_v26  ;;  %v14424_v15 = vld [vmem:[#allocation12 + $0x340] ss:$16 sps:$4 sm:$0xff]   ;;  %v14427_v26 = vld [vmem:[#allocation12 + $0x348] ss:$16 sps:$4 sm:$0xff]  }
 0x5dd   :  { %11452 = vmatprep.subr.bf16.mxu1 %v14363_v27  ;;  %v14435_v27 = vld [vmem:[#allocation12 + $0x36c] ss:$16 sps:$4 sm:$0xff]  }
 0x5df   :  { %11289 = vmatpush1.bf16.msra.mxu0 %v14358_v51  ;;  %v14433_v51 = vld [vmem:[#allocation12 + $0x368] ss:$16 sps:$4 sm:$0xff]  }
 0x5e0   :  { %11453 = vmatpush1.bf16.msra.mxu1 %v14361_v10  ;;  %11299 = vmatprep.subr.bf16.mxu0 %v14366_v37  ;;  %v14438_v10 = vld [vmem:[#allocation12 + $0x384] ss:$16 sps:$4 sm:$0xff]   ;;  %v14441_v37 = vld [vmem:[#allocation12 + $0x38c] ss:$16 sps:$4 sm:$0xff]  }
 0x5e1   :  { %11463 = vmatprep.subr.bf16.mxu1 %v14369_v30  ;;  %v14439_v30 = vld [vmem:[#allocation12 + $0x388] ss:$16 sps:$4 sm:$0xff]  }
 0x5e2   :  { %11291 = vmatmul.mubr.bf16.vlgmr.msra.gmra.mrb[24].mxu0 %v9692_v33 }
 0x5e3   :  { %11455 = vmatmul.mubr.bf16.vlgmr.msra.gmra.mrb[24].mxu1 %v9692_v33  ;;  %11300 = vmatpush1.bf16.msra.mxu0 %v14364_v31  ;;  %v14444_v31 = vld [vmem:[#allocation12 + $0x3a4] ss:$16 sps:$4 sm:$0xff]   ;;  %v14447_v33 = vld [vmem:[#allocation12 + $0x3ac] ss:$16 sps:$4 sm:$0xff]  }
 0x5e4   :  { %11331 = vmatprep.mubr.bf16.mxu0 %v9695_v58  ;;  %11464 = vmatpush1.bf16.msra.mxu1 %v14367_v50  ;;  %v14442_v50 = vld [vmem:[#allocation12 + $0x3a0] ss:$16 sps:$4 sm:$0xff]  }
 0x5e5   :  { %11495 = vmatprep.mubr.bf16.mxu1 %v9695_v58  ;;  %11301 = vmatprep.subr.bf16.mxu0 %v14372_v42  ;;  %v14445_v42 = vld [vmem:[#allocation12 + $0x3a8] ss:$16 sps:$4 sm:$0xff]   ;;  %v14450_v58 = vld [vmem:[#allocation12 + $0x3c4] ss:$16 sps:$4 sm:$0xff]  }
 0x5e6   :  { %11465 = vmatprep.subr.bf16.mxu1 %v14375_v41  ;;  %v14095_v41 = vadd.f32 %v15428_v32, %v3205_v17  ;;  %v14514_v17 = vld [vmem:[#allocation12 + $0x520] ss:$16 sps:$4 sm:$0xff]  }
 0x5e7   :  { %11302 = vmatpush1.bf16.msra.mxu0 %v14370_v40  ;;  %v14453_v40 = vld [vmem:[#allocation12 + $0x3cc] ss:$16 sps:$4 sm:$0xff]  }
 0x5e8   :  { %11466 = vmatpush1.bf16.msra.mxu1 %v14373_v43  ;;  %11303 = vmatprep.subr.bf16.mxu0 %v14378_v0  ;;  %v14448_v43 = vld [vmem:[#allocation12 + $0x3c0] ss:$16 sps:$4 sm:$0xff]   ;;  %v14451_v0 = vld [vmem:[#allocation12 + $0x3c8] ss:$16 sps:$4 sm:$0xff]   ;;  %vm9669_vm3 = vcmp.gt.f32.partialorder %v14095_v41, 0.0 }
 0x5e9   :  { %11467 = vmatprep.subr.bf16.mxu1 %v14381_v12  ;;  %v14456_v12 = vld [vmem:[#allocation12 + $0x3e4] ss:$16 sps:$4 sm:$0xff]  }
 0x5eb   :  { %11304 = vmatpush1.bf16.msra.mxu0 %v14376_v14  ;;  %v9678_v14 = vmul.f32 %v14095_v41, %v15455_v1 }
 0x5ec   :  { %11468 = vmatpush1.bf16.msra.mxu1 %v14379_v45  ;;  %11305 = vmatprep.subr.bf16.mxu0 %v14384_v21  ;;  %v14459_v45 = vld [vmem:[#allocation12 + $0x3ec] ss:$16 sps:$4 sm:$0xff]   ;;  %v14454_v21 = vld [vmem:[#allocation12 + $0x3e0] ss:$16 sps:$4 sm:$0xff]  }
 0x5ed   :  { %11469 = vmatprep.subr.bf16.mxu1 %v14387_v47  ;;  %v14457_v47 = vld [vmem:[#allocation12 + $0x3e8] ss:$16 sps:$4 sm:$0xff]   ;;  %v9686_v32 = vsel %vm9669_vm3, %v14095_v41, %v9678_v14  ;;  %v14534_v14 = vld [vmem:[#allocation12 + $0x584] ss:$16 sps:$4 sm:$0xff]  }
 0x5ee   :  { %v14523_v41 = vld [vmem:[#allocation12 + $0x548] ss:$16 sps:$4 sm:$0xff]  }
 0x5ef   :  { %11306 = vmatpush1.bf16.msra.mxu0 %v14382_v20  ;;  %v14462_v20 = vld [vmem:[#allocation12 + $0x404] ss:$16 sps:$4 sm:$0xff]  }
 0x5f0   :  { %11470 = vmatpush1.bf16.msra.mxu1 %v14385_v60  ;;  %11307 = vmatprep.subr.bf16.mxu0 %v14390_v7  ;;  %v14465_v60 = vld [vmem:[#allocation12 + $0x40c] ss:$16 sps:$4 sm:$0xff]   ;;  %v14460_v7 = vld [vmem:[#allocation12 + $0x400] ss:$16 sps:$4 sm:$0xff]  }
 0x5f1   :  { %11471 = vmatprep.subr.bf16.mxu1 %v14393_v23  ;;  %v9694_v23 = vpack.c.bf16 %v9686_v32, %v9686_v32  ;;  %v14543_v32 = vld [vmem:[#allocation12 + $0x5ac] ss:$16 sps:$4 sm:$0xff]  }
 0x5f3   :  { %11308 = vmatpush1.bf16.msra.mxu0 %v14388_v49  ;;  %v14463_v49 = vld [vmem:[#allocation12 + $0x408] ss:$16 sps:$4 sm:$0xff]  }
 0x5f4   :  { %11472 = vmatpush1.bf16.msra.mxu1 %v14391_v36  ;;  %11309 = vmatprep.subr.bf16.mxu0 %v14396_v55  ;;  %v14468_v36 = vld [vmem:[#allocation12 + $0x424] ss:$16 sps:$4 sm:$0xff]   ;;  %v14471_v55 = vld [vmem:[#allocation12 + $0x42c] ss:$16 sps:$4 sm:$0xff]  }
 0x5f5   :  { %11473 = vmatprep.subr.bf16.mxu1 %v14399_v56  ;;  %v14466_v56 = vld [vmem:[#allocation12 + $0x420] ss:$16 sps:$4 sm:$0xff]  }
 0x5f7   :  { %11310 = vmatpush1.bf16.msra.mxu0 %v14394_v3  ;;  %v14469_v3 = vld [vmem:[#allocation12 + $0x428] ss:$16 sps:$4 sm:$0xff]  }
 0x5f8   :  { %11474 = vmatpush1.bf16.msra.mxu1 %v14397_v6  ;;  %11311 = vmatprep.subr.bf16.mxu0 %v14402_v19  ;;  %v14474_v6 = vld [vmem:[#allocation12 + $0x444] ss:$16 sps:$4 sm:$0xff]   ;;  %v14477_v19 = vld [vmem:[#allocation12 + $0x44c] ss:$16 sps:$4 sm:$0xff]  }
 0x5f9   :  { %11475 = vmatprep.subr.bf16.mxu1 %v14405_v5  ;;  %v14472_v5 = vld [vmem:[#allocation12 + $0x440] ss:$16 sps:$4 sm:$0xff]  }
 0x5fb   :  { %11312 = vmatpush1.bf16.msra.mxu0 %v14400_v38  ;;  %v14475_v38 = vld [vmem:[#allocation12 + $0x448] ss:$16 sps:$4 sm:$0xff]  }
 0x5fc   :  { %11476 = vmatpush1.bf16.msra.mxu1 %v14403_v8  ;;  %11313 = vmatprep.subr.bf16.mxu0 %v14408_v54  ;;  %v14480_v8 = vld [vmem:[#allocation12 + $0x464] ss:$16 sps:$4 sm:$0xff]   ;;  %v14483_v54 = vld [vmem:[#allocation12 + $0x46c] ss:$16 sps:$4 sm:$0xff]  }
 0x5fd   :  { %11477 = vmatprep.subr.bf16.mxu1 %v14411_v13  ;;  %v14478_v13 = vld [vmem:[#allocation12 + $0x460] ss:$16 sps:$4 sm:$0xff]  }
 0x5ff   :  { %11314 = vmatpush1.bf16.msra.mxu0 %v14406_v62  ;;  %v14481_v62 = vld [vmem:[#allocation12 + $0x468] ss:$16 sps:$4 sm:$0xff]  }
 0x600   :  { %11478 = vmatpush1.bf16.msra.mxu1 %v14409_v11  ;;  %11315 = vmatprep.subr.bf16.mxu0 %v14414_v46  ;;  %v14486_v11 = vld [vmem:[#allocation12 + $0x484] ss:$16 sps:$4 sm:$0xff]   ;;  %v14489_v46 = vld [vmem:[#allocation12 + $0x48c] ss:$16 sps:$4 sm:$0xff]  }
 0x601   :  { %11479 = vmatprep.subr.bf16.mxu1 %v14417_v16  ;;  %v14484_v16 = vld [vmem:[#allocation12 + $0x480] ss:$16 sps:$4 sm:$0xff]  }
 0x603   :  { %11316 = vmatpush1.bf16.msra.mxu0 %v14412_v35  ;;  %v14487_v35 = vld [vmem:[#allocation12 + $0x488] ss:$16 sps:$4 sm:$0xff]  }
 0x604   :  { %11480 = vmatpush1.bf16.msra.mxu1 %v14415_v34  ;;  %11317 = vmatprep.subr.bf16.mxu0 %v14420_v52  ;;  %v14492_v34 = vld [vmem:[#allocation12 + $0x4a4] ss:$16 sps:$4 sm:$0xff]   ;;  %v14495_v52 = vld [vmem:[#allocation12 + $0x4ac] ss:$16 sps:$4 sm:$0xff]  }
 0x605   :  { %11481 = vmatprep.subr.bf16.mxu1 %v14423_v22  ;;  %v14490_v22 = vld [vmem:[#allocation12 + $0x4a0] ss:$16 sps:$4 sm:$0xff]  }
 0x607   :  { %11318 = vmatpush1.bf16.msra.mxu0 %v14418_v24  ;;  %v14493_v24 = vld [vmem:[#allocation12 + $0x4a8] ss:$16 sps:$4 sm:$0xff]  }
 0x608   :  { %11482 = vmatpush1.bf16.msra.mxu1 %v14421_v4  ;;  %11319 = vmatprep.subr.bf16.mxu0 %v14426_v25  ;;  %v14498_v4 = vld [vmem:[#allocation12 + $0x4c4] ss:$16 sps:$4 sm:$0xff]   ;;  %v14501_v25 = vld [vmem:[#allocation12 + $0x4cc] ss:$16 sps:$4 sm:$0xff]  }
 0x609   :  { %11483 = vmatprep.subr.bf16.mxu1 %v14429_v44  ;;  %v14496_v44 = vld [vmem:[#allocation12 + $0x4c0] ss:$16 sps:$4 sm:$0xff]  }
 0x60b   :  { %11320 = vmatpush1.bf16.msra.mxu0 %v14424_v15  ;;  %v14499_v15 = vld [vmem:[#allocation12 + $0x4c8] ss:$16 sps:$4 sm:$0xff]  }
 0x60c   :  { %11484 = vmatpush1.bf16.msra.mxu1 %v14427_v26  ;;  %11321 = vmatprep.subr.bf16.mxu0 %v14432_v48  ;;  %v14504_v26 = vld [vmem:[#allocation12 + $0x4e4] ss:$16 sps:$4 sm:$0xff]   ;;  %v14507_v48 = vld [vmem:[#allocation12 + $0x4ec] ss:$16 sps:$4 sm:$0xff]  }
 0x60d   :  { %11485 = vmatprep.subr.bf16.mxu1 %v14435_v27  ;;  %v14502_v27 = vld [vmem:[#allocation12 + $0x4e0] ss:$16 sps:$4 sm:$0xff]  }
 0x60f   :  { %11322 = vmatpush1.bf16.msra.mxu0 %v14430_v28  ;;  %v14505_v28 = vld [vmem:[#allocation12 + $0x4e8] ss:$16 sps:$4 sm:$0xff]  }
 0x610   :  { %11486 = vmatpush1.bf16.msra.mxu1 %v14433_v51  ;;  %11323 = vmatprep.subr.bf16.mxu0 %v14438_v10  ;;  %v14510_v51 = vld [vmem:[#allocation12 + $0x504] ss:$16 sps:$4 sm:$0xff]   ;;  %v14513_v10 = vld [vmem:[#allocation12 + $0x50c] ss:$16 sps:$4 sm:$0xff]  }
 0x611   :  { %11487 = vmatprep.subr.bf16.mxu1 %v14441_v37  ;;  %v14508_v37 = vld [vmem:[#allocation12 + $0x500] ss:$16 sps:$4 sm:$0xff]  }
 0x613   :  { %11324 = vmatpush1.bf16.msra.mxu0 %v14436_v29  ;;  %v14511_v29 = vld [vmem:[#allocation12 + $0x508] ss:$16 sps:$4 sm:$0xff]  }
 0x614   :  { %11488 = vmatpush1.bf16.msra.mxu1 %v14439_v30  ;;  %11325 = vmatprep.subr.bf16.mxu0 %v14444_v31  ;;  %v14516_v30 = vld [vmem:[#allocation12 + $0x524] ss:$16 sps:$4 sm:$0xff]   ;;  %v14519_v31 = vld [vmem:[#allocation12 + $0x52c] ss:$16 sps:$4 sm:$0xff]  }
 0x615   :  { %11489 = vmatprep.subr.bf16.mxu1 %v14447_v33  ;;  %v14517_v33 = vld [vmem:[#allocation12 + $0x528] ss:$16 sps:$4 sm:$0xff]  }
 0x617   :  { %11326 = vmatpush1.bf16.msra.mxu0 %v14442_v50  ;;  %v14522_v50 = vld [vmem:[#allocation12 + $0x544] ss:$16 sps:$4 sm:$0xff]  }
 0x618   :  { %11490 = vmatpush1.bf16.msra.mxu1 %v14445_v42  ;;  %11327 = vmatprep.subr.bf16.mxu0 %v14450_v58  ;;  %v14525_v42 = vld [vmem:[#allocation12 + $0x54c] ss:$16 sps:$4 sm:$0xff]   ;;  %v14520_v58 = vld [vmem:[#allocation12 + $0x540] ss:$16 sps:$4 sm:$0xff]  }
 0x619   :  { %11491 = vmatprep.subr.bf16.mxu1 %v14453_v40  ;;  %v14528_v40 = vld [vmem:[#allocation12 + $0x564] ss:$16 sps:$4 sm:$0xff]  }
 0x61b   :  { %11328 = vmatpush1.bf16.msra.mxu0 %v14448_v43  ;;  %v14531_v43 = vld [vmem:[#allocation12 + $0x56c] ss:$16 sps:$4 sm:$0xff]  }
 0x61c   :  { %11492 = vmatpush1.bf16.msra.mxu1 %v14451_v0  ;;  %11329 = vmatprep.subr.bf16.mxu0 %v14456_v12  ;;  %v14526_v0 = vld [vmem:[#allocation12 + $0x560] ss:$16 sps:$4 sm:$0xff]   ;;  %v14529_v12 = vld [vmem:[#allocation12 + $0x568] ss:$16 sps:$4 sm:$0xff]  }
 0x61d   :  { %11493 = vmatprep.subr.bf16.mxu1 %v14459_v45  ;;  %v14537_v45 = vld [vmem:[#allocation12 + $0x58c] ss:$16 sps:$4 sm:$0xff]  }
 0x61f   :  { %11330 = vmatpush1.bf16.msra.mxu0 %v14454_v21  ;;  %v14532_v21 = vld [vmem:[#allocation12 + $0x580] ss:$16 sps:$4 sm:$0xff]  }
 0x620   :  { %11494 = vmatpush1.bf16.msra.mxu1 %v14457_v47  ;;  %11340 = vmatprep.subr.bf16.mxu0 %v14462_v20  ;;  %v14535_v47 = vld [vmem:[#allocation12 + $0x588] ss:$16 sps:$4 sm:$0xff]   ;;  %v14540_v20 = vld [vmem:[#allocation12 + $0x5a4] ss:$16 sps:$4 sm:$0xff]  }
 0x621   :  { %11504 = vmatprep.subr.bf16.mxu1 %v14465_v60  ;;  %v14538_v60 = vld [vmem:[#allocation12 + $0x5a0] ss:$16 sps:$4 sm:$0xff]  }
 0x622   :  { %11332 = vmatmul.mubr.bf16.vlgmr.msra.gmra.mrb[24].mxu0 %v9694_v23 }
 0x623   :  { %11496 = vmatmul.mubr.bf16.vlgmr.msra.gmra.mrb[24].mxu1 %v9694_v23  ;;  %11341 = vmatpush1.bf16.msra.mxu0 %v14460_v7  ;;  %v14541_v7 = vld [vmem:[#allocation12 + $0x5a8] ss:$16 sps:$4 sm:$0xff]   ;;  %v14546_v23 = vld [vmem:[#allocation12 + $0x5c4] ss:$16 sps:$4 sm:$0xff]  }
 0x624   :  { %11505 = vmatpush1.bf16.msra.mxu1 %v14463_v49  ;;  %11342 = vmatprep.subr.bf16.mxu0 %v14468_v36  ;;  %v14549_v49 = vld [vmem:[#allocation12 + $0x5cc] ss:$16 sps:$4 sm:$0xff]   ;;  %v14544_v36 = vld [vmem:[#allocation12 + $0x5c0] ss:$16 sps:$4 sm:$0xff]  }
 0x625   :  { %11506 = vmatprep.subr.bf16.mxu1 %v14471_v55  ;;  %v14547_v55 = vld [vmem:[#allocation12 + $0x5c8] ss:$16 sps:$4 sm:$0xff]  }
 0x627   :  { %11343 = vmatpush1.bf16.msra.mxu0 %v14466_v56  ;;  %v14552_v56 = vld [vmem:[#allocation12 + $0x5e4] ss:$16 sps:$4 sm:$0xff]  }
 0x628   :  { %11507 = vmatpush1.bf16.msra.mxu1 %v14469_v3  ;;  %11344 = vmatprep.subr.bf16.mxu0 %v14474_v6  ;;  %v14555_v3 = vld [vmem:[#allocation12 + $0x5ec] ss:$16 sps:$4 sm:$0xff]   ;;  %v14550_v6 = vld [vmem:[#allocation12 + $0x5e0] ss:$16 sps:$4 sm:$0xff]  }
 0x629   :  { %11508 = vmatprep.subr.bf16.mxu1 %v14477_v19  ;;  %v14553_v19 = vld [vmem:[#allocation12 + $0x5e8] ss:$16 sps:$4 sm:$0xff]  }
 0x62b   :  { %11345 = vmatpush1.bf16.msra.mxu0 %v14472_v5  ;;  %v14558_v5 = vld [vmem:[#allocation12 + $0x604] ss:$16 sps:$4 sm:$0xff]  }
 0x62c   :  { %11509 = vmatpush1.bf16.msra.mxu1 %v14475_v38  ;;  %11346 = vmatprep.subr.bf16.mxu0 %v14480_v8  ;;  %v14561_v38 = vld [vmem:[#allocation12 + $0x60c] ss:$16 sps:$4 sm:$0xff]   ;;  %v3213_v8 = vrot.slane %v15450_v39, %v15302_v53 }
 0x62d   :  { %11510 = vmatprep.subr.bf16.mxu1 %v14483_v54  ;;  %v3217_v54 = vrot.slane %v15450_v39, %v15275_v63 }
 0x62f   :  { %11347 = vmatpush1.bf16.msra.mxu0 %v14478_v13  ;;  %v3225_v13 = vrot.slane %v15450_v39, %v15305_v2 }
 0x630   :  { %11511 = vmatpush1.bf16.msra.mxu1 %v14481_v62  ;;  %11348 = vmatprep.subr.bf16.mxu0 %v14486_v11 }
 0x631   :  { %11512 = vmatprep.subr.bf16.mxu1 %v14489_v46 }
 0x633   :  { %11349 = vmatpush1.bf16.msra.mxu0 %v14484_v16 }
 0x634   :  { %11513 = vmatpush1.bf16.msra.mxu1 %v14487_v35  ;;  %11350 = vmatprep.subr.bf16.mxu0 %v14492_v34 }
 0x635   :  { %11514 = vmatprep.subr.bf16.mxu1 %v14495_v52 }
 0x637   :  { %11351 = vmatpush1.bf16.msra.mxu0 %v14490_v22 }
 0x638   :  { %11515 = vmatpush1.bf16.msra.mxu1 %v14493_v24  ;;  %11352 = vmatprep.subr.bf16.mxu0 %v14498_v4 }
 0x639   :  { %11516 = vmatprep.subr.bf16.mxu1 %v14501_v25 }
 0x63b   :  { %11353 = vmatpush1.bf16.msra.mxu0 %v14496_v44 }
 0x63c   :  { %11517 = vmatpush1.bf16.msra.mxu1 %v14499_v15  ;;  %11354 = vmatprep.subr.bf16.mxu0 %v14504_v26  ;;  %v14556_v26 = vld [vmem:[#allocation12 + $0x600] ss:$16 sps:$4 sm:$0xff]  }
 0x63d   :  { %11518 = vmatprep.subr.bf16.mxu1 %v14507_v48  ;;  %v14559_v48 = vld [vmem:[#allocation12 + $0x608] ss:$16 sps:$4 sm:$0xff]  }
 0x63f   :  { %11355 = vmatpush1.bf16.msra.mxu0 %v14502_v27 }
 0x640   :  { %11519 = vmatpush1.bf16.msra.mxu1 %v14505_v28  ;;  %11356 = vmatprep.subr.bf16.mxu0 %v14510_v51  ;;  %v14564_v51 = vld [vmem:[#allocation12 + $0x624] ss:$16 sps:$4 sm:$0xff]  }
 0x641   :  { %11520 = vmatprep.subr.bf16.mxu1 %v14513_v10  ;;  %v14567_v10 = vld [vmem:[#allocation12 + $0x62c] ss:$16 sps:$4 sm:$0xff]  }
 0x643   :  { %11357 = vmatpush1.bf16.msra.mxu0 %v14508_v37 }
 0x644   :  { %11521 = vmatpush1.bf16.msra.mxu1 %v14511_v29  ;;  %11358 = vmatprep.subr.bf16.mxu0 %v14516_v30  ;;  %v14562_v29 = vld [vmem:[#allocation12 + $0x620] ss:$16 sps:$4 sm:$0xff]   ;;  %v14565_v30 = vld [vmem:[#allocation12 + $0x628] ss:$16 sps:$4 sm:$0xff]  }
 0x645   :  { %11522 = vmatprep.subr.bf16.mxu1 %v14519_v31  ;;  %v14570_v31 = vld [vmem:[#allocation12 + $0x644] ss:$16 sps:$4 sm:$0xff]  }
 0x647   :  { %11359 = vmatpush1.bf16.msra.mxu0 %v14514_v17  ;;  %v14573_v17 = vld [vmem:[#allocation12 + $0x64c] ss:$16 sps:$4 sm:$0xff]  }
 0x648   :  { %11523 = vmatpush1.bf16.msra.mxu1 %v14517_v33  ;;  %11360 = vmatprep.subr.bf16.mxu0 %v14522_v50  ;;  %v14568_v33 = vld [vmem:[#allocation12 + $0x640] ss:$16 sps:$4 sm:$0xff]   ;;  %v14571_v50 = vld [vmem:[#allocation12 + $0x648] ss:$16 sps:$4 sm:$0xff]  }
 0x649   :  { %11524 = vmatprep.subr.bf16.mxu1 %v14525_v42  ;;  %v14576_v42 = vld [vmem:[#allocation12 + $0x664] ss:$16 sps:$4 sm:$0xff]  }
 0x64b   :  { %11361 = vmatpush1.bf16.msra.mxu0 %v14520_v58  ;;  %v14579_v58 = vld [vmem:[#allocation12 + $0x66c] ss:$16 sps:$4 sm:$0xff]  }
 0x64c   :  { %11525 = vmatpush1.bf16.msra.mxu1 %v14523_v41  ;;  %11362 = vmatprep.subr.bf16.mxu0 %v14528_v40  ;;  %v14574_v41 = vld [vmem:[#allocation12 + $0x660] ss:$16 sps:$4 sm:$0xff]   ;;  %v14577_v40 = vld [vmem:[#allocation12 + $0x668] ss:$16 sps:$4 sm:$0xff]  }
 0x64d   :  { %11526 = vmatprep.subr.bf16.mxu1 %v14531_v43  ;;  %v14582_v43 = vld [vmem:[#allocation12 + $0x684] ss:$16 sps:$4 sm:$0xff]  }
 0x64f   :  { %11363 = vmatpush1.bf16.msra.mxu0 %v14526_v0  ;;  %v14585_v0 = vld [vmem:[#allocation12 + $0x68c] ss:$16 sps:$4 sm:$0xff]  }
 0x650   :  { %11527 = vmatpush1.bf16.msra.mxu1 %v14529_v12  ;;  %11364 = vmatprep.subr.bf16.mxu0 %v14534_v14  ;;  %v14580_v12 = vld [vmem:[#allocation12 + $0x680] ss:$16 sps:$4 sm:$0xff]   ;;  %v14583_v14 = vld [vmem:[#allocation12 + $0x688] ss:$16 sps:$4 sm:$0xff]  }
 0x651   :  { %11528 = vmatprep.subr.bf16.mxu1 %v14537_v45  ;;  %v14588_v45 = vld [vmem:[#allocation12 + $0x6a4] ss:$16 sps:$4 sm:$0xff]  }
 0x653   :  { %11365 = vmatpush1.bf16.msra.mxu0 %v14532_v21  ;;  %v14591_v21 = vld [vmem:[#allocation12 + $0x6ac] ss:$16 sps:$4 sm:$0xff]  }
 0x654   :  { %11529 = vmatpush1.bf16.msra.mxu1 %v14535_v47  ;;  %11366 = vmatprep.subr.bf16.mxu0 %v14540_v20  ;;  %v14586_v47 = vld [vmem:[#allocation12 + $0x6a0] ss:$16 sps:$4 sm:$0xff]   ;;  %v14589_v20 = vld [vmem:[#allocation12 + $0x6a8] ss:$16 sps:$4 sm:$0xff]  }
 0x655   :  { %11530 = vmatprep.subr.bf16.mxu1 %v14543_v32  ;;  %v14594_v32 = vld [vmem:[#allocation12 + $0x6c4] ss:$16 sps:$4 sm:$0xff]  }
 0x657   :  { %11367 = vmatpush1.bf16.msra.mxu0 %v14538_v60  ;;  %v14597_v60 = vld [vmem:[#allocation12 + $0x6cc] ss:$16 sps:$4 sm:$0xff]  }
 0x658   :  { %11531 = vmatpush1.bf16.msra.mxu1 %v14541_v7  ;;  %11368 = vmatprep.subr.bf16.mxu0 %v14546_v23  ;;  %v14592_v7 = vld [vmem:[#allocation12 + $0x6c0] ss:$16 sps:$4 sm:$0xff]   ;;  %v14595_v23 = vld [vmem:[#allocation12 + $0x6c8] ss:$16 sps:$4 sm:$0xff]  }
 0x659   :  { %11532 = vmatprep.subr.bf16.mxu1 %v14549_v49  ;;  %v14600_v49 = vld [vmem:[#allocation12 + $0x6e4] ss:$16 sps:$4 sm:$0xff]  }
 0x65b   :  { %11369 = vmatpush1.bf16.msra.mxu0 %v14544_v36  ;;  %v14603_v36 = vld [vmem:[#allocation12 + $0x6ec] ss:$16 sps:$4 sm:$0xff]  }
 0x65c   :  { %11533 = vmatpush1.bf16.msra.mxu1 %v14547_v55  ;;  %11370 = vmatprep.subr.bf16.mxu0 %v14552_v56  ;;  %v14598_v55 = vld [vmem:[#allocation12 + $0x6e0] ss:$16 sps:$4 sm:$0xff]   ;;  %v14601_v56 = vld [vmem:[#allocation12 + $0x6e8] ss:$16 sps:$4 sm:$0xff]  }
 0x65d   :  { %11534 = vmatprep.subr.bf16.mxu1 %v14555_v3  ;;  %v14606_v3 = vld [vmem:[#allocation12 + $0x704] ss:$16 sps:$4 sm:$0xff]  }
 0x65f   :  { %11371 = vmatpush1.bf16.msra.mxu0 %v14550_v6  ;;  %v14609_v6 = vld [vmem:[#allocation12 + $0x70c] ss:$16 sps:$4 sm:$0xff]  }
 0x660   :  { %11535 = vmatpush1.bf16.msra.mxu1 %v14553_v19  ;;  %11381 = vmatprep.subr.bf16.mxu0 %v14558_v5  ;;  %v14604_v19 = vld [vmem:[#allocation12 + $0x700] ss:$16 sps:$4 sm:$0xff]   ;;  %v14607_v5 = vld [vmem:[#allocation12 + $0x708] ss:$16 sps:$4 sm:$0xff]  }
 0x661   :  { %11545 = vmatprep.subr.bf16.mxu1 %v14561_v38  ;;  %v14612_v38 = vld [vmem:[#allocation12 + $0x724] ss:$16 sps:$4 sm:$0xff]  }
 0x675   :  { %v9331_v62 = vpop.f32.mrb[20].mxu0 }
 0x676   :  { %v14097_v11 = vadd.f32 %v9331_v62, %v3213_v8  ;;  %v15478_v46 = vpop.f32.mrb[20].mxu1  ;;  %v9333_v16 = vpop.f32.mrb[21].mxu0  ;;  %v14615_v8 = vld [vmem:[#allocation12 + $0x72c] ss:$16 sps:$4 sm:$0xff]   ;;  %v14618_v62 = vld [vmem:[#allocation12 + $0x744] ss:$16 sps:$4 sm:$0xff]  }
 0x677   :  { %v14098_v35 = vadd.f32 %v9333_v16, %v3217_v54  ;;  %v9661_v34 = vpop.f32.mrb[21].mxu1  ;;  %v9335_v52 = vpop.f32.mrb[22].mxu0  ;;  %v14610_v54 = vld [vmem:[#allocation12 + $0x720] ss:$16 sps:$4 sm:$0xff]  }
 0x678   :  { %vm9671_vm4 = vcmp.gt.f32.partialorder %v14097_v11, 0.0  ;;  %v9680_v22 = vmul.f32 %v14097_v11, %v15455_v1  ;;  %v14100_v24 = vadd.f32 %v9661_v34, %v3225_v13  ;;  %v9663_v4 = vpop.f32.mrb[22].mxu1  ;;  %v9336_v53 = vpop.f32.mrb[23].mxu0  ;;  %v14613_v13 = vld [vmem:[#allocation12 + $0x728] ss:$16 sps:$4 sm:$0xff]  }
 0x679   :  { %vm9672_vm5 = vcmp.gt.f32.partialorder %v14098_v35, 0.0  ;;  %v9681_v63 = vmul.f32 %v14098_v35, %v15455_v1  ;;  %v9664_v25 = vpop.f32.mrb[23].mxu1  ;;  %v14616_v16 = vld [vmem:[#allocation12 + $0x740] ss:$16 sps:$4 sm:$0xff]   ;;  %v14624_v34 = vld [vmem:[#allocation12 + $0x764] ss:$16 sps:$4 sm:$0xff]  }
 0x67a   :  { %v9688_v44 = vsel %vm9671_vm4, %v14097_v11, %v9680_v22  ;;  %vm9674_vm6 = vcmp.gt.f32.partialorder %v14100_v24, 0.0  ;;  %v9683_v2 = vmul.f32 %v14100_v24, %v15455_v1  ;;  %v14621_v11 = vld [vmem:[#allocation12 + $0x74c] ss:$16 sps:$4 sm:$0xff]   ;;  %v14622_v22 = vld [vmem:[#allocation12 + $0x760] ss:$16 sps:$4 sm:$0xff]  }
 0x67b   :  { %v9689_v39 = vsel %vm9672_vm5, %v14098_v35, %v9681_v63  ;;  %v9696_v28 = vpack.c.bf16 %v9688_v44, %v9688_v44  ;;  %v14619_v35 = vld [vmem:[#allocation12 + $0x748] ss:$16 sps:$4 sm:$0xff]   ;;  %v14627_v52 = vld [vmem:[#allocation12 + $0x76c] ss:$16 sps:$4 sm:$0xff]   ;;  %v14630_v4 = vld [vmem:[#allocation12 + $0x784] ss:$16 sps:$4 sm:$0xff]  }
 0x67c   :  { %v9697_v15 = vpack.c.bf16 %v9689_v39, %v9689_v39  ;;  %v9691_v27 = vsel %vm9674_vm6, %v14100_v24, %v9683_v2  ;;  %v14625_v24 = vld [vmem:[#allocation12 + $0x768] ss:$16 sps:$4 sm:$0xff]   ;;  %v14633_v53 = vld [vmem:[#allocation12 + $0x78c] ss:$16 sps:$4 sm:$0xff]   ;;  %v14628_v63 = vld [vmem:[#allocation12 + $0x780] ss:$16 sps:$4 sm:$0xff]  }
 0x67d   :  { %v9699_v37 = vpack.c.bf16 %v9691_v27, %v9691_v27  ;;  %v14631_v25 = vld [vmem:[#allocation12 + $0x788] ss:$16 sps:$4 sm:$0xff]   ;;  %v14636_v44 = vld [vmem:[#allocation12 + $0x7a4] ss:$16 sps:$4 sm:$0xff]   ;;  %v14639_v2 = vld [vmem:[#allocation12 + $0x7ac] ss:$16 sps:$4 sm:$0xff]  }
 0x67e   :  { %11372 = vmatprep.mubr.bf16.mxu0 %v9697_v15  ;;  %11536 = vmatprep.mubr.bf16.mxu1 %v9697_v15  ;;  %v14778_v39 = vld [vmem:[#allocation7 + $0x10] sm:$0xff] }
 0x67f   :  { %11373 = vmatmul.mubr.bf16.vlgmr.msra.gmra.mrb[24].mxu0 %v9696_v28  ;;  %11537 = vmatmul.mubr.bf16.vlgmr.msra.gmra.mrb[24].mxu1 %v9696_v28  ;;  %v3221_v15 = vrot.slane %v14778_v39, %v15334_v61  ;;  %v14642_v27 = vld [vmem:[#allocation12 + $0x7c4] ss:$16 sps:$4 sm:$0xff]   ;;  %v14645_v28 = vld [vmem:[#allocation12 + $0x7cc] ss:$16 sps:$4 sm:$0xff]  }
 0x680   :  { %11382 = vmatpush1.bf16.msra.mxu0 %v14556_v26  ;;  %11546 = vmatpush1.bf16.msra.mxu1 %v14559_v48  ;;  %v14634_v26 = vld [vmem:[#allocation12 + $0x7a0] ss:$16 sps:$4 sm:$0xff]   ;;  %v14637_v48 = vld [vmem:[#allocation12 + $0x7a8] ss:$16 sps:$4 sm:$0xff]  }
 0x681   :  { %11413 = vmatprep.mubr.bf16.mxu0 %v9699_v37  ;;  %11577 = vmatprep.mubr.bf16.mxu1 %v9699_v37  ;;  %v14643_v37 = vld [vmem:[#allocation12 + $0x7c8] ss:$16 sps:$4 sm:$0xff]  }
 0x682   :  { %11383 = vmatprep.subr.bf16.mxu0 %v14564_v51  ;;  %11547 = vmatprep.subr.bf16.mxu1 %v14567_v10  ;;  %v14099_v51 = vadd.f32 %v15478_v46, %v3221_v15  ;;  %v14640_v10 = vld [vmem:[#allocation12 + $0x7c0] ss:$16 sps:$4 sm:$0xff]   ;;  %v14759_v39 = vld [vmem:[#allocation15 + $0x28] sm:$0xff]   ;;  %v9956_v15 = vld [vmem:[#allocation7 + $0x18] sm:$0xf] }
 0x683   :  { %v14652_v46 = vld [vmem:[#allocation13] ss:$8 sps:$4 sm:$0xff]  }
 0x684   :  { %11384 = vmatpush1.bf16.msra.mxu0 %v14562_v29  ;;  %11548 = vmatpush1.bf16.msra.mxu1 %v14565_v30  ;;  %v14648_v29 = vld [vmem:[#allocation12 + $0x7e4] ss:$16 sps:$4 sm:$0xff]   ;;  %v14651_v30 = vld [vmem:[#allocation12 + $0x7ec] ss:$16 sps:$4 sm:$0xff]   ;;  %v9682_v61 = vmul.f32 %v14099_v51, %v15455_v1  ;;  %vm9673_vm7 = vcmp.gt.f32.partialorder %v14099_v51, 0.0 }
 0x685   :  { %11385 = vmatprep.subr.bf16.mxu0 %v14570_v31  ;;  %11549 = vmatprep.subr.bf16.mxu1 %v14573_v17  ;;  %v14646_v31 = vld [vmem:[#allocation12 + $0x7e0] ss:$16 sps:$4 sm:$0xff]   ;;  %v14649_v17 = vld [vmem:[#allocation12 + $0x7e8] ss:$16 sps:$4 sm:$0xff]   ;;  %v14660_v1 = vld [vmem:[#allocation13 + $0x24] ss:$8 sps:$4 sm:$0xff]  }
 0x688   :  { %11386 = vmatpush1.bf16.msra.mxu0 %v14568_v33  ;;  %11550 = vmatpush1.bf16.msra.mxu1 %v14571_v50  ;;  %v14654_v33 = vld [vmem:[#allocation13 + $0x4] ss:$8 sps:$4 sm:$0xff]   ;;  %v9690_v50 = vsel %vm9673_vm7, %v14099_v51, %v9682_v61 }
 0x689   :  { %11387 = vmatprep.subr.bf16.mxu0 %v14576_v42  ;;  %11551 = vmatprep.subr.bf16.mxu1 %v14579_v58  ;;  %v9698_v42 = vpack.c.bf16 %v9690_v50, %v9690_v50  ;;  %v14657_v58 = vld [vmem:[#allocation13 + $0x14] ss:$8 sps:$4 sm:$0xff]  }
 0x68c   :  { %11388 = vmatpush1.bf16.msra.mxu0 %v14574_v41  ;;  %11552 = vmatpush1.bf16.msra.mxu1 %v14577_v40  ;;  %v14655_v41 = vld [vmem:[#allocation13 + $0x10] ss:$8 sps:$4 sm:$0xff]   ;;  %v14658_v40 = vld [vmem:[#allocation13 + $0x20] ss:$8 sps:$4 sm:$0xff]  }
 0x68d   :  { %11389 = vmatprep.subr.bf16.mxu0 %v14582_v43  ;;  %11553 = vmatprep.subr.bf16.mxu1 %v14585_v0  ;;  %v14663_v43 = vld [vmem:[#allocation13 + $0x34] ss:$8 sps:$4 sm:$0xff]   ;;  %v14661_v0 = vld [vmem:[#allocation13 + $0x30] ss:$8 sps:$4 sm:$0xff]  }
 0x690   :  { %11390 = vmatpush1.bf16.msra.mxu0 %v14580_v12  ;;  %11554 = vmatpush1.bf16.msra.mxu1 %v14583_v14  ;;  %v14666_v12 = vld [vmem:[#allocation13 + $0x44] ss:$8 sps:$4 sm:$0xff]   ;;  %v14664_v14 = vld [vmem:[#allocation13 + $0x40] ss:$8 sps:$4 sm:$0xff]  }
 0x691   :  { %11391 = vmatprep.subr.bf16.mxu0 %v14588_v45  ;;  %11555 = vmatprep.subr.bf16.mxu1 %v14591_v21  ;;  %v14669_v45 = vld [vmem:[#allocation13 + $0x54] ss:$8 sps:$4 sm:$0xff]   ;;  %v14667_v21 = vld [vmem:[#allocation13 + $0x50] ss:$8 sps:$4 sm:$0xff]  }
 0x694   :  { %11392 = vmatpush1.bf16.msra.mxu0 %v14586_v47  ;;  %11556 = vmatpush1.bf16.msra.mxu1 %v14589_v20  ;;  %v14672_v47 = vld [vmem:[#allocation13 + $0x64] ss:$8 sps:$4 sm:$0xff]   ;;  %v14670_v20 = vld [vmem:[#allocation13 + $0x60] ss:$8 sps:$4 sm:$0xff]  }
 0x695   :  { %11393 = vmatprep.subr.bf16.mxu0 %v14594_v32  ;;  %11557 = vmatprep.subr.bf16.mxu1 %v14597_v60  ;;  %v14675_v32 = vld [vmem:[#allocation13 + $0x74] ss:$8 sps:$4 sm:$0xff]   ;;  %v14673_v60 = vld [vmem:[#allocation13 + $0x70] ss:$8 sps:$4 sm:$0xff]  }
 0x698   :  { %11394 = vmatpush1.bf16.msra.mxu0 %v14592_v7  ;;  %11558 = vmatpush1.bf16.msra.mxu1 %v14595_v23  ;;  %v14678_v7 = vld [vmem:[#allocation13 + $0x84] ss:$8 sps:$4 sm:$0xff]   ;;  %v14676_v23 = vld [vmem:[#allocation13 + $0x80] ss:$8 sps:$4 sm:$0xff]  }
 0x699   :  { %11395 = vmatprep.subr.bf16.mxu0 %v14600_v49  ;;  %11559 = vmatprep.subr.bf16.mxu1 %v14603_v36  ;;  %v14681_v49 = vld [vmem:[#allocation13 + $0x94] ss:$8 sps:$4 sm:$0xff]   ;;  %v14679_v36 = vld [vmem:[#allocation13 + $0x90] ss:$8 sps:$4 sm:$0xff]  }
 0x69c   :  { %11396 = vmatpush1.bf16.msra.mxu0 %v14598_v55  ;;  %11560 = vmatpush1.bf16.msra.mxu1 %v14601_v56  ;;  %v14684_v55 = vld [vmem:[#allocation13 + $0xa4] ss:$8 sps:$4 sm:$0xff]   ;;  %v14682_v56 = vld [vmem:[#allocation13 + $0xa0] ss:$8 sps:$4 sm:$0xff]  }
 0x69d   :  { %11397 = vmatprep.subr.bf16.mxu0 %v14606_v3  ;;  %11561 = vmatprep.subr.bf16.mxu1 %v14609_v6  ;;  %v14687_v3 = vld [vmem:[#allocation13 + $0xb4] ss:$8 sps:$4 sm:$0xff]   ;;  %v14685_v6 = vld [vmem:[#allocation13 + $0xb0] ss:$8 sps:$4 sm:$0xff]  }
 0x6a0   :  { %11398 = vmatpush1.bf16.msra.mxu0 %v14604_v19  ;;  %11562 = vmatpush1.bf16.msra.mxu1 %v14607_v5  ;;  %v14690_v19 = vld [vmem:[#allocation13 + $0xc4] ss:$8 sps:$4 sm:$0xff]   ;;  %v14688_v5 = vld [vmem:[#allocation13 + $0xc0] ss:$8 sps:$4 sm:$0xff]  }
 0x6a1   :  { %11399 = vmatprep.subr.bf16.mxu0 %v14612_v38  ;;  %11563 = vmatprep.subr.bf16.mxu1 %v14615_v8  ;;  %v14693_v38 = vld [vmem:[#allocation13 + $0xd4] ss:$8 sps:$4 sm:$0xff]   ;;  %v14691_v8 = vld [vmem:[#allocation13 + $0xd0] ss:$8 sps:$4 sm:$0xff]  }
 0x6a4   :  { %11400 = vmatpush1.bf16.msra.mxu0 %v14610_v54  ;;  %11564 = vmatpush1.bf16.msra.mxu1 %v14613_v13  ;;  %v14696_v54 = vld [vmem:[#allocation13 + $0xe4] ss:$8 sps:$4 sm:$0xff]   ;;  %v14694_v13 = vld [vmem:[#allocation13 + $0xe0] ss:$8 sps:$4 sm:$0xff]  }
 0x6a5   :  { %11401 = vmatprep.subr.bf16.mxu0 %v14618_v62  ;;  %11565 = vmatprep.subr.bf16.mxu1 %v14621_v11  ;;  %v14699_v62 = vld [vmem:[#allocation13 + $0xf4] ss:$8 sps:$4 sm:$0xff]   ;;  %v14697_v11 = vld [vmem:[#allocation13 + $0xf0] ss:$8 sps:$4 sm:$0xff]  }
 0x6a8   :  { %11402 = vmatpush1.bf16.msra.mxu0 %v14616_v16  ;;  %11566 = vmatpush1.bf16.msra.mxu1 %v14619_v35  ;;  %v14702_v16 = vld [vmem:[#allocation13 + $0x104] ss:$8 sps:$4 sm:$0xff]  }
 0x6a9   :  { %11403 = vmatprep.subr.bf16.mxu0 %v14624_v34  ;;  %11567 = vmatprep.subr.bf16.mxu1 %v14627_v52  ;;  %v14748_v35 = vld [vmem:[#allocation15 + $0x40] sm:$0xff]   ;;  %v14750_v52 = vld [vmem:[#allocation15 + $0x48] sm:$0xff]  }
 0x6aa   :  { %v14749_v34 = vld [vmem:[#allocation15] sm:$0xff]  }
 0x6ac   :  { %11404 = vmatpush1.bf16.msra.mxu0 %v14622_v22  ;;  %11568 = vmatpush1.bf16.msra.mxu1 %v14625_v24  ;;  %v14751_v22 = vld [vmem:[#allocation15 + $0x8] sm:$0xff]   ;;  %v14752_v24 = vld [vmem:[#allocation15 + $0x50] sm:$0xff]  }
 0x6ad   :  { %11405 = vmatprep.subr.bf16.mxu0 %v14630_v4  ;;  %11569 = vmatprep.subr.bf16.mxu1 %v14633_v53  ;;  %v14753_v4 = vld [vmem:[#allocation15 + $0x10] sm:$0xff]   ;;  %v14754_v53 = vld [vmem:[#allocation15 + $0x58] sm:$0xff]  }
 0x6b0   :  { %11406 = vmatpush1.bf16.msra.mxu0 %v14628_v63  ;;  %11570 = vmatpush1.bf16.msra.mxu1 %v14631_v25  ;;  %v14755_v63 = vld [vmem:[#allocation15 + $0x18] sm:$0xff]   ;;  %v14756_v25 = vld [vmem:[#allocation15 + $0x60] sm:$0xff]  }
 0x6b1   :  { %11407 = vmatprep.subr.bf16.mxu0 %v14636_v44  ;;  %11571 = vmatprep.subr.bf16.mxu1 %v14639_v2  ;;  %v14757_v44 = vld [vmem:[#allocation15 + $0x20] sm:$0xff]   ;;  %v14758_v2 = vld [vmem:[#allocation15 + $0x68] sm:$0xff]  }
 0x6b4   :  { %11408 = vmatpush1.bf16.msra.mxu0 %v14634_v26  ;;  %11572 = vmatpush1.bf16.msra.mxu1 %v14637_v48  ;;  %v9961_v26 = vrot.slane %v9956_v15, %v15242_v9  ;;  %v9969_v48 = vrot.slane %v9956_v15, %v15272_v57 }
 0x6b5   :  { %11409 = vmatprep.subr.bf16.mxu0 %v14642_v27  ;;  %11573 = vmatprep.subr.bf16.mxu1 %v14645_v28  ;;  %v9965_v27 = vrot.slane %v9956_v15, %v15222_v59  ;;  %v9973_v28 = vrot.slane %v9956_v15, %v15245_v18  ;;  %v14761_v15 = vld [vmem:[#allocation15 + $0x30] sm:$0xff]  }
 0x6b8   :  { %11410 = vmatpush1.bf16.msra.mxu0 %v14640_v10  ;;  %11574 = vmatpush1.bf16.msra.mxu1 %v14643_v37  ;;  %v11591_v10 = vstv %s13948_s17 }
 0x6b9   :  { %11411 = vmatprep.subr.bf16.mxu0 %v14648_v29  ;;  %11575 = vmatprep.subr.bf16.mxu1 %v14651_v30 }
 0x6bc   :  { %11412 = vmatpush1.bf16.msra.mxu0 %v14646_v31  ;;  %11576 = vmatpush1.bf16.msra.mxu1 %v14649_v17 }
 0x6bd   :  { %12000 = vmatprep.subr.bf16.mxu0 %v14654_v33  ;;  %14042 = vmatprep.subr.bf16.mxu1 %v14748_v35  ;;  %v14735_v35 = vld [vmem:[#allocation13 + $0x1b4] ss:$8 sps:$4 sm:$0xff]  }
 0x6bf   :  { %11414 = vmatmul.mubr.bf16.vlgmr.msra.gmra.mrb[24].mxu0 %v9698_v42  ;;  %11578 = vmatmul.mubr.bf16.vlgmr.msra.gmra.mrb[24].mxu1 %v9698_v42 }
 0x6c0   :  { %12001 = vmatpush1.bf16.msra.mxu0 %v14652_v46  ;;  %14043 = vmatpush3.bf16.msra.mxu1 %v14749_v34  ;;  %v14733_v34 = vld [vmem:[#allocation13 + $0x1b0] ss:$8 sps:$4 sm:$0xff]  }
 0x6c1   :  { %12002 = vmatprep.subr.bf16.mxu0 %v14657_v58  ;;  %14044 = vmatprep.subr.bf16.mxu1 %v14750_v52  ;;  %v14738_v52 = vld [vmem:[#allocation13 + $0x1c4] ss:$8 sps:$4 sm:$0xff]  }
 0x6c4   :  { %12003 = vmatpush1.bf16.msra.mxu0 %v14655_v41  ;;  %14045 = vmatpush3.bf16.msra.mxu1 %v14751_v22  ;;  %v14736_v22 = vld [vmem:[#allocation13 + $0x1c0] ss:$8 sps:$4 sm:$0xff]  }
 0x6c5   :  { %12004 = vmatprep.subr.bf16.mxu0 %v14660_v1  ;;  %14046 = vmatprep.subr.bf16.mxu1 %v14752_v24  ;;  %v14741_v24 = vld [vmem:[#allocation13 + $0x1d4] ss:$8 sps:$4 sm:$0xff]  }
 0x6c8   :  { %12005 = vmatpush1.bf16.msra.mxu0 %v14658_v40  ;;  %14047 = vmatpush3.bf16.msra.mxu1 %v14753_v4  ;;  %v14739_v4 = vld [vmem:[#allocation13 + $0x1d0] ss:$8 sps:$4 sm:$0xff]  }
 0x6c9   :  { %12006 = vmatprep.subr.bf16.mxu0 %v14663_v43  ;;  %14048 = vmatprep.subr.bf16.mxu1 %v14754_v53  ;;  %v14744_v53 = vld [vmem:[#allocation13 + $0x1e4] ss:$8 sps:$4 sm:$0xff]  }
 0x6cc   :  { %12007 = vmatpush1.bf16.msra.mxu0 %v14661_v0  ;;  %14049 = vmatpush3.bf16.msra.mxu1 %v14755_v63  ;;  %v14742_v63 = vld [vmem:[#allocation13 + $0x1e0] ss:$8 sps:$4 sm:$0xff]  }
 0x6cd   :  { %12008 = vmatprep.subr.bf16.mxu0 %v14666_v12  ;;  %14050 = vmatprep.subr.bf16.mxu1 %v14756_v25  ;;  %v14747_v25 = vld [vmem:[#allocation13 + $0x1f4] ss:$8 sps:$4 sm:$0xff]  }
 0x6d0   :  { %12009 = vmatpush1.bf16.msra.mxu0 %v14664_v14  ;;  %14051 = vmatpush3.bf16.msra.mxu1 %v14757_v44  ;;  %v14745_v44 = vld [vmem:[#allocation13 + $0x1f0] ss:$8 sps:$4 sm:$0xff]  }
 0x6d1   :  { %12010 = vmatprep.subr.bf16.mxu0 %v14669_v45  ;;  %14052 = vmatprep.subr.bf16.mxu1 %v14758_v2  ;;  %v14700_v45 = vld [vmem:[#allocation13 + $0x100] ss:$8 sps:$4 sm:$0xff]  }
 0x6d4   :  { %12011 = vmatpush1.bf16.msra.mxu0 %v14667_v21  ;;  %14053 = vmatpush3.bf16.msra.mxu1 %v14759_v39  ;;  %v14760_v39 = vld [vmem:[#allocation15 + $0x70] sm:$0xff]  }
 0x6d5   :  { %12012 = vmatprep.subr.bf16.mxu0 %v14672_v47  ;;  %v14705_v47 = vld [vmem:[#allocation13 + $0x114] ss:$8 sps:$4 sm:$0xff]   ;;  %14054 = vmatprep.subr.bf16.mxu1 %v14760_v39 }
 0x6d8   :  { %12013 = vmatpush1.bf16.msra.mxu0 %v14670_v20  ;;  %14055 = vmatpush3.bf16.msra.mxu1 %v14761_v15 }
 0x6d9   :  { %12014 = vmatprep.subr.bf16.mxu0 %v14675_v32  ;;  %v14703_v32 = vld [vmem:[#allocation13 + $0x110] ss:$8 sps:$4 sm:$0xff]  }
 0x6dc   :  { %12015 = vmatpush1.bf16.msra.mxu0 %v14673_v60  ;;  %v14708_v60 = vld [vmem:[#allocation13 + $0x124] ss:$8 sps:$4 sm:$0xff]  }
 0x6dd   :  { %12016 = vmatprep.subr.bf16.mxu0 %v14678_v7  ;;  %v14706_v7 = vld [vmem:[#allocation13 + $0x120] ss:$8 sps:$4 sm:$0xff]  }
 0x6e0   :  { %12017 = vmatpush1.bf16.msra.mxu0 %v14676_v23  ;;  %v14711_v23 = vld [vmem:[#allocation13 + $0x134] ss:$8 sps:$4 sm:$0xff]  }
 0x6e1   :  { %12018 = vmatprep.subr.bf16.mxu0 %v14681_v49  ;;  %v14709_v49 = vld [vmem:[#allocation13 + $0x130] ss:$8 sps:$4 sm:$0xff]  }
 0x6e4   :  { %12019 = vmatpush1.bf16.msra.mxu0 %v14679_v36  ;;  %v14714_v36 = vld [vmem:[#allocation13 + $0x144] ss:$8 sps:$4 sm:$0xff]  }
 0x6e5   :  { %12020 = vmatprep.subr.bf16.mxu0 %v14684_v55  ;;  %v14712_v55 = vld [vmem:[#allocation13 + $0x140] ss:$8 sps:$4 sm:$0xff]  }
 0x6e8   :  { %12021 = vmatpush1.bf16.msra.mxu0 %v14682_v56  ;;  %v14717_v56 = vld [vmem:[#allocation13 + $0x154] ss:$8 sps:$4 sm:$0xff]  }
 0x6e9   :  { %12022 = vmatprep.subr.bf16.mxu0 %v14687_v3  ;;  %v14715_v3 = vld [vmem:[#allocation13 + $0x150] ss:$8 sps:$4 sm:$0xff]  }
 0x6ec   :  { %12023 = vmatpush1.bf16.msra.mxu0 %v14685_v6  ;;  %v14720_v6 = vld [vmem:[#allocation13 + $0x164] ss:$8 sps:$4 sm:$0xff]  }
 0x6ed   :  { %12024 = vmatprep.subr.bf16.mxu0 %v14690_v19  ;;  %v14718_v19 = vld [vmem:[#allocation13 + $0x160] ss:$8 sps:$4 sm:$0xff]  }
 0x6f0   :  { %12025 = vmatpush1.bf16.msra.mxu0 %v14688_v5  ;;  %v14723_v5 = vld [vmem:[#allocation13 + $0x174] ss:$8 sps:$4 sm:$0xff]  }
 0x6f1   :  { %12026 = vmatprep.subr.bf16.mxu0 %v14693_v38  ;;  %v14721_v38 = vld [vmem:[#allocation13 + $0x170] ss:$8 sps:$4 sm:$0xff]  }
 0x6f4   :  { %12027 = vmatpush1.bf16.msra.mxu0 %v14691_v8  ;;  %v14726_v8 = vld [vmem:[#allocation13 + $0x184] ss:$8 sps:$4 sm:$0xff]  }
 0x6f5   :  { %12028 = vmatprep.subr.bf16.mxu0 %v14696_v54  ;;  %v14724_v54 = vld [vmem:[#allocation13 + $0x180] ss:$8 sps:$4 sm:$0xff]  }
 0x6f8   :  { %12029 = vmatpush1.bf16.msra.mxu0 %v14694_v13  ;;  %v14729_v13 = vld [vmem:[#allocation13 + $0x194] ss:$8 sps:$4 sm:$0xff]  }
 0x6f9   :  { %12030 = vmatprep.subr.bf16.mxu0 %v14699_v62  ;;  %v14727_v62 = vld [vmem:[#allocation13 + $0x190] ss:$8 sps:$4 sm:$0xff]  }
 0x6fc   :  { %12031 = vmatpush1.bf16.msra.mxu0 %v14697_v11  ;;  %v14732_v11 = vld [vmem:[#allocation13 + $0x1a4] ss:$8 sps:$4 sm:$0xff]  }
 0x6fd   :  { %12041 = vmatprep.subr.bf16.mxu0 %v14702_v16  ;;  %v14730_v16 = vld [vmem:[#allocation13 + $0x1a0] ss:$8 sps:$4 sm:$0xff]  }
 0x792   :  { %v11415_v51 = vpop.f32.mrb[24].mxu0  ;;  %v11579_v37 = vpop.f32.mrb[24].mxu1 }
 0x793   :  { %v14101_v29 = vadd.f32 %v11415_v51, %v9961_v26  ;;  %v14103_v30 = vadd.f32 %v11579_v37, %v9969_v48  ;;  %v11417_v61 = vpop.f32.mrb[25].mxu0  ;;  %v11581_v31 = vpop.f32.mrb[25].mxu1  ;;  %v14762_v26 = vld [vmem:[#allocation15 + $0x78] sm:$0xff]  }
 0x794   :  { %v14102_v17 = vadd.f32 %v11417_v61, %v9965_v27  ;;  %v14104_v33 = vadd.f32 %v11581_v31, %v9973_v28  ;;  %v11419_v50 = vpop.f32.mrb[26].mxu0  ;;  %v11583_v46 = vpop.f32.mrb[26].mxu1  ;;  %v14763_v48 = vld [vmem:[#allocation15 + $0x38] sm:$0xff]   ;;  %14056 = vmatprep.subr.bf16.mxu1 %v14762_v26  ;;  %v15019_v27 = vmov 0.0  }
 0x795   :  { %vm11587_vm8 = vcmp.gt.f32.partialorder %v14101_v29, 0.0  ;;  %v11592_v42 = vmul.f32 %v14101_v29, %v11591_v10  ;;  %vm11589_vm9 = vcmp.gt.f32.partialorder %v14103_v30, 0.0  ;;  %v11594_v58 = vmul.f32 %v14103_v30, %v11591_v10  ;;  %v11420_v57 = vpop.f32.mrb[27].mxu0  ;;  %v11584_v41 = vpop.f32.mrb[27].mxu1  ;;  %14057 = vmatpush3.bf16.msra.mxu1 %v14763_v48  ;;  %v11668_v28 = vld [vmem:[#allocation7 + $0x1c] sm:$0x3] }
 0x796   :  { %vm11588_vm10 = vcmp.gt.f32.partialorder %v14102_v17, 0.0  ;;  %v11593_v1 = vmul.f32 %v14102_v17, %v11591_v10  ;;  %vm11590_vm11 = vcmp.gt.f32.partialorder %v14104_v33, 0.0  ;;  %v11595_v18 = vmul.f32 %v14104_v33, %v11591_v10  ;;  %14073 = vmatprep.subr.bf16.mxu1 %v15019_v27  ;;  %v14764_v41 = vld [vmem:[#allocation16] sm:$0xff]  }
 0x797   :  { %v11596_v40 = vsel %vm11587_vm8, %v14101_v29, %v11592_v42  ;;  %v15490_v43 = vsel %vm11589_vm9, %v14103_v30, %v11594_v58  ;;  %v11673_v51 = vrot.slane %v11668_v28, %v15242_v9  ;;  %v11677_v10 = vrot.slane %v11668_v28, %v15222_v59  ;;  %v14765_v59 = vld [vmem:[#allocation16 + $0x8] sm:$0xff]   ;;  %v14766_v9 = vld [vmem:[#allocation16 + $0x10] sm:$0xff]  }
 0x798   :  { %v11597_v0 = vsel %vm11588_vm10, %v14102_v17, %v11593_v1  ;;  %v11599_v12 = vsel %vm11590_vm11, %v14104_v33, %v11595_v18  ;;  %v11600_v21 = vpack.c.bf16 %v11596_v40, %v11596_v40  ;;  %v11602_v2 = vpack.c.bf16 %v15490_v43, %v15490_v43  ;;  %v14767_v18 = vld [vmem:[#allocation16 + $0x18] sm:$0xff]   ;;  %v14768_v40 = vld [vmem:[#allocation16 + $0x20] sm:$0xff]   ;;  %v14769_v43 = vld [vmem:[#allocation16 + $0x28] sm:$0xff]  }
 0x799   :  { %v11601_v14 = vpack.c.bf16 %v11597_v0, %v11597_v0  ;;  %v11603_v20 = vpack.c.bf16 %v11599_v12, %v11599_v12  ;;  %v12085_v29 = vstv %s14013_s0  ;;  %v14770_v0 = vld [vmem:[#allocation16 + $0x30] sm:$0xff]   ;;  %v14771_v12 = vld [vmem:[#allocation16 + $0x38] sm:$0xff]  }
 0x79b   :  { %12032 = vmatprep.mubr.bf16.mxu0 %v11601_v14 }
 0x79c   :  { %12033 = vmatmul.mubr.bf16.vlgmr.msra.gmra.mrb[28].mxu0 %v11600_v21 }
 0x79d   :  { %12042 = vmatpush1.bf16.msra.mxu0 %v14700_v45  ;;  %12073 = vmatprep.mubr.bf16.mxu0 %v11603_v20  ;;  %v14014_v45 = vld [vmem:[#allocation7 + $0x1e] ss:$0 sm:$0xff] }
 0x79e   :  { %12043 = vmatprep.subr.bf16.mxu0 %v14705_v47 }
 0x7a1   :  { %12044 = vmatpush1.bf16.msra.mxu0 %v14703_v32  ;;  %v12269_v32 = vstv %s14031_s12 }
 0x7a2   :  { %12045 = vmatprep.subr.bf16.mxu0 %v14708_v60 }
 0x7a5   :  { %12046 = vmatpush1.bf16.msra.mxu0 %v14706_v7 }
 0x7a6   :  { %12047 = vmatprep.subr.bf16.mxu0 %v14711_v23 }
 0x7a9   :  { %12048 = vmatpush1.bf16.msra.mxu0 %v14709_v49 }
 0x7aa   :  { %12049 = vmatprep.subr.bf16.mxu0 %v14714_v36 }
 0x7ad   :  { %12050 = vmatpush1.bf16.msra.mxu0 %v14712_v55  ;;  %v14032_v55 = vld [vmem:[#allocation7 + $0x1f] ss:$0 sm:$0xff] }
 0x7ae   :  { %12051 = vmatprep.subr.bf16.mxu0 %v14717_v56 }
 0x7b1   :  { %12052 = vmatpush1.bf16.msra.mxu0 %v14715_v3 }
 0x7b2   :  { %12053 = vmatprep.subr.bf16.mxu0 %v14720_v6 }
 0x7b5   :  { %12054 = vmatpush1.bf16.msra.mxu0 %v14718_v19 }
 0x7b6   :  { %12055 = vmatprep.subr.bf16.mxu0 %v14723_v5 }
 0x7b9   :  { %12056 = vmatpush1.bf16.msra.mxu0 %v14721_v38 }
 0x7ba   :  { %12057 = vmatprep.subr.bf16.mxu0 %v14726_v8 }
 0x7bd   :  { %12058 = vmatpush1.bf16.msra.mxu0 %v14724_v54 }
 0x7be   :  { %12059 = vmatprep.subr.bf16.mxu0 %v14729_v13 }
 0x7c1   :  { %12060 = vmatpush1.bf16.msra.mxu0 %v14727_v62 }
 0x7c2   :  { %12061 = vmatprep.subr.bf16.mxu0 %v14732_v11 }
 0x7c5   :  { %12062 = vmatpush1.bf16.msra.mxu0 %v14730_v16 }
 0x7c6   :  { %12063 = vmatprep.subr.bf16.mxu0 %v14735_v35 }
 0x7c9   :  { %12064 = vmatpush1.bf16.msra.mxu0 %v14733_v34 }
 0x7ca   :  { %12065 = vmatprep.subr.bf16.mxu0 %v14738_v52 }
 0x7cd   :  { %12066 = vmatpush1.bf16.msra.mxu0 %v14736_v22 }
 0x7ce   :  { %12067 = vmatprep.subr.bf16.mxu0 %v14741_v24 }
 0x7d1   :  { %12068 = vmatpush1.bf16.msra.mxu0 %v14739_v4 }
 0x7d2   :  { %12069 = vmatprep.subr.bf16.mxu0 %v14744_v53 }
 0x7d5   :  { %12070 = vmatpush1.bf16.msra.mxu0 %v14742_v63 }
 0x7d6   :  { %12071 = vmatprep.subr.bf16.mxu0 %v14747_v25 }
 0x7d9   :  { %12072 = vmatpush1.bf16.msra.mxu0 %v14745_v44 }
 0x7dc   :  { %12074 = vmatmul.mubr.bf16.vlgmr.msra.gmra.mrb[28].mxu0 %v11602_v2 }
 0x8af   :  { %v12075_v37 = vpop.f32.mrb[28].mxu0 }
 0x8b0   :  { %v14105_v30 = vadd.f32 %v12075_v37, %v11673_v51  ;;  %v12077_v61 = vpop.f32.mrb[29].mxu0 }
 0x8b1   :  { %v14106_v31 = vadd.f32 %v12077_v61, %v11677_v10  ;;  %v12079_v17 = vpop.f32.mrb[30].mxu0 }
 0x8b2   :  { %vm12083_vm12 = vcmp.gt.f32.partialorder %v14105_v30, 0.0  ;;  %v12086_v33 = vmul.f32 %v14105_v30, %v12085_v29  ;;  %v12080_v50 = vpop.f32.mrb[31].mxu0 }
 0x8b3   :  { %vm12084_vm13 = vcmp.gt.f32.partialorder %v14106_v31, 0.0  ;;  %v12087_v46 = vmul.f32 %v14106_v31, %v12085_v29 }
 0x8b4   :  { %v12088_v42 = vsel %vm12083_vm12, %v14105_v30, %v12086_v33 }
 0x8b5   :  { %v12089_v58 = vsel %vm12084_vm13, %v14106_v31, %v12087_v46  ;;  %v12090_v1 = vpack.c.bf16 %v12088_v42, %v12088_v42 }
 0x8b6   :  { %v12091_v57 = vpack.c.bf16 %v12089_v58, %v12089_v58 }
 0x8b8   :  { %12259 = vmatprep.mubr.bf16.mxu1 %v12091_v57 }
 0x8b9   :  { %12260 = vmatmul.mubr.bf16.vlgmr.msra.gmra.mrb[28].mxu1 %v12090_v1 }
 0x8ba   :  { %14074 = vmatpush3.bf16.msra.mxu1 %v14764_v41  ;;  %14089 = vmatprep.mubr.msk.bf16.mxu1 %vm15020_vm14, %v15019_v27 }
 0x8bb   :  { %14075 = vmatprep.subr.bf16.mxu1 %v15019_v27 }
 0x8be   :  { %14076 = vmatpush3.bf16.msra.mxu1 %v14765_v59 }
 0x8bf   :  { %14077 = vmatprep.subr.bf16.mxu1 %v15019_v27 }
 0x8c2   :  { %14078 = vmatpush3.bf16.msra.mxu1 %v14766_v9 }
 0x8c3   :  { %14079 = vmatprep.subr.bf16.mxu1 %v15019_v27 }
 0x8c6   :  { %14080 = vmatpush3.bf16.msra.mxu1 %v14767_v18 }
 0x8c7   :  { %14081 = vmatprep.subr.bf16.mxu1 %v15019_v27 }
 0x8ca   :  { %14082 = vmatpush3.bf16.msra.mxu1 %v14768_v40 }
 0x8cb   :  { %14083 = vmatprep.subr.bf16.mxu1 %v15019_v27 }
 0x8ce   :  { %14084 = vmatpush3.bf16.msra.mxu1 %v14769_v43 }
 0x8cf   :  { %14085 = vmatprep.subr.bf16.mxu1 %v15019_v27 }
 0x8d2   :  { %14086 = vmatpush3.bf16.msra.mxu1 %v14770_v0 }
 0x8d3   :  { %14087 = vmatprep.subr.bf16.mxu1 %v15019_v27 }
 0x8d6   :  { %14088 = vmatpush3.bf16.msra.mxu1 %v14771_v12 }
 0x98c   :  { %v14058_v14 = vpop.f32.mrb[28].mxu1 }
 0x98d   :  { %v14059_v21 = vpop.f32.mrb[29].mxu1 }
 0x98e   :  { %v14060_v47 = vadd.f32 %v14059_v21, %v14058_v14  ;;  %v14061_v20 = vpop.f32.mrb[30].mxu1 }
 0x98f   :  { %v14062_v60 = vpop.f32.mrb[31].mxu1 }
 0x990   :  { %v12262_v7 = vadd.f32 %v14060_v47, %v14014_v45 }
 0x992   :  { %vm12268_vm15 = vcmp.gt.f32.partialorder %v12262_v7, 0.0  ;;  %v12270_v23 = vmul.f32 %v12269_v32, %v12262_v7 }
 0x994   :  { %v12271_v49 = vsel %vm12268_vm15, %v12262_v7, %v12270_v23 }
 0x995   :  { %v12272_v36 = vpack.c.bf16 %v12271_v49, %v12271_v49 }
 0x997   :  { %14090 = vmatmul.mubr.bf16.vlgmr.msra.gmra.mrb[32].mxu1 %v12272_v36 }
 0xa6a   :  { %v12378_v56 = vpop.f32.mrb[32].mxu1 }
 0xa6b   :  { %v12379_v3 = vadd.f32 %v14032_v55, %v12378_v56  ;;  %v14091_v6 = vpop.f32.mrb[33].mxu1 }
 0xa6c   :  { %v12381_v19 = vpop.f32.mrb[34].mxu1 }
 0xa6d   :  { %v14041_v5 = vmul.f32 -1.442695, %v12379_v3  ;;  %v14092_v38 = vpop.f32.mrb[35].mxu1 }
 0xa6f   :  { %14772 = vpow2.f32 %v14041_v5 }
 0xa79   :  { %v14773_v8 = vpop.eup %14772 }
 0xa7a   :  { %v12387_v54 = vadd.f32 1.0, %v14773_v8 }
 0xa7c   :  { %14774 = vrcp.f32 %v12387_v54 }
 0xa86   :  { %v14775_v13 = vpop.eup %14774 }
 0xa87   :  { %12390 = vst [vmem:[#allocation18] sm:$0xff] %v14775_v13 }
 0xa88   :  { %14976 = shalt.err (!%p14973_p1)
}
 0xa89   :  { %s14977_s29 = scalar_lea.hbm %s15517_s9, 128 }
 0xa8a   :  { %p14978_p2 = scmp.ne.s32.totalorder %s15517_s9, %s14977_s29  ;;  %p14981_p3 = scmp.lt.u32.totalorder %s14977_s29, %s15517_s9 }
 0xa8c   :  { %p14983_p4 = pnand %p14981_p3, %p14978_p2 }
 0xa8e   :  { %14986 = shalt.err (!%p14983_p4)
}
 0xa8f   :  { %12400 = dma.vmem_to_hbm [thread:$0]  %s12398_s25, 128, %s15517_s9, [#allocation4]  }
 0xa90   :  { %14999 = dma.done.wait [#allocation4], 128  }
 0xa91   :  { %15000 = vsyncadd [#allocation4], 4294967168 }
 0xa92   :  { %12404 = vsyncpa [#allocation3], 1 }
 0xa93   :  { %12405 = vsyncpa [#allocation8], 1 }
 0xa94   :  { %12406 = vsyncpa [#allocation11], 1 }
 0xa95   :  { %12407 = vsyncpa [#allocation14], 1 }
 0xa96   :  { %12408 = vsyncpa [#allocation17], 1 }
 0xa97   :  { %12409 = vsyncpa [#allocation4], 1 }
 0xa98   :  { %12410 = vsyncpa [#allocation5], 1 }

</bundles_post_ra>
